<compile_context>
chip_gen: v6e
topology: v6e:2x2x1
jax: 0.10.0
libtpu: 0.0.40
codegen_flags: <defaults>
</compile_context>

<pallas_src>
import math

import jax
import jax.numpy as jnp
from jax.experimental import pallas as pl
from jax.experimental.pallas import tpu as pltpu


# ----------------------------------------------------------------------------
# Fused forward kernel.
# ----------------------------------------------------------------------------
def _make_kernel(H, W, Cin, Cmid, num_blocks, guass_key):
    HW = H * W
    two_pi = 2.0 * math.pi

    def make_conv(width, npix):
        """Builds conv(xs, wms, b, act) for channel-major images (C, npix),
        pixel index = y*width + x (row-major)."""
        col = jax.lax.broadcasted_iota(jnp.int32, (1, npix), 1) % width
        mask_l = col >= 1             # reading x-1 is in-bounds
        mask_r = col <= width - 2     # reading x+1 is in-bounds

        def shift2d(x, dy, dx):
            # s[c, y*width + x] = x[c, (y+dy)*width + (x+dx)], 0 outside the image.
            d = dy * width + dx
            c = x.shape[0]
            if d > 0:
                s = jnp.concatenate([x[:, d:], jnp.zeros((c, d), x.dtype)], axis=1)
            elif d < 0:
                s = jnp.concatenate([jnp.zeros((c, -d), x.dtype), x[:, :d]], axis=1)
            else:
                s = x
            if dx == -1:
                s = jnp.where(mask_l, s, 0.0)
            elif dx == 1:
                s = jnp.where(mask_r, s, 0.0)
            return s

        def im2col(x):
            # (C, npix) -> (9*C, npix); row order = (ky*3 + kx)*C + ci.
            slabs = [shift2d(x, ky - 1, kx - 1)
                     for ky in range(3) for kx in range(3)]
            return jnp.concatenate(slabs, axis=0)

        def conv(xs, wms, b, act=None):
            # xs: list of (C_i, npix); wms: list of (Cout, 9*C_i); b: (Cout, 1).
            acc = None
            for x, wm in zip(xs, wms):
                part = jnp.dot(wm, im2col(x), preferred_element_type=jnp.float32)
                acc = part if acc is None else acc + part
            y = acc + b
            if act == "relu":
                y = jnp.maximum(y, 0.0)
            elif act == "lrelu":
                y = jnp.where(y >= 0.0, y, 0.1 * y)
            return y

        return conv

    def kernel(*refs):
        lr_ref, gb_ref = refs[0], refs[1]
        out_ref = refs[-1]
        wrefs = refs[2:-1]
        cursor = [0]

        def nxt():
            r = wrefs[cursor[0]]
            cursor[0] += 1
            return r[...]

        conv = make_conv(W, HW)           # feature-map convs (H x W images)
        conv_mod = make_conv(H, H * H)    # modulation convs  (H x H images)

        x = lr_ref[0]                                       # (Cin, HW)

        # conv_first (no activation in the reference forward)
        feat = conv([x], [nxt()], nxt())

        # main: ResidualBlockNoBN x num_blocks (identity + conv2(relu(conv1(x))))
        for _ in range(num_blocks):
            h = conv([feat], [nxt()], nxt(), act="relu")
            feat = feat + conv([h], [nxt()], nxt())

        # GaussModulation stand-in on the constant ones*guass_key image.
        # TODO(synk): GaussModulation's exact definition is not in the reference
        # snippet; conv3x3(1->mid) -> LeakyReLU(0.1) -> conv3x3(mid->1) is a
        # plausible stand-in keeping modulation_block's dataflow.
        gk = jnp.full((1, H * H), guass_key, jnp.float32)
        gk = conv_mod([gk], [nxt()], nxt(), act="lrelu")
        gk = conv_mod([gk], [nxt()], nxt())                  # (1, H*H)

        # x_proj = (gauss_b * gauss_key_mod) @ (2*pi*feat), contracted over H,
        # done as a channel-batched matmul so everything stays channel-major.
        g = gb_ref[...] * gk.reshape(1, H, H)                # (1, H, H)
        g = jnp.broadcast_to(g, (Cmid, H, H))
        feat3 = (two_pi * feat).reshape(Cmid, H, W)
        xproj = jnp.einsum("cih,chw->ciw", g, feat3,
                           preferred_element_type=jnp.float32).reshape(Cmid, HW)
        sin_p = jnp.sin(xproj)
        cos_p = jnp.cos(xproj)

        # conv_middle over cat([sin, cos, feat], dim=1) as split-weight accumulation.
        feat_prop = conv([sin_p, cos_p, feat], [nxt(), nxt(), nxt()], nxt())

        # fusion over cat([feat_prop, feat], dim=1).
        feat = conv([feat_prop, feat], [nxt(), nxt()], nxt())

        # last_feature_extractor: ResidualBlockNoBN x num_blocks
        for _ in range(num_blocks):
            h = conv([feat], [nxt()], nxt(), act="relu")
            feat = feat + conv([h], [nxt()], nxt())

        out_ref[0] = feat.astype(out_ref.dtype)
        assert cursor[0] == len(wrefs), "weight list / kernel order mismatch"

    return kernel


# ----------------------------------------------------------------------------
# Weight preparation: PyTorch layout (Cout, Cin, 3, 3) -> im2col matrices.
# ----------------------------------------------------------------------------
def _to_mat(w):
    """(Cout, Cin, 3, 3) -> (Cout, 9*Cin); column order (ky*3+kx)*Cin + ci to
    match the in-kernel im2col row order."""
    cout, cin = w.shape[0], w.shape[1]
    return jnp.transpose(w, (0, 2, 3, 1)).reshape(cout, 9 * cin)


def _to_bias(b):
    return b.reshape(-1, 1)


def _flatten_weights(params, cmid):
    wl = []
    w, b = params["conv_first"]
    wl += [_to_mat(w), _to_bias(b)]
    for (w1, b1, w2, b2) in params["main"]:
        wl += [_to_mat(w1), _to_bias(b1), _to_mat(w2), _to_bias(b2)]
    w, b = params["mod_conv1"]
    wl += [_to_mat(w), _to_bias(b)]
    w, b = params["mod_conv2"]
    wl += [_to_mat(w), _to_bias(b)]
    w, b = params["conv_middle"]                  # (Cmid, 3*Cmid, 3, 3)
    wl += [_to_mat(w[:, 0:cmid]), _to_mat(w[:, cmid:2 * cmid]),
           _to_mat(w[:, 2 * cmid:3 * cmid]), _to_bias(b)]
    w, b = params["fusion"]                       # (Cmid, 2*Cmid, 3, 3)
    wl += [_to_mat(w[:, 0:cmid]), _to_mat(w[:, cmid:2 * cmid]), _to_bias(b)]
    for (w1, b1, w2, b2) in params["last"]:
        wl += [_to_mat(w1), _to_bias(b1), _to_mat(w2), _to_bias(b2)]
    return wl


# ----------------------------------------------------------------------------
# Forward wrapper: single pallas_call for the whole network.
# ----------------------------------------------------------------------------
def dft_feature_extractor(params, lr, gauss_b, guass_key=1.0):
    """lr: (N, Cin, H, W) NCHW (matches the PyTorch reference); gauss_b: (H, H)."""
    N, Cin, H, W = lr.shape
    Cmid = params["conv_first"][0].shape[0]
    num_blocks = len(params["main"])
    HW = H * W

    lr_cm = lr.reshape(N, Cin, HW)                 # channel-major, lane-dense
    gb = gauss_b.reshape(1, H, H)
    wlist = _flatten_weights(params, Cmid)

    kernel = _make_kernel(H, W, Cin, Cmid, num_blocks, guass_key)

    in_specs = [
        pl.BlockSpec((1, Cin, HW), lambda n: (n, 0, 0)),
        pl.BlockSpec((1, H, H), lambda n: (0, 0, 0)),
    ]
    in_specs += [pl.BlockSpec(w.shape, lambda n: (0, 0)) for w in wlist]

    def conv_flops(ci, co):
        return 2 * HW * 9 * ci * co

    flops = N * (conv_flops(Cin, Cmid)
                 + 4 * num_blocks * conv_flops(Cmid, Cmid)
                 + conv_flops(1, Cmid) + conv_flops(Cmid, 1)
                 + conv_flops(3 * Cmid, Cmid) + conv_flops(2 * Cmid, Cmid)
                 + 2 * Cmid * H * H * W)
    transcendentals = N * 2 * Cmid * HW
    bytes_accessed = 4 * (int(lr_cm.size) + int(gb.size)
                          + sum(int(w.size) for w in wlist) + N * Cmid * HW)

    out = pl.pallas_call(
        kernel,
        out_shape=jax.ShapeDtypeStruct((N, Cmid, HW), jnp.float32),
        grid=(N,),
        in_specs=in_specs,
        out_specs=pl.BlockSpec((1, Cmid, HW), lambda n: (n, 0, 0)),
        compiler_params=pltpu.CompilerParams(
            dimension_semantics=("parallel",)),
        cost_estimate=pl.CostEstimate(
            flops=flops, transcendentals=transcendentals,
            bytes_accessed=bytes_accessed),
    )(lr_cm, gb, *wlist)

    return out.reshape(N, Cmid, H, W)


# ----------------------------------------------------------------------------
# Parameters (deterministic synthetic init, PyTorch layer shapes).
# ----------------------------------------------------------------------------
def _conv_params(key, cin, cout, scale=0.1):
    w = jax.random.normal(key, (cout, cin, 3, 3), jnp.float32)
    w = w * (scale / math.sqrt(9.0 * cin))
    b = jnp.zeros((cout,), jnp.float32)
    return w, b


def init_params(key, in_channels=3, mid_channels=16, num_blocks=2):
    keys = jax.random.split(key, 6 + 4 * num_blocks)
    it = iter(keys)
    params = {}
    params["conv_first"] = _conv_params(next(it), in_channels, mid_channels)
    params["main"] = []
    for _ in range(num_blocks):
        w1, b1 = _conv_params(next(it), mid_channels, mid_channels)
        w2, b2 = _conv_params(next(it), mid_channels, mid_channels)
        params["main"].append((w1, b1, w2, b2))
    params["conv_middle"] = _conv_params(next(it), 3 * mid_channels, mid_channels)
    params["fusion"] = _conv_params(next(it), 2 * mid_channels, mid_channels)
    params["last"] = []
    for _ in range(num_blocks):
        w1, b1 = _conv_params(next(it), mid_channels, mid_channels)
        w2, b2 = _conv_params(next(it), mid_channels, mid_channels)
        params["last"].append((w1, b1, w2, b2))
    params["mod_conv1"] = _conv_params(next(it), 1, mid_channels)
    params["mod_conv2"] = _conv_params(next(it), mid_channels, 1)
    return params


if __name__ == "__main__":
    key = jax.random.PRNGKey(0)
    kp, kx, kg = jax.random.split(key, 3)

    in_channels, mid_channels, num_blocks = 3, 16, 2
    N, H, W = 2, 16, 16

    params = init_params(kp, in_channels, mid_channels, num_blocks)
    lr = jax.random.normal(kx, (N, in_channels, H, W), jnp.float32)
    # torch.randn((h, h)) generated inside forward, made an explicit deterministic input:
    gauss_b = jax.random.normal(kg, (H, H), jnp.float32)

    out = jax.jit(dft_feature_extractor)(params, lr, gauss_b)
    out = jax.block_until_ready(out)
    assert out.shape == (N, mid_channels, H, W)
    assert bool(jnp.all(jnp.isfinite(out)))
    print("KERNEL_OK")
</pallas_src>

<mosaic_0001>
module attributes {stable_mosaic.version = 11 : i64} {
  func.func @kernel(%arg0: i32, %arg1: memref<1x3x256xf32, #tpu.memory_space<vmem>>, %arg2: memref<1x16x16xf32, #tpu.memory_space<vmem>>, %arg3: memref<16x27xf32, #tpu.memory_space<vmem>>, %arg4: memref<16x1xf32, #tpu.memory_space<vmem>>, %arg5: memref<16x144xf32, #tpu.memory_space<vmem>>, %arg6: memref<16x1xf32, #tpu.memory_space<vmem>>, %arg7: memref<16x144xf32, #tpu.memory_space<vmem>>, %arg8: memref<16x1xf32, #tpu.memory_space<vmem>>, %arg9: memref<16x144xf32, #tpu.memory_space<vmem>>, %arg10: memref<16x1xf32, #tpu.memory_space<vmem>>, %arg11: memref<16x144xf32, #tpu.memory_space<vmem>>, %arg12: memref<16x1xf32, #tpu.memory_space<vmem>>, %arg13: memref<16x9xf32, #tpu.memory_space<vmem>>, %arg14: memref<16x1xf32, #tpu.memory_space<vmem>>, %arg15: memref<1x144xf32, #tpu.memory_space<vmem>>, %arg16: memref<1x1xf32, #tpu.memory_space<vmem>>, %arg17: memref<16x144xf32, #tpu.memory_space<vmem>>, %arg18: memref<16x144xf32, #tpu.memory_space<vmem>>, %arg19: memref<16x144xf32, #tpu.memory_space<vmem>>, %arg20: memref<16x1xf32, #tpu.memory_space<vmem>>, %arg21: memref<16x144xf32, #tpu.memory_space<vmem>>, %arg22: memref<16x144xf32, #tpu.memory_space<vmem>>, %arg23: memref<16x1xf32, #tpu.memory_space<vmem>>, %arg24: memref<16x144xf32, #tpu.memory_space<vmem>>, %arg25: memref<16x1xf32, #tpu.memory_space<vmem>>, %arg26: memref<16x144xf32, #tpu.memory_space<vmem>>, %arg27: memref<16x1xf32, #tpu.memory_space<vmem>>, %arg28: memref<16x144xf32, #tpu.memory_space<vmem>>, %arg29: memref<16x1xf32, #tpu.memory_space<vmem>>, %arg30: memref<16x144xf32, #tpu.memory_space<vmem>>, %arg31: memref<16x1xf32, #tpu.memory_space<vmem>>, %arg32: memref<1x16x256xf32, #tpu.memory_space<vmem>>) attributes {dimension_semantics = [#tpu.dimension_semantics<parallel>], iteration_bounds = array<i64: 2>, scalar_prefetch = 0 : i64, scratch_operands = 0 : i64, tpu.core_type = #tpu.core_type<tc>, window_params = [{transform_indices = @transform_0, window_bounds = array<i64: 1, 3, 256>}, {pipeline_mode = #tpu.pipeline_mode<synchronous>, transform_indices = @transform_1, window_bounds = array<i64: 1, 16, 16>}, {pipeline_mode = #tpu.pipeline_mode<synchronous>, transform_indices = @transform_2, window_bounds = array<i64: 16, 27>}, {pipeline_mode = #tpu.pipeline_mode<synchronous>, transform_indices = @transform_3, window_bounds = array<i64: 16, 1>}, {pipeline_mode = #tpu.pipeline_mode<synchronous>, transform_indices = @transform_4, window_bounds = array<i64: 16, 144>}, {pipeline_mode = #tpu.pipeline_mode<synchronous>, transform_indices = @transform_5, window_bounds = array<i64: 16, 1>}, {pipeline_mode = #tpu.pipeline_mode<synchronous>, transform_indices = @transform_6, window_bounds = array<i64: 16, 144>}, {pipeline_mode = #tpu.pipeline_mode<synchronous>, transform_indices = @transform_7, window_bounds = array<i64: 16, 1>}, {pipeline_mode = #tpu.pipeline_mode<synchronous>, transform_indices = @transform_8, window_bounds = array<i64: 16, 144>}, {pipeline_mode = #tpu.pipeline_mode<synchronous>, transform_indices = @transform_9, window_bounds = array<i64: 16, 1>}, {pipeline_mode = #tpu.pipeline_mode<synchronous>, transform_indices = @transform_10, window_bounds = array<i64: 16, 144>}, {pipeline_mode = #tpu.pipeline_mode<synchronous>, transform_indices = @transform_11, window_bounds = array<i64: 16, 1>}, {pipeline_mode = #tpu.pipeline_mode<synchronous>, transform_indices = @transform_12, window_bounds = array<i64: 16, 9>}, {pipeline_mode = #tpu.pipeline_mode<synchronous>, transform_indices = @transform_13, window_bounds = array<i64: 16, 1>}, {pipeline_mode = #tpu.pipeline_mode<synchronous>, transform_indices = @transform_14, window_bounds = array<i64: 1, 144>}, {pipeline_mode = #tpu.pipeline_mode<synchronous>, transform_indices = @transform_15, window_bounds = array<i64: 1, 1>}, {pipeline_mode = #tpu.pipeline_mode<synchronous>, transform_indices = @transform_16, window_bounds = array<i64: 16, 144>}, {pipeline_mode = #tpu.pipeline_mode<synchronous>, transform_indices = @transform_17, window_bounds = array<i64: 16, 144>}, {pipeline_mode = #tpu.pipeline_mode<synchronous>, transform_indices = @transform_18, window_bounds = array<i64: 16, 144>}, {pipeline_mode = #tpu.pipeline_mode<synchronous>, transform_indices = @transform_19, window_bounds = array<i64: 16, 1>}, {pipeline_mode = #tpu.pipeline_mode<synchronous>, transform_indices = @transform_20, window_bounds = array<i64: 16, 144>}, {pipeline_mode = #tpu.pipeline_mode<synchronous>, transform_indices = @transform_21, window_bounds = array<i64: 16, 144>}, {pipeline_mode = #tpu.pipeline_mode<synchronous>, transform_indices = @transform_22, window_bounds = array<i64: 16, 1>}, {pipeline_mode = #tpu.pipeline_mode<synchronous>, transform_indices = @transform_23, window_bounds = array<i64: 16, 144>}, {pipeline_mode = #tpu.pipeline_mode<synchronous>, transform_indices = @transform_24, window_bounds = array<i64: 16, 1>}, {pipeline_mode = #tpu.pipeline_mode<synchronous>, transform_indices = @transform_25, window_bounds = array<i64: 16, 144>}, {pipeline_mode = #tpu.pipeline_mode<synchronous>, transform_indices = @transform_26, window_bounds = array<i64: 16, 1>}, {pipeline_mode = #tpu.pipeline_mode<synchronous>, transform_indices = @transform_27, window_bounds = array<i64: 16, 144>}, {pipeline_mode = #tpu.pipeline_mode<synchronous>, transform_indices = @transform_28, window_bounds = array<i64: 16, 1>}, {pipeline_mode = #tpu.pipeline_mode<synchronous>, transform_indices = @transform_29, window_bounds = array<i64: 16, 144>}, {pipeline_mode = #tpu.pipeline_mode<synchronous>, transform_indices = @transform_30, window_bounds = array<i64: 16, 1>}, {transform_indices = @transform_31, window_bounds = array<i64: 1, 16, 256>}]} {
    %0 = tpu.iota {dimensions = array<i32: 1>} : vector<1x256xi32>
    %c16_i32 = arith.constant 16 : i32
    %c0_i32 = arith.constant 0 : i32
    %1 = arith.cmpi eq, %c16_i32, %c0_i32 : i32
    %c1_i32 = arith.constant 1 : i32
    %2 = arith.select %1, %c1_i32, %c16_i32 : i32
    %3 = vector.broadcast %2 : i32 to vector<1x256xi32>
    %4 = arith.remsi %0, %3 : vector<1x256xi32>
    %c0_i32_0 = arith.constant 0 : i32
    %5 = vector.broadcast %c0_i32_0 : i32 to vector<1x256xi32>
    %6 = arith.cmpi ne, %4, %5 : vector<1x256xi32>
    %c0_i32_1 = arith.constant 0 : i32
    %7 = vector.broadcast %c0_i32_1 : i32 to vector<1x256xi32>
    %8 = arith.cmpi slt, %4, %7 : vector<1x256xi32>
    %c0_i32_2 = arith.constant 0 : i32
    %9 = arith.cmpi slt, %2, %c0_i32_2 : i32
    %10 = vector.broadcast %9 : i1 to vector<1x256xi1>
    %11 = vector.broadcast %10 : vector<1x256xi1> to vector<1x256xi1>
    %12 = arith.xori %8, %11 : vector<1x256xi1>
    %13 = arith.andi %12, %6 : vector<1x256xi1>
    %14 = vector.broadcast %2 : i32 to vector<1x256xi32>
    %15 = arith.addi %4, %14 : vector<1x256xi32>
    %16 = arith.select %13, %15, %4 : vector<1x256xi1>, vector<1x256xi32>
    %c1_i32_3 = arith.constant 1 : i32
    %17 = vector.broadcast %c1_i32_3 : i32 to vector<1x256xi32>
    %18 = arith.cmpi sge, %16, %17 : vector<1x256xi32>
    %c14_i32 = arith.constant 14 : i32
    %19 = vector.broadcast %c14_i32 : i32 to vector<1x256xi32>
    %20 = arith.cmpi sle, %16, %19 : vector<1x256xi32>
    %21 = tpu.iota {dimensions = array<i32: 1>} : vector<1x256xi32>
    %c16_i32_4 = arith.constant 16 : i32
    %c0_i32_5 = arith.constant 0 : i32
    %22 = arith.cmpi eq, %c16_i32_4, %c0_i32_5 : i32
    %c1_i32_6 = arith.constant 1 : i32
    %23 = arith.select %22, %c1_i32_6, %c16_i32_4 : i32
    %24 = vector.broadcast %23 : i32 to vector<1x256xi32>
    %25 = arith.remsi %21, %24 : vector<1x256xi32>
    %c0_i32_7 = arith.constant 0 : i32
    %26 = vector.broadcast %c0_i32_7 : i32 to vector<1x256xi32>
    %27 = arith.cmpi ne, %25, %26 : vector<1x256xi32>
    %c0_i32_8 = arith.constant 0 : i32
    %28 = vector.broadcast %c0_i32_8 : i32 to vector<1x256xi32>
    %29 = arith.cmpi slt, %25, %28 : vector<1x256xi32>
    %c0_i32_9 = arith.constant 0 : i32
    %30 = arith.cmpi slt, %23, %c0_i32_9 : i32
    %31 = vector.broadcast %30 : i1 to vector<1x256xi1>
    %32 = vector.broadcast %31 : vector<1x256xi1> to vector<1x256xi1>
    %33 = arith.xori %29, %32 : vector<1x256xi1>
    %34 = arith.andi %33, %27 : vector<1x256xi1>
    %35 = vector.broadcast %23 : i32 to vector<1x256xi32>
    %36 = arith.addi %25, %35 : vector<1x256xi32>
    %37 = arith.select %34, %36, %25 : vector<1x256xi1>, vector<1x256xi32>
    %c1_i32_10 = arith.constant 1 : i32
    %38 = vector.broadcast %c1_i32_10 : i32 to vector<1x256xi32>
    %39 = arith.cmpi sge, %37, %38 : vector<1x256xi32>
    %c14_i32_11 = arith.constant 14 : i32
    %40 = vector.broadcast %c14_i32_11 : i32 to vector<1x256xi32>
    %41 = arith.cmpi sle, %37, %40 : vector<1x256xi32>
    %c0 = arith.constant 0 : index
    %c0_12 = arith.constant 0 : index
    %c0_13 = arith.constant 0 : index
    %42 = vector.load %arg1[%c0, %c0_12, %c0_13] : memref<1x3x256xf32, #tpu.memory_space<vmem>>, vector<1x3x256xf32>
    %43 = vector.shape_cast %42 : vector<1x3x256xf32> to vector<3x256xf32>
    %c0_14 = arith.constant 0 : index
    %c0_15 = arith.constant 0 : index
    %44 = vector.load %arg3[%c0_14, %c0_15] : memref<16x27xf32, #tpu.memory_space<vmem>>, vector<16x27xf32>
    %c0_16 = arith.constant 0 : index
    %c0_17 = arith.constant 0 : index
    %45 = vector.load %arg4[%c0_16, %c0_17] : memref<16x1xf32, #tpu.memory_space<vmem>>, vector<16x1xf32>
    %cst = arith.constant 0.000000e+00 : f32
    %46 = vector.broadcast %cst : f32 to vector<3x17xf32>
    %47 = vector.extract_strided_slice %43 {offsets = [0, 0], sizes = [3, 239], strides = [1, 1]} : vector<3x256xf32> to vector<3x239xf32>
    %48 = tpu.concatenate %46, %47 in 1 : vector<3x17xf32>, vector<3x239xf32> -> vector<3x256xf32>
    %cst_18 = arith.constant 0.000000e+00 : f32
    %49 = vector.shape_cast %18 : vector<1x256xi1> to vector<1x256xi1>
    %50 = vector.broadcast %49 : vector<1x256xi1> to vector<3x256xi1>
    %51 = vector.broadcast %cst_18 : f32 to vector<3x256xf32>
    %52 = arith.select %50, %48, %51 : vector<3x256xi1>, vector<3x256xf32>
    %cst_19 = arith.constant 0.000000e+00 : f32
    %53 = vector.broadcast %cst_19 : f32 to vector<3x16xf32>
    %54 = vector.extract_strided_slice %43 {offsets = [0, 0], sizes = [3, 240], strides = [1, 1]} : vector<3x256xf32> to vector<3x240xf32>
    %55 = tpu.concatenate %53, %54 in 1 : vector<3x16xf32>, vector<3x240xf32> -> vector<3x256xf32>
    %cst_20 = arith.constant 0.000000e+00 : f32
    %56 = vector.broadcast %cst_20 : f32 to vector<3x15xf32>
    %57 = vector.extract_strided_slice %43 {offsets = [0, 0], sizes = [3, 241], strides = [1, 1]} : vector<3x256xf32> to vector<3x241xf32>
    %58 = tpu.concatenate %56, %57 in 1 : vector<3x15xf32>, vector<3x241xf32> -> vector<3x256xf32>
    %cst_21 = arith.constant 0.000000e+00 : f32
    %59 = vector.shape_cast %20 : vector<1x256xi1> to vector<1x256xi1>
    %60 = vector.broadcast %59 : vector<1x256xi1> to vector<3x256xi1>
    %61 = vector.broadcast %cst_21 : f32 to vector<3x256xf32>
    %62 = arith.select %60, %58, %61 : vector<3x256xi1>, vector<3x256xf32>
    %cst_22 = arith.constant 0.000000e+00 : f32
    %63 = vector.broadcast %cst_22 : f32 to vector<3x1xf32>
    %64 = vector.extract_strided_slice %43 {offsets = [0, 0], sizes = [3, 255], strides = [1, 1]} : vector<3x256xf32> to vector<3x255xf32>
    %65 = tpu.concatenate %63, %64 in 1 : vector<3x1xf32>, vector<3x255xf32> -> vector<3x256xf32>
    %cst_23 = arith.constant 0.000000e+00 : f32
    %66 = vector.shape_cast %18 : vector<1x256xi1> to vector<1x256xi1>
    %67 = vector.broadcast %66 : vector<1x256xi1> to vector<3x256xi1>
    %68 = vector.broadcast %cst_23 : f32 to vector<3x256xf32>
    %69 = arith.select %67, %65, %68 : vector<3x256xi1>, vector<3x256xf32>
    %70 = vector.extract_strided_slice %43 {offsets = [0, 1], sizes = [3, 255], strides = [1, 1]} : vector<3x256xf32> to vector<3x255xf32>
    %cst_24 = arith.constant 0.000000e+00 : f32
    %71 = vector.broadcast %cst_24 : f32 to vector<3x1xf32>
    %72 = tpu.concatenate %70, %71 in 1 : vector<3x255xf32>, vector<3x1xf32> -> vector<3x256xf32>
    %cst_25 = arith.constant 0.000000e+00 : f32
    %73 = vector.shape_cast %20 : vector<1x256xi1> to vector<1x256xi1>
    %74 = vector.broadcast %73 : vector<1x256xi1> to vector<3x256xi1>
    %75 = vector.broadcast %cst_25 : f32 to vector<3x256xf32>
    %76 = arith.select %74, %72, %75 : vector<3x256xi1>, vector<3x256xf32>
    %77 = vector.extract_strided_slice %43 {offsets = [0, 15], sizes = [3, 241], strides = [1, 1]} : vector<3x256xf32> to vector<3x241xf32>
    %cst_26 = arith.constant 0.000000e+00 : f32
    %78 = vector.broadcast %cst_26 : f32 to vector<3x15xf32>
    %79 = tpu.concatenate %77, %78 in 1 : vector<3x241xf32>, vector<3x15xf32> -> vector<3x256xf32>
    %cst_27 = arith.constant 0.000000e+00 : f32
    %80 = vector.shape_cast %18 : vector<1x256xi1> to vector<1x256xi1>
    %81 = vector.broadcast %80 : vector<1x256xi1> to vector<3x256xi1>
    %82 = vector.broadcast %cst_27 : f32 to vector<3x256xf32>
    %83 = arith.select %81, %79, %82 : vector<3x256xi1>, vector<3x256xf32>
    %84 = vector.extract_strided_slice %43 {offsets = [0, 16], sizes = [3, 240], strides = [1, 1]} : vector<3x256xf32> to vector<3x240xf32>
    %cst_28 = arith.constant 0.000000e+00 : f32
    %85 = vector.broadcast %cst_28 : f32 to vector<3x16xf32>
    %86 = tpu.concatenate %84, %85 in 1 : vector<3x240xf32>, vector<3x16xf32> -> vector<3x256xf32>
    %87 = vector.extract_strided_slice %43 {offsets = [0, 17], sizes = [3, 239], strides = [1, 1]} : vector<3x256xf32> to vector<3x239xf32>
    %cst_29 = arith.constant 0.000000e+00 : f32
    %88 = vector.broadcast %cst_29 : f32 to vector<3x17xf32>
    %89 = tpu.concatenate %87, %88 in 1 : vector<3x239xf32>, vector<3x17xf32> -> vector<3x256xf32>
    %cst_30 = arith.constant 0.000000e+00 : f32
    %90 = vector.shape_cast %20 : vector<1x256xi1> to vector<1x256xi1>
    %91 = vector.broadcast %90 : vector<1x256xi1> to vector<3x256xi1>
    %92 = vector.broadcast %cst_30 : f32 to vector<3x256xf32>
    %93 = arith.select %91, %89, %92 : vector<3x256xi1>, vector<3x256xf32>
    %94 = tpu.concatenate %52, %55, %62, %69, %43, %76, %83, %86, %93 in 0 : vector<3x256xf32>, vector<3x256xf32>, vector<3x256xf32>, vector<3x256xf32>, vector<3x256xf32>, vector<3x256xf32>, vector<3x256xf32>, vector<3x256xf32>, vector<3x256xf32> -> vector<27x256xf32>
    %cst_31 = arith.constant dense<0.000000e+00> : vector<16x256xf32>
    %95 = tpu.matmul %44, %94, %cst_31 {dimension_numbers = #tpu.dot_dimension_numbers<[1], [0], [0], [1], [0, 0, 1, 1], [], []>} : vector<16x27xf32>, vector<27x256xf32>, vector<16x256xf32> -> vector<16x256xf32>
    %96 = vector.broadcast %45 : vector<16x1xf32> to vector<16x256xf32>
    %97 = arith.addf %95, %96 : vector<16x256xf32>
    %c0_32 = arith.constant 0 : index
    %c0_33 = arith.constant 0 : index
    %98 = vector.load %arg5[%c0_32, %c0_33] : memref<16x144xf32, #tpu.memory_space<vmem>>, vector<16x144xf32>
    %c0_34 = arith.constant 0 : index
    %c0_35 = arith.constant 0 : index
    %99 = vector.load %arg6[%c0_34, %c0_35] : memref<16x1xf32, #tpu.memory_space<vmem>>, vector<16x1xf32>
    %cst_36 = arith.constant 0.000000e+00 : f32
    %100 = vector.broadcast %cst_36 : f32 to vector<16x17xf32>
    %101 = vector.extract_strided_slice %97 {offsets = [0, 0], sizes = [16, 239], strides = [1, 1]} : vector<16x256xf32> to vector<16x239xf32>
    %102 = tpu.concatenate %100, %101 in 1 : vector<16x17xf32>, vector<16x239xf32> -> vector<16x256xf32>
    %cst_37 = arith.constant 0.000000e+00 : f32
    %103 = vector.shape_cast %18 : vector<1x256xi1> to vector<1x256xi1>
    %104 = vector.broadcast %103 : vector<1x256xi1> to vector<16x256xi1>
    %105 = vector.broadcast %cst_37 : f32 to vector<16x256xf32>
    %106 = arith.select %104, %102, %105 : vector<16x256xi1>, vector<16x256xf32>
    %cst_38 = arith.constant 0.000000e+00 : f32
    %107 = vector.broadcast %cst_38 : f32 to vector<16x16xf32>
    %108 = vector.extract_strided_slice %97 {offsets = [0, 0], sizes = [16, 240], strides = [1, 1]} : vector<16x256xf32> to vector<16x240xf32>
    %109 = tpu.concatenate %107, %108 in 1 : vector<16x16xf32>, vector<16x240xf32> -> vector<16x256xf32>
    %cst_39 = arith.constant 0.000000e+00 : f32
    %110 = vector.broadcast %cst_39 : f32 to vector<16x15xf32>
    %111 = vector.extract_strided_slice %97 {offsets = [0, 0], sizes = [16, 241], strides = [1, 1]} : vector<16x256xf32> to vector<16x241xf32>
    %112 = tpu.concatenate %110, %111 in 1 : vector<16x15xf32>, vector<16x241xf32> -> vector<16x256xf32>
    %cst_40 = arith.constant 0.000000e+00 : f32
    %113 = vector.shape_cast %20 : vector<1x256xi1> to vector<1x256xi1>
    %114 = vector.broadcast %113 : vector<1x256xi1> to vector<16x256xi1>
    %115 = vector.broadcast %cst_40 : f32 to vector<16x256xf32>
    %116 = arith.select %114, %112, %115 : vector<16x256xi1>, vector<16x256xf32>
    %cst_41 = arith.constant 0.000000e+00 : f32
    %117 = vector.broadcast %cst_41 : f32 to vector<16x1xf32>
    %118 = vector.extract_strided_slice %97 {offsets = [0, 0], sizes = [16, 255], strides = [1, 1]} : vector<16x256xf32> to vector<16x255xf32>
    %119 = tpu.concatenate %117, %118 in 1 : vector<16x1xf32>, vector<16x255xf32> -> vector<16x256xf32>
    %cst_42 = arith.constant 0.000000e+00 : f32
    %120 = vector.shape_cast %18 : vector<1x256xi1> to vector<1x256xi1>
    %121 = vector.broadcast %120 : vector<1x256xi1> to vector<16x256xi1>
    %122 = vector.broadcast %cst_42 : f32 to vector<16x256xf32>
    %123 = arith.select %121, %119, %122 : vector<16x256xi1>, vector<16x256xf32>
    %124 = vector.extract_strided_slice %97 {offsets = [0, 1], sizes = [16, 255], strides = [1, 1]} : vector<16x256xf32> to vector<16x255xf32>
    %cst_43 = arith.constant 0.000000e+00 : f32
    %125 = vector.broadcast %cst_43 : f32 to vector<16x1xf32>
    %126 = tpu.concatenate %124, %125 in 1 : vector<16x255xf32>, vector<16x1xf32> -> vector<16x256xf32>
    %cst_44 = arith.constant 0.000000e+00 : f32
    %127 = vector.shape_cast %20 : vector<1x256xi1> to vector<1x256xi1>
    %128 = vector.broadcast %127 : vector<1x256xi1> to vector<16x256xi1>
    %129 = vector.broadcast %cst_44 : f32 to vector<16x256xf32>
    %130 = arith.select %128, %126, %129 : vector<16x256xi1>, vector<16x256xf32>
    %131 = vector.extract_strided_slice %97 {offsets = [0, 15], sizes = [16, 241], strides = [1, 1]} : vector<16x256xf32> to vector<16x241xf32>
    %cst_45 = arith.constant 0.000000e+00 : f32
    %132 = vector.broadcast %cst_45 : f32 to vector<16x15xf32>
    %133 = tpu.concatenate %131, %132 in 1 : vector<16x241xf32>, vector<16x15xf32> -> vector<16x256xf32>
    %cst_46 = arith.constant 0.000000e+00 : f32
    %134 = vector.shape_cast %18 : vector<1x256xi1> to vector<1x256xi1>
    %135 = vector.broadcast %134 : vector<1x256xi1> to vector<16x256xi1>
    %136 = vector.broadcast %cst_46 : f32 to vector<16x256xf32>
    %137 = arith.select %135, %133, %136 : vector<16x256xi1>, vector<16x256xf32>
    %138 = vector.extract_strided_slice %97 {offsets = [0, 16], sizes = [16, 240], strides = [1, 1]} : vector<16x256xf32> to vector<16x240xf32>
    %cst_47 = arith.constant 0.000000e+00 : f32
    %139 = vector.broadcast %cst_47 : f32 to vector<16x16xf32>
    %140 = tpu.concatenate %138, %139 in 1 : vector<16x240xf32>, vector<16x16xf32> -> vector<16x256xf32>
    %141 = vector.extract_strided_slice %97 {offsets = [0, 17], sizes = [16, 239], strides = [1, 1]} : vector<16x256xf32> to vector<16x239xf32>
    %cst_48 = arith.constant 0.000000e+00 : f32
    %142 = vector.broadcast %cst_48 : f32 to vector<16x17xf32>
    %143 = tpu.concatenate %141, %142 in 1 : vector<16x239xf32>, vector<16x17xf32> -> vector<16x256xf32>
    %cst_49 = arith.constant 0.000000e+00 : f32
    %144 = vector.shape_cast %20 : vector<1x256xi1> to vector<1x256xi1>
    %145 = vector.broadcast %144 : vector<1x256xi1> to vector<16x256xi1>
    %146 = vector.broadcast %cst_49 : f32 to vector<16x256xf32>
    %147 = arith.select %145, %143, %146 : vector<16x256xi1>, vector<16x256xf32>
    %148 = tpu.concatenate %106, %109, %116, %123, %97, %130, %137, %140, %147 in 0 : vector<16x256xf32>, vector<16x256xf32>, vector<16x256xf32>, vector<16x256xf32>, vector<16x256xf32>, vector<16x256xf32>, vector<16x256xf32>, vector<16x256xf32>, vector<16x256xf32> -> vector<144x256xf32>
    %cst_50 = arith.constant dense<0.000000e+00> : vector<16x256xf32>
    %149 = tpu.matmul %98, %148, %cst_50 {dimension_numbers = #tpu.dot_dimension_numbers<[1], [0], [0], [1], [0, 0, 1, 1], [], []>} : vector<16x144xf32>, vector<144x256xf32>, vector<16x256xf32> -> vector<16x256xf32>
    %150 = vector.broadcast %99 : vector<16x1xf32> to vector<16x256xf32>
    %151 = arith.addf %149, %150 : vector<16x256xf32>
    %cst_51 = arith.constant 0.000000e+00 : f32
    %152 = vector.broadcast %cst_51 : f32 to vector<16x256xf32>
    %153 = arith.maximumf %151, %152 : vector<16x256xf32>
    %c0_52 = arith.constant 0 : index
    %c0_53 = arith.constant 0 : index
    %154 = vector.load %arg7[%c0_52, %c0_53] : memref<16x144xf32, #tpu.memory_space<vmem>>, vector<16x144xf32>
    %c0_54 = arith.constant 0 : index
    %c0_55 = arith.constant 0 : index
    %155 = vector.load %arg8[%c0_54, %c0_55] : memref<16x1xf32, #tpu.memory_space<vmem>>, vector<16x1xf32>
    %cst_56 = arith.constant 0.000000e+00 : f32
    %156 = vector.broadcast %cst_56 : f32 to vector<16x17xf32>
    %157 = vector.extract_strided_slice %153 {offsets = [0, 0], sizes = [16, 239], strides = [1, 1]} : vector<16x256xf32> to vector<16x239xf32>
    %158 = tpu.concatenate %156, %157 in 1 : vector<16x17xf32>, vector<16x239xf32> -> vector<16x256xf32>
    %cst_57 = arith.constant 0.000000e+00 : f32
    %159 = vector.shape_cast %18 : vector<1x256xi1> to vector<1x256xi1>
    %160 = vector.broadcast %159 : vector<1x256xi1> to vector<16x256xi1>
    %161 = vector.broadcast %cst_57 : f32 to vector<16x256xf32>
    %162 = arith.select %160, %158, %161 : vector<16x256xi1>, vector<16x256xf32>
    %cst_58 = arith.constant 0.000000e+00 : f32
    %163 = vector.broadcast %cst_58 : f32 to vector<16x16xf32>
    %164 = vector.extract_strided_slice %153 {offsets = [0, 0], sizes = [16, 240], strides = [1, 1]} : vector<16x256xf32> to vector<16x240xf32>
    %165 = tpu.concatenate %163, %164 in 1 : vector<16x16xf32>, vector<16x240xf32> -> vector<16x256xf32>
    %cst_59 = arith.constant 0.000000e+00 : f32
    %166 = vector.broadcast %cst_59 : f32 to vector<16x15xf32>
    %167 = vector.extract_strided_slice %153 {offsets = [0, 0], sizes = [16, 241], strides = [1, 1]} : vector<16x256xf32> to vector<16x241xf32>
    %168 = tpu.concatenate %166, %167 in 1 : vector<16x15xf32>, vector<16x241xf32> -> vector<16x256xf32>
    %cst_60 = arith.constant 0.000000e+00 : f32
    %169 = vector.shape_cast %20 : vector<1x256xi1> to vector<1x256xi1>
    %170 = vector.broadcast %169 : vector<1x256xi1> to vector<16x256xi1>
    %171 = vector.broadcast %cst_60 : f32 to vector<16x256xf32>
    %172 = arith.select %170, %168, %171 : vector<16x256xi1>, vector<16x256xf32>
    %cst_61 = arith.constant 0.000000e+00 : f32
    %173 = vector.broadcast %cst_61 : f32 to vector<16x1xf32>
    %174 = vector.extract_strided_slice %153 {offsets = [0, 0], sizes = [16, 255], strides = [1, 1]} : vector<16x256xf32> to vector<16x255xf32>
    %175 = tpu.concatenate %173, %174 in 1 : vector<16x1xf32>, vector<16x255xf32> -> vector<16x256xf32>
    %cst_62 = arith.constant 0.000000e+00 : f32
    %176 = vector.shape_cast %18 : vector<1x256xi1> to vector<1x256xi1>
    %177 = vector.broadcast %176 : vector<1x256xi1> to vector<16x256xi1>
    %178 = vector.broadcast %cst_62 : f32 to vector<16x256xf32>
    %179 = arith.select %177, %175, %178 : vector<16x256xi1>, vector<16x256xf32>
    %180 = vector.extract_strided_slice %153 {offsets = [0, 1], sizes = [16, 255], strides = [1, 1]} : vector<16x256xf32> to vector<16x255xf32>
    %cst_63 = arith.constant 0.000000e+00 : f32
    %181 = vector.broadcast %cst_63 : f32 to vector<16x1xf32>
    %182 = tpu.concatenate %180, %181 in 1 : vector<16x255xf32>, vector<16x1xf32> -> vector<16x256xf32>
    %cst_64 = arith.constant 0.000000e+00 : f32
    %183 = vector.shape_cast %20 : vector<1x256xi1> to vector<1x256xi1>
    %184 = vector.broadcast %183 : vector<1x256xi1> to vector<16x256xi1>
    %185 = vector.broadcast %cst_64 : f32 to vector<16x256xf32>
    %186 = arith.select %184, %182, %185 : vector<16x256xi1>, vector<16x256xf32>
    %187 = vector.extract_strided_slice %153 {offsets = [0, 15], sizes = [16, 241], strides = [1, 1]} : vector<16x256xf32> to vector<16x241xf32>
    %cst_65 = arith.constant 0.000000e+00 : f32
    %188 = vector.broadcast %cst_65 : f32 to vector<16x15xf32>
    %189 = tpu.concatenate %187, %188 in 1 : vector<16x241xf32>, vector<16x15xf32> -> vector<16x256xf32>
    %cst_66 = arith.constant 0.000000e+00 : f32
    %190 = vector.shape_cast %18 : vector<1x256xi1> to vector<1x256xi1>
    %191 = vector.broadcast %190 : vector<1x256xi1> to vector<16x256xi1>
    %192 = vector.broadcast %cst_66 : f32 to vector<16x256xf32>
    %193 = arith.select %191, %189, %192 : vector<16x256xi1>, vector<16x256xf32>
    %194 = vector.extract_strided_slice %153 {offsets = [0, 16], sizes = [16, 240], strides = [1, 1]} : vector<16x256xf32> to vector<16x240xf32>
    %cst_67 = arith.constant 0.000000e+00 : f32
    %195 = vector.broadcast %cst_67 : f32 to vector<16x16xf32>
    %196 = tpu.concatenate %194, %195 in 1 : vector<16x240xf32>, vector<16x16xf32> -> vector<16x256xf32>
    %197 = vector.extract_strided_slice %153 {offsets = [0, 17], sizes = [16, 239], strides = [1, 1]} : vector<16x256xf32> to vector<16x239xf32>
    %cst_68 = arith.constant 0.000000e+00 : f32
    %198 = vector.broadcast %cst_68 : f32 to vector<16x17xf32>
    %199 = tpu.concatenate %197, %198 in 1 : vector<16x239xf32>, vector<16x17xf32> -> vector<16x256xf32>
    %cst_69 = arith.constant 0.000000e+00 : f32
    %200 = vector.shape_cast %20 : vector<1x256xi1> to vector<1x256xi1>
    %201 = vector.broadcast %200 : vector<1x256xi1> to vector<16x256xi1>
    %202 = vector.broadcast %cst_69 : f32 to vector<16x256xf32>
    %203 = arith.select %201, %199, %202 : vector<16x256xi1>, vector<16x256xf32>
    %204 = tpu.concatenate %162, %165, %172, %179, %153, %186, %193, %196, %203 in 0 : vector<16x256xf32>, vector<16x256xf32>, vector<16x256xf32>, vector<16x256xf32>, vector<16x256xf32>, vector<16x256xf32>, vector<16x256xf32>, vector<16x256xf32>, vector<16x256xf32> -> vector<144x256xf32>
    %cst_70 = arith.constant dense<0.000000e+00> : vector<16x256xf32>
    %205 = tpu.matmul %154, %204, %cst_70 {dimension_numbers = #tpu.dot_dimension_numbers<[1], [0], [0], [1], [0, 0, 1, 1], [], []>} : vector<16x144xf32>, vector<144x256xf32>, vector<16x256xf32> -> vector<16x256xf32>
    %206 = vector.broadcast %155 : vector<16x1xf32> to vector<16x256xf32>
    %207 = arith.addf %205, %206 : vector<16x256xf32>
    %208 = arith.addf %97, %207 : vector<16x256xf32>
    %c0_71 = arith.constant 0 : index
    %c0_72 = arith.constant 0 : index
    %209 = vector.load %arg9[%c0_71, %c0_72] : memref<16x144xf32, #tpu.memory_space<vmem>>, vector<16x144xf32>
    %c0_73 = arith.constant 0 : index
    %c0_74 = arith.constant 0 : index
    %210 = vector.load %arg10[%c0_73, %c0_74] : memref<16x1xf32, #tpu.memory_space<vmem>>, vector<16x1xf32>
    %cst_75 = arith.constant 0.000000e+00 : f32
    %211 = vector.broadcast %cst_75 : f32 to vector<16x17xf32>
    %212 = vector.extract_strided_slice %208 {offsets = [0, 0], sizes = [16, 239], strides = [1, 1]} : vector<16x256xf32> to vector<16x239xf32>
    %213 = tpu.concatenate %211, %212 in 1 : vector<16x17xf32>, vector<16x239xf32> -> vector<16x256xf32>
    %cst_76 = arith.constant 0.000000e+00 : f32
    %214 = vector.shape_cast %18 : vector<1x256xi1> to vector<1x256xi1>
    %215 = vector.broadcast %214 : vector<1x256xi1> to vector<16x256xi1>
    %216 = vector.broadcast %cst_76 : f32 to vector<16x256xf32>
    %217 = arith.select %215, %213, %216 : vector<16x256xi1>, vector<16x256xf32>
    %cst_77 = arith.constant 0.000000e+00 : f32
    %218 = vector.broadcast %cst_77 : f32 to vector<16x16xf32>
    %219 = vector.extract_strided_slice %208 {offsets = [0, 0], sizes = [16, 240], strides = [1, 1]} : vector<16x256xf32> to vector<16x240xf32>
    %220 = tpu.concatenate %218, %219 in 1 : vector<16x16xf32>, vector<16x240xf32> -> vector<16x256xf32>
    %cst_78 = arith.constant 0.000000e+00 : f32
    %221 = vector.broadcast %cst_78 : f32 to vector<16x15xf32>
    %222 = vector.extract_strided_slice %208 {offsets = [0, 0], sizes = [16, 241], strides = [1, 1]} : vector<16x256xf32> to vector<16x241xf32>
    %223 = tpu.concatenate %221, %222 in 1 : vector<16x15xf32>, vector<16x241xf32> -> vector<16x256xf32>
    %cst_79 = arith.constant 0.000000e+00 : f32
    %224 = vector.shape_cast %20 : vector<1x256xi1> to vector<1x256xi1>
    %225 = vector.broadcast %224 : vector<1x256xi1> to vector<16x256xi1>
    %226 = vector.broadcast %cst_79 : f32 to vector<16x256xf32>
    %227 = arith.select %225, %223, %226 : vector<16x256xi1>, vector<16x256xf32>
    %cst_80 = arith.constant 0.000000e+00 : f32
    %228 = vector.broadcast %cst_80 : f32 to vector<16x1xf32>
    %229 = vector.extract_strided_slice %208 {offsets = [0, 0], sizes = [16, 255], strides = [1, 1]} : vector<16x256xf32> to vector<16x255xf32>
    %230 = tpu.concatenate %228, %229 in 1 : vector<16x1xf32>, vector<16x255xf32> -> vector<16x256xf32>
    %cst_81 = arith.constant 0.000000e+00 : f32
    %231 = vector.shape_cast %18 : vector<1x256xi1> to vector<1x256xi1>
    %232 = vector.broadcast %231 : vector<1x256xi1> to vector<16x256xi1>
    %233 = vector.broadcast %cst_81 : f32 to vector<16x256xf32>
    %234 = arith.select %232, %230, %233 : vector<16x256xi1>, vector<16x256xf32>
    %235 = vector.extract_strided_slice %208 {offsets = [0, 1], sizes = [16, 255], strides = [1, 1]} : vector<16x256xf32> to vector<16x255xf32>
    %cst_82 = arith.constant 0.000000e+00 : f32
    %236 = vector.broadcast %cst_82 : f32 to vector<16x1xf32>
    %237 = tpu.concatenate %235, %236 in 1 : vector<16x255xf32>, vector<16x1xf32> -> vector<16x256xf32>
    %cst_83 = arith.constant 0.000000e+00 : f32
    %238 = vector.shape_cast %20 : vector<1x256xi1> to vector<1x256xi1>
    %239 = vector.broadcast %238 : vector<1x256xi1> to vector<16x256xi1>
    %240 = vector.broadcast %cst_83 : f32 to vector<16x256xf32>
    %241 = arith.select %239, %237, %240 : vector<16x256xi1>, vector<16x256xf32>
    %242 = vector.extract_strided_slice %208 {offsets = [0, 15], sizes = [16, 241], strides = [1, 1]} : vector<16x256xf32> to vector<16x241xf32>
    %cst_84 = arith.constant 0.000000e+00 : f32
    %243 = vector.broadcast %cst_84 : f32 to vector<16x15xf32>
    %244 = tpu.concatenate %242, %243 in 1 : vector<16x241xf32>, vector<16x15xf32> -> vector<16x256xf32>
    %cst_85 = arith.constant 0.000000e+00 : f32
    %245 = vector.shape_cast %18 : vector<1x256xi1> to vector<1x256xi1>
    %246 = vector.broadcast %245 : vector<1x256xi1> to vector<16x256xi1>
    %247 = vector.broadcast %cst_85 : f32 to vector<16x256xf32>
    %248 = arith.select %246, %244, %247 : vector<16x256xi1>, vector<16x256xf32>
    %249 = vector.extract_strided_slice %208 {offsets = [0, 16], sizes = [16, 240], strides = [1, 1]} : vector<16x256xf32> to vector<16x240xf32>
    %cst_86 = arith.constant 0.000000e+00 : f32
    %250 = vector.broadcast %cst_86 : f32 to vector<16x16xf32>
    %251 = tpu.concatenate %249, %250 in 1 : vector<16x240xf32>, vector<16x16xf32> -> vector<16x256xf32>
    %252 = vector.extract_strided_slice %208 {offsets = [0, 17], sizes = [16, 239], strides = [1, 1]} : vector<16x256xf32> to vector<16x239xf32>
    %cst_87 = arith.constant 0.000000e+00 : f32
    %253 = vector.broadcast %cst_87 : f32 to vector<16x17xf32>
    %254 = tpu.concatenate %252, %253 in 1 : vector<16x239xf32>, vector<16x17xf32> -> vector<16x256xf32>
    %cst_88 = arith.constant 0.000000e+00 : f32
    %255 = vector.shape_cast %20 : vector<1x256xi1> to vector<1x256xi1>
    %256 = vector.broadcast %255 : vector<1x256xi1> to vector<16x256xi1>
    %257 = vector.broadcast %cst_88 : f32 to vector<16x256xf32>
    %258 = arith.select %256, %254, %257 : vector<16x256xi1>, vector<16x256xf32>
    %259 = tpu.concatenate %217, %220, %227, %234, %208, %241, %248, %251, %258 in 0 : vector<16x256xf32>, vector<16x256xf32>, vector<16x256xf32>, vector<16x256xf32>, vector<16x256xf32>, vector<16x256xf32>, vector<16x256xf32>, vector<16x256xf32>, vector<16x256xf32> -> vector<144x256xf32>
    %cst_89 = arith.constant dense<0.000000e+00> : vector<16x256xf32>
    %260 = tpu.matmul %209, %259, %cst_89 {dimension_numbers = #tpu.dot_dimension_numbers<[1], [0], [0], [1], [0, 0, 1, 1], [], []>} : vector<16x144xf32>, vector<144x256xf32>, vector<16x256xf32> -> vector<16x256xf32>
    %261 = vector.broadcast %210 : vector<16x1xf32> to vector<16x256xf32>
    %262 = arith.addf %260, %261 : vector<16x256xf32>
    %cst_90 = arith.constant 0.000000e+00 : f32
    %263 = vector.broadcast %cst_90 : f32 to vector<16x256xf32>
    %264 = arith.maximumf %262, %263 : vector<16x256xf32>
    %c0_91 = arith.constant 0 : index
    %c0_92 = arith.constant 0 : index
    %265 = vector.load %arg11[%c0_91, %c0_92] : memref<16x144xf32, #tpu.memory_space<vmem>>, vector<16x144xf32>
    %c0_93 = arith.constant 0 : index
    %c0_94 = arith.constant 0 : index
    %266 = vector.load %arg12[%c0_93, %c0_94] : memref<16x1xf32, #tpu.memory_space<vmem>>, vector<16x1xf32>
    %cst_95 = arith.constant 0.000000e+00 : f32
    %267 = vector.broadcast %cst_95 : f32 to vector<16x17xf32>
    %268 = vector.extract_strided_slice %264 {offsets = [0, 0], sizes = [16, 239], strides = [1, 1]} : vector<16x256xf32> to vector<16x239xf32>
    %269 = tpu.concatenate %267, %268 in 1 : vector<16x17xf32>, vector<16x239xf32> -> vector<16x256xf32>
    %cst_96 = arith.constant 0.000000e+00 : f32
    %270 = vector.shape_cast %18 : vector<1x256xi1> to vector<1x256xi1>
    %271 = vector.broadcast %270 : vector<1x256xi1> to vector<16x256xi1>
    %272 = vector.broadcast %cst_96 : f32 to vector<16x256xf32>
    %273 = arith.select %271, %269, %272 : vector<16x256xi1>, vector<16x256xf32>
    %cst_97 = arith.constant 0.000000e+00 : f32
    %274 = vector.broadcast %cst_97 : f32 to vector<16x16xf32>
    %275 = vector.extract_strided_slice %264 {offsets = [0, 0], sizes = [16, 240], strides = [1, 1]} : vector<16x256xf32> to vector<16x240xf32>
    %276 = tpu.concatenate %274, %275 in 1 : vector<16x16xf32>, vector<16x240xf32> -> vector<16x256xf32>
    %cst_98 = arith.constant 0.000000e+00 : f32
    %277 = vector.broadcast %cst_98 : f32 to vector<16x15xf32>
    %278 = vector.extract_strided_slice %264 {offsets = [0, 0], sizes = [16, 241], strides = [1, 1]} : vector<16x256xf32> to vector<16x241xf32>
    %279 = tpu.concatenate %277, %278 in 1 : vector<16x15xf32>, vector<16x241xf32> -> vector<16x256xf32>
    %cst_99 = arith.constant 0.000000e+00 : f32
    %280 = vector.shape_cast %20 : vector<1x256xi1> to vector<1x256xi1>
    %281 = vector.broadcast %280 : vector<1x256xi1> to vector<16x256xi1>
    %282 = vector.broadcast %cst_99 : f32 to vector<16x256xf32>
    %283 = arith.select %281, %279, %282 : vector<16x256xi1>, vector<16x256xf32>
    %cst_100 = arith.constant 0.000000e+00 : f32
    %284 = vector.broadcast %cst_100 : f32 to vector<16x1xf32>
    %285 = vector.extract_strided_slice %264 {offsets = [0, 0], sizes = [16, 255], strides = [1, 1]} : vector<16x256xf32> to vector<16x255xf32>
    %286 = tpu.concatenate %284, %285 in 1 : vector<16x1xf32>, vector<16x255xf32> -> vector<16x256xf32>
    %cst_101 = arith.constant 0.000000e+00 : f32
    %287 = vector.shape_cast %18 : vector<1x256xi1> to vector<1x256xi1>
    %288 = vector.broadcast %287 : vector<1x256xi1> to vector<16x256xi1>
    %289 = vector.broadcast %cst_101 : f32 to vector<16x256xf32>
    %290 = arith.select %288, %286, %289 : vector<16x256xi1>, vector<16x256xf32>
    %291 = vector.extract_strided_slice %264 {offsets = [0, 1], sizes = [16, 255], strides = [1, 1]} : vector<16x256xf32> to vector<16x255xf32>
    %cst_102 = arith.constant 0.000000e+00 : f32
    %292 = vector.broadcast %cst_102 : f32 to vector<16x1xf32>
    %293 = tpu.concatenate %291, %292 in 1 : vector<16x255xf32>, vector<16x1xf32> -> vector<16x256xf32>
    %cst_103 = arith.constant 0.000000e+00 : f32
    %294 = vector.shape_cast %20 : vector<1x256xi1> to vector<1x256xi1>
    %295 = vector.broadcast %294 : vector<1x256xi1> to vector<16x256xi1>
    %296 = vector.broadcast %cst_103 : f32 to vector<16x256xf32>
    %297 = arith.select %295, %293, %296 : vector<16x256xi1>, vector<16x256xf32>
    %298 = vector.extract_strided_slice %264 {offsets = [0, 15], sizes = [16, 241], strides = [1, 1]} : vector<16x256xf32> to vector<16x241xf32>
    %cst_104 = arith.constant 0.000000e+00 : f32
    %299 = vector.broadcast %cst_104 : f32 to vector<16x15xf32>
    %300 = tpu.concatenate %298, %299 in 1 : vector<16x241xf32>, vector<16x15xf32> -> vector<16x256xf32>
    %cst_105 = arith.constant 0.000000e+00 : f32
    %301 = vector.shape_cast %18 : vector<1x256xi1> to vector<1x256xi1>
    %302 = vector.broadcast %301 : vector<1x256xi1> to vector<16x256xi1>
    %303 = vector.broadcast %cst_105 : f32 to vector<16x256xf32>
    %304 = arith.select %302, %300, %303 : vector<16x256xi1>, vector<16x256xf32>
    %305 = vector.extract_strided_slice %264 {offsets = [0, 16], sizes = [16, 240], strides = [1, 1]} : vector<16x256xf32> to vector<16x240xf32>
    %cst_106 = arith.constant 0.000000e+00 : f32
    %306 = vector.broadcast %cst_106 : f32 to vector<16x16xf32>
    %307 = tpu.concatenate %305, %306 in 1 : vector<16x240xf32>, vector<16x16xf32> -> vector<16x256xf32>
    %308 = vector.extract_strided_slice %264 {offsets = [0, 17], sizes = [16, 239], strides = [1, 1]} : vector<16x256xf32> to vector<16x239xf32>
    %cst_107 = arith.constant 0.000000e+00 : f32
    %309 = vector.broadcast %cst_107 : f32 to vector<16x17xf32>
    %310 = tpu.concatenate %308, %309 in 1 : vector<16x239xf32>, vector<16x17xf32> -> vector<16x256xf32>
    %cst_108 = arith.constant 0.000000e+00 : f32
    %311 = vector.shape_cast %20 : vector<1x256xi1> to vector<1x256xi1>
    %312 = vector.broadcast %311 : vector<1x256xi1> to vector<16x256xi1>
    %313 = vector.broadcast %cst_108 : f32 to vector<16x256xf32>
    %314 = arith.select %312, %310, %313 : vector<16x256xi1>, vector<16x256xf32>
    %315 = tpu.concatenate %273, %276, %283, %290, %264, %297, %304, %307, %314 in 0 : vector<16x256xf32>, vector<16x256xf32>, vector<16x256xf32>, vector<16x256xf32>, vector<16x256xf32>, vector<16x256xf32>, vector<16x256xf32>, vector<16x256xf32>, vector<16x256xf32> -> vector<144x256xf32>
    %cst_109 = arith.constant dense<0.000000e+00> : vector<16x256xf32>
    %316 = tpu.matmul %265, %315, %cst_109 {dimension_numbers = #tpu.dot_dimension_numbers<[1], [0], [0], [1], [0, 0, 1, 1], [], []>} : vector<16x144xf32>, vector<144x256xf32>, vector<16x256xf32> -> vector<16x256xf32>
    %317 = vector.broadcast %266 : vector<16x1xf32> to vector<16x256xf32>
    %318 = arith.addf %316, %317 : vector<16x256xf32>
    %319 = arith.addf %208, %318 : vector<16x256xf32>
    %cst_110 = arith.constant 1.000000e+00 : f32
    %320 = vector.broadcast %cst_110 : f32 to vector<1x256xf32>
    %c0_111 = arith.constant 0 : index
    %c0_112 = arith.constant 0 : index
    %321 = vector.load %arg13[%c0_111, %c0_112] : memref<16x9xf32, #tpu.memory_space<vmem>>, vector<16x9xf32>
    %c0_113 = arith.constant 0 : index
    %c0_114 = arith.constant 0 : index
    %322 = vector.load %arg14[%c0_113, %c0_114] : memref<16x1xf32, #tpu.memory_space<vmem>>, vector<16x1xf32>
    %cst_115 = arith.constant 0.000000e+00 : f32
    %323 = vector.broadcast %cst_115 : f32 to vector<1x17xf32>
    %324 = vector.extract_strided_slice %320 {offsets = [0, 0], sizes = [1, 239], strides = [1, 1]} : vector<1x256xf32> to vector<1x239xf32>
    %325 = tpu.concatenate %323, %324 in 1 : vector<1x17xf32>, vector<1x239xf32> -> vector<1x256xf32>
    %cst_116 = arith.constant 0.000000e+00 : f32
    %326 = vector.broadcast %cst_116 : f32 to vector<1x256xf32>
    %327 = arith.select %39, %325, %326 : vector<1x256xi1>, vector<1x256xf32>
    %cst_117 = arith.constant 0.000000e+00 : f32
    %328 = vector.broadcast %cst_117 : f32 to vector<1x16xf32>
    %329 = vector.extract_strided_slice %320 {offsets = [0, 0], sizes = [1, 240], strides = [1, 1]} : vector<1x256xf32> to vector<1x240xf32>
    %330 = tpu.concatenate %328, %329 in 1 : vector<1x16xf32>, vector<1x240xf32> -> vector<1x256xf32>
    %cst_118 = arith.constant 0.000000e+00 : f32
    %331 = vector.broadcast %cst_118 : f32 to vector<1x15xf32>
    %332 = vector.extract_strided_slice %320 {offsets = [0, 0], sizes = [1, 241], strides = [1, 1]} : vector<1x256xf32> to vector<1x241xf32>
    %333 = tpu.concatenate %331, %332 in 1 : vector<1x15xf32>, vector<1x241xf32> -> vector<1x256xf32>
    %cst_119 = arith.constant 0.000000e+00 : f32
    %334 = vector.broadcast %cst_119 : f32 to vector<1x256xf32>
    %335 = arith.select %41, %333, %334 : vector<1x256xi1>, vector<1x256xf32>
    %cst_120 = arith.constant 0.000000e+00 : f32
    %336 = vector.broadcast %cst_120 : f32 to vector<1x1xf32>
    %337 = vector.extract_strided_slice %320 {offsets = [0, 0], sizes = [1, 255], strides = [1, 1]} : vector<1x256xf32> to vector<1x255xf32>
    %338 = tpu.concatenate %336, %337 in 1 : vector<1x1xf32>, vector<1x255xf32> -> vector<1x256xf32>
    %cst_121 = arith.constant 0.000000e+00 : f32
    %339 = vector.broadcast %cst_121 : f32 to vector<1x256xf32>
    %340 = arith.select %39, %338, %339 : vector<1x256xi1>, vector<1x256xf32>
    %341 = vector.extract_strided_slice %320 {offsets = [0, 1], sizes = [1, 255], strides = [1, 1]} : vector<1x256xf32> to vector<1x255xf32>
    %cst_122 = arith.constant 0.000000e+00 : f32
    %342 = vector.broadcast %cst_122 : f32 to vector<1x1xf32>
    %343 = tpu.concatenate %341, %342 in 1 : vector<1x255xf32>, vector<1x1xf32> -> vector<1x256xf32>
    %cst_123 = arith.constant 0.000000e+00 : f32
    %344 = vector.broadcast %cst_123 : f32 to vector<1x256xf32>
    %345 = arith.select %41, %343, %344 : vector<1x256xi1>, vector<1x256xf32>
    %346 = vector.extract_strided_slice %320 {offsets = [0, 15], sizes = [1, 241], strides = [1, 1]} : vector<1x256xf32> to vector<1x241xf32>
    %cst_124 = arith.constant 0.000000e+00 : f32
    %347 = vector.broadcast %cst_124 : f32 to vector<1x15xf32>
    %348 = tpu.concatenate %346, %347 in 1 : vector<1x241xf32>, vector<1x15xf32> -> vector<1x256xf32>
    %cst_125 = arith.constant 0.000000e+00 : f32
    %349 = vector.broadcast %cst_125 : f32 to vector<1x256xf32>
    %350 = arith.select %39, %348, %349 : vector<1x256xi1>, vector<1x256xf32>
    %351 = vector.extract_strided_slice %320 {offsets = [0, 16], sizes = [1, 240], strides = [1, 1]} : vector<1x256xf32> to vector<1x240xf32>
    %cst_126 = arith.constant 0.000000e+00 : f32
    %352 = vector.broadcast %cst_126 : f32 to vector<1x16xf32>
    %353 = tpu.concatenate %351, %352 in 1 : vector<1x240xf32>, vector<1x16xf32> -> vector<1x256xf32>
    %354 = vector.extract_strided_slice %320 {offsets = [0, 17], sizes = [1, 239], strides = [1, 1]} : vector<1x256xf32> to vector<1x239xf32>
    %cst_127 = arith.constant 0.000000e+00 : f32
    %355 = vector.broadcast %cst_127 : f32 to vector<1x17xf32>
    %356 = tpu.concatenate %354, %355 in 1 : vector<1x239xf32>, vector<1x17xf32> -> vector<1x256xf32>
    %cst_128 = arith.constant 0.000000e+00 : f32
    %357 = vector.broadcast %cst_128 : f32 to vector<1x256xf32>
    %358 = arith.select %41, %356, %357 : vector<1x256xi1>, vector<1x256xf32>
    %359 = tpu.concatenate %327, %330, %335, %340, %320, %345, %350, %353, %358 in 0 : vector<1x256xf32>, vector<1x256xf32>, vector<1x256xf32>, vector<1x256xf32>, vector<1x256xf32>, vector<1x256xf32>, vector<1x256xf32>, vector<1x256xf32>, vector<1x256xf32> -> vector<9x256xf32>
    %cst_129 = arith.constant dense<0.000000e+00> : vector<16x256xf32>
    %360 = tpu.matmul %321, %359, %cst_129 {dimension_numbers = #tpu.dot_dimension_numbers<[1], [0], [0], [1], [0, 0, 1, 1], [], []>} : vector<16x9xf32>, vector<9x256xf32>, vector<16x256xf32> -> vector<16x256xf32>
    %361 = vector.broadcast %322 : vector<16x1xf32> to vector<16x256xf32>
    %362 = arith.addf %360, %361 : vector<16x256xf32>
    %cst_130 = arith.constant 0.000000e+00 : f32
    %363 = vector.broadcast %cst_130 : f32 to vector<16x256xf32>
    %364 = arith.cmpf oge, %362, %363 : vector<16x256xf32>
    %cst_131 = arith.constant 1.000000e-01 : f32
    %365 = vector.broadcast %cst_131 : f32 to vector<16x256xf32>
    %366 = arith.mulf %365, %362 : vector<16x256xf32>
    %367 = arith.select %364, %362, %366 : vector<16x256xi1>, vector<16x256xf32>
    %c0_132 = arith.constant 0 : index
    %c0_133 = arith.constant 0 : index
    %368 = vector.load %arg15[%c0_132, %c0_133] : memref<1x144xf32, #tpu.memory_space<vmem>>, vector<1x144xf32>
    %c0_134 = arith.constant 0 : index
    %c0_135 = arith.constant 0 : index
    %369 = vector.load %arg16[%c0_134, %c0_135] : memref<1x1xf32, #tpu.memory_space<vmem>>, vector<1x1xf32>
    %cst_136 = arith.constant 0.000000e+00 : f32
    %370 = vector.broadcast %cst_136 : f32 to vector<16x17xf32>
    %371 = vector.extract_strided_slice %367 {offsets = [0, 0], sizes = [16, 239], strides = [1, 1]} : vector<16x256xf32> to vector<16x239xf32>
    %372 = tpu.concatenate %370, %371 in 1 : vector<16x17xf32>, vector<16x239xf32> -> vector<16x256xf32>
    %cst_137 = arith.constant 0.000000e+00 : f32
    %373 = vector.shape_cast %39 : vector<1x256xi1> to vector<1x256xi1>
    %374 = vector.broadcast %373 : vector<1x256xi1> to vector<16x256xi1>
    %375 = vector.broadcast %cst_137 : f32 to vector<16x256xf32>
    %376 = arith.select %374, %372, %375 : vector<16x256xi1>, vector<16x256xf32>
    %cst_138 = arith.constant 0.000000e+00 : f32
    %377 = vector.broadcast %cst_138 : f32 to vector<16x16xf32>
    %378 = vector.extract_strided_slice %367 {offsets = [0, 0], sizes = [16, 240], strides = [1, 1]} : vector<16x256xf32> to vector<16x240xf32>
    %379 = tpu.concatenate %377, %378 in 1 : vector<16x16xf32>, vector<16x240xf32> -> vector<16x256xf32>
    %cst_139 = arith.constant 0.000000e+00 : f32
    %380 = vector.broadcast %cst_139 : f32 to vector<16x15xf32>
    %381 = vector.extract_strided_slice %367 {offsets = [0, 0], sizes = [16, 241], strides = [1, 1]} : vector<16x256xf32> to vector<16x241xf32>
    %382 = tpu.concatenate %380, %381 in 1 : vector<16x15xf32>, vector<16x241xf32> -> vector<16x256xf32>
    %cst_140 = arith.constant 0.000000e+00 : f32
    %383 = vector.shape_cast %41 : vector<1x256xi1> to vector<1x256xi1>
    %384 = vector.broadcast %383 : vector<1x256xi1> to vector<16x256xi1>
    %385 = vector.broadcast %cst_140 : f32 to vector<16x256xf32>
    %386 = arith.select %384, %382, %385 : vector<16x256xi1>, vector<16x256xf32>
    %cst_141 = arith.constant 0.000000e+00 : f32
    %387 = vector.broadcast %cst_141 : f32 to vector<16x1xf32>
    %388 = vector.extract_strided_slice %367 {offsets = [0, 0], sizes = [16, 255], strides = [1, 1]} : vector<16x256xf32> to vector<16x255xf32>
    %389 = tpu.concatenate %387, %388 in 1 : vector<16x1xf32>, vector<16x255xf32> -> vector<16x256xf32>
    %cst_142 = arith.constant 0.000000e+00 : f32
    %390 = vector.shape_cast %39 : vector<1x256xi1> to vector<1x256xi1>
    %391 = vector.broadcast %390 : vector<1x256xi1> to vector<16x256xi1>
    %392 = vector.broadcast %cst_142 : f32 to vector<16x256xf32>
    %393 = arith.select %391, %389, %392 : vector<16x256xi1>, vector<16x256xf32>
    %394 = vector.extract_strided_slice %367 {offsets = [0, 1], sizes = [16, 255], strides = [1, 1]} : vector<16x256xf32> to vector<16x255xf32>
    %cst_143 = arith.constant 0.000000e+00 : f32
    %395 = vector.broadcast %cst_143 : f32 to vector<16x1xf32>
    %396 = tpu.concatenate %394, %395 in 1 : vector<16x255xf32>, vector<16x1xf32> -> vector<16x256xf32>
    %cst_144 = arith.constant 0.000000e+00 : f32
    %397 = vector.shape_cast %41 : vector<1x256xi1> to vector<1x256xi1>
    %398 = vector.broadcast %397 : vector<1x256xi1> to vector<16x256xi1>
    %399 = vector.broadcast %cst_144 : f32 to vector<16x256xf32>
    %400 = arith.select %398, %396, %399 : vector<16x256xi1>, vector<16x256xf32>
    %401 = vector.extract_strided_slice %367 {offsets = [0, 15], sizes = [16, 241], strides = [1, 1]} : vector<16x256xf32> to vector<16x241xf32>
    %cst_145 = arith.constant 0.000000e+00 : f32
    %402 = vector.broadcast %cst_145 : f32 to vector<16x15xf32>
    %403 = tpu.concatenate %401, %402 in 1 : vector<16x241xf32>, vector<16x15xf32> -> vector<16x256xf32>
    %cst_146 = arith.constant 0.000000e+00 : f32
    %404 = vector.shape_cast %39 : vector<1x256xi1> to vector<1x256xi1>
    %405 = vector.broadcast %404 : vector<1x256xi1> to vector<16x256xi1>
    %406 = vector.broadcast %cst_146 : f32 to vector<16x256xf32>
    %407 = arith.select %405, %403, %406 : vector<16x256xi1>, vector<16x256xf32>
    %408 = vector.extract_strided_slice %367 {offsets = [0, 16], sizes = [16, 240], strides = [1, 1]} : vector<16x256xf32> to vector<16x240xf32>
    %cst_147 = arith.constant 0.000000e+00 : f32
    %409 = vector.broadcast %cst_147 : f32 to vector<16x16xf32>
    %410 = tpu.concatenate %408, %409 in 1 : vector<16x240xf32>, vector<16x16xf32> -> vector<16x256xf32>
    %411 = vector.extract_strided_slice %367 {offsets = [0, 17], sizes = [16, 239], strides = [1, 1]} : vector<16x256xf32> to vector<16x239xf32>
    %cst_148 = arith.constant 0.000000e+00 : f32
    %412 = vector.broadcast %cst_148 : f32 to vector<16x17xf32>
    %413 = tpu.concatenate %411, %412 in 1 : vector<16x239xf32>, vector<16x17xf32> -> vector<16x256xf32>
    %cst_149 = arith.constant 0.000000e+00 : f32
    %414 = vector.shape_cast %41 : vector<1x256xi1> to vector<1x256xi1>
    %415 = vector.broadcast %414 : vector<1x256xi1> to vector<16x256xi1>
    %416 = vector.broadcast %cst_149 : f32 to vector<16x256xf32>
    %417 = arith.select %415, %413, %416 : vector<16x256xi1>, vector<16x256xf32>
    %418 = tpu.concatenate %376, %379, %386, %393, %367, %400, %407, %410, %417 in 0 : vector<16x256xf32>, vector<16x256xf32>, vector<16x256xf32>, vector<16x256xf32>, vector<16x256xf32>, vector<16x256xf32>, vector<16x256xf32>, vector<16x256xf32>, vector<16x256xf32> -> vector<144x256xf32>
    %cst_150 = arith.constant dense<0.000000e+00> : vector<1x256xf32>
    %419 = tpu.matmul %368, %418, %cst_150 {dimension_numbers = #tpu.dot_dimension_numbers<[1], [0], [0], [1], [0, 0, 1, 1], [], []>} : vector<1x144xf32>, vector<144x256xf32>, vector<1x256xf32> -> vector<1x256xf32>
    %420 = vector.broadcast %369 : vector<1x1xf32> to vector<1x256xf32>
    %421 = arith.addf %419, %420 : vector<1x256xf32>
    %c0_151 = arith.constant 0 : index
    %c0_152 = arith.constant 0 : index
    %c0_153 = arith.constant 0 : index
    %422 = vector.load %arg2[%c0_151, %c0_152, %c0_153] : memref<1x16x16xf32, #tpu.memory_space<vmem>>, vector<1x16x16xf32>
    %423 = vector.shape_cast %421 : vector<1x256xf32> to vector<1x16x16xf32>
    %424 = arith.mulf %422, %423 : vector<1x16x16xf32>
    %425 = vector.shape_cast %424 : vector<1x16x16xf32> to vector<1x16x16xf32>
    %426 = vector.broadcast %425 : vector<1x16x16xf32> to vector<16x16x16xf32>
    %cst_154 = arith.constant 6.28318548 : f32
    %427 = vector.broadcast %cst_154 : f32 to vector<16x256xf32>
    %428 = arith.mulf %427, %319 : vector<16x256xf32>
    %429 = vector.shape_cast %428 : vector<16x256xf32> to vector<16x16x16xf32>
    "tpu.trace_start"() <{level = 10 : i32, message = "cih,chw->ciw"}> : () -> ()
    %cst_155 = arith.constant dense<0.000000e+00> : vector<16x16x16xf32>
    %430 = tpu.matmul %426, %429, %cst_155 {dimension_numbers = #tpu.dot_dimension_numbers<[2], [1], [1], [2], [0, 0, 0, 1, 1, 2], [0], [0]>} : vector<16x16x16xf32>, vector<16x16x16xf32>, vector<16x16x16xf32> -> vector<16x16x16xf32>
    "tpu.trace_stop"() : () -> ()
    %431 = vector.shape_cast %430 : vector<16x16x16xf32> to vector<16x256xf32>
    %432 = math.sin %431 : vector<16x256xf32>
    %433 = math.cos %431 : vector<16x256xf32>
    %c0_156 = arith.constant 0 : index
    %c0_157 = arith.constant 0 : index
    %434 = vector.load %arg17[%c0_156, %c0_157] : memref<16x144xf32, #tpu.memory_space<vmem>>, vector<16x144xf32>
    %c0_158 = arith.constant 0 : index
    %c0_159 = arith.constant 0 : index
    %435 = vector.load %arg18[%c0_158, %c0_159] : memref<16x144xf32, #tpu.memory_space<vmem>>, vector<16x144xf32>
    %c0_160 = arith.constant 0 : index
    %c0_161 = arith.constant 0 : index
    %436 = vector.load %arg19[%c0_160, %c0_161] : memref<16x144xf32, #tpu.memory_space<vmem>>, vector<16x144xf32>
    %c0_162 = arith.constant 0 : index
    %c0_163 = arith.constant 0 : index
    %437 = vector.load %arg20[%c0_162, %c0_163] : memref<16x1xf32, #tpu.memory_space<vmem>>, vector<16x1xf32>
    %cst_164 = arith.constant 0.000000e+00 : f32
    %438 = vector.broadcast %cst_164 : f32 to vector<16x17xf32>
    %439 = vector.extract_strided_slice %432 {offsets = [0, 0], sizes = [16, 239], strides = [1, 1]} : vector<16x256xf32> to vector<16x239xf32>
    %440 = tpu.concatenate %438, %439 in 1 : vector<16x17xf32>, vector<16x239xf32> -> vector<16x256xf32>
    %cst_165 = arith.constant 0.000000e+00 : f32
    %441 = vector.shape_cast %18 : vector<1x256xi1> to vector<1x256xi1>
    %442 = vector.broadcast %441 : vector<1x256xi1> to vector<16x256xi1>
    %443 = vector.broadcast %cst_165 : f32 to vector<16x256xf32>
    %444 = arith.select %442, %440, %443 : vector<16x256xi1>, vector<16x256xf32>
    %cst_166 = arith.constant 0.000000e+00 : f32
    %445 = vector.broadcast %cst_166 : f32 to vector<16x16xf32>
    %446 = vector.extract_strided_slice %432 {offsets = [0, 0], sizes = [16, 240], strides = [1, 1]} : vector<16x256xf32> to vector<16x240xf32>
    %447 = tpu.concatenate %445, %446 in 1 : vector<16x16xf32>, vector<16x240xf32> -> vector<16x256xf32>
    %cst_167 = arith.constant 0.000000e+00 : f32
    %448 = vector.broadcast %cst_167 : f32 to vector<16x15xf32>
    %449 = vector.extract_strided_slice %432 {offsets = [0, 0], sizes = [16, 241], strides = [1, 1]} : vector<16x256xf32> to vector<16x241xf32>
    %450 = tpu.concatenate %448, %449 in 1 : vector<16x15xf32>, vector<16x241xf32> -> vector<16x256xf32>
    %cst_168 = arith.constant 0.000000e+00 : f32
    %451 = vector.shape_cast %20 : vector<1x256xi1> to vector<1x256xi1>
    %452 = vector.broadcast %451 : vector<1x256xi1> to vector<16x256xi1>
    %453 = vector.broadcast %cst_168 : f32 to vector<16x256xf32>
    %454 = arith.select %452, %450, %453 : vector<16x256xi1>, vector<16x256xf32>
    %cst_169 = arith.constant 0.000000e+00 : f32
    %455 = vector.broadcast %cst_169 : f32 to vector<16x1xf32>
    %456 = vector.extract_strided_slice %432 {offsets = [0, 0], sizes = [16, 255], strides = [1, 1]} : vector<16x256xf32> to vector<16x255xf32>
    %457 = tpu.concatenate %455, %456 in 1 : vector<16x1xf32>, vector<16x255xf32> -> vector<16x256xf32>
    %cst_170 = arith.constant 0.000000e+00 : f32
    %458 = vector.shape_cast %18 : vector<1x256xi1> to vector<1x256xi1>
    %459 = vector.broadcast %458 : vector<1x256xi1> to vector<16x256xi1>
    %460 = vector.broadcast %cst_170 : f32 to vector<16x256xf32>
    %461 = arith.select %459, %457, %460 : vector<16x256xi1>, vector<16x256xf32>
    %462 = vector.extract_strided_slice %432 {offsets = [0, 1], sizes = [16, 255], strides = [1, 1]} : vector<16x256xf32> to vector<16x255xf32>
    %cst_171 = arith.constant 0.000000e+00 : f32
    %463 = vector.broadcast %cst_171 : f32 to vector<16x1xf32>
    %464 = tpu.concatenate %462, %463 in 1 : vector<16x255xf32>, vector<16x1xf32> -> vector<16x256xf32>
    %cst_172 = arith.constant 0.000000e+00 : f32
    %465 = vector.shape_cast %20 : vector<1x256xi1> to vector<1x256xi1>
    %466 = vector.broadcast %465 : vector<1x256xi1> to vector<16x256xi1>
    %467 = vector.broadcast %cst_172 : f32 to vector<16x256xf32>
    %468 = arith.select %466, %464, %467 : vector<16x256xi1>, vector<16x256xf32>
    %469 = vector.extract_strided_slice %432 {offsets = [0, 15], sizes = [16, 241], strides = [1, 1]} : vector<16x256xf32> to vector<16x241xf32>
    %cst_173 = arith.constant 0.000000e+00 : f32
    %470 = vector.broadcast %cst_173 : f32 to vector<16x15xf32>
    %471 = tpu.concatenate %469, %470 in 1 : vector<16x241xf32>, vector<16x15xf32> -> vector<16x256xf32>
    %cst_174 = arith.constant 0.000000e+00 : f32
    %472 = vector.shape_cast %18 : vector<1x256xi1> to vector<1x256xi1>
    %473 = vector.broadcast %472 : vector<1x256xi1> to vector<16x256xi1>
    %474 = vector.broadcast %cst_174 : f32 to vector<16x256xf32>
    %475 = arith.select %473, %471, %474 : vector<16x256xi1>, vector<16x256xf32>
    %476 = vector.extract_strided_slice %432 {offsets = [0, 16], sizes = [16, 240], strides = [1, 1]} : vector<16x256xf32> to vector<16x240xf32>
    %cst_175 = arith.constant 0.000000e+00 : f32
    %477 = vector.broadcast %cst_175 : f32 to vector<16x16xf32>
    %478 = tpu.concatenate %476, %477 in 1 : vector<16x240xf32>, vector<16x16xf32> -> vector<16x256xf32>
    %479 = vector.extract_strided_slice %432 {offsets = [0, 17], sizes = [16, 239], strides = [1, 1]} : vector<16x256xf32> to vector<16x239xf32>
    %cst_176 = arith.constant 0.000000e+00 : f32
    %480 = vector.broadcast %cst_176 : f32 to vector<16x17xf32>
    %481 = tpu.concatenate %479, %480 in 1 : vector<16x239xf32>, vector<16x17xf32> -> vector<16x256xf32>
    %cst_177 = arith.constant 0.000000e+00 : f32
    %482 = vector.shape_cast %20 : vector<1x256xi1> to vector<1x256xi1>
    %483 = vector.broadcast %482 : vector<1x256xi1> to vector<16x256xi1>
    %484 = vector.broadcast %cst_177 : f32 to vector<16x256xf32>
    %485 = arith.select %483, %481, %484 : vector<16x256xi1>, vector<16x256xf32>
    %486 = tpu.concatenate %444, %447, %454, %461, %432, %468, %475, %478, %485 in 0 : vector<16x256xf32>, vector<16x256xf32>, vector<16x256xf32>, vector<16x256xf32>, vector<16x256xf32>, vector<16x256xf32>, vector<16x256xf32>, vector<16x256xf32>, vector<16x256xf32> -> vector<144x256xf32>
    %cst_178 = arith.constant dense<0.000000e+00> : vector<16x256xf32>
    %487 = tpu.matmul %434, %486, %cst_178 {dimension_numbers = #tpu.dot_dimension_numbers<[1], [0], [0], [1], [0, 0, 1, 1], [], []>} : vector<16x144xf32>, vector<144x256xf32>, vector<16x256xf32> -> vector<16x256xf32>
    %cst_179 = arith.constant 0.000000e+00 : f32
    %488 = vector.broadcast %cst_179 : f32 to vector<16x17xf32>
    %489 = vector.extract_strided_slice %433 {offsets = [0, 0], sizes = [16, 239], strides = [1, 1]} : vector<16x256xf32> to vector<16x239xf32>
    %490 = tpu.concatenate %488, %489 in 1 : vector<16x17xf32>, vector<16x239xf32> -> vector<16x256xf32>
    %cst_180 = arith.constant 0.000000e+00 : f32
    %491 = vector.shape_cast %18 : vector<1x256xi1> to vector<1x256xi1>
    %492 = vector.broadcast %491 : vector<1x256xi1> to vector<16x256xi1>
    %493 = vector.broadcast %cst_180 : f32 to vector<16x256xf32>
    %494 = arith.select %492, %490, %493 : vector<16x256xi1>, vector<16x256xf32>
    %cst_181 = arith.constant 0.000000e+00 : f32
    %495 = vector.broadcast %cst_181 : f32 to vector<16x16xf32>
    %496 = vector.extract_strided_slice %433 {offsets = [0, 0], sizes = [16, 240], strides = [1, 1]} : vector<16x256xf32> to vector<16x240xf32>
    %497 = tpu.concatenate %495, %496 in 1 : vector<16x16xf32>, vector<16x240xf32> -> vector<16x256xf32>
    %cst_182 = arith.constant 0.000000e+00 : f32
    %498 = vector.broadcast %cst_182 : f32 to vector<16x15xf32>
    %499 = vector.extract_strided_slice %433 {offsets = [0, 0], sizes = [16, 241], strides = [1, 1]} : vector<16x256xf32> to vector<16x241xf32>
    %500 = tpu.concatenate %498, %499 in 1 : vector<16x15xf32>, vector<16x241xf32> -> vector<16x256xf32>
    %cst_183 = arith.constant 0.000000e+00 : f32
    %501 = vector.shape_cast %20 : vector<1x256xi1> to vector<1x256xi1>
    %502 = vector.broadcast %501 : vector<1x256xi1> to vector<16x256xi1>
    %503 = vector.broadcast %cst_183 : f32 to vector<16x256xf32>
    %504 = arith.select %502, %500, %503 : vector<16x256xi1>, vector<16x256xf32>
    %cst_184 = arith.constant 0.000000e+00 : f32
    %505 = vector.broadcast %cst_184 : f32 to vector<16x1xf32>
    %506 = vector.extract_strided_slice %433 {offsets = [0, 0], sizes = [16, 255], strides = [1, 1]} : vector<16x256xf32> to vector<16x255xf32>
    %507 = tpu.concatenate %505, %506 in 1 : vector<16x1xf32>, vector<16x255xf32> -> vector<16x256xf32>
    %cst_185 = arith.constant 0.000000e+00 : f32
    %508 = vector.shape_cast %18 : vector<1x256xi1> to vector<1x256xi1>
    %509 = vector.broadcast %508 : vector<1x256xi1> to vector<16x256xi1>
    %510 = vector.broadcast %cst_185 : f32 to vector<16x256xf32>
    %511 = arith.select %509, %507, %510 : vector<16x256xi1>, vector<16x256xf32>
    %512 = vector.extract_strided_slice %433 {offsets = [0, 1], sizes = [16, 255], strides = [1, 1]} : vector<16x256xf32> to vector<16x255xf32>
    %cst_186 = arith.constant 0.000000e+00 : f32
    %513 = vector.broadcast %cst_186 : f32 to vector<16x1xf32>
    %514 = tpu.concatenate %512, %513 in 1 : vector<16x255xf32>, vector<16x1xf32> -> vector<16x256xf32>
    %cst_187 = arith.constant 0.000000e+00 : f32
    %515 = vector.shape_cast %20 : vector<1x256xi1> to vector<1x256xi1>
    %516 = vector.broadcast %515 : vector<1x256xi1> to vector<16x256xi1>
    %517 = vector.broadcast %cst_187 : f32 to vector<16x256xf32>
    %518 = arith.select %516, %514, %517 : vector<16x256xi1>, vector<16x256xf32>
    %519 = vector.extract_strided_slice %433 {offsets = [0, 15], sizes = [16, 241], strides = [1, 1]} : vector<16x256xf32> to vector<16x241xf32>
    %cst_188 = arith.constant 0.000000e+00 : f32
    %520 = vector.broadcast %cst_188 : f32 to vector<16x15xf32>
    %521 = tpu.concatenate %519, %520 in 1 : vector<16x241xf32>, vector<16x15xf32> -> vector<16x256xf32>
    %cst_189 = arith.constant 0.000000e+00 : f32
    %522 = vector.shape_cast %18 : vector<1x256xi1> to vector<1x256xi1>
    %523 = vector.broadcast %522 : vector<1x256xi1> to vector<16x256xi1>
    %524 = vector.broadcast %cst_189 : f32 to vector<16x256xf32>
    %525 = arith.select %523, %521, %524 : vector<16x256xi1>, vector<16x256xf32>
    %526 = vector.extract_strided_slice %433 {offsets = [0, 16], sizes = [16, 240], strides = [1, 1]} : vector<16x256xf32> to vector<16x240xf32>
    %cst_190 = arith.constant 0.000000e+00 : f32
    %527 = vector.broadcast %cst_190 : f32 to vector<16x16xf32>
    %528 = tpu.concatenate %526, %527 in 1 : vector<16x240xf32>, vector<16x16xf32> -> vector<16x256xf32>
    %529 = vector.extract_strided_slice %433 {offsets = [0, 17], sizes = [16, 239], strides = [1, 1]} : vector<16x256xf32> to vector<16x239xf32>
    %cst_191 = arith.constant 0.000000e+00 : f32
    %530 = vector.broadcast %cst_191 : f32 to vector<16x17xf32>
    %531 = tpu.concatenate %529, %530 in 1 : vector<16x239xf32>, vector<16x17xf32> -> vector<16x256xf32>
    %cst_192 = arith.constant 0.000000e+00 : f32
    %532 = vector.shape_cast %20 : vector<1x256xi1> to vector<1x256xi1>
    %533 = vector.broadcast %532 : vector<1x256xi1> to vector<16x256xi1>
    %534 = vector.broadcast %cst_192 : f32 to vector<16x256xf32>
    %535 = arith.select %533, %531, %534 : vector<16x256xi1>, vector<16x256xf32>
    %536 = tpu.concatenate %494, %497, %504, %511, %433, %518, %525, %528, %535 in 0 : vector<16x256xf32>, vector<16x256xf32>, vector<16x256xf32>, vector<16x256xf32>, vector<16x256xf32>, vector<16x256xf32>, vector<16x256xf32>, vector<16x256xf32>, vector<16x256xf32> -> vector<144x256xf32>
    %cst_193 = arith.constant dense<0.000000e+00> : vector<16x256xf32>
    %537 = tpu.matmul %435, %536, %cst_193 {dimension_numbers = #tpu.dot_dimension_numbers<[1], [0], [0], [1], [0, 0, 1, 1], [], []>} : vector<16x144xf32>, vector<144x256xf32>, vector<16x256xf32> -> vector<16x256xf32>
    %538 = arith.addf %487, %537 : vector<16x256xf32>
    %cst_194 = arith.constant 0.000000e+00 : f32
    %539 = vector.broadcast %cst_194 : f32 to vector<16x17xf32>
    %540 = vector.extract_strided_slice %319 {offsets = [0, 0], sizes = [16, 239], strides = [1, 1]} : vector<16x256xf32> to vector<16x239xf32>
    %541 = tpu.concatenate %539, %540 in 1 : vector<16x17xf32>, vector<16x239xf32> -> vector<16x256xf32>
    %cst_195 = arith.constant 0.000000e+00 : f32
    %542 = vector.shape_cast %18 : vector<1x256xi1> to vector<1x256xi1>
    %543 = vector.broadcast %542 : vector<1x256xi1> to vector<16x256xi1>
    %544 = vector.broadcast %cst_195 : f32 to vector<16x256xf32>
    %545 = arith.select %543, %541, %544 : vector<16x256xi1>, vector<16x256xf32>
    %cst_196 = arith.constant 0.000000e+00 : f32
    %546 = vector.broadcast %cst_196 : f32 to vector<16x16xf32>
    %547 = vector.extract_strided_slice %319 {offsets = [0, 0], sizes = [16, 240], strides = [1, 1]} : vector<16x256xf32> to vector<16x240xf32>
    %548 = tpu.concatenate %546, %547 in 1 : vector<16x16xf32>, vector<16x240xf32> -> vector<16x256xf32>
    %cst_197 = arith.constant 0.000000e+00 : f32
    %549 = vector.broadcast %cst_197 : f32 to vector<16x15xf32>
    %550 = vector.extract_strided_slice %319 {offsets = [0, 0], sizes = [16, 241], strides = [1, 1]} : vector<16x256xf32> to vector<16x241xf32>
    %551 = tpu.concatenate %549, %550 in 1 : vector<16x15xf32>, vector<16x241xf32> -> vector<16x256xf32>
    %cst_198 = arith.constant 0.000000e+00 : f32
    %552 = vector.shape_cast %20 : vector<1x256xi1> to vector<1x256xi1>
    %553 = vector.broadcast %552 : vector<1x256xi1> to vector<16x256xi1>
    %554 = vector.broadcast %cst_198 : f32 to vector<16x256xf32>
    %555 = arith.select %553, %551, %554 : vector<16x256xi1>, vector<16x256xf32>
    %cst_199 = arith.constant 0.000000e+00 : f32
    %556 = vector.broadcast %cst_199 : f32 to vector<16x1xf32>
    %557 = vector.extract_strided_slice %319 {offsets = [0, 0], sizes = [16, 255], strides = [1, 1]} : vector<16x256xf32> to vector<16x255xf32>
    %558 = tpu.concatenate %556, %557 in 1 : vector<16x1xf32>, vector<16x255xf32> -> vector<16x256xf32>
    %cst_200 = arith.constant 0.000000e+00 : f32
    %559 = vector.shape_cast %18 : vector<1x256xi1> to vector<1x256xi1>
    %560 = vector.broadcast %559 : vector<1x256xi1> to vector<16x256xi1>
    %561 = vector.broadcast %cst_200 : f32 to vector<16x256xf32>
    %562 = arith.select %560, %558, %561 : vector<16x256xi1>, vector<16x256xf32>
    %563 = vector.extract_strided_slice %319 {offsets = [0, 1], sizes = [16, 255], strides = [1, 1]} : vector<16x256xf32> to vector<16x255xf32>
    %cst_201 = arith.constant 0.000000e+00 : f32
    %564 = vector.broadcast %cst_201 : f32 to vector<16x1xf32>
    %565 = tpu.concatenate %563, %564 in 1 : vector<16x255xf32>, vector<16x1xf32> -> vector<16x256xf32>
    %cst_202 = arith.constant 0.000000e+00 : f32
    %566 = vector.shape_cast %20 : vector<1x256xi1> to vector<1x256xi1>
    %567 = vector.broadcast %566 : vector<1x256xi1> to vector<16x256xi1>
    %568 = vector.broadcast %cst_202 : f32 to vector<16x256xf32>
    %569 = arith.select %567, %565, %568 : vector<16x256xi1>, vector<16x256xf32>
    %570 = vector.extract_strided_slice %319 {offsets = [0, 15], sizes = [16, 241], strides = [1, 1]} : vector<16x256xf32> to vector<16x241xf32>
    %cst_203 = arith.constant 0.000000e+00 : f32
    %571 = vector.broadcast %cst_203 : f32 to vector<16x15xf32>
    %572 = tpu.concatenate %570, %571 in 1 : vector<16x241xf32>, vector<16x15xf32> -> vector<16x256xf32>
    %cst_204 = arith.constant 0.000000e+00 : f32
    %573 = vector.shape_cast %18 : vector<1x256xi1> to vector<1x256xi1>
    %574 = vector.broadcast %573 : vector<1x256xi1> to vector<16x256xi1>
    %575 = vector.broadcast %cst_204 : f32 to vector<16x256xf32>
    %576 = arith.select %574, %572, %575 : vector<16x256xi1>, vector<16x256xf32>
    %577 = vector.extract_strided_slice %319 {offsets = [0, 16], sizes = [16, 240], strides = [1, 1]} : vector<16x256xf32> to vector<16x240xf32>
    %cst_205 = arith.constant 0.000000e+00 : f32
    %578 = vector.broadcast %cst_205 : f32 to vector<16x16xf32>
    %579 = tpu.concatenate %577, %578 in 1 : vector<16x240xf32>, vector<16x16xf32> -> vector<16x256xf32>
    %580 = vector.extract_strided_slice %319 {offsets = [0, 17], sizes = [16, 239], strides = [1, 1]} : vector<16x256xf32> to vector<16x239xf32>
    %cst_206 = arith.constant 0.000000e+00 : f32
    %581 = vector.broadcast %cst_206 : f32 to vector<16x17xf32>
    %582 = tpu.concatenate %580, %581 in 1 : vector<16x239xf32>, vector<16x17xf32> -> vector<16x256xf32>
    %cst_207 = arith.constant 0.000000e+00 : f32
    %583 = vector.shape_cast %20 : vector<1x256xi1> to vector<1x256xi1>
    %584 = vector.broadcast %583 : vector<1x256xi1> to vector<16x256xi1>
    %585 = vector.broadcast %cst_207 : f32 to vector<16x256xf32>
    %586 = arith.select %584, %582, %585 : vector<16x256xi1>, vector<16x256xf32>
    %587 = tpu.concatenate %545, %548, %555, %562, %319, %569, %576, %579, %586 in 0 : vector<16x256xf32>, vector<16x256xf32>, vector<16x256xf32>, vector<16x256xf32>, vector<16x256xf32>, vector<16x256xf32>, vector<16x256xf32>, vector<16x256xf32>, vector<16x256xf32> -> vector<144x256xf32>
    %cst_208 = arith.constant dense<0.000000e+00> : vector<16x256xf32>
    %588 = tpu.matmul %436, %587, %cst_208 {dimension_numbers = #tpu.dot_dimension_numbers<[1], [0], [0], [1], [0, 0, 1, 1], [], []>} : vector<16x144xf32>, vector<144x256xf32>, vector<16x256xf32> -> vector<16x256xf32>
    %589 = arith.addf %538, %588 : vector<16x256xf32>
    %590 = vector.broadcast %437 : vector<16x1xf32> to vector<16x256xf32>
    %591 = arith.addf %589, %590 : vector<16x256xf32>
    %c0_209 = arith.constant 0 : index
    %c0_210 = arith.constant 0 : index
    %592 = vector.load %arg21[%c0_209, %c0_210] : memref<16x144xf32, #tpu.memory_space<vmem>>, vector<16x144xf32>
    %c0_211 = arith.constant 0 : index
    %c0_212 = arith.constant 0 : index
    %593 = vector.load %arg22[%c0_211, %c0_212] : memref<16x144xf32, #tpu.memory_space<vmem>>, vector<16x144xf32>
    %c0_213 = arith.constant 0 : index
    %c0_214 = arith.constant 0 : index
    %594 = vector.load %arg23[%c0_213, %c0_214] : memref<16x1xf32, #tpu.memory_space<vmem>>, vector<16x1xf32>
    %cst_215 = arith.constant 0.000000e+00 : f32
    %595 = vector.broadcast %cst_215 : f32 to vector<16x17xf32>
    %596 = vector.extract_strided_slice %591 {offsets = [0, 0], sizes = [16, 239], strides = [1, 1]} : vector<16x256xf32> to vector<16x239xf32>
    %597 = tpu.concatenate %595, %596 in 1 : vector<16x17xf32>, vector<16x239xf32> -> vector<16x256xf32>
    %cst_216 = arith.constant 0.000000e+00 : f32
    %598 = vector.shape_cast %18 : vector<1x256xi1> to vector<1x256xi1>
    %599 = vector.broadcast %598 : vector<1x256xi1> to vector<16x256xi1>
    %600 = vector.broadcast %cst_216 : f32 to vector<16x256xf32>
    %601 = arith.select %599, %597, %600 : vector<16x256xi1>, vector<16x256xf32>
    %cst_217 = arith.constant 0.000000e+00 : f32
    %602 = vector.broadcast %cst_217 : f32 to vector<16x16xf32>
    %603 = vector.extract_strided_slice %591 {offsets = [0, 0], sizes = [16, 240], strides = [1, 1]} : vector<16x256xf32> to vector<16x240xf32>
    %604 = tpu.concatenate %602, %603 in 1 : vector<16x16xf32>, vector<16x240xf32> -> vector<16x256xf32>
    %cst_218 = arith.constant 0.000000e+00 : f32
    %605 = vector.broadcast %cst_218 : f32 to vector<16x15xf32>
    %606 = vector.extract_strided_slice %591 {offsets = [0, 0], sizes = [16, 241], strides = [1, 1]} : vector<16x256xf32> to vector<16x241xf32>
    %607 = tpu.concatenate %605, %606 in 1 : vector<16x15xf32>, vector<16x241xf32> -> vector<16x256xf32>
    %cst_219 = arith.constant 0.000000e+00 : f32
    %608 = vector.shape_cast %20 : vector<1x256xi1> to vector<1x256xi1>
    %609 = vector.broadcast %608 : vector<1x256xi1> to vector<16x256xi1>
    %610 = vector.broadcast %cst_219 : f32 to vector<16x256xf32>
    %611 = arith.select %609, %607, %610 : vector<16x256xi1>, vector<16x256xf32>
    %cst_220 = arith.constant 0.000000e+00 : f32
    %612 = vector.broadcast %cst_220 : f32 to vector<16x1xf32>
    %613 = vector.extract_strided_slice %591 {offsets = [0, 0], sizes = [16, 255], strides = [1, 1]} : vector<16x256xf32> to vector<16x255xf32>
    %614 = tpu.concatenate %612, %613 in 1 : vector<16x1xf32>, vector<16x255xf32> -> vector<16x256xf32>
    %cst_221 = arith.constant 0.000000e+00 : f32
    %615 = vector.shape_cast %18 : vector<1x256xi1> to vector<1x256xi1>
    %616 = vector.broadcast %615 : vector<1x256xi1> to vector<16x256xi1>
    %617 = vector.broadcast %cst_221 : f32 to vector<16x256xf32>
    %618 = arith.select %616, %614, %617 : vector<16x256xi1>, vector<16x256xf32>
    %619 = vector.extract_strided_slice %591 {offsets = [0, 1], sizes = [16, 255], strides = [1, 1]} : vector<16x256xf32> to vector<16x255xf32>
    %cst_222 = arith.constant 0.000000e+00 : f32
    %620 = vector.broadcast %cst_222 : f32 to vector<16x1xf32>
    %621 = tpu.concatenate %619, %620 in 1 : vector<16x255xf32>, vector<16x1xf32> -> vector<16x256xf32>
    %cst_223 = arith.constant 0.000000e+00 : f32
    %622 = vector.shape_cast %20 : vector<1x256xi1> to vector<1x256xi1>
    %623 = vector.broadcast %622 : vector<1x256xi1> to vector<16x256xi1>
    %624 = vector.broadcast %cst_223 : f32 to vector<16x256xf32>
    %625 = arith.select %623, %621, %624 : vector<16x256xi1>, vector<16x256xf32>
    %626 = vector.extract_strided_slice %591 {offsets = [0, 15], sizes = [16, 241], strides = [1, 1]} : vector<16x256xf32> to vector<16x241xf32>
    %cst_224 = arith.constant 0.000000e+00 : f32
    %627 = vector.broadcast %cst_224 : f32 to vector<16x15xf32>
    %628 = tpu.concatenate %626, %627 in 1 : vector<16x241xf32>, vector<16x15xf32> -> vector<16x256xf32>
    %cst_225 = arith.constant 0.000000e+00 : f32
    %629 = vector.shape_cast %18 : vector<1x256xi1> to vector<1x256xi1>
    %630 = vector.broadcast %629 : vector<1x256xi1> to vector<16x256xi1>
    %631 = vector.broadcast %cst_225 : f32 to vector<16x256xf32>
    %632 = arith.select %630, %628, %631 : vector<16x256xi1>, vector<16x256xf32>
    %633 = vector.extract_strided_slice %591 {offsets = [0, 16], sizes = [16, 240], strides = [1, 1]} : vector<16x256xf32> to vector<16x240xf32>
    %cst_226 = arith.constant 0.000000e+00 : f32
    %634 = vector.broadcast %cst_226 : f32 to vector<16x16xf32>
    %635 = tpu.concatenate %633, %634 in 1 : vector<16x240xf32>, vector<16x16xf32> -> vector<16x256xf32>
    %636 = vector.extract_strided_slice %591 {offsets = [0, 17], sizes = [16, 239], strides = [1, 1]} : vector<16x256xf32> to vector<16x239xf32>
    %cst_227 = arith.constant 0.000000e+00 : f32
    %637 = vector.broadcast %cst_227 : f32 to vector<16x17xf32>
    %638 = tpu.concatenate %636, %637 in 1 : vector<16x239xf32>, vector<16x17xf32> -> vector<16x256xf32>
    %cst_228 = arith.constant 0.000000e+00 : f32
    %639 = vector.shape_cast %20 : vector<1x256xi1> to vector<1x256xi1>
    %640 = vector.broadcast %639 : vector<1x256xi1> to vector<16x256xi1>
    %641 = vector.broadcast %cst_228 : f32 to vector<16x256xf32>
    %642 = arith.select %640, %638, %641 : vector<16x256xi1>, vector<16x256xf32>
    %643 = tpu.concatenate %601, %604, %611, %618, %591, %625, %632, %635, %642 in 0 : vector<16x256xf32>, vector<16x256xf32>, vector<16x256xf32>, vector<16x256xf32>, vector<16x256xf32>, vector<16x256xf32>, vector<16x256xf32>, vector<16x256xf32>, vector<16x256xf32> -> vector<144x256xf32>
    %cst_229 = arith.constant dense<0.000000e+00> : vector<16x256xf32>
    %644 = tpu.matmul %592, %643, %cst_229 {dimension_numbers = #tpu.dot_dimension_numbers<[1], [0], [0], [1], [0, 0, 1, 1], [], []>} : vector<16x144xf32>, vector<144x256xf32>, vector<16x256xf32> -> vector<16x256xf32>
    %cst_230 = arith.constant 0.000000e+00 : f32
    %645 = vector.broadcast %cst_230 : f32 to vector<16x17xf32>
    %646 = vector.extract_strided_slice %319 {offsets = [0, 0], sizes = [16, 239], strides = [1, 1]} : vector<16x256xf32> to vector<16x239xf32>
    %647 = tpu.concatenate %645, %646 in 1 : vector<16x17xf32>, vector<16x239xf32> -> vector<16x256xf32>
    %cst_231 = arith.constant 0.000000e+00 : f32
    %648 = vector.shape_cast %18 : vector<1x256xi1> to vector<1x256xi1>
    %649 = vector.broadcast %648 : vector<1x256xi1> to vector<16x256xi1>
    %650 = vector.broadcast %cst_231 : f32 to vector<16x256xf32>
    %651 = arith.select %649, %647, %650 : vector<16x256xi1>, vector<16x256xf32>
    %cst_232 = arith.constant 0.000000e+00 : f32
    %652 = vector.broadcast %cst_232 : f32 to vector<16x16xf32>
    %653 = vector.extract_strided_slice %319 {offsets = [0, 0], sizes = [16, 240], strides = [1, 1]} : vector<16x256xf32> to vector<16x240xf32>
    %654 = tpu.concatenate %652, %653 in 1 : vector<16x16xf32>, vector<16x240xf32> -> vector<16x256xf32>
    %cst_233 = arith.constant 0.000000e+00 : f32
    %655 = vector.broadcast %cst_233 : f32 to vector<16x15xf32>
    %656 = vector.extract_strided_slice %319 {offsets = [0, 0], sizes = [16, 241], strides = [1, 1]} : vector<16x256xf32> to vector<16x241xf32>
    %657 = tpu.concatenate %655, %656 in 1 : vector<16x15xf32>, vector<16x241xf32> -> vector<16x256xf32>
    %cst_234 = arith.constant 0.000000e+00 : f32
    %658 = vector.shape_cast %20 : vector<1x256xi1> to vector<1x256xi1>
    %659 = vector.broadcast %658 : vector<1x256xi1> to vector<16x256xi1>
    %660 = vector.broadcast %cst_234 : f32 to vector<16x256xf32>
    %661 = arith.select %659, %657, %660 : vector<16x256xi1>, vector<16x256xf32>
    %cst_235 = arith.constant 0.000000e+00 : f32
    %662 = vector.broadcast %cst_235 : f32 to vector<16x1xf32>
    %663 = vector.extract_strided_slice %319 {offsets = [0, 0], sizes = [16, 255], strides = [1, 1]} : vector<16x256xf32> to vector<16x255xf32>
    %664 = tpu.concatenate %662, %663 in 1 : vector<16x1xf32>, vector<16x255xf32> -> vector<16x256xf32>
    %cst_236 = arith.constant 0.000000e+00 : f32
    %665 = vector.shape_cast %18 : vector<1x256xi1> to vector<1x256xi1>
    %666 = vector.broadcast %665 : vector<1x256xi1> to vector<16x256xi1>
    %667 = vector.broadcast %cst_236 : f32 to vector<16x256xf32>
    %668 = arith.select %666, %664, %667 : vector<16x256xi1>, vector<16x256xf32>
    %669 = vector.extract_strided_slice %319 {offsets = [0, 1], sizes = [16, 255], strides = [1, 1]} : vector<16x256xf32> to vector<16x255xf32>
    %cst_237 = arith.constant 0.000000e+00 : f32
    %670 = vector.broadcast %cst_237 : f32 to vector<16x1xf32>
    %671 = tpu.concatenate %669, %670 in 1 : vector<16x255xf32>, vector<16x1xf32> -> vector<16x256xf32>
    %cst_238 = arith.constant 0.000000e+00 : f32
    %672 = vector.shape_cast %20 : vector<1x256xi1> to vector<1x256xi1>
    %673 = vector.broadcast %672 : vector<1x256xi1> to vector<16x256xi1>
    %674 = vector.broadcast %cst_238 : f32 to vector<16x256xf32>
    %675 = arith.select %673, %671, %674 : vector<16x256xi1>, vector<16x256xf32>
    %676 = vector.extract_strided_slice %319 {offsets = [0, 15], sizes = [16, 241], strides = [1, 1]} : vector<16x256xf32> to vector<16x241xf32>
    %cst_239 = arith.constant 0.000000e+00 : f32
    %677 = vector.broadcast %cst_239 : f32 to vector<16x15xf32>
    %678 = tpu.concatenate %676, %677 in 1 : vector<16x241xf32>, vector<16x15xf32> -> vector<16x256xf32>
    %cst_240 = arith.constant 0.000000e+00 : f32
    %679 = vector.shape_cast %18 : vector<1x256xi1> to vector<1x256xi1>
    %680 = vector.broadcast %679 : vector<1x256xi1> to vector<16x256xi1>
    %681 = vector.broadcast %cst_240 : f32 to vector<16x256xf32>
    %682 = arith.select %680, %678, %681 : vector<16x256xi1>, vector<16x256xf32>
    %683 = vector.extract_strided_slice %319 {offsets = [0, 16], sizes = [16, 240], strides = [1, 1]} : vector<16x256xf32> to vector<16x240xf32>
    %cst_241 = arith.constant 0.000000e+00 : f32
    %684 = vector.broadcast %cst_241 : f32 to vector<16x16xf32>
    %685 = tpu.concatenate %683, %684 in 1 : vector<16x240xf32>, vector<16x16xf32> -> vector<16x256xf32>
    %686 = vector.extract_strided_slice %319 {offsets = [0, 17], sizes = [16, 239], strides = [1, 1]} : vector<16x256xf32> to vector<16x239xf32>
    %cst_242 = arith.constant 0.000000e+00 : f32
    %687 = vector.broadcast %cst_242 : f32 to vector<16x17xf32>
    %688 = tpu.concatenate %686, %687 in 1 : vector<16x239xf32>, vector<16x17xf32> -> vector<16x256xf32>
    %cst_243 = arith.constant 0.000000e+00 : f32
    %689 = vector.shape_cast %20 : vector<1x256xi1> to vector<1x256xi1>
    %690 = vector.broadcast %689 : vector<1x256xi1> to vector<16x256xi1>
    %691 = vector.broadcast %cst_243 : f32 to vector<16x256xf32>
    %692 = arith.select %690, %688, %691 : vector<16x256xi1>, vector<16x256xf32>
    %693 = tpu.concatenate %651, %654, %661, %668, %319, %675, %682, %685, %692 in 0 : vector<16x256xf32>, vector<16x256xf32>, vector<16x256xf32>, vector<16x256xf32>, vector<16x256xf32>, vector<16x256xf32>, vector<16x256xf32>, vector<16x256xf32>, vector<16x256xf32> -> vector<144x256xf32>
    %cst_244 = arith.constant dense<0.000000e+00> : vector<16x256xf32>
    %694 = tpu.matmul %593, %693, %cst_244 {dimension_numbers = #tpu.dot_dimension_numbers<[1], [0], [0], [1], [0, 0, 1, 1], [], []>} : vector<16x144xf32>, vector<144x256xf32>, vector<16x256xf32> -> vector<16x256xf32>
    %695 = arith.addf %644, %694 : vector<16x256xf32>
    %696 = vector.broadcast %594 : vector<16x1xf32> to vector<16x256xf32>
    %697 = arith.addf %695, %696 : vector<16x256xf32>
    %c0_245 = arith.constant 0 : index
    %c0_246 = arith.constant 0 : index
    %698 = vector.load %arg24[%c0_245, %c0_246] : memref<16x144xf32, #tpu.memory_space<vmem>>, vector<16x144xf32>
    %c0_247 = arith.constant 0 : index
    %c0_248 = arith.constant 0 : index
    %699 = vector.load %arg25[%c0_247, %c0_248] : memref<16x1xf32, #tpu.memory_space<vmem>>, vector<16x1xf32>
    %cst_249 = arith.constant 0.000000e+00 : f32
    %700 = vector.broadcast %cst_249 : f32 to vector<16x17xf32>
    %701 = vector.extract_strided_slice %697 {offsets = [0, 0], sizes = [16, 239], strides = [1, 1]} : vector<16x256xf32> to vector<16x239xf32>
    %702 = tpu.concatenate %700, %701 in 1 : vector<16x17xf32>, vector<16x239xf32> -> vector<16x256xf32>
    %cst_250 = arith.constant 0.000000e+00 : f32
    %703 = vector.shape_cast %18 : vector<1x256xi1> to vector<1x256xi1>
    %704 = vector.broadcast %703 : vector<1x256xi1> to vector<16x256xi1>
    %705 = vector.broadcast %cst_250 : f32 to vector<16x256xf32>
    %706 = arith.select %704, %702, %705 : vector<16x256xi1>, vector<16x256xf32>
    %cst_251 = arith.constant 0.000000e+00 : f32
    %707 = vector.broadcast %cst_251 : f32 to vector<16x16xf32>
    %708 = vector.extract_strided_slice %697 {offsets = [0, 0], sizes = [16, 240], strides = [1, 1]} : vector<16x256xf32> to vector<16x240xf32>
    %709 = tpu.concatenate %707, %708 in 1 : vector<16x16xf32>, vector<16x240xf32> -> vector<16x256xf32>
    %cst_252 = arith.constant 0.000000e+00 : f32
    %710 = vector.broadcast %cst_252 : f32 to vector<16x15xf32>
    %711 = vector.extract_strided_slice %697 {offsets = [0, 0], sizes = [16, 241], strides = [1, 1]} : vector<16x256xf32> to vector<16x241xf32>
    %712 = tpu.concatenate %710, %711 in 1 : vector<16x15xf32>, vector<16x241xf32> -> vector<16x256xf32>
    %cst_253 = arith.constant 0.000000e+00 : f32
    %713 = vector.shape_cast %20 : vector<1x256xi1> to vector<1x256xi1>
    %714 = vector.broadcast %713 : vector<1x256xi1> to vector<16x256xi1>
    %715 = vector.broadcast %cst_253 : f32 to vector<16x256xf32>
    %716 = arith.select %714, %712, %715 : vector<16x256xi1>, vector<16x256xf32>
    %cst_254 = arith.constant 0.000000e+00 : f32
    %717 = vector.broadcast %cst_254 : f32 to vector<16x1xf32>
    %718 = vector.extract_strided_slice %697 {offsets = [0, 0], sizes = [16, 255], strides = [1, 1]} : vector<16x256xf32> to vector<16x255xf32>
    %719 = tpu.concatenate %717, %718 in 1 : vector<16x1xf32>, vector<16x255xf32> -> vector<16x256xf32>
    %cst_255 = arith.constant 0.000000e+00 : f32
    %720 = vector.shape_cast %18 : vector<1x256xi1> to vector<1x256xi1>
    %721 = vector.broadcast %720 : vector<1x256xi1> to vector<16x256xi1>
    %722 = vector.broadcast %cst_255 : f32 to vector<16x256xf32>
    %723 = arith.select %721, %719, %722 : vector<16x256xi1>, vector<16x256xf32>
    %724 = vector.extract_strided_slice %697 {offsets = [0, 1], sizes = [16, 255], strides = [1, 1]} : vector<16x256xf32> to vector<16x255xf32>
    %cst_256 = arith.constant 0.000000e+00 : f32
    %725 = vector.broadcast %cst_256 : f32 to vector<16x1xf32>
    %726 = tpu.concatenate %724, %725 in 1 : vector<16x255xf32>, vector<16x1xf32> -> vector<16x256xf32>
    %cst_257 = arith.constant 0.000000e+00 : f32
    %727 = vector.shape_cast %20 : vector<1x256xi1> to vector<1x256xi1>
    %728 = vector.broadcast %727 : vector<1x256xi1> to vector<16x256xi1>
    %729 = vector.broadcast %cst_257 : f32 to vector<16x256xf32>
    %730 = arith.select %728, %726, %729 : vector<16x256xi1>, vector<16x256xf32>
    %731 = vector.extract_strided_slice %697 {offsets = [0, 15], sizes = [16, 241], strides = [1, 1]} : vector<16x256xf32> to vector<16x241xf32>
    %cst_258 = arith.constant 0.000000e+00 : f32
    %732 = vector.broadcast %cst_258 : f32 to vector<16x15xf32>
    %733 = tpu.concatenate %731, %732 in 1 : vector<16x241xf32>, vector<16x15xf32> -> vector<16x256xf32>
    %cst_259 = arith.constant 0.000000e+00 : f32
    %734 = vector.shape_cast %18 : vector<1x256xi1> to vector<1x256xi1>
    %735 = vector.broadcast %734 : vector<1x256xi1> to vector<16x256xi1>
    %736 = vector.broadcast %cst_259 : f32 to vector<16x256xf32>
    %737 = arith.select %735, %733, %736 : vector<16x256xi1>, vector<16x256xf32>
    %738 = vector.extract_strided_slice %697 {offsets = [0, 16], sizes = [16, 240], strides = [1, 1]} : vector<16x256xf32> to vector<16x240xf32>
    %cst_260 = arith.constant 0.000000e+00 : f32
    %739 = vector.broadcast %cst_260 : f32 to vector<16x16xf32>
    %740 = tpu.concatenate %738, %739 in 1 : vector<16x240xf32>, vector<16x16xf32> -> vector<16x256xf32>
    %741 = vector.extract_strided_slice %697 {offsets = [0, 17], sizes = [16, 239], strides = [1, 1]} : vector<16x256xf32> to vector<16x239xf32>
    %cst_261 = arith.constant 0.000000e+00 : f32
    %742 = vector.broadcast %cst_261 : f32 to vector<16x17xf32>
    %743 = tpu.concatenate %741, %742 in 1 : vector<16x239xf32>, vector<16x17xf32> -> vector<16x256xf32>
    %cst_262 = arith.constant 0.000000e+00 : f32
    %744 = vector.shape_cast %20 : vector<1x256xi1> to vector<1x256xi1>
    %745 = vector.broadcast %744 : vector<1x256xi1> to vector<16x256xi1>
    %746 = vector.broadcast %cst_262 : f32 to vector<16x256xf32>
    %747 = arith.select %745, %743, %746 : vector<16x256xi1>, vector<16x256xf32>
    %748 = tpu.concatenate %706, %709, %716, %723, %697, %730, %737, %740, %747 in 0 : vector<16x256xf32>, vector<16x256xf32>, vector<16x256xf32>, vector<16x256xf32>, vector<16x256xf32>, vector<16x256xf32>, vector<16x256xf32>, vector<16x256xf32>, vector<16x256xf32> -> vector<144x256xf32>
    %cst_263 = arith.constant dense<0.000000e+00> : vector<16x256xf32>
    %749 = tpu.matmul %698, %748, %cst_263 {dimension_numbers = #tpu.dot_dimension_numbers<[1], [0], [0], [1], [0, 0, 1, 1], [], []>} : vector<16x144xf32>, vector<144x256xf32>, vector<16x256xf32> -> vector<16x256xf32>
    %750 = vector.broadcast %699 : vector<16x1xf32> to vector<16x256xf32>
    %751 = arith.addf %749, %750 : vector<16x256xf32>
    %cst_264 = arith.constant 0.000000e+00 : f32
    %752 = vector.broadcast %cst_264 : f32 to vector<16x256xf32>
    %753 = arith.maximumf %751, %752 : vector<16x256xf32>
    %c0_265 = arith.constant 0 : index
    %c0_266 = arith.constant 0 : index
    %754 = vector.load %arg26[%c0_265, %c0_266] : memref<16x144xf32, #tpu.memory_space<vmem>>, vector<16x144xf32>
    %c0_267 = arith.constant 0 : index
    %c0_268 = arith.constant 0 : index
    %755 = vector.load %arg27[%c0_267, %c0_268] : memref<16x1xf32, #tpu.memory_space<vmem>>, vector<16x1xf32>
    %cst_269 = arith.constant 0.000000e+00 : f32
    %756 = vector.broadcast %cst_269 : f32 to vector<16x17xf32>
    %757 = vector.extract_strided_slice %753 {offsets = [0, 0], sizes = [16, 239], strides = [1, 1]} : vector<16x256xf32> to vector<16x239xf32>
    %758 = tpu.concatenate %756, %757 in 1 : vector<16x17xf32>, vector<16x239xf32> -> vector<16x256xf32>
    %cst_270 = arith.constant 0.000000e+00 : f32
    %759 = vector.shape_cast %18 : vector<1x256xi1> to vector<1x256xi1>
    %760 = vector.broadcast %759 : vector<1x256xi1> to vector<16x256xi1>
    %761 = vector.broadcast %cst_270 : f32 to vector<16x256xf32>
    %762 = arith.select %760, %758, %761 : vector<16x256xi1>, vector<16x256xf32>
    %cst_271 = arith.constant 0.000000e+00 : f32
    %763 = vector.broadcast %cst_271 : f32 to vector<16x16xf32>
    %764 = vector.extract_strided_slice %753 {offsets = [0, 0], sizes = [16, 240], strides = [1, 1]} : vector<16x256xf32> to vector<16x240xf32>
    %765 = tpu.concatenate %763, %764 in 1 : vector<16x16xf32>, vector<16x240xf32> -> vector<16x256xf32>
    %cst_272 = arith.constant 0.000000e+00 : f32
    %766 = vector.broadcast %cst_272 : f32 to vector<16x15xf32>
    %767 = vector.extract_strided_slice %753 {offsets = [0, 0], sizes = [16, 241], strides = [1, 1]} : vector<16x256xf32> to vector<16x241xf32>
    %768 = tpu.concatenate %766, %767 in 1 : vector<16x15xf32>, vector<16x241xf32> -> vector<16x256xf32>
    %cst_273 = arith.constant 0.000000e+00 : f32
    %769 = vector.shape_cast %20 : vector<1x256xi1> to vector<1x256xi1>
    %770 = vector.broadcast %769 : vector<1x256xi1> to vector<16x256xi1>
    %771 = vector.broadcast %cst_273 : f32 to vector<16x256xf32>
    %772 = arith.select %770, %768, %771 : vector<16x256xi1>, vector<16x256xf32>
    %cst_274 = arith.constant 0.000000e+00 : f32
    %773 = vector.broadcast %cst_274 : f32 to vector<16x1xf32>
    %774 = vector.extract_strided_slice %753 {offsets = [0, 0], sizes = [16, 255], strides = [1, 1]} : vector<16x256xf32> to vector<16x255xf32>
    %775 = tpu.concatenate %773, %774 in 1 : vector<16x1xf32>, vector<16x255xf32> -> vector<16x256xf32>
    %cst_275 = arith.constant 0.000000e+00 : f32
    %776 = vector.shape_cast %18 : vector<1x256xi1> to vector<1x256xi1>
    %777 = vector.broadcast %776 : vector<1x256xi1> to vector<16x256xi1>
    %778 = vector.broadcast %cst_275 : f32 to vector<16x256xf32>
    %779 = arith.select %777, %775, %778 : vector<16x256xi1>, vector<16x256xf32>
    %780 = vector.extract_strided_slice %753 {offsets = [0, 1], sizes = [16, 255], strides = [1, 1]} : vector<16x256xf32> to vector<16x255xf32>
    %cst_276 = arith.constant 0.000000e+00 : f32
    %781 = vector.broadcast %cst_276 : f32 to vector<16x1xf32>
    %782 = tpu.concatenate %780, %781 in 1 : vector<16x255xf32>, vector<16x1xf32> -> vector<16x256xf32>
    %cst_277 = arith.constant 0.000000e+00 : f32
    %783 = vector.shape_cast %20 : vector<1x256xi1> to vector<1x256xi1>
    %784 = vector.broadcast %783 : vector<1x256xi1> to vector<16x256xi1>
    %785 = vector.broadcast %cst_277 : f32 to vector<16x256xf32>
    %786 = arith.select %784, %782, %785 : vector<16x256xi1>, vector<16x256xf32>
    %787 = vector.extract_strided_slice %753 {offsets = [0, 15], sizes = [16, 241], strides = [1, 1]} : vector<16x256xf32> to vector<16x241xf32>
    %cst_278 = arith.constant 0.000000e+00 : f32
    %788 = vector.broadcast %cst_278 : f32 to vector<16x15xf32>
    %789 = tpu.concatenate %787, %788 in 1 : vector<16x241xf32>, vector<16x15xf32> -> vector<16x256xf32>
    %cst_279 = arith.constant 0.000000e+00 : f32
    %790 = vector.shape_cast %18 : vector<1x256xi1> to vector<1x256xi1>
    %791 = vector.broadcast %790 : vector<1x256xi1> to vector<16x256xi1>
    %792 = vector.broadcast %cst_279 : f32 to vector<16x256xf32>
    %793 = arith.select %791, %789, %792 : vector<16x256xi1>, vector<16x256xf32>
    %794 = vector.extract_strided_slice %753 {offsets = [0, 16], sizes = [16, 240], strides = [1, 1]} : vector<16x256xf32> to vector<16x240xf32>
    %cst_280 = arith.constant 0.000000e+00 : f32
    %795 = vector.broadcast %cst_280 : f32 to vector<16x16xf32>
    %796 = tpu.concatenate %794, %795 in 1 : vector<16x240xf32>, vector<16x16xf32> -> vector<16x256xf32>
    %797 = vector.extract_strided_slice %753 {offsets = [0, 17], sizes = [16, 239], strides = [1, 1]} : vector<16x256xf32> to vector<16x239xf32>
    %cst_281 = arith.constant 0.000000e+00 : f32
    %798 = vector.broadcast %cst_281 : f32 to vector<16x17xf32>
    %799 = tpu.concatenate %797, %798 in 1 : vector<16x239xf32>, vector<16x17xf32> -> vector<16x256xf32>
    %cst_282 = arith.constant 0.000000e+00 : f32
    %800 = vector.shape_cast %20 : vector<1x256xi1> to vector<1x256xi1>
    %801 = vector.broadcast %800 : vector<1x256xi1> to vector<16x256xi1>
    %802 = vector.broadcast %cst_282 : f32 to vector<16x256xf32>
    %803 = arith.select %801, %799, %802 : vector<16x256xi1>, vector<16x256xf32>
    %804 = tpu.concatenate %762, %765, %772, %779, %753, %786, %793, %796, %803 in 0 : vector<16x256xf32>, vector<16x256xf32>, vector<16x256xf32>, vector<16x256xf32>, vector<16x256xf32>, vector<16x256xf32>, vector<16x256xf32>, vector<16x256xf32>, vector<16x256xf32> -> vector<144x256xf32>
    %cst_283 = arith.constant dense<0.000000e+00> : vector<16x256xf32>
    %805 = tpu.matmul %754, %804, %cst_283 {dimension_numbers = #tpu.dot_dimension_numbers<[1], [0], [0], [1], [0, 0, 1, 1], [], []>} : vector<16x144xf32>, vector<144x256xf32>, vector<16x256xf32> -> vector<16x256xf32>
    %806 = vector.broadcast %755 : vector<16x1xf32> to vector<16x256xf32>
    %807 = arith.addf %805, %806 : vector<16x256xf32>
    %808 = arith.addf %697, %807 : vector<16x256xf32>
    %c0_284 = arith.constant 0 : index
    %c0_285 = arith.constant 0 : index
    %809 = vector.load %arg28[%c0_284, %c0_285] : memref<16x144xf32, #tpu.memory_space<vmem>>, vector<16x144xf32>
    %c0_286 = arith.constant 0 : index
    %c0_287 = arith.constant 0 : index
    %810 = vector.load %arg29[%c0_286, %c0_287] : memref<16x1xf32, #tpu.memory_space<vmem>>, vector<16x1xf32>
    %cst_288 = arith.constant 0.000000e+00 : f32
    %811 = vector.broadcast %cst_288 : f32 to vector<16x17xf32>
    %812 = vector.extract_strided_slice %808 {offsets = [0, 0], sizes = [16, 239], strides = [1, 1]} : vector<16x256xf32> to vector<16x239xf32>
    %813 = tpu.concatenate %811, %812 in 1 : vector<16x17xf32>, vector<16x239xf32> -> vector<16x256xf32>
    %cst_289 = arith.constant 0.000000e+00 : f32
    %814 = vector.shape_cast %18 : vector<1x256xi1> to vector<1x256xi1>
    %815 = vector.broadcast %814 : vector<1x256xi1> to vector<16x256xi1>
    %816 = vector.broadcast %cst_289 : f32 to vector<16x256xf32>
    %817 = arith.select %815, %813, %816 : vector<16x256xi1>, vector<16x256xf32>
    %cst_290 = arith.constant 0.000000e+00 : f32
    %818 = vector.broadcast %cst_290 : f32 to vector<16x16xf32>
    %819 = vector.extract_strided_slice %808 {offsets = [0, 0], sizes = [16, 240], strides = [1, 1]} : vector<16x256xf32> to vector<16x240xf32>
    %820 = tpu.concatenate %818, %819 in 1 : vector<16x16xf32>, vector<16x240xf32> -> vector<16x256xf32>
    %cst_291 = arith.constant 0.000000e+00 : f32
    %821 = vector.broadcast %cst_291 : f32 to vector<16x15xf32>
    %822 = vector.extract_strided_slice %808 {offsets = [0, 0], sizes = [16, 241], strides = [1, 1]} : vector<16x256xf32> to vector<16x241xf32>
    %823 = tpu.concatenate %821, %822 in 1 : vector<16x15xf32>, vector<16x241xf32> -> vector<16x256xf32>
    %cst_292 = arith.constant 0.000000e+00 : f32
    %824 = vector.shape_cast %20 : vector<1x256xi1> to vector<1x256xi1>
    %825 = vector.broadcast %824 : vector<1x256xi1> to vector<16x256xi1>
    %826 = vector.broadcast %cst_292 : f32 to vector<16x256xf32>
    %827 = arith.select %825, %823, %826 : vector<16x256xi1>, vector<16x256xf32>
    %cst_293 = arith.constant 0.000000e+00 : f32
    %828 = vector.broadcast %cst_293 : f32 to vector<16x1xf32>
    %829 = vector.extract_strided_slice %808 {offsets = [0, 0], sizes = [16, 255], strides = [1, 1]} : vector<16x256xf32> to vector<16x255xf32>
    %830 = tpu.concatenate %828, %829 in 1 : vector<16x1xf32>, vector<16x255xf32> -> vector<16x256xf32>
    %cst_294 = arith.constant 0.000000e+00 : f32
    %831 = vector.shape_cast %18 : vector<1x256xi1> to vector<1x256xi1>
    %832 = vector.broadcast %831 : vector<1x256xi1> to vector<16x256xi1>
    %833 = vector.broadcast %cst_294 : f32 to vector<16x256xf32>
    %834 = arith.select %832, %830, %833 : vector<16x256xi1>, vector<16x256xf32>
    %835 = vector.extract_strided_slice %808 {offsets = [0, 1], sizes = [16, 255], strides = [1, 1]} : vector<16x256xf32> to vector<16x255xf32>
    %cst_295 = arith.constant 0.000000e+00 : f32
    %836 = vector.broadcast %cst_295 : f32 to vector<16x1xf32>
    %837 = tpu.concatenate %835, %836 in 1 : vector<16x255xf32>, vector<16x1xf32> -> vector<16x256xf32>
    %cst_296 = arith.constant 0.000000e+00 : f32
    %838 = vector.shape_cast %20 : vector<1x256xi1> to vector<1x256xi1>
    %839 = vector.broadcast %838 : vector<1x256xi1> to vector<16x256xi1>
    %840 = vector.broadcast %cst_296 : f32 to vector<16x256xf32>
    %841 = arith.select %839, %837, %840 : vector<16x256xi1>, vector<16x256xf32>
    %842 = vector.extract_strided_slice %808 {offsets = [0, 15], sizes = [16, 241], strides = [1, 1]} : vector<16x256xf32> to vector<16x241xf32>
    %cst_297 = arith.constant 0.000000e+00 : f32
    %843 = vector.broadcast %cst_297 : f32 to vector<16x15xf32>
    %844 = tpu.concatenate %842, %843 in 1 : vector<16x241xf32>, vector<16x15xf32> -> vector<16x256xf32>
    %cst_298 = arith.constant 0.000000e+00 : f32
    %845 = vector.shape_cast %18 : vector<1x256xi1> to vector<1x256xi1>
    %846 = vector.broadcast %845 : vector<1x256xi1> to vector<16x256xi1>
    %847 = vector.broadcast %cst_298 : f32 to vector<16x256xf32>
    %848 = arith.select %846, %844, %847 : vector<16x256xi1>, vector<16x256xf32>
    %849 = vector.extract_strided_slice %808 {offsets = [0, 16], sizes = [16, 240], strides = [1, 1]} : vector<16x256xf32> to vector<16x240xf32>
    %cst_299 = arith.constant 0.000000e+00 : f32
    %850 = vector.broadcast %cst_299 : f32 to vector<16x16xf32>
    %851 = tpu.concatenate %849, %850 in 1 : vector<16x240xf32>, vector<16x16xf32> -> vector<16x256xf32>
    %852 = vector.extract_strided_slice %808 {offsets = [0, 17], sizes = [16, 239], strides = [1, 1]} : vector<16x256xf32> to vector<16x239xf32>
    %cst_300 = arith.constant 0.000000e+00 : f32
    %853 = vector.broadcast %cst_300 : f32 to vector<16x17xf32>
    %854 = tpu.concatenate %852, %853 in 1 : vector<16x239xf32>, vector<16x17xf32> -> vector<16x256xf32>
    %cst_301 = arith.constant 0.000000e+00 : f32
    %855 = vector.shape_cast %20 : vector<1x256xi1> to vector<1x256xi1>
    %856 = vector.broadcast %855 : vector<1x256xi1> to vector<16x256xi1>
    %857 = vector.broadcast %cst_301 : f32 to vector<16x256xf32>
    %858 = arith.select %856, %854, %857 : vector<16x256xi1>, vector<16x256xf32>
    %859 = tpu.concatenate %817, %820, %827, %834, %808, %841, %848, %851, %858 in 0 : vector<16x256xf32>, vector<16x256xf32>, vector<16x256xf32>, vector<16x256xf32>, vector<16x256xf32>, vector<16x256xf32>, vector<16x256xf32>, vector<16x256xf32>, vector<16x256xf32> -> vector<144x256xf32>
    %cst_302 = arith.constant dense<0.000000e+00> : vector<16x256xf32>
    %860 = tpu.matmul %809, %859, %cst_302 {dimension_numbers = #tpu.dot_dimension_numbers<[1], [0], [0], [1], [0, 0, 1, 1], [], []>} : vector<16x144xf32>, vector<144x256xf32>, vector<16x256xf32> -> vector<16x256xf32>
    %861 = vector.broadcast %810 : vector<16x1xf32> to vector<16x256xf32>
    %862 = arith.addf %860, %861 : vector<16x256xf32>
    %cst_303 = arith.constant 0.000000e+00 : f32
    %863 = vector.broadcast %cst_303 : f32 to vector<16x256xf32>
    %864 = arith.maximumf %862, %863 : vector<16x256xf32>
    %c0_304 = arith.constant 0 : index
    %c0_305 = arith.constant 0 : index
    %865 = vector.load %arg30[%c0_304, %c0_305] : memref<16x144xf32, #tpu.memory_space<vmem>>, vector<16x144xf32>
    %c0_306 = arith.constant 0 : index
    %c0_307 = arith.constant 0 : index
    %866 = vector.load %arg31[%c0_306, %c0_307] : memref<16x1xf32, #tpu.memory_space<vmem>>, vector<16x1xf32>
    %cst_308 = arith.constant 0.000000e+00 : f32
    %867 = vector.broadcast %cst_308 : f32 to vector<16x17xf32>
    %868 = vector.extract_strided_slice %864 {offsets = [0, 0], sizes = [16, 239], strides = [1, 1]} : vector<16x256xf32> to vector<16x239xf32>
    %869 = tpu.concatenate %867, %868 in 1 : vector<16x17xf32>, vector<16x239xf32> -> vector<16x256xf32>
    %cst_309 = arith.constant 0.000000e+00 : f32
    %870 = vector.shape_cast %18 : vector<1x256xi1> to vector<1x256xi1>
    %871 = vector.broadcast %870 : vector<1x256xi1> to vector<16x256xi1>
    %872 = vector.broadcast %cst_309 : f32 to vector<16x256xf32>
    %873 = arith.select %871, %869, %872 : vector<16x256xi1>, vector<16x256xf32>
    %cst_310 = arith.constant 0.000000e+00 : f32
    %874 = vector.broadcast %cst_310 : f32 to vector<16x16xf32>
    %875 = vector.extract_strided_slice %864 {offsets = [0, 0], sizes = [16, 240], strides = [1, 1]} : vector<16x256xf32> to vector<16x240xf32>
    %876 = tpu.concatenate %874, %875 in 1 : vector<16x16xf32>, vector<16x240xf32> -> vector<16x256xf32>
    %cst_311 = arith.constant 0.000000e+00 : f32
    %877 = vector.broadcast %cst_311 : f32 to vector<16x15xf32>
    %878 = vector.extract_strided_slice %864 {offsets = [0, 0], sizes = [16, 241], strides = [1, 1]} : vector<16x256xf32> to vector<16x241xf32>
    %879 = tpu.concatenate %877, %878 in 1 : vector<16x15xf32>, vector<16x241xf32> -> vector<16x256xf32>
    %cst_312 = arith.constant 0.000000e+00 : f32
    %880 = vector.shape_cast %20 : vector<1x256xi1> to vector<1x256xi1>
    %881 = vector.broadcast %880 : vector<1x256xi1> to vector<16x256xi1>
    %882 = vector.broadcast %cst_312 : f32 to vector<16x256xf32>
    %883 = arith.select %881, %879, %882 : vector<16x256xi1>, vector<16x256xf32>
    %cst_313 = arith.constant 0.000000e+00 : f32
    %884 = vector.broadcast %cst_313 : f32 to vector<16x1xf32>
    %885 = vector.extract_strided_slice %864 {offsets = [0, 0], sizes = [16, 255], strides = [1, 1]} : vector<16x256xf32> to vector<16x255xf32>
    %886 = tpu.concatenate %884, %885 in 1 : vector<16x1xf32>, vector<16x255xf32> -> vector<16x256xf32>
    %cst_314 = arith.constant 0.000000e+00 : f32
    %887 = vector.shape_cast %18 : vector<1x256xi1> to vector<1x256xi1>
    %888 = vector.broadcast %887 : vector<1x256xi1> to vector<16x256xi1>
    %889 = vector.broadcast %cst_314 : f32 to vector<16x256xf32>
    %890 = arith.select %888, %886, %889 : vector<16x256xi1>, vector<16x256xf32>
    %891 = vector.extract_strided_slice %864 {offsets = [0, 1], sizes = [16, 255], strides = [1, 1]} : vector<16x256xf32> to vector<16x255xf32>
    %cst_315 = arith.constant 0.000000e+00 : f32
    %892 = vector.broadcast %cst_315 : f32 to vector<16x1xf32>
    %893 = tpu.concatenate %891, %892 in 1 : vector<16x255xf32>, vector<16x1xf32> -> vector<16x256xf32>
    %cst_316 = arith.constant 0.000000e+00 : f32
    %894 = vector.shape_cast %20 : vector<1x256xi1> to vector<1x256xi1>
    %895 = vector.broadcast %894 : vector<1x256xi1> to vector<16x256xi1>
    %896 = vector.broadcast %cst_316 : f32 to vector<16x256xf32>
    %897 = arith.select %895, %893, %896 : vector<16x256xi1>, vector<16x256xf32>
    %898 = vector.extract_strided_slice %864 {offsets = [0, 15], sizes = [16, 241], strides = [1, 1]} : vector<16x256xf32> to vector<16x241xf32>
    %cst_317 = arith.constant 0.000000e+00 : f32
    %899 = vector.broadcast %cst_317 : f32 to vector<16x15xf32>
    %900 = tpu.concatenate %898, %899 in 1 : vector<16x241xf32>, vector<16x15xf32> -> vector<16x256xf32>
    %cst_318 = arith.constant 0.000000e+00 : f32
    %901 = vector.shape_cast %18 : vector<1x256xi1> to vector<1x256xi1>
    %902 = vector.broadcast %901 : vector<1x256xi1> to vector<16x256xi1>
    %903 = vector.broadcast %cst_318 : f32 to vector<16x256xf32>
    %904 = arith.select %902, %900, %903 : vector<16x256xi1>, vector<16x256xf32>
    %905 = vector.extract_strided_slice %864 {offsets = [0, 16], sizes = [16, 240], strides = [1, 1]} : vector<16x256xf32> to vector<16x240xf32>
    %cst_319 = arith.constant 0.000000e+00 : f32
    %906 = vector.broadcast %cst_319 : f32 to vector<16x16xf32>
    %907 = tpu.concatenate %905, %906 in 1 : vector<16x240xf32>, vector<16x16xf32> -> vector<16x256xf32>
    %908 = vector.extract_strided_slice %864 {offsets = [0, 17], sizes = [16, 239], strides = [1, 1]} : vector<16x256xf32> to vector<16x239xf32>
    %cst_320 = arith.constant 0.000000e+00 : f32
    %909 = vector.broadcast %cst_320 : f32 to vector<16x17xf32>
    %910 = tpu.concatenate %908, %909 in 1 : vector<16x239xf32>, vector<16x17xf32> -> vector<16x256xf32>
    %cst_321 = arith.constant 0.000000e+00 : f32
    %911 = vector.shape_cast %20 : vector<1x256xi1> to vector<1x256xi1>
    %912 = vector.broadcast %911 : vector<1x256xi1> to vector<16x256xi1>
    %913 = vector.broadcast %cst_321 : f32 to vector<16x256xf32>
    %914 = arith.select %912, %910, %913 : vector<16x256xi1>, vector<16x256xf32>
    %915 = tpu.concatenate %873, %876, %883, %890, %864, %897, %904, %907, %914 in 0 : vector<16x256xf32>, vector<16x256xf32>, vector<16x256xf32>, vector<16x256xf32>, vector<16x256xf32>, vector<16x256xf32>, vector<16x256xf32>, vector<16x256xf32>, vector<16x256xf32> -> vector<144x256xf32>
    %cst_322 = arith.constant dense<0.000000e+00> : vector<16x256xf32>
    %916 = tpu.matmul %865, %915, %cst_322 {dimension_numbers = #tpu.dot_dimension_numbers<[1], [0], [0], [1], [0, 0, 1, 1], [], []>} : vector<16x144xf32>, vector<144x256xf32>, vector<16x256xf32> -> vector<16x256xf32>
    %917 = vector.broadcast %866 : vector<16x1xf32> to vector<16x256xf32>
    %918 = arith.addf %916, %917 : vector<16x256xf32>
    %919 = arith.addf %808, %918 : vector<16x256xf32>
    %c0_323 = arith.constant 0 : index
    %c0_324 = arith.constant 0 : index
    %c0_325 = arith.constant 0 : index
    %920 = vector.load %arg32[%c0_323, %c0_324, %c0_325] : memref<1x16x256xf32, #tpu.memory_space<vmem>>, vector<1x16x256xf32>
    %921 = vector.shape_cast %920 : vector<1x16x256xf32> to vector<16x256xf32>
    %922 = vector.shape_cast %919 : vector<16x256xf32> to vector<1x16x256xf32>
    tpu.vector_store %arg32[%c0_323, %c0_324, %c0_325], %922 {strides = array<i32>} : memref<1x16x256xf32, #tpu.memory_space<vmem>>, vector<1x16x256xf32>,
    return
  }
  func.func @transform_0(%arg0: i32) -> (i32, i32, i32) {
    %c0_i32 = arith.constant 0 : i32
    %c0_i32_0 = arith.constant 0 : i32
    %c0_i32_1 = arith.constant 0 : i32
    return %arg0, %c0_i32, %c0_i32_0 : i32, i32, i32
  }
  func.func @transform_1(%arg0: i32) -> (i32, i32, i32) {
    %c0_i32 = arith.constant 0 : i32
    %c0_i32_0 = arith.constant 0 : i32
    %c0_i32_1 = arith.constant 0 : i32
    %c0_i32_2 = arith.constant 0 : i32
    return %c0_i32, %c0_i32_0, %c0_i32_1 : i32, i32, i32
  }
  func.func @transform_2(%arg0: i32) -> (i32, i32) {
    %c0_i32 = arith.constant 0 : i32
    %c0_i32_0 = arith.constant 0 : i32
    %c0_i32_1 = arith.constant 0 : i32
    return %c0_i32, %c0_i32_0 : i32, i32
  }
  func.func @transform_3(%arg0: i32) -> (i32, i32) {
    %c0_i32 = arith.constant 0 : i32
    %c0_i32_0 = arith.constant 0 : i32
    %c0_i32_1 = arith.constant 0 : i32
    return %c0_i32, %c0_i32_0 : i32, i32
  }
  func.func @transform_4(%arg0: i32) -> (i32, i32) {
    %c0_i32 = arith.constant 0 : i32
    %c0_i32_0 = arith.constant 0 : i32
    %c0_i32_1 = arith.constant 0 : i32
    return %c0_i32, %c0_i32_0 : i32, i32
  }
  func.func @transform_5(%arg0: i32) -> (i32, i32) {
    %c0_i32 = arith.constant 0 : i32
    %c0_i32_0 = arith.constant 0 : i32
    %c0_i32_1 = arith.constant 0 : i32
    return %c0_i32, %c0_i32_0 : i32, i32
  }
  func.func @transform_6(%arg0: i32) -> (i32, i32) {
    %c0_i32 = arith.constant 0 : i32
    %c0_i32_0 = arith.constant 0 : i32
    %c0_i32_1 = arith.constant 0 : i32
    return %c0_i32, %c0_i32_0 : i32, i32
  }
  func.func @transform_7(%arg0: i32) -> (i32, i32) {
    %c0_i32 = arith.constant 0 : i32
    %c0_i32_0 = arith.constant 0 : i32
    %c0_i32_1 = arith.constant 0 : i32
    return %c0_i32, %c0_i32_0 : i32, i32
  }
  func.func @transform_8(%arg0: i32) -> (i32, i32) {
    %c0_i32 = arith.constant 0 : i32
    %c0_i32_0 = arith.constant 0 : i32
    %c0_i32_1 = arith.constant 0 : i32
    return %c0_i32, %c0_i32_0 : i32, i32
  }
  func.func @transform_9(%arg0: i32) -> (i32, i32) {
    %c0_i32 = arith.constant 0 : i32
    %c0_i32_0 = arith.constant 0 : i32
    %c0_i32_1 = arith.constant 0 : i32
    return %c0_i32, %c0_i32_0 : i32, i32
  }
  func.func @transform_10(%arg0: i32) -> (i32, i32) {
    %c0_i32 = arith.constant 0 : i32
    %c0_i32_0 = arith.constant 0 : i32
    %c0_i32_1 = arith.constant 0 : i32
    return %c0_i32, %c0_i32_0 : i32, i32
  }
  func.func @transform_11(%arg0: i32) -> (i32, i32) {
    %c0_i32 = arith.constant 0 : i32
    %c0_i32_0 = arith.constant 0 : i32
    %c0_i32_1 = arith.constant 0 : i32
    return %c0_i32, %c0_i32_0 : i32, i32
  }
  func.func @transform_12(%arg0: i32) -> (i32, i32) {
    %c0_i32 = arith.constant 0 : i32
    %c0_i32_0 = arith.constant 0 : i32
    %c0_i32_1 = arith.constant 0 : i32
    return %c0_i32, %c0_i32_0 : i32, i32
  }
  func.func @transform_13(%arg0: i32) -> (i32, i32) {
    %c0_i32 = arith.constant 0 : i32
    %c0_i32_0 = arith.constant 0 : i32
    %c0_i32_1 = arith.constant 0 : i32
    return %c0_i32, %c0_i32_0 : i32, i32
  }
  func.func @transform_14(%arg0: i32) -> (i32, i32) {
    %c0_i32 = arith.constant 0 : i32
    %c0_i32_0 = arith.constant 0 : i32
    %c0_i32_1 = arith.constant 0 : i32
    return %c0_i32, %c0_i32_0 : i32, i32
  }
  func.func @transform_15(%arg0: i32) -> (i32, i32) {
    %c0_i32 = arith.constant 0 : i32
    %c0_i32_0 = arith.constant 0 : i32
    %c0_i32_1 = arith.constant 0 : i32
    return %c0_i32, %c0_i32_0 : i32, i32
  }
  func.func @transform_16(%arg0: i32) -> (i32, i32) {
    %c0_i32 = arith.constant 0 : i32
    %c0_i32_0 = arith.constant 0 : i32
    %c0_i32_1 = arith.constant 0 : i32
    return %c0_i32, %c0_i32_0 : i32, i32
  }
  func.func @transform_17(%arg0: i32) -> (i32, i32) {
    %c0_i32 = arith.constant 0 : i32
    %c0_i32_0 = arith.constant 0 : i32
    %c0_i32_1 = arith.constant 0 : i32
    return %c0_i32, %c0_i32_0 : i32, i32
  }
  func.func @transform_18(%arg0: i32) -> (i32, i32) {
    %c0_i32 = arith.constant 0 : i32
    %c0_i32_0 = arith.constant 0 : i32
    %c0_i32_1 = arith.constant 0 : i32
    return %c0_i32, %c0_i32_0 : i32, i32
  }
  func.func @transform_19(%arg0: i32) -> (i32, i32) {
    %c0_i32 = arith.constant 0 : i32
    %c0_i32_0 = arith.constant 0 : i32
    %c0_i32_1 = arith.constant 0 : i32
    return %c0_i32, %c0_i32_0 : i32, i32
  }
  func.func @transform_20(%arg0: i32) -> (i32, i32) {
    %c0_i32 = arith.constant 0 : i32
    %c0_i32_0 = arith.constant 0 : i32
    %c0_i32_1 = arith.constant 0 : i32
    return %c0_i32, %c0_i32_0 : i32, i32
  }
  func.func @transform_21(%arg0: i32) -> (i32, i32) {
    %c0_i32 = arith.constant 0 : i32
    %c0_i32_0 = arith.constant 0 : i32
    %c0_i32_1 = arith.constant 0 : i32
    return %c0_i32, %c0_i32_0 : i32, i32
  }
  func.func @transform_22(%arg0: i32) -> (i32, i32) {
    %c0_i32 = arith.constant 0 : i32
    %c0_i32_0 = arith.constant 0 : i32
    %c0_i32_1 = arith.constant 0 : i32
    return %c0_i32, %c0_i32_0 : i32, i32
  }
  func.func @transform_23(%arg0: i32) -> (i32, i32) {
    %c0_i32 = arith.constant 0 : i32
    %c0_i32_0 = arith.constant 0 : i32
    %c0_i32_1 = arith.constant 0 : i32
    return %c0_i32, %c0_i32_0 : i32, i32
  }
  func.func @transform_24(%arg0: i32) -> (i32, i32) {
    %c0_i32 = arith.constant 0 : i32
    %c0_i32_0 = arith.constant 0 : i32
    %c0_i32_1 = arith.constant 0 : i32
    return %c0_i32, %c0_i32_0 : i32, i32
  }
  func.func @transform_25(%arg0: i32) -> (i32, i32) {
    %c0_i32 = arith.constant 0 : i32
    %c0_i32_0 = arith.constant 0 : i32
    %c0_i32_1 = arith.constant 0 : i32
    return %c0_i32, %c0_i32_0 : i32, i32
  }
  func.func @transform_26(%arg0: i32) -> (i32, i32) {
    %c0_i32 = arith.constant 0 : i32
    %c0_i32_0 = arith.constant 0 : i32
    %c0_i32_1 = arith.constant 0 : i32
    return %c0_i32, %c0_i32_0 : i32, i32
  }
  func.func @transform_27(%arg0: i32) -> (i32, i32) {
    %c0_i32 = arith.constant 0 : i32
    %c0_i32_0 = arith.constant 0 : i32
    %c0_i32_1 = arith.constant 0 : i32
    return %c0_i32, %c0_i32_0 : i32, i32
  }
  func.func @transform_28(%arg0: i32) -> (i32, i32) {
    %c0_i32 = arith.constant 0 : i32
    %c0_i32_0 = arith.constant 0 : i32
    %c0_i32_1 = arith.constant 0 : i32
    return %c0_i32, %c0_i32_0 : i32, i32
  }
  func.func @transform_29(%arg0: i32) -> (i32, i32) {
    %c0_i32 = arith.constant 0 : i32
    %c0_i32_0 = arith.constant 0 : i32
    %c0_i32_1 = arith.constant 0 : i32
    return %c0_i32, %c0_i32_0 : i32, i32
  }
  func.func @transform_30(%arg0: i32) -> (i32, i32) {
    %c0_i32 = arith.constant 0 : i32
    %c0_i32_0 = arith.constant 0 : i32
    %c0_i32_1 = arith.constant 0 : i32
    return %c0_i32, %c0_i32_0 : i32, i32
  }
  func.func @transform_31(%arg0: i32) -> (i32, i32, i32) {
    %c0_i32 = arith.constant 0 : i32
    %c0_i32_0 = arith.constant 0 : i32
    %c0_i32_1 = arith.constant 0 : i32
    return %arg0, %c0_i32, %c0_i32_0 : i32, i32, i32
  }
}

</mosaic_0001>

<bundles_post_ra>
// kernel: dft_feature_extractor.1
= control target key start
LH: loop header
LB: loop body
LE: loop exit
PB: predicated region body
PF: predicated region fallthrough
CT: control target
= control target key end

     0   :  { %s9255_s6 = smov 1   ;;  %s9256_s10 = smov 2   ;;  %s13428_s0 = inlined_call_operand.smem [shape: u32[32], index: -1, kind: input, shape index: {}] }
   0x1   :  { %s9318_s5 = sld [smem:[%s13428_s0]]   ;;  %s9257_s14 = smov 3  }
   0x2   :  { %s9323_s9 = sld [smem:[%s13428_s0 + %s9255_s6]]   ;;  %s9258_s18 = smov 4  }
   0x3   :  { %s9328_s13 = sld [smem:[%s13428_s0 + %s9256_s10]]   ;;  %s9259_s22 = smov 5  }
   0x4   :  { %s9333_s17 = sld [smem:[%s13428_s0 + %s9257_s14]]   ;;  %s9260_s26 = smov 6  }
   0x5   :  { %s9338_s21 = sld [smem:[%s13428_s0 + %s9258_s18]]   ;;  %s9261_s30 = smov 7  }
   0x6   :  { %s9343_s25 = sld [smem:[%s13428_s0 + %s9259_s22]]   ;;  %s9262_s4 = smov 8  }
   0x7   :  { %13495 = sst [smem:[#allocation3_spill]] %s9318_s5  ;;  %s9263_s10 = smov 9  }
   0x8   :  { %13496 = sst [smem:[#allocation4_spill]] %s9323_s9  ;;  %s9264_s15 = smov 10  }
   0x9   :  { %s9348_s29 = sld [smem:[%s13428_s0 + %s9260_s26]]   ;;  %s9265_s20 = smov 11  }
   0xa   :  { %s9353_s3 = sld [smem:[%s13428_s0 + %s9261_s30]]   ;;  %s9266_s26 = smov 12  }
   0xb   :  { %s9358_s8 = sld [smem:[%s13428_s0 + %s9262_s4]]   ;;  %s9267_s1 = smov 13  }
   0xc   :  { %s9363_s14 = sld [smem:[%s13428_s0 + %s9263_s10]]   ;;  %s9268_s7 = smov 14  }
   0xd   :  { %s9368_s19 = sld [smem:[%s13428_s0 + %s9264_s15]]   ;;  %s9269_s15 = smov 15  }
   0xe   :  { %s9373_s24 = sld [smem:[%s13428_s0 + %s9265_s20]]   ;;  %s9270_s22 = smov 16  }
   0xf   :  { %s9378_s30 = sld [smem:[%s13428_s0 + %s9266_s26]]   ;;  %s9271_s28 = smov 17  }
  0x10   :  { %13497 = sst [smem:[#allocation5_spill]] %s9353_s3  ;;  %s9272_s10 = smov 18  }
  0x11   :  { %s9383_s6 = sld [smem:[%s13428_s0 + %s9267_s1]]   ;;  %s9273_s16 = smov 19  }
  0x12   :  { %s9388_s12 = sld [smem:[%s13428_s0 + %s9268_s7]]   ;;  %s9278_s23 = smov 24  }
  0x13   :  { %s8423_s20 = sld [smem:[%s13428_s0 + %s9269_s15]]  }
  0x14   :  { %s9396_s27 = sld [smem:[%s13428_s0 + %s9270_s22]]   ;;  %s9274_s22 = smov 20  }
  0x15   :  { %s9401_s4 = sld [smem:[%s13428_s0 + %s9271_s28]]   ;;  %s9275_s28 = smov 21  }
  0x16   :  { %s9406_s9 = sld [smem:[%s13428_s0 + %s9272_s10]]   ;;  %s9276_s10 = smov 22  }
  0x17   :  { %13498 = sst [smem:[#allocation6_spill]] %s9383_s6 }
  0x18   :  { %13499 = sst [smem:[#allocation7_spill]] %s9388_s12 }
  0x19   :  { %s9411_s12 = sld [smem:[%s13428_s0 + %s9273_s16]]   ;;  %v68_v0 = vstv %s8423_s20  ;;  %s9277_s16 = smov 23  }
  0x1a   :  { %13500 = sst [smem:[#allocation8_spill]] %s9396_s27  ;;  %69 = vst [vmem:[#allocation2] sm:$0x1] %v68_v0  ;;  %s9279_s20 = smov 25  }
  0x1b   :  { %13501 = sst [smem:[#allocation9_spill]] %s9401_s4 }
  0x1c   :  { %13502 = sst [smem:[#allocation10_spill]] %s9406_s9  ;;  %s9281_s9 = smov 27  }
  0x1d   :  { %s9416_s27 = sld [smem:[%s13428_s0 + %s9274_s22]]  }
  0x1e   :  { %s9421_s4 = sld [smem:[%s13428_s0 + %s9275_s28]]  }
  0x1f   :  { %s9426_s15 = sld [smem:[%s13428_s0 + %s9276_s10]]   ;;  %s9280_s10 = smov 26  }
  0x20   :  { %s9431_s22 = sld [smem:[%s13428_s0 + %s9277_s16]]  }
  0x21   :  { %s9436_s28 = sld [smem:[%s13428_s0 + %s9278_s23]]  }
  0x22   :  { %s9441_s7 = sld [smem:[%s13428_s0 + %s9279_s20]]   ;;  %s9283_s20 = smov 29  }
  0x23   :  { %13503 = sst [smem:[#allocation11_spill]] %s9416_s27  ;;  %s9282_s27 = smov 28  }
  0x24   :  { %13504 = sst [smem:[#allocation12_spill]] %s9421_s4 }
  0x25   :  { %13505 = sst [smem:[#allocation13_spill]] %s9426_s15  ;;  %s9284_s15 = smov 30  }
  0x26   :  { %13506 = sst [smem:[#allocation14_spill]] %s9431_s22 }
  0x27   :  { %13507 = sst [smem:[#allocation15_spill]] %s9436_s28 }
  0x28   :  { %13508 = sst [smem:[#allocation16_spill]] %s9441_s7 }
  0x29   :  { %s9446_s4 = sld [smem:[%s13428_s0 + %s9280_s10]]  }
  0x2a   :  { %s9451_s22 = sld [smem:[%s13428_s0 + %s9281_s9]]   ;;  %s9285_s9 = smov 31  }
  0x2b   :  { %s9456_s28 = sld [smem:[%s13428_s0 + %s9282_s27]]   ;;  %s9473_s27 = smov 0  }
  0x2c   :  { %s9461_s7 = sld [smem:[%s13428_s0 + %s9283_s20]]  }
  0x2f   :  { %13509 = sst [smem:[#allocation17_spill]] %s9446_s4 }
  0x30   :  { %13510 = sst [smem:[#allocation18_spill]] %s9451_s22 }
  0x31   :  { %s9466_s4 = sld [smem:[%s13428_s0 + %s9284_s15]]  }
  0x32   :  { %s9471_s22 = sld [smem:[%s13428_s0 + %s9285_s9]]  }
  0x33 LB: > { %s13511_s6 = sld [smem:[#allocation6_spill]]  ;;  %s8440_s23 = sadd.s32 4294967295, %s9253_s27   ;;  %s9253_s27 = sphi %s9473_s27, %s75_s27  }
  0x34   : > { %s13512_s3 = sld [smem:[#allocation5_spill]]  ;;  %p8444_p0 = scmp.ge.s32.totalorder %s9253_s27, 1 }
  0x35   : > { %p871_p1 = scmp.lt.s32.totalorder %s9253_s27, 3 }
  0x37   : > { %p872_p2 = pnand %p8444_p0, %p871_p1 }
  0x39   : > { %875 = sbr.rel (%p872_p2) target bundleno = 5034 (0x13aa), region = 144 }
  0x3e   : > { %p951_p3 = scmp.lt.s32.totalorder %s8440_s23, 1  ;;  %s13513_s5 = sld [smem:[#allocation3_spill]]  ;;  %v9292_v3 = vmov 0.0   ;;  %v9294_v4 = vmov 0   ;;  %v995_v5 = vld [vmem:[%s9333_s17] sm:$0xff]  ;;  %v996_v6 = vld [vmem:[%s9333_s17 + $0x8] sm:$0xff]  ;;  %v961_v7 = vlaneseq }
  0x3f   : > { %s13484_s20 = smov 1   ;;  %s13479_s1 = smov 15   ;;  %1233 = vmatprep.mubr.f32.mxu1 %v9292_v3  ;;  %9228 = vset.pattern.permute.xlu1 %v9294_v4  ;;  %vm13457_vm0 = vcmask 7168   ;;  %vm13441_vm1 = vcmask 121856   ;;  %vm13459_vm3 = vcmask 924672   ;;  %vm13458_vm7 = vcmask 1039360  }
  0x40   : > { %s13861_s23 = smov (!%p951_p3, %s8440_s23), 1  ;;  %s13482_s2 = smov 127   ;;  %9227 = vset.pattern.permute.xlu0 %v9294_v4  ;;  %v962_v10 = vand.u32 127, %v961_v7  ;;  %vm13460_vm8 = vcmask 916480   ;;  %vm13449_vm9 = vcmask 908288   ;;  %vm13448_vm10 = vcmask 1042432  }
  0x41   : > { %s8970_s0 = sshll.u32 %s13861_s23, 3  ;;  %s13454_s15 = smov 113   ;;  %vm13442_vm11 = vcmask 1040384   ;;  %vm13443_vm12 = vcmask 1041408   ;;  %vm13446_vm13 = vcmask 1044480   ;;  %vm13447_vm14 = vcmask 1043456  }
  0x42   : > { %s13452_s10 = smov 111   ;;  %s13486_s11 = smov 112   ;;  %v963_v11 = vadd.s32 128, %v962_v10  ;;  %v968_v14 = vand.u32 15, %v962_v10  ;;  %vm13444_vm15 = vcmask 1046528   ;;  %v8094_v20 = vld [vmem:[%s9461_s7 + $0x18] sm:$0xff] }
  0x43   : > { %s13477_s9 = smov 16   ;;  %s13450_s16 = smov 17  }
  0x44   : > { %s955_s26 = scalar_lea.vmem %s13513_s5, %s8970_s0  ;;  %v975_v15 = vand.u32 15, %v963_v11  ;;  %vm9522_vm4 = vcmp.ge.s32.totalorder %v968_v14, 1  ;;  %vm9527_vm5 = vcmp.le.s32.totalorder %v968_v14, 14  ;;  %s13554_s18 = sld [smem:[#allocation7_spill]] }
  0x45   : > { %v9485_v1 = vld [vmem:[%s955_s26] sm:$0x77]  ;;  %s9297_s0 = smov 96   ;;  %s9298_s26 = smov 64  }
  0x46   : > { %1037 = vrot.lane.b32.xlu0 %v9485_v1, %s13484_s20  ;;  %1022 = vrot.lane.b32.xlu1 %v9485_v1, %s13479_s1  ;;  %v998_v2 = vcombine.high %v9485_v1, %v9485_v1  ;;  %vm9517_vm2 = vcmp.ge.s32.totalorder %v975_v15, 1  ;;  %vm9532_vm6 = vcmp.le.s32.totalorder %v975_v15, 14  ;;  %v1106_v59 = vcombine.low %v9485_v1, %v9485_v1  ;;  %s13709_s5 = sld [smem:[#allocation11_spill]] }
  0x4a   : > { %1024 = vrot.lane.b32.xlu1 %v998_v2, %s13479_s1  ;;  %1050 = vrot.lane.b32.xlu0 %v998_v2, %s13482_s2 }
  0x4e   : > { %1039 = vrot.lane.b32.xlu1 %v998_v2, %s13484_s20  ;;  %1061 = vrot.lane.b32.xlu0 %v998_v2, %s13454_s15 }
  0x52   : > { %1059 = vrot.lane.b32.xlu1 %v9485_v1, %s13454_s15  ;;  %1048 = vrot.lane.b32.xlu0 %v9485_v1, %s13482_s2 }
  0x56   : > { %1080 = vrot.lane.b32.xlu1 %v998_v2, %s13452_s10  ;;  %1072 = vrot.lane.b32.xlu0 %v998_v2, %s13486_s11 }
  0x5a   : > { %1078 = vrot.lane.b32.xlu1 %v9485_v1, %s13452_s10  ;;  %1070 = vrot.lane.b32.xlu0 %v9485_v1, %s13486_s11 }
  0x5e   : > { %1016 = vrot.lane.b32.xlu1 %v998_v2, %s13477_s9  ;;  %1014 = vrot.lane.b32.xlu0 %v9485_v1, %s13477_s9 }
  0x62   : > { %1001 = vrot.lane.b32.xlu1 %v998_v2, %s13450_s16  ;;  %999 = vrot.lane.b32.xlu0 %v9485_v1, %s13450_s16 }
  0x66   : > { %1148 = vperm.xlu1 %9228, %v995_v5   ;;  %1153 = vperm.xlu0 %9227, %v996_v6  }
  0xb8   : > { %v1038_v8 = vpop.permute.xlu0 %1037  ;;  %v1023_v9 = vpop.permute.xlu1 %1022 }
  0xb9   : > { %v1045_v21 = vsel %vm13457_vm0, 0.0, %v1038_v8  ;;  %v1030_v23 = vsel %vm13441_vm1, 0.0, %v1023_v9 }
  0xba   : > { %v1046_v30 = vsel %vm9522_vm4, %v1045_v21, 0.0  ;;  %v1035_v31 = vsel %vm9527_vm5, %v1030_v23, 0.0 }
  0xbb   : > { %v1102_v38 = vrot.slane %v1046_v30, 7  ;;  %v1096_v39 = vrot.slane %v1035_v31, 2  ;;  %v994_v30 = vld [vmem:[%s9328_s13 + $0x8] sm:$0xff] }
  0xbc   : > { %v1025_v12 = vpop.permute.xlu1 %1024  ;;  %v1051_v13 = vpop.permute.xlu0 %1050 }
  0xbd   : > { %v1027_v25 = vsel %vm13441_vm1, %v1023_v9, %v1025_v12  ;;  %v1056_v35 = vsel %vm13458_vm7, %v1051_v13, 0.0  ;;  %v1132_v60 = vsel %vm13442_vm11, %v1096_v39, %v1102_v38  ;;  %vm1018_vm1 = vcmask 130048  }
  0xbe   : > { %v1036_v34 = vsel %vm9532_vm6, %v1027_v25, 0.0  ;;  %v1058_v45 = vsel %vm9532_vm6, %v1056_v35, 0.0  ;;  %v1135_v10 = vsel %vm13447_vm14, %v1132_v60, %v1106_v59 }
  0xbf   : > { %v1097_v44 = vrot.slane %v1036_v34, 2  ;;  %v1111_v54 = vrot.slane %v1058_v45, 1 }
  0xc0   : > { %v1040_v16 = vpop.permute.xlu1 %1039  ;;  %v1062_v17 = vpop.permute.xlu0 %1061 }
  0xc1   : > { %v1042_v19 = vsel %vm13457_vm0, %v1038_v8, %v1040_v16  ;;  %v1067_v27 = vsel %vm13459_vm3, %v1062_v17, 0.0 }
  0xc2   : > { %v1047_v26 = vsel %vm9517_vm2, %v1042_v19, 0.0  ;;  %v1069_v37 = vsel %vm9517_vm2, %v1067_v27, 0.0 }
  0xc3   : > { %v1103_v36 = vrot.slane %v1047_v26, 7  ;;  %v1117_v48 = vrot.slane %v1069_v37, 6 }
  0xc4   : > { %v1060_v28 = vpop.permute.xlu1 %1059  ;;  %v1049_v29 = vpop.permute.xlu0 %1048 }
  0xc5   : > { %v1064_v32 = vsel %vm13459_vm3, %v1060_v28, %v1062_v17  ;;  %v1053_v33 = vsel %vm13458_vm7, %v1049_v29, %v1051_v13  ;;  %v1133_v53 = vsel %vm13442_vm11, %v1097_v44, %v1103_v36  ;;  %v1142_v63 = vsel %vm13443_vm12, %v1111_v54, %v1117_v48  ;;  %v993_v29 = vld [vmem:[%s9328_s13] sm:$0xff] }
  0xc6   : > { %v1068_v40 = vsel %vm9522_vm4, %v1064_v32, 0.0  ;;  %v1057_v41 = vsel %vm9527_vm5, %v1053_v33, 0.0  ;;  %v1136_v0 = vsel %vm13447_vm14, %v1133_v53, %v9485_v1  ;;  %vm13456_vm11 = vcmask 138240  }
  0xc7   : > { %v1116_v50 = vrot.slane %v1068_v40, 6  ;;  %v1110_v51 = vrot.slane %v1057_v41, 1  ;;  %v1139_v9 = vsel %vm13444_vm15, %v1136_v0, %v1111_v54  ;;  %v1247_v41 = vld [vmem:[%s9338_s21 + $0x8] sm:$0xff] }
  0xc8   : > { %v1081_v42 = vpop.permute.xlu1 %1080  ;;  %v1073_v43 = vpop.permute.xlu0 %1072 }
  0xc9   : > { %v1077_v46 = vsel %vm13460_vm8, %v1073_v43, 0.0  ;;  %v1086_v47 = vsel %vm13449_vm9, %v1081_v42, 0.0  ;;  %v1141_v4 = vsel %vm13443_vm12, %v1110_v51, %v1116_v50  ;;  %v1138_v12 = vsel %vm13444_vm15, %v1135_v10, %v1110_v51 }
  0xca   : > { %v1088_v49 = vsel %vm9532_vm6, %v1086_v47, 0.0  ;;  %v1122_v52 = vrot.slane %v1077_v46, 3  ;;  %vm13445_vm12 = vcmask 1045504   ;;  %vm1156_vm15 = vcmask 220160  }
  0xcb   : > { %8449 = vmatprep.subr.msk.mxu1 %vm13448_vm10, %v1088_v49 }
  0xcc   : > { %v1079_v55 = vpop.permute.xlu1 %1078  ;;  %v1071_v56 = vpop.permute.xlu0 %1070  ;;  %v1145_v2 = vsel %vm13446_vm13, %v1142_v63, %v1122_v52 }
  0xcd   : > { %v1083_v57 = vsel %vm13449_vm9, %v1079_v55, %v1081_v42  ;;  %v1075_v58 = vsel %vm13460_vm8, %v1071_v56, %v1073_v43  ;;  %v1250_v42 = vld [vmem:[%s9343_s25] sm:$0xff]  ;;  %v1251_v43 = vld [vmem:[%s9343_s25 + $0x8] sm:$0xff] }
  0xce   : > { %v1121_v61 = vrot.slane %v1075_v58, 3  ;;  %v1087_v62 = vsel %vm9527_vm5, %v1083_v57, 0.0 }
  0xcf   : > { %8450 = vmatpush1.msk.msra.mxu1 %vm13448_vm10, %v1087_v62 }
  0xd0   : > { %v1017_v5 = vpop.permute.xlu1 %1016  ;;  %1195 = vmatprep.subr.mxu1 %v1145_v2  ;;  %v1015_v6 = vpop.permute.xlu0 %1014  ;;  %v1144_v8 = vsel %vm13446_vm13, %v1141_v4, %v1121_v61 }
  0xd1   : > { %1196 = vmatpush1.msra.mxu1 %v1144_v8  ;;  %v1019_v1 = vsel %vm1018_vm1, %v1015_v6, %v1017_v5  ;;  %v1021_v11 = vsel %vm1018_vm1, 0.0, %v1015_v6 }
  0xd2   : > { %1197 = vmatprep.subr.mxu1 %v1139_v9  ;;  %v1090_v15 = vrot.slane %v1021_v11, 5  ;;  %v1091_v16 = vrot.slane %v1019_v1, 5 }
  0xd3   : > { %1198 = vmatpush1.msra.mxu1 %v1138_v12 }
  0xd4   : > { %v1002_v13 = vpop.permute.xlu1 %1001  ;;  %v1000_v14 = vpop.permute.xlu0 %999 }
  0xd5   : > { %v1004_v17 = vsel %vm13456_vm11, %v1000_v14, %v1002_v13  ;;  %v1007_v19 = vsel %vm13456_vm11, 0.0, %v1000_v14 }
  0xd6   : > { %v1012_v21 = vsel %vm9522_vm4, %v1007_v19, 0.0  ;;  %v1013_v23 = vsel %vm9517_vm2, %v1004_v17, 0.0 }
  0xd7   : > { %v1127_v25 = vsel %vm13448_vm10, %v1013_v23, %v1091_v16  ;;  %v1126_v26 = vsel %vm13448_vm10, %v1012_v21, %v1090_v15 }
  0xd8   : > { %v1130_v27 = vsel %vm13445_vm12, %v1127_v25, %v1097_v44  ;;  %v1129_v28 = vsel %vm13445_vm12, %v1126_v26, %v1096_v39 }
  0xd9   : > { %1199 = vmatprep.subr.mxu1 %v1130_v27 }
  0xda   : > { %1200 = vmatpush1.msra.mxu1 %v1129_v28 }
  0xdb   : > { %8451 = vmatmul.mubr.msk.f32.vlgmr.msra.gmra.mxu1 %vm1156_vm15, %v993_v29 }
  0xdc   : > { %1239 = vmatprep.mubr.f32.mxu1 %v9292_v3 }
  0xdf   : > { %8452 = vmatmul.mubr.msk.f32.gmra.mxu1 %vm1156_vm15, %v994_v30  ;;  %vm13522_vm15 = vcmask 121856  }
  0xe0   : > { %8483 = vmatprep.mubr.msk.f32.mxu1 %vm1018_vm1, %v1247_v41  ;;  %vm13523_vm12 = vmmov %vm13522_vm15 }
  0xe1   : > { %v1149_v31 = vpop.permute.xlu1 %1148  ;;  %v1154_v36 = vpop.permute.xlu0 %1153  ;;  %vm13524_vm13 = vmmov %vm13523_vm12 }
  0xe2   : > { %vm13525_vm14 = vmmov %vm13523_vm12 }
  0xe3   : > { %vm13530_vm10 = vmmov %vm13523_vm12 }
 0x19b   : > { %v1235_v32 = vpop.f32.mrf.mxu1 }
 0x19c   : > { %v9595_v33 = vadd.f32 %v1235_v32, %v1149_v31 }
 0x19d   : > { %v1237_v34 = vpop.f32.mrf.mxu1 }
 0x19e   : > { %1352 = vrot.lane.b32.xlu0 %v9595_v33, %s13454_s15  ;;  %1372 = vrot.lane.b32.xlu1 %v9595_v33, %s13486_s11  ;;  %v9605_v35 = vadd.f32 %v1237_v34, %v1149_v31 }
 0x19f   : > { %v1241_v37 = vpop.f32.mrf.mxu1 }
 0x1a0   : > { %v9615_v38 = vadd.f32 %v1241_v37, %v1154_v36 }
 0x1a1   : > { %v1243_v39 = vpop.f32.mrf.mxu1 }
 0x1a2   : > { %1332 = vrot.lane.b32.xlu0 %v9595_v33, %s13482_s2  ;;  %1312 = vrot.lane.b32.xlu1 %v9595_v33, %s13484_s20  ;;  %v9625_v40 = vadd.f32 %v1243_v39, %v1154_v36 }
 0x1a6   : > { %1374 = vrot.lane.b32.xlu0 %v9605_v35, %s13486_s11  ;;  %1354 = vrot.lane.b32.xlu1 %v9605_v35, %s13454_s15 }
 0x1aa   : > { %1314 = vrot.lane.b32.xlu0 %v9605_v35, %s13484_s20  ;;  %1334 = vrot.lane.b32.xlu1 %v9605_v35, %s13482_s2 }
 0x1ae   : > { %1356 = vrot.lane.b32.xlu0 %v9615_v38, %s13454_s15  ;;  %1376 = vrot.lane.b32.xlu1 %v9615_v38, %s13486_s11 }
 0x1b2   : > { %1336 = vrot.lane.b32.xlu0 %v9615_v38, %s13482_s2  ;;  %1316 = vrot.lane.b32.xlu1 %v9615_v38, %s13484_s20 }
 0x1b6   : > { %1378 = vrot.lane.b32.xlu0 %v9625_v40, %s13486_s11  ;;  %1296 = vrot.lane.b32.xlu1 %v9615_v38, %s13479_s1 }
 0x1ba   : > { %1294 = vrot.lane.b32.xlu0 %v9605_v35, %s13479_s1  ;;  %1358 = vrot.lane.b32.xlu1 %v9625_v40, %s13454_s15 }
 0x1be   : > { %1278 = vrot.lane.b32.xlu0 %v9605_v35, %s13477_s9  ;;  %1338 = vrot.lane.b32.xlu1 %v9625_v40, %s13482_s2 }
 0x1c2   : > { %1258 = vrot.lane.b32.xlu0 %v9605_v35, %s13450_s16  ;;  %1292 = vrot.lane.b32.xlu1 %v9595_v33, %s13479_s1 }
 0x1c6   : > { %1318 = vrot.lane.b32.xlu0 %v9625_v40, %s13484_s20  ;;  %1280 = vrot.lane.b32.xlu1 %v9615_v38, %s13477_s9 }
 0x1ca   : > { %1298 = vrot.lane.b32.xlu0 %v9625_v40, %s13479_s1  ;;  %1276 = vrot.lane.b32.xlu1 %v9595_v33, %s13477_s9 }
 0x1ce   : > { %1282 = vrot.lane.b32.xlu0 %v9625_v40, %s13477_s9  ;;  %1260 = vrot.lane.b32.xlu1 %v9615_v38, %s13450_s16 }
 0x1d2   : > { %1262 = vrot.lane.b32.xlu0 %v9625_v40, %s13450_s16  ;;  %1256 = vrot.lane.b32.xlu1 %v9595_v33, %s13450_s16 }
 0x1d6   : > { %1392 = vrot.lane.b32.xlu0 %v9615_v38, %s13452_s10  ;;  %1394 = vrot.lane.b32.xlu1 %v9625_v40, %s13452_s10 }
 0x1da   : > { %1388 = vrot.lane.b32.xlu0 %v9595_v33, %s13452_s10  ;;  %1390 = vrot.lane.b32.xlu1 %v9605_v35, %s13452_s10 }
 0x1de   : > { %1410 = vperm.xlu0 %9227, %v1250_v42   ;;  %1415 = vperm.xlu1 %9228, %v1251_v43  }
 0x210   : > { %v1373_v44 = vpop.permute.xlu1 %1372  ;;  %v1353_v45 = vpop.permute.xlu0 %1352 }
 0x214   : > { %v1313_v46 = vpop.permute.xlu1 %1312  ;;  %v1333_v47 = vpop.permute.xlu0 %1332 }
 0x215   : > { %v1326_v17 = vsel %vm13457_vm0, 0.0, %v1313_v46 }
 0x218   : > { %v1355_v48 = vpop.permute.xlu1 %1354  ;;  %v1375_v49 = vpop.permute.xlu0 %1374 }
 0x219   : > { %v1380_v59 = vsel %vm13460_vm8, %v1373_v44, %v1375_v49  ;;  %v1366_v0 = vsel %vm13459_vm3, %v1355_v48, 0.0  ;;  %v1360_v2 = vsel %vm13459_vm3, %v1353_v45, %v1355_v48 }
 0x21c   : > { %v1335_v50 = vpop.permute.xlu1 %1334  ;;  %v1315_v51 = vpop.permute.xlu0 %1314 }
 0x21d   : > { %v1346_v9 = vsel %vm13458_vm7, %v1335_v50, 0.0  ;;  %v1340_v10 = vsel %vm13458_vm7, %v1333_v47, %v1335_v50  ;;  %v1320_v16 = vsel %vm13457_vm0, %v1313_v46, %v1315_v51  ;;  %v1246_v51 = vld [vmem:[%s9338_s21] sm:$0xff] }
 0x220   : > { %v1377_v52 = vpop.permute.xlu1 %1376  ;;  %v1357_v53 = vpop.permute.xlu0 %1356 }
 0x224   : > { %v1317_v54 = vpop.permute.xlu1 %1316  ;;  %v1337_v55 = vpop.permute.xlu0 %1336 }
 0x225   : > { %v1327_v15 = vsel %vm13457_vm0, 0.0, %v1317_v54 }
 0x228   : > { %v1297_v56 = vpop.permute.xlu1 %1296  ;;  %v1379_v57 = vpop.permute.xlu0 %1378 }
 0x229   : > { %8453 = vmatprep.subr.msk.mxu1 %vm13460_vm8, %v1379_v57  ;;  %v1381_v58 = vsel %vm13460_vm8, %v1377_v52, %v1379_v57  ;;  %v1307_v25 = vsel %vm13523_vm12, 0.0, %v1297_v56  ;;  %v1249_v52 = vld [vmem:[%s9338_s21 + $0x18] sm:$0xff] }
 0x22a   : > { %1425 = vmatpush1.msra.mxu1 %v1381_v58 }
 0x22b   : > { %8454 = vmatprep.subr.msk.mxu1 %vm13460_vm8, %v1375_v49 }
 0x22c   : > { %v1359_v60 = vpop.permute.xlu1 %1358  ;;  %1427 = vmatpush1.msra.mxu1 %v1380_v59  ;;  %v1295_v61 = vpop.permute.xlu0 %1294 }
 0x22d   : > { %v1361_v62 = vsel %vm13459_vm3, %v1357_v53, %v1359_v60  ;;  %v1367_v63 = vsel %vm13459_vm3, %v1359_v60, 0.0  ;;  %v1248_v53 = vld [vmem:[%s9338_s21 + $0x10] sm:$0xff] }
 0x22e   : > { %8455 = vmatprep.subr.msk.mxu1 %vm9517_vm2, %v1367_v63 }
 0x22f   : > { %8456 = vmatpush1.msk.msra.mxu1 %vm9522_vm4, %v1361_v62 }
 0x230   : > { %v1339_v4 = vpop.permute.xlu1 %1338  ;;  %8457 = vmatprep.subr.msk.mxu1 %vm9517_vm2, %v1366_v0  ;;  %v1279_v5 = vpop.permute.xlu0 %1278 }
 0x231   : > { %v1341_v6 = vsel %vm13458_vm7, %v1337_v55, %v1339_v4  ;;  %8458 = vmatpush1.msk.msra.mxu1 %vm9522_vm4, %v1360_v2  ;;  %v1347_v8 = vsel %vm13458_vm7, %v1339_v4, 0.0 }
 0x232   : > { %8459 = vmatprep.subr.msk.mxu1 %vm9532_vm6, %v1347_v8  ;;  %v1509_v8 = vld [vmem:[%s13512_s3] sm:$0xff] }
 0x233   : > { %8460 = vmatpush1.msk.msra.mxu1 %vm9527_vm5, %v1341_v6  ;;  %v1506_v6 = vld [vmem:[%s9348_s29 + $0x8] sm:$0xff] }
 0x234   : > { %v1293_v1 = vpop.permute.xlu1 %1292  ;;  %8461 = vmatprep.subr.msk.mxu1 %vm9532_vm6, %v1346_v9  ;;  %v1259_v11 = vpop.permute.xlu0 %1258  ;;  %8515 = vmatprep.mubr.msk.f32.mxu0 %vm1018_vm1, %v1506_v6  ;;  %v1510_v9 = vld [vmem:[%s13512_s3 + $0x8] sm:$0xff]  ;;  %s13708_s3 = smov 15  }
 0x235   : > { %8462 = vmatpush1.msk.msra.mxu1 %vm9527_vm5, %v1340_v10  ;;  %v1300_v26 = vsel %vm13524_vm13, %v1293_v1, %v1295_v61  ;;  %v1306_v27 = vsel %vm13525_vm14, 0.0, %v1293_v1  ;;  %vm13528_vm13 = vmmov %vm13523_vm12 }
 0x236   : > { %1436 = vmatprep.subr.mxu1 %v9625_v40  ;;  %vm13529_vm14 = vmmov %vm13523_vm12 }
 0x237   : > { %1437 = vmatpush1.msra.mxu1 %v9615_v38 }
 0x238   : > { %v1281_v12 = vpop.permute.xlu1 %1280  ;;  %1438 = vmatprep.subr.mxu1 %v9605_v35  ;;  %v1319_v13 = vpop.permute.xlu0 %1318 }
 0x239   : > { %v1321_v14 = vsel %vm13457_vm0, %v1317_v54, %v1319_v13  ;;  %1439 = vmatpush1.msra.mxu1 %v9595_v33 }
 0x23a   : > { %8463 = vmatprep.subr.msk.mxu1 %vm9517_vm2, %v1321_v14 }
 0x23b   : > { %8464 = vmatpush1.msk.msra.mxu1 %vm9522_vm4, %v1327_v15 }
 0x23c   : > { %v1277_v19 = vpop.permute.xlu1 %1276  ;;  %8465 = vmatprep.subr.msk.mxu1 %vm9517_vm2, %v1320_v16  ;;  %v1299_v21 = vpop.permute.xlu0 %1298 }
 0x23d   : > { %v1301_v23 = vsel %vm13522_vm15, %v1297_v56, %v1299_v21  ;;  %8466 = vmatpush1.msk.msra.mxu1 %vm9522_vm4, %v1326_v17  ;;  %vm9726_vm15 = vmneg %vm1018_vm1  ;;  %v1284_v32 = vsel %vm1018_vm1, %v1277_v19, %v1279_v5 }
 0x23e   : > { %8467 = vmatprep.subr.msk.mxu1 %vm9532_vm6, %v1301_v23 }
 0x23f   : > { %8468 = vmatpush1.msk.msra.mxu1 %vm9527_vm5, %v1307_v25 }
 0x240   : > { %v1261_v28 = vpop.permute.xlu1 %1260  ;;  %8469 = vmatprep.subr.msk.mxu1 %vm9532_vm6, %v1300_v26  ;;  %v1283_v29 = vpop.permute.xlu0 %1282 }
 0x241   : > { %8470 = vmatpush1.msk.msra.mxu1 %vm9527_vm5, %v1306_v27  ;;  %v1285_v31 = vsel %vm1018_vm1, %v1281_v12, %v1283_v29  ;;  %v1271_v39 = vsel %vm13456_vm11, 0.0, %v1261_v28 }
 0x242   : > { %1448 = vmatprep.subr.mxu1 %v1285_v31 }
 0x243   : > { %8472 = vmatpush1.msk.msra.mxu1 %vm9726_vm15, %v1281_v12 }
 0x244   : > { %v1257_v34 = vpop.permute.xlu1 %1256  ;;  %1450 = vmatprep.subr.mxu1 %v1284_v32  ;;  %v1263_v36 = vpop.permute.xlu0 %1262 }
 0x245   : > { %v1265_v37 = vsel %vm13456_vm11, %v1261_v28, %v1263_v36  ;;  %8474 = vmatpush1.msk.msra.mxu1 %vm9726_vm15, %v1277_v19  ;;  %v1264_v41 = vsel %vm13456_vm11, %v1257_v34, %v1259_v11  ;;  %v1270_v42 = vsel %vm13456_vm11, 0.0, %v1257_v34 }
 0x246   : > { %8475 = vmatprep.subr.msk.mxu1 %vm9517_vm2, %v1265_v37 }
 0x247   : > { %8476 = vmatpush1.msk.msra.mxu1 %vm9522_vm4, %v1271_v39 }
 0x248   : > { %v1395_v43 = vpop.permute.xlu1 %1394  ;;  %8477 = vmatprep.subr.msk.mxu1 %vm9517_vm2, %v1264_v41  ;;  %v1393_v44 = vpop.permute.xlu0 %1392 }
 0x249   : > { %v1397_v45 = vsel %vm13449_vm9, %v1393_v44, %v1395_v43  ;;  %8478 = vmatpush1.msk.msra.mxu1 %vm9522_vm4, %v1270_v42  ;;  %v1403_v46 = vsel %vm13449_vm9, %v1395_v43, 0.0 }
 0x24a   : > { %8479 = vmatprep.subr.msk.mxu1 %vm9532_vm6, %v1403_v46 }
 0x24b   : > { %8480 = vmatpush2.msk.msra.mxu1 %vm9527_vm5, %v1397_v45 }
 0x24c   : > { %v1391_v47 = vpop.permute.xlu1 %1390  ;;  %v1389_v48 = vpop.permute.xlu0 %1388 }
 0x24d   : > { %v1396_v49 = vsel %vm13449_vm9, %v1389_v48, %v1391_v47  ;;  %v1402_v50 = vsel %vm13449_vm9, %v1391_v47, 0.0 }
 0x24e   : > { %8481 = vmatprep.subr.msk.mxu1 %vm9532_vm6, %v1402_v50 }
 0x24f   : > { %8482 = vmatpush2.msk.msra.mxu1 %vm9527_vm5, %v1396_v49 }
 0x250   : > { %1489 = vmatmul.mubr.f32.vlgmr.msra.gmra.mxu1 %v1246_v51 }
 0x251   : > { %8484 = vmatprep.mubr.msk.f32.mxu1 %vm1018_vm1, %v1249_v52 }
 0x254   : > { %1495 = vmatmul.mubr.f32.gmra.mxu1 %v1248_v53 }
 0x259   : > { %v1411_v54 = vpop.permute.xlu0 %1410  ;;  %v1416_v62 = vpop.permute.xlu1 %1415 }
 0x310   : > { %v1490_v55 = vpop.f32.mrf.mxu1 }
 0x311   : > { %v1491_v56 = vadd.f32 %v1490_v55, %v1411_v54 }
 0x312   : > { %v1492_v58 = vpop.f32.mrf.mxu1 }
 0x313   : > { %v9766_v57 = vmax.f32 %v1491_v56, 0.0  ;;  %v1493_v59 = vadd.f32 %v1492_v58, %v1411_v54 }
 0x314   : > { %v1496_v61 = vpop.f32.mrf.mxu1 }
 0x315   : > { %1611 = vrot.lane.b32.xlu0 %v9766_v57, %s13454_s15  ;;  %1631 = vrot.lane.b32.xlu1 %v9766_v57, %s13486_s11  ;;  %v9776_v60 = vmax.f32 %v1493_v59, 0.0  ;;  %v1497_v63 = vadd.f32 %v1496_v61, %v1416_v62 }
 0x316   : > { %v1498_v2 = vpop.f32.mrf.mxu1 }
 0x317   : > { %v9786_v0 = vmax.f32 %v1497_v63, 0.0  ;;  %v1499_v4 = vadd.f32 %v1498_v2, %v1416_v62 }
 0x319   : > { %1591 = vrot.lane.b32.xlu0 %v9766_v57, %s13482_s2  ;;  %1571 = vrot.lane.b32.xlu1 %v9766_v57, %s13484_s20  ;;  %v9796_v5 = vmax.f32 %v1499_v4, 0.0 }
 0x31d   : > { %1633 = vrot.lane.b32.xlu0 %v9776_v60, %s13486_s11  ;;  %1613 = vrot.lane.b32.xlu1 %v9776_v60, %s13454_s15 }
 0x321   : > { %1573 = vrot.lane.b32.xlu0 %v9776_v60, %s13484_s20  ;;  %1593 = vrot.lane.b32.xlu1 %v9776_v60, %s13482_s2 }
 0x325   : > { %1615 = vrot.lane.b32.xlu0 %v9786_v0, %s13454_s15  ;;  %1635 = vrot.lane.b32.xlu1 %v9786_v0, %s13486_s11 }
 0x329   : > { %1595 = vrot.lane.b32.xlu0 %v9786_v0, %s13482_s2  ;;  %1575 = vrot.lane.b32.xlu1 %v9786_v0, %s13484_s20 }
 0x32d   : > { %1637 = vrot.lane.b32.xlu0 %v9796_v5, %s13486_s11  ;;  %1555 = vrot.lane.b32.xlu1 %v9786_v0, %s13479_s1 }
 0x331   : > { %1553 = vrot.lane.b32.xlu0 %v9776_v60, %s13479_s1  ;;  %1617 = vrot.lane.b32.xlu1 %v9796_v5, %s13454_s15 }
 0x335   : > { %1537 = vrot.lane.b32.xlu0 %v9776_v60, %s13477_s9  ;;  %1597 = vrot.lane.b32.xlu1 %v9796_v5, %s13482_s2 }
 0x339   : > { %1517 = vrot.lane.b32.xlu0 %v9776_v60, %s13450_s16  ;;  %1551 = vrot.lane.b32.xlu1 %v9766_v57, %s13479_s1 }
 0x33d   : > { %1577 = vrot.lane.b32.xlu0 %v9796_v5, %s13484_s20  ;;  %1539 = vrot.lane.b32.xlu1 %v9786_v0, %s13477_s9 }
 0x341   : > { %1557 = vrot.lane.b32.xlu0 %v9796_v5, %s13479_s1  ;;  %1535 = vrot.lane.b32.xlu1 %v9766_v57, %s13477_s9 }
 0x345   : > { %1541 = vrot.lane.b32.xlu0 %v9796_v5, %s13477_s9  ;;  %1519 = vrot.lane.b32.xlu1 %v9786_v0, %s13450_s16 }
 0x349   : > { %1521 = vrot.lane.b32.xlu0 %v9796_v5, %s13450_s16  ;;  %1515 = vrot.lane.b32.xlu1 %v9766_v57, %s13450_s16 }
 0x34d   : > { %1651 = vrot.lane.b32.xlu0 %v9786_v0, %s13452_s10  ;;  %1653 = vrot.lane.b32.xlu1 %v9796_v5, %s13452_s10 }
 0x351   : > { %1647 = vrot.lane.b32.xlu0 %v9766_v57, %s13452_s10  ;;  %1649 = vrot.lane.b32.xlu1 %v9776_v60, %s13452_s10 }
 0x355   : > { %1669 = vperm.xlu0 %9227, %v1509_v8   ;;  %1674 = vperm.xlu1 %9228, %v1510_v9  }
 0x387   : > { %v1612_v10 = vpop.permute.xlu0 %1611  ;;  %v1632_v1 = vpop.permute.xlu1 %1631 }
 0x38b   : > { %v1592_v11 = vpop.permute.xlu0 %1591  ;;  %v1572_v12 = vpop.permute.xlu1 %1571 }
 0x38c   : > { %v1585_v55 = vsel %vm13457_vm0, 0.0, %v1572_v12 }
 0x38f   : > { %v1634_v13 = vpop.permute.xlu0 %1633  ;;  %v1614_v14 = vpop.permute.xlu1 %1613 }
 0x390   : > { %v1639_v28 = vsel %vm13460_vm8, %v1632_v1, %v1634_v13  ;;  %v1625_v36 = vsel %vm13459_vm3, %v1614_v14, 0.0  ;;  %v1619_v41 = vsel %vm13459_vm3, %v1612_v10, %v1614_v14 }
 0x393   : > { %v1574_v15 = vpop.permute.xlu0 %1573  ;;  %v1594_v16 = vpop.permute.xlu1 %1593 }
 0x394   : > { %v1605_v44 = vsel %vm13458_vm7, %v1594_v16, 0.0  ;;  %v1599_v47 = vsel %vm13458_vm7, %v1592_v11, %v1594_v16  ;;  %v1579_v52 = vsel %vm13457_vm0, %v1572_v12, %v1574_v15  ;;  %v1505_v16 = vld [vmem:[%s9348_s29] sm:$0xff] }
 0x397   : > { %v1616_v17 = vpop.permute.xlu0 %1615  ;;  %v1636_v19 = vpop.permute.xlu1 %1635 }
 0x39b   : > { %v1596_v21 = vpop.permute.xlu0 %1595  ;;  %v1576_v23 = vpop.permute.xlu1 %1575 }
 0x39c   : > { %v1586_v51 = vsel %vm13457_vm0, 0.0, %v1576_v23 }
 0x39f   : > { %v1638_v25 = vpop.permute.xlu0 %1637  ;;  %v1556_v26 = vpop.permute.xlu1 %1555 }
 0x3a0   : > { %8485 = vmatprep.subr.msk.mxu0 %vm13460_vm8, %v1638_v25  ;;  %v1640_v27 = vsel %vm13460_vm8, %v1636_v19, %v1638_v25  ;;  %v1507_v19 = vld [vmem:[%s9348_s29 + $0x10] sm:$0xff] }
 0x3a1   : > { %1684 = vmatpush1.msra.mxu0 %v1640_v27 }
 0x3a2   : > { %8486 = vmatprep.subr.msk.mxu0 %vm13460_vm8, %v1634_v13 }
 0x3a3   : > { %v1554_v29 = vpop.permute.xlu0 %1553  ;;  %1686 = vmatpush1.msra.mxu0 %v1639_v28  ;;  %v1618_v31 = vpop.permute.xlu1 %1617 }
 0x3a4   : > { %v1626_v32 = vsel %vm13459_vm3, %v1618_v31, 0.0  ;;  %v1620_v34 = vsel %vm13459_vm3, %v1616_v17, %v1618_v31  ;;  %v1508_v17 = vld [vmem:[%s9348_s29 + $0x18] sm:$0xff] }
 0x3a5   : > { %8487 = vmatprep.subr.msk.mxu0 %vm9517_vm2, %v1626_v32 }
 0x3a6   : > { %8488 = vmatpush1.msk.msra.mxu0 %vm9522_vm4, %v1620_v34 }
 0x3a7   : > { %v1538_v37 = vpop.permute.xlu0 %1537  ;;  %8489 = vmatprep.subr.msk.mxu0 %vm9517_vm2, %v1625_v36  ;;  %v1598_v39 = vpop.permute.xlu1 %1597 }
 0x3a8   : > { %8490 = vmatpush1.msk.msra.mxu0 %vm9522_vm4, %v1619_v41  ;;  %v1606_v42 = vsel %vm13458_vm7, %v1598_v39, 0.0  ;;  %v1600_v43 = vsel %vm13458_vm7, %v1596_v21, %v1598_v39  ;;  %v1769_v39 = vld [vmem:[%s9363_s14 + $0x8] sm:$0xff]  ;;  %v2284_v41 = vld [vmem:[%s13511_s6] sm:$0xff] }
 0x3a9   : > { %8491 = vmatprep.subr.msk.mxu0 %vm9532_vm6, %v1606_v42  ;;  %v2285_v42 = vld [vmem:[%s13511_s6 + $0x8] sm:$0xff]  ;;  %s13713_s6 = sld [smem:[#allocation13_spill]] }
 0x3aa   : > { %8492 = vmatpush1.msk.msra.mxu0 %vm9527_vm5, %v1600_v43 }
 0x3ab   : > { %v1518_v45 = vpop.permute.xlu0 %1517  ;;  %8493 = vmatprep.subr.msk.mxu0 %vm9532_vm6, %v1605_v44  ;;  %v1552_v46 = vpop.permute.xlu1 %1551 }
 0x3ac   : > { %8494 = vmatpush1.msk.msra.mxu0 %vm9527_vm5, %v1599_v47  ;;  %v1559_v58 = vsel %vm13529_vm14, %v1552_v46, %v1554_v29  ;;  %v1565_v61 = vsel %vm13530_vm10, 0.0, %v1552_v46 }
 0x3ad   : > { %1695 = vmatprep.subr.mxu0 %v9796_v5 }
 0x3ae   : > { %1696 = vmatpush1.msra.mxu0 %v9786_v0 }
 0x3af   : > { %v1578_v48 = vpop.permute.xlu0 %1577  ;;  %1697 = vmatprep.subr.mxu0 %v9776_v60  ;;  %v1540_v49 = vpop.permute.xlu1 %1539 }
 0x3b0   : > { %v1580_v50 = vsel %vm13457_vm0, %v1576_v23, %v1578_v48  ;;  %1698 = vmatpush1.msra.mxu0 %v9766_v57  ;;  %v1566_v57 = vsel %vm13528_vm13, 0.0, %v1556_v26  ;;  %vm13532_vm13 = vcmask 1040384  }
 0x3b1   : > { %8495 = vmatprep.subr.msk.mxu0 %vm9517_vm2, %v1580_v50  ;;  %vm13533_vm14 = vmmov %vm13532_vm13 }
 0x3b2   : > { %8496 = vmatpush1.msk.msra.mxu0 %vm9522_vm4, %v1586_v51 }
 0x3b3   : > { %v1558_v53 = vpop.permute.xlu0 %1557  ;;  %8497 = vmatprep.subr.msk.mxu0 %vm9517_vm2, %v1579_v52  ;;  %v1536_v54 = vpop.permute.xlu1 %1535 }
 0x3b4   : > { %v1560_v56 = vsel %vm13523_vm12, %v1556_v26, %v1558_v53  ;;  %8498 = vmatpush1.msk.msra.mxu0 %vm9522_vm4, %v1585_v55  ;;  %v1543_v63 = vsel %vm1018_vm1, %v1536_v54, %v1538_v37  ;;  %vm13531_vm12 = vmmov %vm13530_vm10 }
 0x3b5   : > { %8499 = vmatprep.subr.msk.mxu0 %vm9532_vm6, %v1560_v56 }
 0x3b6   : > { %8500 = vmatpush1.msk.msra.mxu0 %vm9527_vm5, %v1566_v57 }
 0x3b7   : > { %v1542_v59 = vpop.permute.xlu0 %1541  ;;  %8501 = vmatprep.subr.msk.mxu0 %vm9532_vm6, %v1559_v58  ;;  %v1520_v60 = vpop.permute.xlu1 %1519 }
 0x3b8   : > { %8502 = vmatpush1.msk.msra.mxu0 %vm9527_vm5, %v1565_v61  ;;  %v1544_v62 = vsel %vm1018_vm1, %v1540_v49, %v1542_v59  ;;  %v1530_v5 = vsel %vm13456_vm11, 0.0, %v1520_v60 }
 0x3b9   : > { %1707 = vmatprep.subr.mxu0 %v1544_v62 }
 0x3ba   : > { %8504 = vmatpush1.msk.msra.mxu0 %vm9726_vm15, %v1540_v49 }
 0x3bb   : > { %v1522_v0 = vpop.permute.xlu0 %1521  ;;  %1709 = vmatprep.subr.mxu0 %v1543_v63  ;;  %v1516_v2 = vpop.permute.xlu1 %1515 }
 0x3bc   : > { %v1524_v4 = vsel %vm13456_vm11, %v1520_v60, %v1522_v0  ;;  %8506 = vmatpush1.msk.msra.mxu0 %vm9726_vm15, %v1536_v54  ;;  %v1523_v6 = vsel %vm13456_vm11, %v1516_v2, %v1518_v45  ;;  %v1529_v10 = vsel %vm13456_vm11, 0.0, %v1516_v2 }
 0x3bd   : > { %8507 = vmatprep.subr.msk.mxu0 %vm9517_vm2, %v1524_v4 }
 0x3be   : > { %8508 = vmatpush1.msk.msra.mxu0 %vm9522_vm4, %v1530_v5 }
 0x3bf   : > { %v1652_v8 = vpop.permute.xlu0 %1651  ;;  %8509 = vmatprep.subr.msk.mxu0 %vm9517_vm2, %v1523_v6  ;;  %v1654_v9 = vpop.permute.xlu1 %1653 }
 0x3c0   : > { %8510 = vmatpush1.msk.msra.mxu0 %vm9522_vm4, %v1529_v10  ;;  %v1662_v1 = vsel %vm13449_vm9, %v1654_v9, 0.0  ;;  %v1656_v11 = vsel %vm13449_vm9, %v1652_v8, %v1654_v9 }
 0x3c1   : > { %8511 = vmatprep.subr.msk.mxu0 %vm9532_vm6, %v1662_v1 }
 0x3c2   : > { %8512 = vmatpush2.msk.msra.mxu0 %vm9527_vm5, %v1656_v11  ;;  %v9296_v11 = vmov 1.0  }
 0x3c3   : > { %v1648_v12 = vpop.permute.xlu0 %1647  ;;  %v1650_v13 = vpop.permute.xlu1 %1649 }
 0x3c4   : > { %v1661_v14 = vsel %vm13449_vm9, %v1650_v13, 0.0  ;;  %v1655_v15 = vsel %vm13449_vm9, %v1648_v12, %v1650_v13  ;;  %v2290_v12 = vsel %vm13530_vm10, 0.0, %v9296_v11  ;;  %v2289_v13 = vsel %vm1018_vm1, 0.0, %v9296_v11 }
 0x3c5   : > { %8513 = vmatprep.subr.msk.mxu0 %vm9532_vm6, %v1661_v14  ;;  %v2286_v14 = vsel %vm13456_vm11, 0.0, %v9296_v11 }
 0x3c6   : > { %8514 = vmatpush2.msk.msra.mxu0 %vm9527_vm5, %v1655_v15 }
 0x3c7   : > { %1748 = vmatmul.mubr.f32.vlgmr.msra.gmra.mxu0 %v1505_v16 }
 0x3c8   : > { %8516 = vmatprep.mubr.msk.f32.mxu0 %vm1018_vm1, %v1508_v17  ;;  %v2291_v17 = vsel %vm9527_vm5, %v2290_v12, 0.0 }
 0x3cb   : > { %1754 = vmatmul.mubr.f32.gmra.mxu0 %v1507_v19 }
 0x3d0   : > { %v1670_v21 = vpop.permute.xlu0 %1669 }
 0x487   : > { %v1749_v23 = vpop.f32.mrf.mxu0 }
 0x488   : > { %v1750_v25 = vadd.f32 %v1749_v23, %v1670_v21  ;;  %v2307_v23 = vrot.slane %v9296_v11, 7 }
 0x489   : > { %v1751_v27 = vpop.f32.mrf.mxu0 }
 0x48a   : > { %v9933_v26 = vadd.f32 %v1750_v25, %v9595_v33  ;;  %v1752_v28 = vadd.f32 %v1751_v27, %v1670_v21  ;;  %v1675_v33 = vpop.permute.xlu1 %1674  ;;  %v2292_v21 = vsel %vm9532_vm6, 1.0, %v9292_v3  ;;  %v2306_v25 = vrot.slane %v2289_v13, 7 }
 0x48b   : > { %v1755_v31 = vpop.f32.mrf.mxu0 }
 0x48c   : > { %1870 = vrot.lane.b32.xlu0 %v9933_v26, %s13454_s15  ;;  %1890 = vrot.lane.b32.xlu1 %v9933_v26, %s13486_s11  ;;  %v9944_v29 = vadd.f32 %v1752_v28, %v9605_v35  ;;  %v1756_v32 = vadd.f32 %v1755_v31, %v1675_v33  ;;  %v2288_v28 = vsel %vm9517_vm2, 1.0, %v9292_v3  ;;  %v2293_v31 = vsel %vm13457_vm0, 0.0, %v9296_v11 }
 0x48d   : > { %v1757_v35 = vpop.f32.mrf.mxu0 }
 0x48e   : > { %v9955_v34 = vadd.f32 %v1756_v32, %v9615_v38  ;;  %v1758_v36 = vadd.f32 %v1757_v35, %v1675_v33  ;;  %v1765_v38 = vld [vmem:[%s9358_s8 + $0x8] sm:$0xff]  ;;  %v2287_v33 = vsel %vm9522_vm4, %v2286_v14, 0.0 }
 0x48f   : > { %8547 = vmatprep.mubr.msk.f32.mxu1 %vm1018_vm1, %v1765_v38 }
 0x490   : > { %1850 = vrot.lane.b32.xlu0 %v9933_v26, %s13482_s2  ;;  %1830 = vrot.lane.b32.xlu1 %v9933_v26, %s13484_s20  ;;  %v9966_v37 = vadd.f32 %v1758_v36, %v9625_v40  ;;  %v1768_v40 = vld [vmem:[%s9363_s14] sm:$0xff] }
 0x494   : > { %1892 = vrot.lane.b32.xlu0 %v9944_v29, %s13486_s11  ;;  %1872 = vrot.lane.b32.xlu1 %v9944_v29, %s13454_s15 }
 0x498   : > { %1832 = vrot.lane.b32.xlu0 %v9944_v29, %s13484_s20  ;;  %1852 = vrot.lane.b32.xlu1 %v9944_v29, %s13482_s2 }
 0x49c   : > { %1874 = vrot.lane.b32.xlu0 %v9955_v34, %s13454_s15  ;;  %1894 = vrot.lane.b32.xlu1 %v9955_v34, %s13486_s11 }
 0x4a0   : > { %1854 = vrot.lane.b32.xlu0 %v9955_v34, %s13482_s2  ;;  %1834 = vrot.lane.b32.xlu1 %v9955_v34, %s13484_s20 }
 0x4a4   : > { %1896 = vrot.lane.b32.xlu0 %v9966_v37, %s13486_s11  ;;  %1814 = vrot.lane.b32.xlu1 %v9955_v34, %s13479_s1 }
 0x4a8   : > { %1812 = vrot.lane.b32.xlu0 %v9944_v29, %s13479_s1  ;;  %1876 = vrot.lane.b32.xlu1 %v9966_v37, %s13454_s15 }
 0x4ac   : > { %1796 = vrot.lane.b32.xlu0 %v9944_v29, %s13477_s9  ;;  %1856 = vrot.lane.b32.xlu1 %v9966_v37, %s13482_s2 }
 0x4b0   : > { %1776 = vrot.lane.b32.xlu0 %v9944_v29, %s13450_s16  ;;  %1810 = vrot.lane.b32.xlu1 %v9933_v26, %s13479_s1 }
 0x4b4   : > { %1836 = vrot.lane.b32.xlu0 %v9966_v37, %s13484_s20  ;;  %1798 = vrot.lane.b32.xlu1 %v9955_v34, %s13477_s9 }
 0x4b8   : > { %1816 = vrot.lane.b32.xlu0 %v9966_v37, %s13479_s1  ;;  %1794 = vrot.lane.b32.xlu1 %v9933_v26, %s13477_s9 }
 0x4bc   : > { %1800 = vrot.lane.b32.xlu0 %v9966_v37, %s13477_s9  ;;  %1778 = vrot.lane.b32.xlu1 %v9955_v34, %s13450_s16 }
 0x4c0   : > { %1780 = vrot.lane.b32.xlu0 %v9966_v37, %s13450_s16  ;;  %1774 = vrot.lane.b32.xlu1 %v9933_v26, %s13450_s16 }
 0x4c4   : > { %1910 = vrot.lane.b32.xlu0 %v9955_v34, %s13452_s10  ;;  %1912 = vrot.lane.b32.xlu1 %v9966_v37, %s13452_s10 }
 0x4c8   : > { %1906 = vrot.lane.b32.xlu0 %v9933_v26, %s13452_s10  ;;  %1908 = vrot.lane.b32.xlu1 %v9944_v29, %s13452_s10 }
 0x4cc   : > { %1928 = vperm.xlu0 %9227, %v1768_v40   ;;  %1933 = vperm.xlu1 %9228, %v1769_v39   ;;  %v2313_v40 = vrot.slane %v2292_v21, 6  ;;  %v2312_v39 = vrot.slane %v2291_v17, 6 }
 0x4d0   : > { %2355 = vperm.xlu0 %9227, %v2284_v41   ;;  %2360 = vperm.xlu1 %9228, %v2285_v42   ;;  %v2340_v42 = vsel %vm13532_vm13, %v2288_v28, %v2307_v23  ;;  %vm13535_vm13 = vmmov %vm13530_vm10 }
 0x4fe   : > { %v1871_v43 = vpop.permute.xlu0 %1870  ;;  %v1891_v44 = vpop.permute.xlu1 %1890 }
 0x502   : > { %v1851_v45 = vpop.permute.xlu0 %1850  ;;  %v1831_v46 = vpop.permute.xlu1 %1830 }
 0x503   : > { %v1844_v35 = vsel %vm13457_vm0, 0.0, %v1831_v46 }
 0x506   : > { %v1893_v47 = vpop.permute.xlu0 %1892  ;;  %v1873_v48 = vpop.permute.xlu1 %1872 }
 0x507   : > { %v1898_v58 = vsel %vm13460_vm8, %v1891_v44, %v1893_v47  ;;  %v1884_v63 = vsel %vm13459_vm3, %v1873_v48, 0.0  ;;  %v1878_v0 = vsel %vm13459_vm3, %v1871_v43, %v1873_v48  ;;  %v2294_v43 = vsel %vm9522_vm4, %v2293_v31, 0.0 }
 0x508   : > { %v2339_v44 = vsel %vm13533_vm14, %v2287_v33, %v2306_v25  ;;  %v2319_v48 = vrot.slane %v2288_v28, 5  ;;  %vm13536_vm14 = vcmask 1041408   ;;  %v2302_v25 = vsel %vm13449_vm9, 1.0, %v9292_v3 }
 0x50a   : > { %v1833_v49 = vpop.permute.xlu0 %1832  ;;  %v1853_v50 = vpop.permute.xlu1 %1852 }
 0x50b   : > { %v1864_v8 = vsel %vm13458_vm7, %v1853_v50, 0.0  ;;  %v1858_v9 = vsel %vm13458_vm7, %v1851_v45, %v1853_v50  ;;  %v1838_v32 = vsel %vm13457_vm0, %v1831_v46, %v1833_v49 }
 0x50e   : > { %v1875_v51 = vpop.permute.xlu0 %1874  ;;  %v1895_v52 = vpop.permute.xlu1 %1894 }
 0x512   : > { %v1855_v53 = vpop.permute.xlu0 %1854  ;;  %v1835_v54 = vpop.permute.xlu1 %1834 }
 0x513   : > { %v1845_v27 = vsel %vm13457_vm0, 0.0, %v1835_v54 }
 0x516   : > { %v1897_v55 = vpop.permute.xlu0 %1896  ;;  %v10014_v56 = vpop.permute.xlu1 %1814 }
 0x517   : > { %8517 = vmatprep.subr.msk.mxu1 %vm13460_vm8, %v1897_v55  ;;  %v1899_v57 = vsel %vm13460_vm8, %v1895_v52, %v1897_v55  ;;  %v1825_v45 = vsel %vm13530_vm10, 0.0, %v10014_v56  ;;  %v2342_v52 = vsel %vm13536_vm14, %v2340_v42, %v2313_v40  ;;  %v1764_v40 = vld [vmem:[%s9358_s8] sm:$0xff]  ;;  %v1767_v42 = vld [vmem:[%s9358_s8 + $0x18] sm:$0xff] }
 0x518   : > { %1943 = vmatpush1.msra.mxu1 %v1899_v57  ;;  %v2298_v57 = vsel %vm13459_vm3, 1.0, %v9292_v3 }
 0x519   : > { %8518 = vmatprep.subr.msk.mxu1 %vm13460_vm8, %v1893_v47  ;;  %v2295_v47 = vsel %vm13458_vm7, 1.0, %v9292_v3 }
 0x51a   : > { %v1813_v59 = vpop.permute.xlu0 %1812  ;;  %1945 = vmatpush1.msra.mxu1 %v1898_v58  ;;  %v1877_v60 = vpop.permute.xlu1 %1876 }
 0x51b   : > { %v1879_v61 = vsel %vm13459_vm3, %v1875_v51, %v1877_v60  ;;  %v1885_v62 = vsel %vm13459_vm3, %v1877_v60, 0.0 }
 0x51c   : > { %8519 = vmatprep.subr.msk.mxu1 %vm9517_vm2, %v1885_v62 }
 0x51d   : > { %8520 = vmatpush1.msk.msra.mxu1 %vm9522_vm4, %v1879_v61 }
 0x51e   : > { %v10028_v2 = vpop.permute.xlu0 %1796  ;;  %8521 = vmatprep.subr.msk.mxu1 %vm9517_vm2, %v1884_v63  ;;  %v1857_v4 = vpop.permute.xlu1 %1856 }
 0x51f   : > { %v1859_v5 = vsel %vm13458_vm7, %v1855_v53, %v1857_v4  ;;  %8522 = vmatpush1.msk.msra.mxu1 %vm9522_vm4, %v1878_v0  ;;  %v1865_v6 = vsel %vm13458_vm7, %v1857_v4, 0.0  ;;  %v2318_v53 = vrot.slane %v2294_v43, 5  ;;  %v2300_v4 = vsel %vm9517_vm2, %v2298_v57, 0.0 }
 0x520   : > { %8523 = vmatprep.subr.msk.mxu1 %vm9532_vm6, %v1865_v6  ;;  %v2331_v17 = vrot.slane %v2300_v4, 2 }
 0x521   : > { %8524 = vmatpush1.msk.msra.mxu1 %vm9527_vm5, %v1859_v5 }
 0x522   : > { %v10042_v10 = vpop.permute.xlu0 %1776  ;;  %8525 = vmatprep.subr.msk.mxu1 %vm9532_vm6, %v1864_v8  ;;  %v1811_v1 = vpop.permute.xlu1 %1810 }
 0x523   : > { %8526 = vmatpush1.msk.msra.mxu1 %vm9527_vm5, %v1858_v9  ;;  %v1824_v49 = vsel %vm13535_vm13, 0.0, %v1811_v1  ;;  %v2299_v9 = vsel %vm9522_vm4, 1.0, %v9292_v3 }
 0x524   : > { %1954 = vmatprep.subr.mxu1 %v9966_v37  ;;  %v2330_v23 = vrot.slane %v2299_v9, 2  ;;  %v2024_v9 = vld [vmem:[%s9368_s19 + $0x8] sm:$0xff] }
 0x525   : > { %1955 = vmatpush1.msra.mxu1 %v9955_v34  ;;  %8579 = vmatprep.mubr.msk.f32.mxu0 %vm1018_vm1, %v2024_v9 }
 0x526   : > { %v1837_v15 = vpop.permute.xlu0 %1836  ;;  %1956 = vmatprep.subr.mxu1 %v9944_v29  ;;  %v1799_v16 = vpop.permute.xlu1 %1798 }
 0x527   : > { %v1839_v19 = vsel %vm13457_vm0, %v1835_v54, %v1837_v15  ;;  %1957 = vmatpush1.msra.mxu1 %v9933_v26 }
 0x528   : > { %8527 = vmatprep.subr.msk.mxu1 %vm9517_vm2, %v1839_v19 }
 0x529   : > { %8528 = vmatpush1.msk.msra.mxu1 %vm9522_vm4, %v1845_v27 }
 0x52a   : > { %v1817_v36 = vpop.permute.xlu0 %1816  ;;  %8529 = vmatprep.subr.msk.mxu1 %vm9517_vm2, %v1838_v32  ;;  %v1795_v38 = vpop.permute.xlu1 %1794 }
 0x52b   : > { %v1819_v41 = vsel %vm13531_vm12, %v10014_v56, %v1817_v36  ;;  %8530 = vmatpush1.msk.msra.mxu1 %vm9522_vm4, %v1844_v35  ;;  %vm13534_vm12 = vmmov %vm13530_vm10  ;;  %v2297_v56 = vsel %vm9532_vm6, %v2295_v47, 0.0  ;;  %v1802_v58 = vsel %vm1018_vm1, %v1795_v38, %v10028_v2  ;;  %v2335_v35 = vrot.slane %v9296_v11, 1 }
 0x52c   : > { %8531 = vmatprep.subr.msk.mxu1 %vm9532_vm6, %v1819_v41  ;;  %v1818_v46 = vsel %vm13534_vm12, %v1811_v1, %v1813_v59  ;;  %vm13537_vm10 = vmmov %vm13536_vm14  ;;  %v2296_v59 = vsel %vm9527_vm5, 1.0, %v9292_v3  ;;  %vm13538_vm12 = vcmask 1042432   ;;  %v2325_v2 = vrot.slane %v2297_v56, 3 }
 0x52d   : > { %8532 = vmatpush1.msk.msra.mxu1 %vm9527_vm5, %v1825_v45  ;;  %v2341_v54 = vsel %vm13537_vm10, %v2339_v44, %v2312_v39  ;;  %v2344_v60 = vsel %vm13538_vm12, %v2342_v52, %v2319_v48  ;;  %vm13539_vm13 = vmmov %vm13538_vm12  ;;  %v2324_v6 = vrot.slane %v2296_v59, 3  ;;  %vm13540_vm14 = vcmask 1043456   ;;  %v1766_v44 = vld [vmem:[%s9358_s8 + $0x10] sm:$0xff]  ;;  %v2282_v45 = vld [vmem:[%s9378_s30] sm:$0xff] }
 0x52e   : > { %v1801_v50 = vpop.permute.xlu0 %1800  ;;  %8533 = vmatprep.subr.msk.mxu1 %vm9532_vm6, %v1818_v46  ;;  %v1779_v51 = vpop.permute.xlu1 %1778  ;;  %v2343_v63 = vsel %vm13539_vm13, %v2341_v54, %v2318_v53  ;;  %v2346_v8 = vsel %vm13540_vm14, %v2344_v60, 1.0  ;;  %vm13541_vm10 = vmmov %vm13540_vm14  ;;  %vm13542_vm12 = vcmask 1044480   ;;  %vm13544_vm14 = vcmask 1045504   ;;  %v2283_v46 = vld [vmem:[%s9378_s30 + $0x8] sm:$0xff] }
 0x52f   : > { %8534 = vmatpush1.msk.msra.mxu1 %vm9527_vm5, %v1824_v49  ;;  %v1803_v55 = vsel %vm1018_vm1, %v1799_v16, %v1801_v50  ;;  %v1789_v5 = vsel %vm13456_vm11, 0.0, %v1779_v51  ;;  %v2345_v12 = vsel %vm13541_vm10, %v2343_v63, 1.0  ;;  %v2348_v21 = vsel %vm13542_vm12, %v2346_v8, %v2325_v2  ;;  %vm13543_vm13 = vmmov %vm13542_vm12 }
 0x530   : > { %1966 = vmatprep.subr.mxu1 %v1803_v55  ;;  %v2347_v27 = vsel %vm13543_vm13, %v2345_v12, %v2324_v6  ;;  %v2350_v32 = vsel %vm13544_vm14, %v2348_v21, %v2331_v17  ;;  %v2303_v39 = vsel %vm9532_vm6, %v2302_v25, 0.0  ;;  %vm13545_vm10 = vmmov %vm13544_vm14  ;;  %vm13546_vm12 = vcmask 1046528  }
 0x531   : > { %8536 = vmatpush1.msk.msra.mxu1 %vm9726_vm15, %v1799_v16  ;;  %v2301_v16 = vsel %vm13460_vm8, 1.0, %v9292_v3  ;;  %v2349_v41 = vsel %vm13545_vm10, %v2347_v27, %v2330_v23  ;;  %vm13547_vm13 = vcmask 1040384   ;;  %vm13548_vm14 = vmmov %vm13546_vm12  ;;  %vm2363_vm10 = vcmask 72704  }
 0x532   : > { %v1781_v61 = vpop.permute.xlu0 %1780  ;;  %1968 = vmatprep.subr.mxu1 %v1802_v58  ;;  %v1775_v62 = vpop.permute.xlu1 %1774  ;;  %v2336_v28 = vrot.slane %v2301_v16, 1  ;;  %v2351_v43 = vsel %vm13548_vm14, %v2349_v41, %v2335_v35 }
 0x533   : > { %v1783_v0 = vsel %vm13456_vm11, %v1779_v51, %v1781_v61  ;;  %8538 = vmatpush1.msk.msra.mxu1 %vm9726_vm15, %v1795_v38  ;;  %v1782_v1 = vsel %vm13456_vm11, %v1775_v62, %v10042_v10  ;;  %v1788_v13 = vsel %vm13456_vm11, 0.0, %v1775_v62 }
 0x534   : > { %8539 = vmatprep.subr.msk.mxu1 %vm9517_vm2, %v1783_v0  ;;  %v2352_v11 = vsel %vm13546_vm12, %v2350_v32, %v2336_v28 }
 0x535   : > { %8540 = vmatpush1.msk.msra.mxu1 %vm9522_vm4, %v1789_v5 }
 0x536   : > { %v1911_v14 = vpop.permute.xlu0 %1910  ;;  %8541 = vmatprep.subr.msk.mxu1 %vm9517_vm2, %v1782_v1  ;;  %v1913_v15 = vpop.permute.xlu1 %1912 }
 0x537   : > { %v1915_v19 = vsel %vm13449_vm9, %v1911_v14, %v1913_v15  ;;  %8542 = vmatpush1.msk.msra.mxu1 %vm9522_vm4, %v1788_v13  ;;  %v1921_v10 = vsel %vm13449_vm9, %v1913_v15, 0.0 }
 0x538   : > { %8543 = vmatprep.subr.msk.mxu1 %vm9532_vm6, %v1921_v10 }
 0x539   : > { %8544 = vmatpush2.msk.msra.mxu1 %vm9527_vm5, %v1915_v19 }
 0x53a   : > { %v1907_v31 = vpop.permute.xlu0 %1906  ;;  %v1909_v33 = vpop.permute.xlu1 %1908 }
 0x53b   : > { %v1914_v36 = vsel %vm13449_vm9, %v1907_v31, %v1909_v33  ;;  %v1920_v38 = vsel %vm13449_vm9, %v1909_v33, 0.0  ;;  %vm13549_vm9 = vmmov %vm13547_vm13  ;;  %v2465_v31 = vld [vmem:[#allocation2] sm:$0x1] }
 0x53c   : > { %8545 = vmatprep.subr.msk.mxu1 %vm9532_vm6, %v1920_v38  ;;  %v2027_v33 = vld [vmem:[%s9373_s24] sm:$0xff] }
 0x53d   : > { %8546 = vmatpush2.msk.msra.mxu1 %vm9527_vm5, %v1914_v36  ;;  %v2028_v36 = vld [vmem:[%s9373_s24 + $0x8] sm:$0xff] }
 0x53e   : > { %2007 = vmatmul.mubr.f32.vlgmr.msra.gmra.mxu1 %v1764_v40  ;;  %8581 = vmatprep.subr.msk.mxu1 %vm13547_vm13, %v2303_v39 }
 0x53f   : > { %8548 = vmatprep.mubr.msk.f32.mxu1 %vm1018_vm1, %v1767_v42  ;;  %8582 = vmatpush1.msk.msra.mxu1 %vm13549_vm9, %v2296_v59 }
 0x540   : > { %2405 = vmatprep.subr.mxu1 %v2352_v11 }
 0x541   : > { %2406 = vmatpush1.msra.mxu1 %v2351_v43 }
 0x542   : > { %2013 = vmatmul.mubr.f32.gmra.mxu1 %v1766_v44 }
 0x543   : > { %2439 = vmatprep.mubr.f32.mxu1 %v9292_v3 }
 0x546   : > { %8583 = vmatmul.mubr.msk.f32.vlgmr.msra.gmra.mxu1 %vm2363_vm10, %v2282_v45 }
 0x547   : > { %2445 = vmatprep.mubr.f32.mxu1 %v9292_v3  ;;  %v1929_v47 = vpop.permute.xlu0 %1928  ;;  %v1934_v54 = vpop.permute.xlu1 %1933 }
 0x54a   : > { %8584 = vmatmul.mubr.msk.f32.gmra.mxu1 %vm2363_vm10, %v2283_v46  ;;  %vm13550_vm10 = vcmask 121856  }
 0x54b   : > { %v2356_v61 = vpop.permute.xlu0 %2355  ;;  %v2361_v8 = vpop.permute.xlu1 %2360 }
 0x5fe   : > { %v2008_v48 = vpop.f32.mrf.mxu1 }
 0x5ff   : > { %v2009_v49 = vadd.f32 %v2008_v48, %v1929_v47 }
 0x600   : > { %v2010_v51 = vpop.f32.mrf.mxu1 }
 0x601   : > { %v10176_v50 = vmax.f32 %v2009_v49, 0.0  ;;  %v2011_v3 = vadd.f32 %v2010_v51, %v1929_v47 }
 0x602   : > { %v2014_v53 = vpop.f32.mrf.mxu1 }
 0x603   : > { %2129 = vrot.lane.b32.xlu0 %v10176_v50, %s13454_s15  ;;  %2149 = vrot.lane.b32.xlu1 %v10176_v50, %s13486_s11  ;;  %v10190_v52 = vmax.f32 %v2011_v3, 0.0  ;;  %v2015_v55 = vadd.f32 %v2014_v53, %v1934_v54 }
 0x604   : > { %v2016_v57 = vpop.f32.mrf.mxu1 }
 0x605   : > { %v10212_v56 = vmax.f32 %v2015_v55, 0.0  ;;  %v2017_v58 = vadd.f32 %v2016_v57, %v1934_v54 }
 0x606   : > { %v2441_v60 = vpop.f32.mrf.mxu1 }
 0x607   : > { %2109 = vrot.lane.b32.xlu0 %v10176_v50, %s13482_s2  ;;  %2089 = vrot.lane.b32.xlu1 %v10176_v50, %s13484_s20  ;;  %v10226_v59 = vmax.f32 %v2017_v58, 0.0  ;;  %v2442_v62 = vadd.f32 %v2441_v60, %v2356_v61 }
 0x608   : > { %v2443_v0 = vpop.f32.mrf.mxu1 }
 0x609   : > { %v2456_v63 = vmul.f32 0.1, %v2442_v62  ;;  %vm2452_vm9 = vcmp.ge.f32.partialorder %v2442_v62, 0.0  ;;  %v2444_v2 = vadd.f32 %v2443_v0, %v2356_v61 }
 0x60a   : > { %v2447_v6 = vpop.f32.mrf.mxu1 }
 0x60b   : > { %2165 = vrot.lane.b32.xlu0 %v10176_v50, %s13452_s10  ;;  %2069 = vrot.lane.b32.xlu1 %v10176_v50, %s13479_s1  ;;  %v10248_v4 = vsel %vm2452_vm9, %v2442_v62, %v2456_v63  ;;  %v2457_v5 = vmul.f32 0.1, %v2444_v2  ;;  %vm2453_vm12 = vcmp.ge.f32.partialorder %v2444_v2, 0.0  ;;  %v2448_v12 = vadd.f32 %v2447_v6, %v2361_v8  ;;  %vm13551_vm9 = vmmov %vm13550_vm10 }
 0x60c   : > { %v2449_v14 = vpop.f32.mrf.mxu1 }
 0x60d   : > { %v10259_v1 = vsel %vm2453_vm12, %v2444_v2, %v2457_v5  ;;  %v2458_v13 = vmul.f32 0.1, %v2448_v12  ;;  %vm2454_vm13 = vcmp.ge.f32.partialorder %v2448_v12, 0.0  ;;  %v2450_v16 = vadd.f32 %v2449_v14, %v2361_v8  ;;  %vm13552_vm12 = vmmov %vm13551_vm9 }
 0x60f   : > { %2151 = vrot.lane.b32.xlu0 %v10190_v52, %s13486_s11  ;;  %2053 = vrot.lane.b32.xlu1 %v10176_v50, %s13477_s9  ;;  %v10270_v15 = vsel %vm2454_vm13, %v2448_v12, %v2458_v13  ;;  %v2459_v17 = vmul.f32 0.1, %v2450_v16  ;;  %vm2455_vm14 = vcmp.ge.f32.partialorder %v2450_v16, 0.0  ;;  %vm13553_vm13 = vmmov %vm13551_vm9 }
 0x611   : > { %v10280_v19 = vsel %vm2455_vm14, %v2450_v16, %v2459_v17  ;;  %vm13555_vm14 = vcmask 908288  }
 0x613   : > { %2091 = vrot.lane.b32.xlu0 %v10190_v52, %s13484_s20  ;;  %2033 = vrot.lane.b32.xlu1 %v10176_v50, %s13450_s16 }
 0x617   : > { %2071 = vrot.lane.b32.xlu0 %v10190_v52, %s13479_s1  ;;  %2131 = vrot.lane.b32.xlu1 %v10190_v52, %s13454_s15 }
 0x61b   : > { %2055 = vrot.lane.b32.xlu0 %v10190_v52, %s13477_s9  ;;  %2111 = vrot.lane.b32.xlu1 %v10190_v52, %s13482_s2 }
 0x61f   : > { %2035 = vrot.lane.b32.xlu0 %v10190_v52, %s13450_s16  ;;  %2167 = vrot.lane.b32.xlu1 %v10190_v52, %s13452_s10 }
 0x623   : > { %2133 = vrot.lane.b32.xlu0 %v10212_v56, %s13454_s15  ;;  %2153 = vrot.lane.b32.xlu1 %v10212_v56, %s13486_s11 }
 0x627   : > { %2113 = vrot.lane.b32.xlu0 %v10212_v56, %s13482_s2  ;;  %2093 = vrot.lane.b32.xlu1 %v10212_v56, %s13484_s20 }
 0x62b   : > { %2169 = vrot.lane.b32.xlu0 %v10212_v56, %s13452_s10  ;;  %2073 = vrot.lane.b32.xlu1 %v10212_v56, %s13479_s1 }
 0x62f   : > { %2155 = vrot.lane.b32.xlu0 %v10226_v59, %s13486_s11  ;;  %2057 = vrot.lane.b32.xlu1 %v10212_v56, %s13477_s9 }
 0x633   : > { %2095 = vrot.lane.b32.xlu0 %v10226_v59, %s13484_s20  ;;  %2037 = vrot.lane.b32.xlu1 %v10212_v56, %s13450_s16 }
 0x637   : > { %2075 = vrot.lane.b32.xlu0 %v10226_v59, %s13479_s1  ;;  %2135 = vrot.lane.b32.xlu1 %v10226_v59, %s13454_s15 }
 0x63b   : > { %2059 = vrot.lane.b32.xlu0 %v10226_v59, %s13477_s9  ;;  %2115 = vrot.lane.b32.xlu1 %v10226_v59, %s13482_s2 }
 0x63f   : > { %2039 = vrot.lane.b32.xlu0 %v10226_v59, %s13450_s16  ;;  %2171 = vrot.lane.b32.xlu1 %v10226_v59, %s13452_s10 }
 0x643   : > { %2566 = vrot.lane.b32.xlu0 %v10248_v4, %s13454_s15  ;;  %2586 = vrot.lane.b32.xlu1 %v10248_v4, %s13486_s11 }
 0x647   : > { %2546 = vrot.lane.b32.xlu0 %v10248_v4, %s13482_s2  ;;  %2526 = vrot.lane.b32.xlu1 %v10248_v4, %s13484_s20 }
 0x64b   : > { %2588 = vrot.lane.b32.xlu0 %v10259_v1, %s13486_s11  ;;  %2568 = vrot.lane.b32.xlu1 %v10259_v1, %s13454_s15 }
 0x64f   : > { %2528 = vrot.lane.b32.xlu0 %v10259_v1, %s13484_s20  ;;  %2548 = vrot.lane.b32.xlu1 %v10259_v1, %s13482_s2 }
 0x653   : > { %2570 = vrot.lane.b32.xlu0 %v10270_v15, %s13454_s15  ;;  %2590 = vrot.lane.b32.xlu1 %v10270_v15, %s13486_s11 }
 0x657   : > { %2550 = vrot.lane.b32.xlu0 %v10270_v15, %s13482_s2  ;;  %2530 = vrot.lane.b32.xlu1 %v10270_v15, %s13484_s20 }
 0x65b   : > { %2592 = vrot.lane.b32.xlu0 %v10280_v19, %s13486_s11  ;;  %2510 = vrot.lane.b32.xlu1 %v10270_v15, %s13479_s1 }
 0x65f   : > { %2508 = vrot.lane.b32.xlu0 %v10259_v1, %s13479_s1  ;;  %2572 = vrot.lane.b32.xlu1 %v10280_v19, %s13454_s15  ;;  %s13568_s15 = sld [smem:[#allocation4_spill]] }
 0x663   : > { %2492 = vrot.lane.b32.xlu0 %v10259_v1, %s13477_s9  ;;  %2552 = vrot.lane.b32.xlu1 %v10280_v19, %s13482_s2 }
 0x667   : > { %2472 = vrot.lane.b32.xlu0 %v10259_v1, %s13450_s16  ;;  %2506 = vrot.lane.b32.xlu1 %v10248_v4, %s13479_s1 }
 0x66b   : > { %2532 = vrot.lane.b32.xlu0 %v10280_v19, %s13484_s20  ;;  %2494 = vrot.lane.b32.xlu1 %v10270_v15, %s13477_s9 }
 0x66f   : > { %2512 = vrot.lane.b32.xlu0 %v10280_v19, %s13479_s1  ;;  %2490 = vrot.lane.b32.xlu1 %v10248_v4, %s13477_s9 }
 0x673   : > { %2496 = vrot.lane.b32.xlu0 %v10280_v19, %s13477_s9  ;;  %2474 = vrot.lane.b32.xlu1 %v10270_v15, %s13450_s16 }
 0x675   : > { %v2130_v10 = vpop.permute.xlu0 %2129  ;;  %v2150_v21 = vpop.permute.xlu1 %2149 }
 0x677   : > { %2476 = vrot.lane.b32.xlu0 %v10280_v19, %s13450_s16  ;;  %2470 = vrot.lane.b32.xlu1 %v10248_v4, %s13450_s16  ;;  %s9300_s16 = smov 48  }
 0x679   : > { %v2110_v23 = vpop.permute.xlu0 %2109  ;;  %v10314_v25 = vpop.permute.xlu1 %2089 }
 0x67b   : > { %2606 = vrot.lane.b32.xlu0 %v10270_v15, %s13452_s10  ;;  %2608 = vrot.lane.b32.xlu1 %v10280_v19, %s13452_s10 }
 0x67d   : > { %v10320_v27 = vpop.permute.xlu0 %2165  ;;  %v10322_v28 = vpop.permute.xlu1 %2069 }
 0x67f   : > { %2602 = vrot.lane.b32.xlu0 %v10248_v4, %s13452_s10  ;;  %2604 = vrot.lane.b32.xlu1 %v10259_v1, %s13452_s10  ;;  %s9301_s10 = smov 32  }
 0x681   : > { %v2152_v32 = vpop.permute.xlu0 %2151  ;;  %v10329_v35 = vpop.permute.xlu1 %2053 }
 0x682   : > { %v2157_v55 = vsel %vm13460_vm8, %v2150_v21, %v2152_v32 }
 0x683   : > { %2624 = vperm.xlu0 %9227, %v2465_v31   ;;  %2187 = vperm.xlu1 %9228, %v2027_v33  }
 0x685   : > { %v2092_v38 = vpop.permute.xlu0 %2091  ;;  %v10332_v40 = vpop.permute.xlu1 %2033 }
 0x687   : > { %2192 = vperm.xlu1 %9228, %v2028_v36  }
 0x689   : > { %v10334_v39 = vpop.permute.xlu0 %2071  ;;  %v2132_v41 = vpop.permute.xlu1 %2131 }
 0x68a   : > { %v2143_v0 = vsel %vm13459_vm3, %v2132_v41, 0.0  ;;  %v2137_v2 = vsel %vm13459_vm3, %v2130_v10, %v2132_v41 }
 0x68d   : > { %v10336_v42 = vpop.permute.xlu0 %2055  ;;  %v2112_v11 = vpop.permute.xlu1 %2111 }
 0x68e   : > { %v2123_v12 = vsel %vm13458_vm7, %v2112_v11, 0.0  ;;  %v2117_v13 = vsel %vm13458_vm7, %v2110_v23, %v2112_v11 }
 0x691   : > { %v10338_v43 = vpop.permute.xlu0 %2035  ;;  %v10340_v44 = vpop.permute.xlu1 %2167 }
 0x695   : > { %v2134_v45 = vpop.permute.xlu0 %2133  ;;  %v2154_v46 = vpop.permute.xlu1 %2153 }
 0x699   : > { %v2114_v47 = vpop.permute.xlu0 %2113  ;;  %v2094_v48 = vpop.permute.xlu1 %2093 }
 0x69a   : > { %v2104_v23 = vsel %vm13457_vm0, 0.0, %v2094_v48 }
 0x69d   : > { %v10342_v49 = vpop.permute.xlu0 %2169  ;;  %v2074_v51 = vpop.permute.xlu1 %2073 }
 0x69e   : > { %v2084_v33 = vsel %vm13551_vm9, 0.0, %v2074_v51 }
 0x6a1   : > { %v2156_v3 = vpop.permute.xlu0 %2155  ;;  %v2058_v53 = vpop.permute.xlu1 %2057 }
 0x6a2   : > { %8549 = vmatprep.subr.msk.mxu0 %vm13460_vm8, %v2156_v3  ;;  %v2158_v54 = vsel %vm13460_vm8, %v2154_v46, %v2156_v3  ;;  %v2023_v3 = vld [vmem:[%s9368_s19] sm:$0xff] }
 0x6a3   : > { %2202 = vmatpush1.msra.mxu0 %v2158_v54 }
 0x6a4   : > { %8550 = vmatprep.subr.msk.mxu0 %vm13460_vm8, %v2152_v32  ;;  %v2083_v32 = vsel %vm13553_vm13, 0.0, %v10322_v28 }
 0x6a5   : > { %v2096_v57 = vpop.permute.xlu0 %2095  ;;  %2204 = vmatpush1.msra.mxu0 %v2157_v55  ;;  %v2038_v58 = vpop.permute.xlu1 %2037 }
 0x6a6   : > { %v2098_v21 = vsel %vm13457_vm0, %v2094_v48, %v2096_v57  ;;  %v2048_v46 = vsel %vm13456_vm11, 0.0, %v2038_v58  ;;  %v2047_v48 = vsel %vm13456_vm11, 0.0, %v10332_v40  ;;  %v2026_v57 = vld [vmem:[%s9368_s19 + $0x18] sm:$0xff] }
 0x6a9   : > { %v2076_v60 = vpop.permute.xlu0 %2075  ;;  %v2136_v61 = vpop.permute.xlu1 %2135 }
 0x6aa   : > { %v2138_v62 = vsel %vm13459_vm3, %v2134_v45, %v2136_v61  ;;  %v2144_v63 = vsel %vm13459_vm3, %v2136_v61, 0.0  ;;  %v2078_v31 = vsel %vm13550_vm10, %v2074_v51, %v2076_v60  ;;  %vm13556_vm10 = vmmov %vm13555_vm14  ;;  %v2025_v60 = vld [vmem:[%s9368_s19 + $0x10] sm:$0xff] }
 0x6ab   : > { %8551 = vmatprep.subr.msk.mxu0 %vm9517_vm2, %v2144_v63  ;;  %vm13557_vm9 = vmmov %vm13556_vm10 }
 0x6ac   : > { %8552 = vmatpush1.msk.msra.mxu0 %vm9522_vm4, %v2138_v62 }
 0x6ad   : > { %v2060_v5 = vpop.permute.xlu0 %2059  ;;  %8553 = vmatprep.subr.msk.mxu0 %vm9517_vm2, %v2143_v0  ;;  %v2116_v6 = vpop.permute.xlu1 %2115 }
 0x6ae   : > { %v2118_v8 = vsel %vm13458_vm7, %v2114_v47, %v2116_v6  ;;  %8554 = vmatpush1.msk.msra.mxu0 %vm9522_vm4, %v2137_v2  ;;  %v2124_v9 = vsel %vm13458_vm7, %v2116_v6, 0.0  ;;  %v2062_v41 = vsel %vm1018_vm1, %v2058_v53, %v2060_v5  ;;  %v10434_v47 = vshrl.u32 %v961_v7, 7 }
 0x6af   : > { %8555 = vmatprep.subr.msk.mxu0 %vm9532_vm6, %v2124_v9 }
 0x6b0   : > { %8556 = vmatpush1.msk.msra.mxu0 %vm9527_vm5, %v2118_v8 }
 0x6b1   : > { %v2040_v14 = vpop.permute.xlu0 %2039  ;;  %8557 = vmatprep.subr.msk.mxu0 %vm9532_vm6, %v2123_v12  ;;  %v2172_v16 = vpop.permute.xlu1 %2171 }
 0x6b2   : > { %8558 = vmatpush1.msk.msra.mxu0 %vm9527_vm5, %v2117_v13  ;;  %v2042_v45 = vsel %vm13456_vm11, %v2038_v58, %v2040_v14  ;;  %v2174_v7 = vsel %vm13556_vm10, %v10342_v49, %v2172_v16  ;;  %v10460_v58 = vld [vmem:[%s13554_s18] sm:$0x3]  ;;  %vm13560_vm10 = vmmov %vm13553_vm13  ;;  %s9299_s18 = smov 80  }
 0x6b3   : > { %2213 = vmatprep.subr.mxu0 %v10226_v59  ;;  %v2097_v59 = vsel %vm13457_vm0, %v10314_v25, %v2092_v38 }
 0x6b4   : > { %2214 = vmatpush1.msra.mxu0 %v10212_v56 }
 0x6b5   : > { %v10374_v17 = vpop.permute.xlu0 %2566  ;;  %2215 = vmatprep.subr.mxu0 %v10190_v52  ;;  %v10377_v10 = vpop.permute.xlu1 %2586  ;;  %v2103_v52 = vsel %vm13457_vm0, 0.0, %v10314_v25  ;;  %v2077_v25 = vsel %vm13552_vm12, %v10322_v28, %v10334_v39  ;;  %v2061_v39 = vsel %vm1018_vm1, %v10329_v35, %v10336_v42  ;;  %v2041_v42 = vsel %vm13456_vm11, %v10332_v40, %v10338_v43  ;;  %vm13558_vm12 = vmmov %vm13557_vm9 }
 0x6b6   : > { %2216 = vmatpush1.msra.mxu0 %v10176_v50  ;;  %v2180_v43 = vsel %vm13555_vm14, %v2172_v16, 0.0  ;;  %v2179_v40 = vsel %vm13557_vm9, %v10340_v44, 0.0  ;;  %v2173_v54 = vsel %vm13558_vm12, %v10320_v27, %v10340_v44  ;;  %vm13559_vm14 = vmmov %vm13553_vm13 }
 0x6b7   : > { %8559 = vmatprep.subr.msk.mxu0 %vm9517_vm2, %v2098_v21  ;;  %vm13561_vm9 = vmmov %vm13560_vm10 }
 0x6b8   : > { %8560 = vmatpush1.msk.msra.mxu0 %vm9522_vm4, %v2104_v23 }
 0x6b9   : > { %v10390_v56 = vpop.permute.xlu0 %2546  ;;  %8561 = vmatprep.subr.msk.mxu0 %vm9517_vm2, %v2097_v59  ;;  %v10394_v50 = vpop.permute.xlu1 %2526 }
 0x6ba   : > { %8562 = vmatpush1.msk.msra.mxu0 %vm9522_vm4, %v2103_v52 }
 0x6bb   : > { %8563 = vmatprep.subr.msk.mxu0 %vm9532_vm6, %v2078_v31 }
 0x6bc   : > { %8564 = vmatpush1.msk.msra.mxu0 %vm9527_vm5, %v2084_v33 }
 0x6bd   : > { %v2589_v36 = vpop.permute.xlu0 %2588  ;;  %8565 = vmatprep.subr.msk.mxu0 %vm9532_vm6, %v2077_v25  ;;  %v2569_v38 = vpop.permute.xlu1 %2568 }
 0x6be   : > { %8566 = vmatpush1.msk.msra.mxu0 %vm9527_vm5, %v2083_v32  ;;  %v2594_v0 = vsel %vm13460_vm8, %v10377_v10, %v2589_v36  ;;  %v2580_v8 = vsel %vm13459_vm3, %v2569_v38, 0.0  ;;  %v2574_v9 = vsel %vm13459_vm3, %v10374_v17, %v2569_v38 }
 0x6bf   : > { %2225 = vmatprep.subr.mxu0 %v2062_v41 }
 0x6c0   : > { %8568 = vmatpush1.msk.msra.mxu0 %vm9726_vm15, %v2058_v53  ;;  %v2638_v53 = vsub.s32 1, %v10434_v47 }
 0x6c1   : > { %v10419_v11 = vpop.permute.xlu0 %2528  ;;  %2227 = vmatprep.subr.mxu0 %v2061_v39  ;;  %v2549_v28 = vpop.permute.xlu1 %2548 }
 0x6c2   : > { %8570 = vmatpush1.msk.msra.mxu0 %vm9726_vm15, %v10329_v35  ;;  %v2639_v61 = vrot.slane %v10460_v58, %v2638_v53  ;;  %v2560_v17 = vsel %vm13458_vm7, %v2549_v28, 0.0  ;;  %v2554_v10 = vsel %vm13458_vm7, %v10390_v56, %v2549_v28  ;;  %v2534_v33 = vsel %vm13457_vm0, %v10394_v50, %v10419_v11 }
 0x6c3   : > { %8571 = vmatprep.subr.msk.mxu0 %vm9517_vm2, %v2042_v45 }
 0x6c4   : > { %8572 = vmatpush1.msk.msra.mxu0 %vm9522_vm4, %v2048_v46 }
 0x6c5   : > { %v2571_v35 = vpop.permute.xlu0 %2570  ;;  %8573 = vmatprep.subr.msk.mxu0 %vm9517_vm2, %v2041_v42  ;;  %v2591_v51 = vpop.permute.xlu1 %2590 }
 0x6c6   : > { %8574 = vmatpush1.msk.msra.mxu0 %vm9522_vm4, %v2047_v48 }
 0x6c7   : > { %8575 = vmatprep.subr.msk.mxu0 %vm9532_vm6, %v2180_v43  ;;  %v2629_v43 = vsub.s32 0, %v10434_v47 }
 0x6c8   : > { %8576 = vmatpush2.msk.msra.mxu0 %vm9527_vm5, %v2174_v7 }
 0x6c9   : > { %v2551_v55 = vpop.permute.xlu0 %2550  ;;  %8577 = vmatprep.subr.msk.mxu0 %vm9532_vm6, %v2179_v40  ;;  %v2531_v49 = vpop.permute.xlu1 %2530 }
 0x6ca   : > { %8578 = vmatpush2.msk.msra.mxu0 %vm9527_vm5, %v2173_v54  ;;  %v2541_v56 = vsel %vm13457_vm0, 0.0, %v2531_v49  ;;  %v2635_v54 = vrot.slane %v10460_v58, %v2629_v43 }
 0x6cb   : > { %2266 = vmatmul.mubr.f32.vlgmr.msra.gmra.mxu0 %v2023_v3 }
 0x6cc   : > { %8580 = vmatprep.mubr.msk.f32.mxu0 %vm1018_vm1, %v2026_v57 }
 0x6cd   : > { %v2593_v62 = vpop.permute.xlu0 %2592  ;;  %v2511_v63 = vpop.permute.xlu1 %2510 }
 0x6ce   : > { %8585 = vmatprep.subr.msk.mxu0 %vm13460_vm8, %v2593_v62  ;;  %v2595_v27 = vsel %vm13460_vm8, %v2591_v51, %v2593_v62  ;;  %v2521_v25 = vsel %vm13559_vm14, 0.0, %v2511_v63  ;;  %vm13563_vm14 = vmmov %vm13558_vm12 }
 0x6cf   : > { %2272 = vmatmul.mubr.f32.gmra.mxu0 %v2025_v60 }
 0x6d0   : > { %2644 = vmatpush1.msra.mxu0 %v2595_v27  ;;  %8615 = vmatprep.mubr.msk.f32.mxu0 %vm1018_vm1, %v2639_v61 }
 0x6d1   : > { %8586 = vmatprep.subr.msk.mxu0 %vm13460_vm8, %v2589_v36  ;;  %v2509_v44 = vpop.permute.xlu0 %2508  ;;  %v2573_v2 = vpop.permute.xlu1 %2572 }
 0x6d2   : > { %2646 = vmatpush1.msra.mxu0 %v2594_v0  ;;  %v2575_v5 = vsel %vm13459_vm3, %v2571_v35, %v2573_v2  ;;  %v2581_v6 = vsel %vm13459_vm3, %v2573_v2, 0.0 }
 0x6d3   : > { %8587 = vmatprep.subr.msk.mxu0 %vm9517_vm2, %v2581_v6 }
 0x6d4   : > { %8588 = vmatpush1.msk.msra.mxu0 %vm9522_vm4, %v2575_v5 }
 0x6d5   : > { %v2493_v12 = vpop.permute.xlu0 %2492  ;;  %8589 = vmatprep.subr.msk.mxu0 %vm9517_vm2, %v2580_v8  ;;  %v2553_v13 = vpop.permute.xlu1 %2552 }
 0x6d6   : > { %v2555_v14 = vsel %vm13458_vm7, %v2551_v55, %v2553_v13  ;;  %8590 = vmatpush1.msk.msra.mxu0 %vm9522_vm4, %v2574_v9  ;;  %v2561_v16 = vsel %vm13458_vm7, %v2553_v13, 0.0 }
 0x6d7   : > { %8591 = vmatprep.subr.msk.mxu0 %vm9532_vm6, %v2561_v16 }
 0x6d8   : > { %8592 = vmatpush1.msk.msra.mxu0 %vm9527_vm5, %v2555_v14 }
 0x6d9   : > { %v2473_v21 = vpop.permute.xlu0 %2472  ;;  %8593 = vmatprep.subr.msk.mxu0 %vm9532_vm6, %v2560_v17  ;;  %v2507_v23 = vpop.permute.xlu1 %2506 }
 0x6da   : > { %8594 = vmatpush1.msk.msra.mxu0 %vm9527_vm5, %v2554_v10  ;;  %v2520_v32 = vsel %vm13561_vm9, 0.0, %v2507_v23  ;;  %vm5360_vm9 = vcmask 261120  }
 0x6db   : > { %2655 = vmatprep.subr.mxu0 %v10280_v19 }
 0x6dc   : > { %2656 = vmatpush1.msra.mxu0 %v10270_v15 }
 0x6dd   : > { %v2533_v59 = vpop.permute.xlu0 %2532  ;;  %2657 = vmatprep.subr.mxu0 %v10259_v1  ;;  %v2495_v52 = vpop.permute.xlu1 %2494  ;;  %v2540_v1 = vsel %vm13457_vm0, 0.0, %v10394_v50  ;;  %v2514_v50 = vsel %vm13560_vm10, %v2507_v23, %v2509_v44  ;;  %vm13564_vm10 = vmmov %vm13558_vm12 }
 0x6de   : > { %v2535_v31 = vsel %vm13457_vm0, %v2531_v49, %v2533_v59  ;;  %2658 = vmatpush1.msra.mxu0 %v10248_v4 }
 0x6df   : > { %8595 = vmatprep.subr.msk.mxu0 %vm9517_vm2, %v2535_v31 }
 0x6e0   : > { %8596 = vmatpush1.msk.msra.mxu0 %vm9522_vm4, %v2541_v56 }
 0x6e1   : > { %v2513_v15 = vpop.permute.xlu0 %2512  ;;  %8597 = vmatprep.subr.msk.mxu0 %vm9517_vm2, %v2534_v33  ;;  %v2491_v4 = vpop.permute.xlu1 %2490  ;;  %v9302_v33 = vmov 1983009808  }
 0x6e2   : > { %v2515_v19 = vsel %vm13553_vm13, %v2511_v63, %v2513_v15  ;;  %8598 = vmatpush1.msk.msra.mxu0 %vm9522_vm4, %v2540_v1  ;;  %v2498_v39 = vsel %vm1018_vm1, %v2491_v4, %v2493_v12  ;;  %vm13562_vm13 = vmmov %vm13558_vm12  ;;  %v2762_v1 = vunpack.c.l.s4 %v9302_v33 }
 0x6e3   : > { %8599 = vmatprep.subr.msk.mxu0 %vm9532_vm6, %v2515_v19 }
 0x6e4   : > { %8600 = vmatpush1.msk.msra.mxu0 %vm9527_vm5, %v2521_v25  ;;  %v2763_v19 = vunpack.c.0.s8 %v2762_v1 }
 0x6e5   : > { %v2497_v36 = vpop.permute.xlu0 %2496  ;;  %8601 = vmatprep.subr.msk.mxu0 %vm9532_vm6, %v2514_v50  ;;  %v2475_v38 = vpop.permute.xlu1 %2474 }
 0x6e6   : > { %8602 = vmatpush1.msk.msra.mxu0 %vm9527_vm5, %v2520_v32  ;;  %v2499_v41 = vsel %vm1018_vm1, %v2495_v52, %v2497_v36  ;;  %v2485_v46 = vsel %vm13456_vm11, 0.0, %v2475_v38 }
 0x6e7   : > { %2667 = vmatprep.subr.mxu0 %v2499_v41  ;;  %v9303_v41 = vmov 1934713408  }
 0x6e8   : > { %8604 = vmatpush1.msk.msra.mxu0 %vm9726_vm15, %v2495_v52 }
 0x6e9   : > { %v2477_v11 = vpop.permute.xlu0 %2476  ;;  %2669 = vmatprep.subr.mxu0 %v2498_v39  ;;  %v2471_v28 = vpop.permute.xlu1 %2470  ;;  %v2794_v39 = vunpack.c.l.s4 %v9303_v41  ;;  %v2714_v41 = vld [vmem:[%s13568_s15] sm:$0xff] }
 0x6ea   : > { %v2479_v45 = vsel %vm13456_vm11, %v2475_v38, %v2477_v11  ;;  %8606 = vmatpush1.msk.msra.mxu0 %vm9726_vm15, %v2491_v4  ;;  %v2478_v42 = vsel %vm13456_vm11, %v2471_v28, %v2473_v21  ;;  %v2484_v48 = vsel %vm13456_vm11, 0.0, %v2471_v28  ;;  %v10699_v38 = vsub.s32 %v2763_v19, %v10434_v47 }
 0x6eb   : > { %8607 = vmatprep.subr.msk.mxu0 %vm9517_vm2, %v2479_v45 }
 0x6ec   : > { %8608 = vmatpush1.msk.msra.mxu0 %vm9522_vm4, %v2485_v46 }
 0x6ed   : > { %v2607_v35 = vpop.permute.xlu0 %2606  ;;  %8609 = vmatprep.subr.msk.mxu0 %vm9517_vm2, %v2478_v42  ;;  %v2609_v51 = vpop.permute.xlu1 %2608  ;;  %v2795_v42 = vunpack.c.0.s8 %v2794_v39 }
 0x6ee   : > { %v2611_v7 = vsel %vm13558_vm12, %v2607_v35, %v2609_v51  ;;  %8610 = vmatpush1.msk.msra.mxu0 %vm9522_vm4, %v2484_v48  ;;  %v2617_v40 = vsel %vm13562_vm13, %v2609_v51, 0.0  ;;  %vm5363_vm12 = vcmask 392192   ;;  %vm13461_vm13 = vcmask 523264  }
 0x6ef   : > { %8611 = vmatprep.subr.msk.mxu0 %vm9532_vm6, %v2617_v40  ;;  %v10724_v40 = vsub.s32 %v2795_v42, %v10434_v47 }
 0x6f0   : > { %8612 = vmatpush2.msk.msra.mxu0 %vm9527_vm5, %v2611_v7 }
 0x6f1   : > { %v2603_v3 = vpop.permute.xlu0 %2602  ;;  %v2605_v53 = vpop.permute.xlu1 %2604 }
 0x6f2   : > { %v2610_v55 = vsel %vm13563_vm14, %v2603_v3, %v2605_v53  ;;  %v2616_v49 = vsel %vm13564_vm10, %v2605_v53, 0.0  ;;  %vm5372_vm14 = vcmask 785408   ;;  %vm5369_vm10 = vcmask 654336  }
 0x6f3   : > { %8613 = vmatprep.subr.msk.mxu0 %vm9532_vm6, %v2616_v49 }
 0x6f4   : > { %8614 = vmatpush2.msk.msra.mxu0 %vm9527_vm5, %v2610_v55 }
 0x6f5   : > { %2708 = vmatmul.mubr.f32.vlgmr.msra.gmra.mxu0 %v2635_v54 }
 0x6fe   : > { %v2188_v57 = vpop.permute.xlu1 %2187  ;;  %v2625_v0 = vpop.permute.xlu0 %2624 }
 0x6ff   : > { %v2630_v5 = vrot.slane %v2625_v0, %v2629_v43 }
 0x702   : > { %v2193_v13 = vpop.permute.xlu1 %2192 }
 0x78b   : > { %v2267_v60 = vpop.f32.mrf.mxu0 }
 0x78c   : > { %v2268_v61 = vadd.f32 %v2267_v60, %v2188_v57 }
 0x78d   : > { %v2269_v62 = vpop.f32.mrf.mxu0 }
 0x78e   : > { %v10563_v63 = vadd.f32 %v2268_v61, %v9933_v26  ;;  %v2270_v27 = vadd.f32 %v2269_v62, %v2188_v57 }
 0x790   : > { %13565 = vst [vmem:[#allocation19_spill] sm:$0xff] %v10563_v63  ;;  %v10566_v58 = vmul.f32 6.2831855, %v10563_v63  ;;  %v10573_v44 = vadd.f32 %v2270_v27, %v9944_v29  ;;  %v2273_v29 = vpop.f32.mrf.mxu0 }
 0x791   : > { %v2274_v10 = vadd.f32 %v2273_v29, %v2193_v13 }
 0x792   : > { %2872 = vrot.lane.b32.xlu0 %v10566_v58, %s9297_s0  ;;  %2866 = vrot.lane.b32.xlu1 %v10566_v58, %s13486_s11  ;;  %13566 = vst [vmem:[#allocation20_spill] sm:$0xff] %v10573_v44  ;;  %v10580_v26 = vmul.f32 6.2831855, %v10573_v44  ;;  %v2275_v2 = vpop.f32.mrf.mxu0 }
 0x793   : > { %v2276_v14 = vadd.f32 %v2275_v2, %v2193_v13 }
 0x795   : > { %v10631_v16 = vadd.f32 %v2276_v14, %v9966_v37  ;;  %v10649_v37 = vadd.f32 %v2274_v10, %v9955_v34 }
 0x796   : > { %2884 = vrot.lane.b32.xlu0 %v10566_v58, %s9298_s26  ;;  %2878 = vrot.lane.b32.xlu1 %v10566_v58, %s9299_s18 }
 0x797   : > { %v10638_v17 = vmul.f32 6.2831855, %v10631_v16  ;;  %13567 = vst [vmem:[#allocation21_spill] sm:$0xff] %v10649_v37  ;;  %v10656_v21 = vmul.f32 6.2831855, %v10649_v37 }
 0x79a   : > { %2910 = vrot.lane.b32.xlu0 %v10580_v26, %s13486_s11  ;;  %2890 = vrot.lane.b32.xlu1 %v10566_v58, %s9300_s16 }
 0x79e   : > { %2922 = vrot.lane.b32.xlu0 %v10580_v26, %s9299_s18  ;;  %2916 = vrot.lane.b32.xlu1 %v10580_v26, %s9297_s0 }
 0x7a2   : > { %2934 = vrot.lane.b32.xlu0 %v10580_v26, %s9300_s16  ;;  %2928 = vrot.lane.b32.xlu1 %v10580_v26, %s9298_s26 }
 0x7a6   : > { %2946 = vrot.lane.b32.xlu0 %v10580_v26, %s13477_s9  ;;  %2940 = vrot.lane.b32.xlu1 %v10580_v26, %s9301_s10 }
 0x7b5   : > { %v2709_v6 = vpop.f32.mrf.mxu0 }
 0x7b6   : > { %v10598_v8 = vadd.f32 %v2709_v6, %v2630_v5 }
 0x7b7   : > { %v2711_v9 = vpop.f32.mrf.mxu0 }
 0x7b8   : > { %2720 = vrot.lane.b32.xlu0 %v10598_v8, %s9297_s0  ;;  %2717 = vrot.lane.b32.xlu1 %v10598_v8, %s13486_s11  ;;  %v10612_v12 = vadd.f32 %v2711_v9, %v2630_v5 }
 0x7bc   : > { %2726 = vrot.lane.b32.xlu0 %v10598_v8, %s9298_s26  ;;  %2723 = vrot.lane.b32.xlu1 %v10598_v8, %s9299_s18 }
 0x7c0   : > { %2732 = vrot.lane.b32.xlu0 %v10598_v8, %s9301_s10  ;;  %2729 = vrot.lane.b32.xlu1 %v10598_v8, %s9300_s16 }
 0x7c4   : > { %2739 = vrot.lane.b32.xlu0 %v10612_v12, %s13486_s11  ;;  %2735 = vrot.lane.b32.xlu1 %v10598_v8, %s13477_s9 }
 0x7c8   : > { %2745 = vrot.lane.b32.xlu0 %v10612_v12, %s9299_s18  ;;  %2742 = vrot.lane.b32.xlu1 %v10612_v12, %s9297_s0 }
 0x7cc   : > { %2751 = vrot.lane.b32.xlu0 %v10612_v12, %s9300_s16  ;;  %2748 = vrot.lane.b32.xlu1 %v10612_v12, %s9298_s26 }
 0x7d0   : > { %2757 = vrot.lane.b32.xlu0 %v10612_v12, %s13477_s9  ;;  %2754 = vrot.lane.b32.xlu1 %v10612_v12, %s9301_s10 }
 0x7d4   : > { %2896 = vrot.lane.b32.xlu0 %v10566_v58, %s9301_s10  ;;  %2902 = vrot.lane.b32.xlu1 %v10566_v58, %s13477_s9 }
 0x7d8   : > { %2918 = vrot.lane.b32.xlu1 %v10638_v17, %s9297_s0  ;;  %2912 = vrot.lane.b32.xlu0 %v10638_v17, %s13486_s11 }
 0x7dc   : > { %2930 = vrot.lane.b32.xlu1 %v10638_v17, %s9298_s26  ;;  %2924 = vrot.lane.b32.xlu0 %v10638_v17, %s9299_s18 }
 0x7e0   : > { %2942 = vrot.lane.b32.xlu1 %v10638_v17, %s9301_s10  ;;  %2936 = vrot.lane.b32.xlu0 %v10638_v17, %s9300_s16 }
 0x7e4   : > { %2948 = vrot.lane.b32.xlu0 %v10638_v17, %s13477_s9  ;;  %2868 = vrot.lane.b32.xlu1 %v10656_v21, %s13486_s11 }
 0x7e8   : > { %2874 = vrot.lane.b32.xlu0 %v10656_v21, %s9297_s0  ;;  %2880 = vrot.lane.b32.xlu1 %v10656_v21, %s9299_s18 }
 0x7ec   : > { %2886 = vrot.lane.b32.xlu0 %v10656_v21, %s9298_s26  ;;  %2892 = vrot.lane.b32.xlu1 %v10656_v21, %s9300_s16 }
 0x7f0   : > { %2898 = vrot.lane.b32.xlu0 %v10656_v21, %s9301_s10  ;;  %2904 = vrot.lane.b32.xlu1 %v10656_v21, %s13477_s9 }
 0x804   : > { %v10674_v34 = vpop.permute.xlu0 %2872  ;;  %v10676_v23 = vpop.permute.xlu1 %2866 }
 0x808   : > { %v10678_v59 = vpop.permute.xlu0 %2884  ;;  %v10680_v52 = vpop.permute.xlu1 %2878 }
 0x80c   : > { %v10682_v31 = vpop.permute.xlu0 %2910  ;;  %v10684_v56 = vpop.permute.xlu1 %2890 }
 0x810   : > { %v10686_v15 = vpop.permute.xlu0 %2922  ;;  %v10688_v4 = vpop.permute.xlu1 %2916 }
 0x811   : > { %v3104_v25 = vcombine.low %v10682_v31, %v10686_v15  ;;  %v3088_v50 = vcombine.low %v10580_v26, %v10688_v4 }
 0x813   : > { %v10702_v11 = vrot.slane %v3104_v25, %v10699_v38  ;;  %v10705_v28 = vrot.slane %v3088_v50, %v10699_v38 }
 0x814   : > { %v10694_v32 = vpop.permute.xlu0 %2934  ;;  %v10696_v36 = vpop.permute.xlu1 %2928 }
 0x815   : > { %v3152_v51 = vcombine.low %v10705_v28, %v10702_v11 }
 0x817   : > { %v10729_v53 = vrot.slane %v3152_v51, %v10724_v40 }
 0x818   : > { %v10707_v45 = vpop.permute.xlu0 %2946  ;;  %v10709_v46 = vpop.permute.xlu1 %2940 }
 0x819   : > { %v3136_v48 = vcombine.low %v10694_v32, %v10707_v45  ;;  %v3120_v35 = vcombine.low %v10696_v36, %v10709_v46 }
 0x81b   : > { %v10718_v43 = vrot.slane %v3136_v48, %v10699_v38  ;;  %v10721_v7 = vrot.slane %v3120_v35, %v10699_v38 }
 0x81d   : > { %v3184_v3 = vcombine.low %v10721_v7, %v10718_v43 }
 0x81f   : > { %v10732_v54 = vrot.slane %v3184_v3, %v10724_v40  ;;  %v2968_v3 = vcombine.low %v10676_v23, %v10680_v52 }
 0x821   : > { %v3216_v55 = vcombine.low %v10729_v53, %v10732_v54 }
 0x823   : > { %9036 = vmatprep.subr.mxu1 %v3216_v55 }
 0x824   : > { %9037 = vmatpush3.msra.mxu1 %v3216_v55 }
 0x82a   : > { %v2721_v49 = vpop.permute.xlu0 %2720  ;;  %v2718_v57 = vpop.permute.xlu1 %2717 }
 0x82b   : > { %v2760_v29 = vcombine.low %v10598_v8, %v2721_v49  ;;  %v2952_v49 = vcombine.low %v10566_v58, %v10674_v34 }
 0x82d   : > { %v2767_v9 = vrot.slane %v2760_v29, %v10699_v38 }
 0x82e   : > { %v2727_v60 = vpop.permute.xlu0 %2726  ;;  %v2724_v61 = vpop.permute.xlu1 %2723 }
 0x82f   : > { %v2768_v47 = vcombine.low %v2718_v57, %v2724_v61 }
 0x831   : > { %v2775_v0 = vrot.slane %v2768_v47, %v10699_v38 }
 0x832   : > { %v2733_v62 = vpop.permute.xlu0 %2732  ;;  %v2730_v27 = vpop.permute.xlu1 %2729 }
 0x833   : > { %v2776_v2 = vcombine.low %v2727_v60, %v2733_v62  ;;  %v2792_v14 = vcombine.low %v2767_v9, %v2775_v0 }
 0x835   : > { %v2783_v10 = vrot.slane %v2776_v2, %v10699_v38  ;;  %v2799_v50 = vrot.slane %v2792_v14, %v10724_v40  ;;  %v10763_v2 = vrot.slane %v2952_v49, %v10699_v38  ;;  %v3089_v49 = vcombine.high %v10580_v26, %v10688_v4 }
 0x836   : > { %v2740_v5 = vpop.permute.xlu0 %2739  ;;  %v2736_v6 = vpop.permute.xlu1 %2735  ;;  %v2953_v4 = vcombine.high %v10566_v58, %v10674_v34 }
 0x837   : > { %v2784_v13 = vcombine.low %v2730_v27, %v2736_v6  ;;  %v10815_v58 = vrot.slane %v3089_v49, %v10699_v38 }
 0x839   : > { %v2791_v33 = vrot.slane %v2784_v13, %v10699_v38 }
 0x83a   : > { %v2746_v1 = vpop.permute.xlu0 %2745  ;;  %v2743_v19 = vpop.permute.xlu1 %2742 }
 0x83b   : > { %v2800_v25 = vcombine.low %v2783_v10, %v2791_v33  ;;  %v2817_v39 = vcombine.low %v2740_v5, %v2746_v1  ;;  %v2809_v51 = vcombine.low %v10612_v12, %v2743_v19  ;;  %v10758_v12 = vrot.slane %v2968_v3, %v10699_v38 }
 0x83d   : > { %v2807_v8 = vrot.slane %v2800_v25, %v10724_v40  ;;  %v2824_v57 = vrot.slane %v2817_v39, %v10699_v38  ;;  %v2816_v47 = vrot.slane %v2809_v51, %v10699_v38  ;;  %v3016_v33 = vcombine.low %v10763_v2, %v10758_v12 }
 0x83e   : > { %v2752_v42 = vpop.permute.xlu0 %2751  ;;  %v2749_v48 = vpop.permute.xlu1 %2748 }
 0x83f   : > { %v2808_v35 = vcombine.low %v2799_v50, %v2807_v8  ;;  %v2841_v9 = vcombine.low %v2816_v47, %v2824_v57  ;;  %v3024_v51 = vrot.slane %v3016_v33, %v10724_v40  ;;  %v3153_v57 = vcombine.high %v10705_v28, %v10702_v11 }
 0x841   : > { %v10747_v55 = vmul.f32 %v2808_v35, %v2714_v41  ;;  %v2848_v41 = vrot.slane %v2841_v9, %v10724_v40 }
 0x842   : > { %v2758_v60 = vpop.permute.xlu0 %2757  ;;  %v2755_v61 = vpop.permute.xlu1 %2754 }
 0x843   : > { %v2833_v62 = vcombine.low %v2752_v42, %v2758_v60  ;;  %v2825_v27 = vcombine.low %v2749_v48, %v2755_v61  ;;  %9040 = vmatprep.mubr.msk.f32.mxu1 %vm1018_vm1, %v10747_v55  ;;  %9124 = vmatprep.mubr.msk.f32.mxu0 %vm1018_vm1, %v10747_v55  ;;  %v2969_v42 = vcombine.high %v10676_v23, %v10680_v52  ;;  %v2715_v61 = vld [vmem:[%s13568_s15 + $0x8] sm:$0xff] }
 0x844   : > { %v3105_v48 = vcombine.high %v10682_v31, %v10686_v15  ;;  %v3185_v60 = vcombine.high %v10721_v7, %v10718_v43  ;;  %v3137_v52 = vcombine.high %v10694_v32, %v10707_v45  ;;  %v3121_v31 = vcombine.high %v10696_v36, %v10709_v46 }
 0x845   : > { %v2840_v29 = vrot.slane %v2833_v62, %v10699_v38  ;;  %v2832_v0 = vrot.slane %v2825_v27, %v10699_v38  ;;  %v10802_v11 = vrot.slane %v2969_v42, %v10699_v38  ;;  %v3017_v7 = vcombine.high %v10763_v2, %v10758_v12 }
 0x846   : > { %v2897_v5 = vpop.permute.xlu0 %2896  ;;  %v2903_v6 = vpop.permute.xlu1 %2902  ;;  %v10808_v32 = vrot.slane %v3105_v48, %v10699_v38  ;;  %v3217_v36 = vcombine.high %v10729_v53, %v10732_v54  ;;  %v3167_v46 = vrot.slane %v3153_v57, %v10724_v40  ;;  %v3199_v62 = vrot.slane %v3185_v60, %v10724_v40 }
 0x847   : > { %v2849_v13 = vcombine.low %v2832_v0, %v2840_v29  ;;  %v2984_v14 = vcombine.low %v10678_v59, %v2897_v5  ;;  %v3000_v10 = vcombine.low %v10684_v56, %v2903_v6  ;;  %v2985_v15 = vcombine.high %v10678_v59, %v2897_v5 }
 0x848   : > { %v3001_v28 = vcombine.high %v10684_v56, %v2903_v6  ;;  %v10826_v27 = vrot.slane %v3137_v52, %v10699_v38  ;;  %v10829_v12 = vrot.slane %v3121_v31, %v10699_v38  ;;  %v2967_v5 = vrot.slane %v2953_v4, %v10699_v38 }
 0x849   : > { %v2856_v1 = vrot.slane %v2849_v13, %v10724_v40  ;;  %v2992_v19 = vrot.slane %v2984_v14, %v10699_v38  ;;  %v3008_v25 = vrot.slane %v3000_v10, %v10699_v38  ;;  %v10832_v29 = vrot.slane %v2985_v15, %v10699_v38 }
 0x84a   : > { %v10772_v50 = vpop.permute.xlu0 %2912  ;;  %v10774_v8 = vpop.permute.xlu1 %2918  ;;  %v10839_v53 = vrot.slane %v3001_v28, %v10699_v38  ;;  %v3218_v10 = vcombine.low %v3167_v46, %v3199_v62  ;;  %v3031_v33 = vrot.slane %v3017_v7, %v10724_v40  ;;  %v3033_v49 = vcombine.high %v2967_v5, %v10802_v11 }
 0x84b   : > { %v3048_v39 = vcombine.low %v2992_v19, %v3008_v25  ;;  %v2857_v35 = vcombine.low %v2848_v41, %v2856_v1  ;;  %v3049_v43 = vcombine.high %v2992_v19, %v3008_v25  ;;  %v3361_v0 = vcombine.high %v10638_v17, %v10774_v8 }
 0x84c   : > { %v3032_v1 = vcombine.low %v2967_v5, %v10802_v11  ;;  %v3200_v19 = vcombine.low %v10829_v12, %v10826_v27  ;;  %v3064_v42 = vcombine.low %v10832_v29, %v10839_v53  ;;  %v3169_v57 = vcombine.high %v10815_v58, %v10808_v32 }
 0x84d   : > { %v3056_v3 = vrot.slane %v3048_v39, %v10724_v40  ;;  %v10810_v45 = vmul.f32 %v2857_v35, %v2715_v61  ;;  %v3063_v2 = vrot.slane %v3049_v43, %v10724_v40  ;;  %v10857_v25 = vrot.slane %v3361_v0, %v10699_v38 }
 0x84e   : > { %v10790_v47 = vpop.permute.xlu0 %2924  ;;  %v10792_v23 = vpop.permute.xlu1 %2930  ;;  %v3168_v39 = vcombine.low %v10815_v58, %v10808_v32  ;;  %v3201_v52 = vcombine.high %v10829_v12, %v10826_v27  ;;  %v3219_v15 = vcombine.high %v3167_v46, %v3199_v62  ;;  %v3065_v4 = vcombine.high %v10832_v29, %v10839_v53 }
 0x84f   : > { %v3080_v26 = vcombine.low %v3024_v51, %v3056_v3  ;;  %v3377_v59 = vcombine.high %v10772_v50, %v10790_v47  ;;  %v3081_v54 = vcombine.high %v3024_v51, %v3056_v3  ;;  %v3082_v48 = vcombine.low %v3031_v33, %v3063_v2 }
 0x850   : > { %v3176_v11 = vrot.slane %v3168_v39, %v10724_v40  ;;  %v3040_v28 = vrot.slane %v3032_v1, %v10724_v40  ;;  %v3072_v43 = vrot.slane %v3064_v42, %v10724_v40  ;;  %v3083_v7 = vcombine.high %v3031_v33, %v3063_v2 }
 0x851   : > { %9038 = vmatprep.subr.mxu1 %v3080_v26  ;;  %v10846_v6 = vrot.slane %v3377_v59, %v10699_v38  ;;  %v10909_v12 = vrot.slane %v3033_v49, %v10724_v40  ;;  %v3183_v53 = vrot.slane %v3169_v57, %v10724_v40  ;;  %v3376_v2 = vcombine.low %v10772_v50, %v10790_v47 }
 0x852   : > { %v10817_v34 = vpop.permute.xlu0 %2936  ;;  %9039 = vmatpush3.msra.mxu1 %v3080_v26  ;;  %v10819_v56 = vpop.permute.xlu1 %2942  ;;  %v3208_v26 = vrot.slane %v3200_v19, %v10724_v40  ;;  %v3079_v33 = vrot.slane %v3065_v4, %v10724_v40 }
 0x853   : > { %9041 = vmatmul.mubr.msk.f32.vlgmr.msra.gmra.mxu1 %vm1018_vm1, %v10810_v45  ;;  %9043 = vmatprep.subr.mxu1 %v3217_v36  ;;  %v3393_v9 = vcombine.high %v10792_v23, %v10819_v56  ;;  %v3440_v35 = vcombine.low %v10857_v25, %v10846_v6  ;;  %v3392_v5 = vcombine.low %v10792_v23, %v10819_v56 }
 0x854   : > { %9047 = vmatprep.mubr.msk.f32.mxu1 %vm1018_vm1, %v10747_v55  ;;  %9044 = vmatpush3.msra.mxu1 %v3217_v36  ;;  %v3220_v29 = vcombine.low %v3176_v11, %v3208_v26  ;;  %v3086_v4 = vcombine.low %v10909_v12, %v3079_v33 }
 0x855   : > { %9045 = vmatprep.subr.mxu1 %v3081_v54  ;;  %v10869_v51 = vrot.slane %v3393_v9, %v10699_v38  ;;  %v10898_v32 = vrot.slane %v3440_v35, %v10724_v40  ;;  %v3221_v9 = vcombine.high %v3176_v11, %v3208_v26  ;;  %v10939_v39 = vrot.slane %v3392_v5, %v10699_v38 }
 0x856   : > { %v2949_v13 = vpop.permute.xlu0 %2948  ;;  %v10850_v14 = vpop.permute.xlu1 %2868  ;;  %9046 = vmatpush3.msra.mxu1 %v3081_v54  ;;  %v3360_v54 = vcombine.low %v10638_v17, %v10774_v8 }
 0x857   : > { %v3409_v41 = vcombine.high %v10817_v34, %v2949_v13  ;;  %9048 = vmatmul.mubr.msk.f32.vlgmr.msra.gmra.mxu1 %vm1018_vm1, %v10810_v45  ;;  %9050 = vmatprep.subr.mxu1 %v3218_v10  ;;  %v3408_v58 = vcombine.low %v10817_v34, %v2949_v13  ;;  %v3215_v34 = vrot.slane %v3201_v52, %v10724_v40 }
 0x858   : > { %9051 = vmatpush3.msra.mxu1 %v3218_v10  ;;  %9054 = vmatprep.mubr.msk.f32.mxu1 %vm1018_vm1, %v10747_v55  ;;  %v3084_v13 = vcombine.low %v3040_v28, %v3072_v43  ;;  %v3085_v10 = vcombine.high %v3040_v28, %v3072_v43 }
 0x859   : > { %v10872_v3 = vrot.slane %v3409_v41, %v10699_v38  ;;  %9052 = vmatprep.subr.mxu1 %v3082_v48  ;;  %v10925_v1 = vrot.slane %v3408_v58, %v10699_v38  ;;  %v10936_v41 = vrot.slane %v3376_v2, %v10699_v38 }
 0x85a   : > { %v10879_v60 = vpop.permute.xlu0 %2874  ;;  %v10881_v61 = vpop.permute.xlu1 %2880  ;;  %9053 = vmatpush3.msra.mxu1 %v3082_v48 }
 0x85b   : > { %v3472_v31 = vcombine.low %v10869_v51, %v10872_v3  ;;  %9055 = vmatmul.mubr.msk.f32.vlgmr.msra.gmra.mxu1 %vm1018_vm1, %v10810_v45  ;;  %9057 = vmatprep.subr.mxu1 %v3219_v15  ;;  %v3225_v36 = vcombine.high %v10656_v21, %v10879_v60  ;;  %v3241_v46 = vcombine.high %v10850_v14, %v10881_v61 }
 0x85c   : > { %9061 = vmatprep.mubr.msk.f32.mxu1 %vm1018_vm1, %v10747_v55  ;;  %9058 = vmatpush3.msra.mxu1 %v3219_v15  ;;  %v3224_v48 = vcombine.low %v10656_v21, %v10879_v60  ;;  %v3240_v35 = vcombine.low %v10850_v14, %v10881_v61  ;;  %v10954_v21 = vrot.slane %v3360_v54, %v10699_v38 }
 0x85d   : > { %v10901_v59 = vrot.slane %v3472_v31, %v10724_v40  ;;  %9059 = vmatprep.subr.mxu1 %v3083_v7  ;;  %v10928_v17 = vrot.slane %v3225_v36, %v10699_v38  ;;  %v10931_v50 = vrot.slane %v3241_v46, %v10699_v38  ;;  %v3222_v31 = vcombine.low %v3183_v53, %v3215_v34 }
 0x85e   : > { %v2887_v62 = vpop.permute.xlu0 %2886  ;;  %v2893_v27 = vpop.permute.xlu1 %2892  ;;  %9060 = vmatpush3.msra.mxu1 %v3083_v7  ;;  %v3456_v14 = vcombine.low %v10939_v39, %v10925_v1  ;;  %v3473_v15 = vcombine.high %v10869_v51, %v10872_v3  ;;  %v3424_v11 = vcombine.low %v10954_v21, %v10936_v41  ;;  %v10970_v28 = vrot.slane %v3224_v48, %v10699_v38 }
 0x85f   : > { %v3492_v0 = vcombine.low %v10898_v32, %v10901_v59  ;;  %9062 = vmatmul.mubr.msk.f32.vlgmr.msra.gmra.mxu1 %vm1018_vm1, %v10810_v45  ;;  %9064 = vmatprep.subr.mxu1 %v3220_v29  ;;  %v3304_v57 = vcombine.low %v10928_v17, %v10931_v50  ;;  %v10973_v43 = vrot.slane %v3240_v35, %v10699_v38 }
 0x860   : > { %9065 = vmatpush3.msra.mxu1 %v3220_v29  ;;  %9068 = vmatprep.mubr.msk.f32.mxu1 %vm1018_vm1, %v10747_v55  ;;  %v3441_v51 = vcombine.high %v10857_v25, %v10846_v6  ;;  %v3223_v46 = vcombine.high %v3183_v53, %v3215_v34  ;;  %v3087_v6 = vcombine.high %v10909_v12, %v3079_v33 }
 0x861   : > { %9066 = vmatprep.subr.mxu1 %v3084_v13  ;;  %9120 = vmatprep.subr.mxu0 %v3492_v0  ;;  %v10982_v3 = vrot.slane %v3304_v57, %v10724_v40  ;;  %v3288_v29 = vcombine.low %v10970_v28, %v10973_v43  ;;  %v3432_v53 = vrot.slane %v3424_v11, %v10724_v40 }
 0x862   : > { %v2899_v8 = vpop.permute.xlu0 %2898  ;;  %v2905_v47 = vpop.permute.xlu1 %2904  ;;  %9067 = vmatpush3.msra.mxu1 %v3084_v13  ;;  %9121 = vmatpush3.msra.mxu0 %v3492_v0  ;;  %v3305_v0 = vcombine.high %v10928_v17, %v10931_v50  ;;  %v11006_v12 = vrot.slane %v3441_v51, %v10724_v40  ;;  %v3425_v33 = vcombine.high %v10954_v21, %v10936_v41 }
 0x863   : > { %v3256_v23 = vcombine.low %v2887_v62, %v2899_v8  ;;  %v3257_v56 = vcombine.high %v2887_v62, %v2899_v8  ;;  %v3272_v19 = vcombine.low %v2893_v27, %v2905_v47  ;;  %v3273_v42 = vcombine.high %v2893_v27, %v2905_v47  ;;  %9069 = vmatmul.mubr.msk.f32.vlgmr.msra.gmra.mxu1 %vm1018_vm1, %v10810_v45 }
 0x864   : > { %9071 = vmatprep.subr.mxu1 %v3221_v9  ;;  %9075 = vmatprep.mubr.msk.f32.mxu1 %vm1018_vm1, %v10747_v55  ;;  %v3464_v62 = vrot.slane %v3456_v14, %v10724_v40  ;;  %v10994_v27 = vrot.slane %v3473_v15, %v10724_v40  ;;  %v3296_v13 = vrot.slane %v3288_v29, %v10724_v40 }
 0x865   : > { %v3271_v49 = vrot.slane %v3257_v56, %v10699_v38  ;;  %v3287_v52 = vrot.slane %v3273_v42, %v10699_v38  ;;  %9072 = vmatpush3.msra.mxu1 %v3221_v9  ;;  %v10959_v60 = vrot.slane %v3256_v23, %v10699_v38  ;;  %v10962_v61 = vrot.slane %v3272_v19, %v10699_v38 }
 0x866   : > { %9073 = vmatprep.subr.mxu1 %v3085_v10  ;;  %v3488_v34 = vcombine.low %v3432_v53, %v3464_v62  ;;  %v3494_v5 = vcombine.low %v11006_v12, %v10994_v27  ;;  %v3457_v9 = vcombine.high %v10939_v39, %v10925_v1  ;;  %v3289_v8 = vcombine.high %v10970_v28, %v10973_v43 }
 0x867   : > { %v3336_v26 = vcombine.low %v3271_v49, %v3287_v52  ;;  %9074 = vmatpush3.msra.mxu1 %v3085_v10  ;;  %v3320_v58 = vcombine.low %v10959_v60, %v10962_v61  ;;  %v3337_v36 = vcombine.high %v3271_v49, %v3287_v52  ;;  %v3319_v10 = vrot.slane %v3305_v0, %v10724_v40 }
 0x868   : > { %9076 = vmatmul.mubr.msk.f32.vlgmr.msra.gmra.mxu1 %vm1018_vm1, %v10810_v45  ;;  %9078 = vmatprep.subr.mxu1 %v3222_v31  ;;  %v3321_v17 = vcombine.high %v10959_v60, %v10962_v61  ;;  %v3489_v47 = vcombine.high %v3432_v53, %v3464_v62  ;;  %v3471_v23 = vrot.slane %v3457_v9, %v10724_v40 }
 0x869   : > { %9079 = vmatpush3.msra.mxu1 %v3222_v31  ;;  %9082 = vmatprep.mubr.msk.f32.mxu1 %vm1018_vm1, %v10747_v55  ;;  %v10985_v7 = vrot.slane %v3336_v26, %v10724_v40  ;;  %v3328_v54 = vrot.slane %v3320_v58, %v10724_v40  ;;  %v11010_v2 = vrot.slane %v3337_v36, %v10724_v40 }
 0x86a   : > { %9080 = vmatprep.subr.mxu1 %v3086_v4  ;;  %v3439_v19 = vrot.slane %v3425_v33, %v10724_v40  ;;  %v3335_v41 = vrot.slane %v3321_v17, %v10724_v40  ;;  %v3303_v42 = vrot.slane %v3289_v8, %v10724_v40  ;;  %v3493_v57 = vcombine.high %v10898_v32, %v10901_v59 }
 0x86b   : > { %9081 = vmatpush3.msra.mxu1 %v3086_v4  ;;  %v3356_v25 = vcombine.low %v10982_v3, %v10985_v7  ;;  %v3352_v1 = vcombine.low %v3296_v13, %v3328_v54  ;;  %v3358_v50 = vcombine.low %v3319_v10, %v11010_v2  ;;  %v3353_v56 = vcombine.high %v3296_v13, %v3328_v54 }
 0x86c   : > { %9083 = vmatmul.mubr.msk.f32.vlgmr.msra.gmra.mxu1 %vm1018_vm1, %v10810_v45  ;;  %9085 = vmatprep.subr.mxu1 %v3223_v46  ;;  %v3490_v39 = vcombine.low %v3439_v19, %v3471_v23  ;;  %v3354_v48 = vcombine.low %v3303_v42, %v3335_v41  ;;  %v3491_v35 = vcombine.high %v3439_v19, %v3471_v23 }
 0x86d   : > { %9086 = vmatpush3.msra.mxu1 %v3223_v46  ;;  %9089 = vmatprep.mubr.msk.f32.mxu1 %vm1018_vm1, %v10747_v55  ;;  %v3355_v49 = vcombine.high %v3303_v42, %v3335_v41  ;;  %v3357_v52 = vcombine.high %v10982_v3, %v10985_v7  ;;  %v3495_v31 = vcombine.high %v11006_v12, %v10994_v27 }
 0x86e   : > { %9087 = vmatprep.subr.mxu1 %v3087_v6  ;;  %9122 = vmatprep.subr.mxu0 %v3356_v25  ;;  %v3359_v32 = vcombine.high %v3319_v10, %v11010_v2 }
 0x86f   : > { %9088 = vmatpush3.msra.mxu1 %v3087_v6  ;;  %9123 = vmatpush3.msra.mxu0 %v3356_v25 }
 0x870   : > { %9090 = vmatmul.mubr.msk.f32.vlgmr.msra.gmra.mxu1 %vm1018_vm1, %v10810_v45  ;;  %9092 = vmatprep.subr.mxu1 %v3488_v34 }
 0x871   : > { %9125 = vmatmul.mubr.msk.f32.vlgmr.msra.gmra.mxu0 %vm1018_vm1, %v10810_v45  ;;  %9134 = vmatprep.subr.mxu0 %v3494_v5 }
 0x872   : > { %9093 = vmatpush3.msra.mxu1 %v3488_v34  ;;  %9096 = vmatprep.mubr.msk.f32.mxu1 %vm1018_vm1, %v10747_v55 }
 0x873   : > { %9135 = vmatpush3.msra.mxu0 %v3494_v5  ;;  %9138 = vmatprep.mubr.msk.f32.mxu0 %vm1018_vm1, %v10747_v55 }
 0x874   : > { %9094 = vmatprep.subr.mxu1 %v3352_v1  ;;  %9136 = vmatprep.subr.mxu0 %v3358_v50 }
 0x875   : > { %9095 = vmatpush3.msra.mxu1 %v3352_v1  ;;  %9137 = vmatpush3.msra.mxu0 %v3358_v50 }
 0x876   : > { %9097 = vmatmul.mubr.msk.f32.vlgmr.msra.gmra.mxu1 %vm1018_vm1, %v10810_v45  ;;  %9099 = vmatprep.subr.mxu1 %v3489_v47 }
 0x877   : > { %9139 = vmatmul.mubr.msk.f32.vlgmr.msra.gmra.mxu0 %vm1018_vm1, %v10810_v45  ;;  %9100 = vmatpush3.msra.mxu1 %v3489_v47 }
 0x878   : > { %9103 = vmatprep.mubr.msk.f32.mxu1 %vm1018_vm1, %v10747_v55  ;;  %9101 = vmatprep.subr.mxu1 %v3353_v56 }
 0x879   : > { %9102 = vmatpush3.msra.mxu1 %v3353_v56 }
 0x87a   : > { %9104 = vmatmul.mubr.msk.f32.vlgmr.msra.gmra.mxu1 %vm1018_vm1, %v10810_v45  ;;  %9106 = vmatprep.subr.mxu1 %v3490_v39 }
 0x87b   : > { %9107 = vmatpush3.msra.mxu1 %v3490_v39  ;;  %9110 = vmatprep.mubr.msk.f32.mxu1 %vm1018_vm1, %v10747_v55 }
 0x87c   : > { %9108 = vmatprep.subr.mxu1 %v3354_v48 }
 0x87d   : > { %9109 = vmatpush3.msra.mxu1 %v3354_v48 }
 0x87e   : > { %9111 = vmatmul.mubr.msk.f32.vlgmr.msra.gmra.mxu1 %vm1018_vm1, %v10810_v45  ;;  %9113 = vmatprep.subr.mxu1 %v3491_v35 }
 0x87f   : > { %9114 = vmatpush3.msra.mxu1 %v3491_v35  ;;  %9117 = vmatprep.mubr.msk.f32.mxu1 %vm1018_vm1, %v10747_v55 }
 0x880   : > { %9115 = vmatprep.subr.mxu1 %v3355_v49 }
 0x881   : > { %9116 = vmatpush3.msra.mxu1 %v3355_v49 }
 0x882   : > { %9118 = vmatmul.mubr.msk.f32.vlgmr.msra.gmra.mxu1 %vm1018_vm1, %v10810_v45  ;;  %9127 = vmatprep.subr.mxu1 %v3493_v57 }
 0x883   : > { %9128 = vmatpush3.msra.mxu1 %v3493_v57  ;;  %9131 = vmatprep.mubr.msk.f32.mxu1 %vm1018_vm1, %v10747_v55 }
 0x884   : > { %9129 = vmatprep.subr.mxu1 %v3357_v52 }
 0x885   : > { %9130 = vmatpush3.msra.mxu1 %v3357_v52 }
 0x886   : > { %9132 = vmatmul.mubr.msk.f32.vlgmr.msra.gmra.mxu1 %vm1018_vm1, %v10810_v45  ;;  %9141 = vmatprep.subr.mxu1 %v3495_v31 }
 0x887   : > { %9142 = vmatpush3.msra.mxu1 %v3495_v31  ;;  %9145 = vmatprep.mubr.msk.f32.mxu1 %vm1018_vm1, %v10747_v55 }
 0x888   : > { %9143 = vmatprep.subr.mxu1 %v3359_v32 }
 0x889   : > { %9144 = vmatpush3.msra.mxu1 %v3359_v32 }
 0x88a   : > { %9146 = vmatmul.mubr.msk.f32.vlgmr.msra.gmra.mxu1 %vm1018_vm1, %v10810_v45 }
 0x913   : > { %v9042_v59 = vpop.f32.mrf.mxu1 }
 0x915   : > { %v11068_v21 = vpop.f32.mrf.mxu1 }
 0x917   : > { %v9049_v14 = vpop.f32.mrf.mxu1 }
 0x919   : > { %v11070_v60 = vpop.f32.mrf.mxu1 }
 0x91b   : > { %v9056_v61 = vpop.f32.mrf.mxu1 }
 0x91c   : > { %v4974_v3 = vcombine.low %v9042_v59, %v9056_v61  ;;  %v4975_v39 = vcombine.high %v9042_v59, %v9056_v61 }
 0x91d   : > { %v11072_v15 = vpop.f32.mrf.mxu1 }
 0x91e   : > { %v4982_v62 = vrot.slane %v4974_v3, %v10699_v38  ;;  %v4702_v54 = vcombine.low %v11068_v21, %v11072_v15  ;;  %v11144_v61 = vrot.slane %v4975_v39, %v10699_v38 }
 0x91f   : > { %v9063_v26 = vpop.f32.mrf.mxu1 }
 0x920   : > { %v4990_v51 = vcombine.low %v9049_v14, %v9063_v26  ;;  %v4991_v13 = vcombine.high %v9049_v14, %v9063_v26  ;;  %v11114_v56 = vrot.slane %v4702_v54, %v10699_v38 }
 0x921   : > { %v11074_v4 = vpop.f32.mrf.mxu1 }
 0x922   : > { %v4998_v58 = vrot.slane %v4990_v51, %v10699_v38  ;;  %v4718_v25 = vcombine.low %v11070_v60, %v11074_v4  ;;  %v11131_v52 = vrot.slane %v4991_v13, %v10699_v38 }
 0x923   : > { %v9070_v11 = vpop.f32.mrf.mxu1 }
 0x924   : > { %v5038_v0 = vcombine.low %v4982_v62, %v4998_v58  ;;  %v11097_v10 = vrot.slane %v4718_v25, %v10699_v38  ;;  %v5039_v50 = vcombine.high %v4982_v62, %v4998_v58  ;;  %v5054_v3 = vcombine.low %v11144_v61, %v11131_v52 }
 0x925   : > { %v11076_v28 = vpop.f32.mrf.mxu1 }
 0x926   : > { %v11108_v8 = vrot.slane %v5038_v0, %v10724_v40  ;;  %v4766_v49 = vcombine.low %v11114_v56, %v11097_v10  ;;  %v5053_v31 = vrot.slane %v5039_v50, %v10724_v40  ;;  %v5062_v0 = vrot.slane %v5054_v3, %v10724_v40 }
 0x928   : > { %v9077_v55 = vpop.f32.mrf.mxu1  ;;  %v11151_v51 = vrot.slane %v4766_v49, %v10724_v40 }
 0x92a   : > { %v11078_v43 = vpop.f32.mrf.mxu1 }
 0x92c   : > { %v9084_v45 = vpop.f32.mrf.mxu1 }
 0x92d   : > { %v5006_v36 = vcombine.low %v9070_v11, %v9084_v45  ;;  %v5007_v47 = vcombine.high %v9070_v11, %v9084_v45 }
 0x92e   : > { %v11080_v7 = vpop.f32.mrf.mxu1 }
 0x92f   : > { %v4734_v27 = vcombine.low %v11076_v28, %v11080_v7  ;;  %v5014_v53 = vrot.slane %v5006_v36, %v10699_v38  ;;  %v11135_v32 = vrot.slane %v5007_v47, %v10699_v38  ;;  %v4735_v13 = vcombine.high %v11076_v28, %v11080_v7 }
 0x930   : > { %v9091_v46 = vpop.f32.mrf.mxu1 }
 0x931   : > { %v5022_v6 = vcombine.low %v9077_v55, %v9091_v46  ;;  %v5023_v2 = vcombine.high %v9077_v55, %v9091_v46  ;;  %v11100_v33 = vrot.slane %v4734_v27, %v10699_v38  ;;  %v11148_v11 = vpop.f32.mrf.mxu0 }
 0x932   : > { %v11088_v29 = vpop.f32.mrf.mxu1 }
 0x933   : > { %v5030_v12 = vrot.slane %v5022_v6, %v10699_v38  ;;  %v4750_v34 = vcombine.low %v11078_v43, %v11088_v29  ;;  %v11121_v42 = vrot.slane %v5023_v2, %v10699_v38  ;;  %v11165_v6 = vpop.f32.mrf.mxu0  ;;  %v4703_v2 = vcombine.high %v11068_v21, %v11072_v15 }
 0x935   : > { %v5070_v5 = vcombine.low %v5014_v53, %v5030_v12  ;;  %v5071_v9 = vcombine.high %v5014_v53, %v5030_v12  ;;  %v11103_v17 = vrot.slane %v4750_v34, %v10699_v38  ;;  %v5086_v26 = vcombine.low %v11135_v32, %v11121_v42 }
 0x936   : > { %v11105_v1 = vpop.f32.mrf.mxu1  ;;  %v11195_v7 = vrot.slane %v4703_v2, %v10699_v38 }
 0x937   : > { %v11111_v23 = vrot.slane %v5070_v5, %v10724_v40  ;;  %v4798_v19 = vcombine.low %v11100_v33, %v11103_v17  ;;  %v5085_v48 = vrot.slane %v5071_v9, %v10724_v40  ;;  %v5094_v62 = vrot.slane %v5086_v26, %v10724_v40  ;;  %v9140_v12 = vpop.f32.mrf.mxu0 }
 0x938   : > { %v11118_v41 = vpop.f32.mrf.mxu1  ;;  %v4751_v5 = vcombine.high %v11078_v43, %v11088_v29  ;;  %v4799_v47 = vcombine.high %v11100_v33, %v11103_v17  ;;  %v4719_v29 = vcombine.high %v11070_v60, %v11074_v4  ;;  %v4767_v33 = vcombine.high %v11114_v56, %v11097_v10 }
 0x939   : > { %v5103_v35 = vcombine.high %v11108_v8, %v11111_v23  ;;  %v11139_v59 = vrot.slane %v4798_v19, %v10724_v40  ;;  %v5104_v55 = vcombine.low %v5053_v31, %v5085_v48  ;;  %v5105_v25 = vcombine.high %v5053_v31, %v5085_v48  ;;  %v11189_v21 = vpop.f32.mrf.mxu0 }
 0x93a   : > { %v11128_v57 = vpop.f32.mrf.mxu1  ;;  %v5106_v54 = vcombine.low %v5062_v0, %v5094_v62  ;;  %v5142_v19 = vcombine.low %v11148_v11, %v9140_v12  ;;  %v5107_v28 = vcombine.high %v5062_v0, %v5094_v62  ;;  %v11202_v17 = vrot.slane %v4751_v5, %v10699_v38 }
 0x93b   : > { %5304 = vrot.lane.b32.xlu0 %v5103_v35, %s13477_s9  ;;  %v4830_v46 = vcombine.low %v11151_v51, %v11139_v59  ;;  %v11205_v35 = vrot.slane %v4735_v13, %v10699_v38  ;;  %v4813_v60 = vrot.slane %v4799_v47, %v10724_v40  ;;  %v4870_v10 = vcombine.low %v11165_v6, %v11189_v21 }
 0x93c   : > { %v11141_v14 = vpop.f32.mrf.mxu1  ;;  %v5150_v4 = vrot.slane %v5142_v19, %v10699_v38  ;;  %v5143_v5 = vcombine.high %v11148_v11, %v9140_v12 }
 0x93d   : > { %v4814_v2 = vcombine.low %v11205_v35, %v11202_v17 }
 0x93e   : > { %v11153_v45 = vpop.f32.mrf.mxu1 }
 0x93f   : > { %5312 = vrot.lane.b32.xlu0 %v5104_v55, %s9301_s10  ;;  %v5110_v50 = vcombine.low %v11105_v1, %v11153_v45  ;;  %v4831_v55 = vcombine.high %v11151_v51, %v11139_v59 }
 0x940   : > { %v11158_v58 = vpop.f32.mrf.mxu1 }
 0x941   : > { %v5118_v49 = vrot.slane %v5110_v50, %v10699_v38  ;;  %v4838_v31 = vcombine.low %v11118_v41, %v11158_v58 }
 0x942   : > { %v11167_v27 = vpop.f32.mrf.mxu1 }
 0x943   : > { %5320 = vrot.lane.b32.xlu0 %v5105_v25, %s9300_s16  ;;  %v5126_v34 = vcombine.low %v11128_v57, %v11167_v27  ;;  %v4846_v13 = vrot.slane %v4838_v31, %v10699_v38  ;;  %v5111_v31 = vcombine.high %v11105_v1, %v11153_v45 }
 0x944   : > { %v11171_v53 = vpop.f32.mrf.mxu1 }
 0x945   : > { %v5134_v15 = vrot.slane %v5126_v34, %v10699_v38  ;;  %v4854_v43 = vcombine.low %v11141_v14, %v11171_v53  ;;  %v11226_v34 = vrot.slane %v4719_v29, %v10699_v38 }
 0x946   : > { %v9133_v9 = vpop.f32.mrf.mxu1 }
 0x947   : > { %5328 = vrot.lane.b32.xlu0 %v5106_v54, %s9298_s26  ;;  %v5174_v3 = vcombine.low %v5118_v49, %v5134_v15  ;;  %v11220_v62 = vrot.slane %v4854_v43, %v10699_v38  ;;  %v4781_v54 = vrot.slane %v4767_v33, %v10724_v40  ;;  %v4878_v43 = vrot.slane %v4870_v10, %v10699_v38 }
 0x948   : > { %v11187_v39 = vpop.f32.mrf.mxu1 }
 0x949   : > { %v4832_v33 = vcombine.low %v4781_v54, %v4813_v60  ;;  %v11239_v36 = vrot.slane %v5174_v3, %v10724_v40  ;;  %v4902_v11 = vcombine.low %v4846_v13, %v11220_v62 }
 0x94a   : > { %v9147_v48 = vpop.f32.mrf.mxu1 }
 0x94b   : > { %v5158_v26 = vcombine.low %v9133_v9, %v9147_v48  ;;  %5336 = vrot.lane.b32.xlu0 %v5107_v28, %s9299_s18  ;;  %v5159_v50 = vcombine.high %v9133_v9, %v9147_v48  ;;  %v5127_v28 = vcombine.high %v11128_v57, %v11167_v27  ;;  %v4782_v9 = vcombine.low %v11195_v7, %v11226_v34 }
 0x94c   : > { %v11215_v56 = vpop.f32.mrf.mxu1  ;;  %v11262_v45 = vrot.slane %v4902_v11, %v10724_v40 }
 0x94d   : > { %v5166_v25 = vrot.slane %v5158_v26, %v10699_v38  ;;  %v4886_v0 = vcombine.low %v11187_v39, %v11215_v56  ;;  %v5175_v26 = vcombine.high %v5118_v49, %v5134_v15  ;;  %v5173_v57 = vrot.slane %v5159_v50, %v10699_v38 }
 0x94e   : > { %v4822_v49 = vrot.slane %v4814_v2, %v10724_v40  ;;  %v5141_v3 = vrot.slane %v5127_v28, %v10699_v38  ;;  %v5125_v2 = vrot.slane %v5111_v31, %v10699_v38 }
 0x94f   : > { %v5206_v47 = vcombine.low %v5150_v4, %v5166_v25  ;;  %v5207_v19 = vcombine.high %v5150_v4, %v5166_v25  ;;  %5248 = vrot.lane.b32.xlu0 %v4831_v55, %s13477_s9  ;;  %v4894_v29 = vrot.slane %v4886_v0, %v10699_v38  ;;  %v5157_v4 = vrot.slane %v5143_v5, %v10699_v38 }
 0x950   : > { %v4833_v55 = vcombine.high %v4781_v54, %v4813_v60  ;;  %v5189_v1 = vrot.slane %v5175_v26, %v10724_v40  ;;  %v4790_v0 = vrot.slane %v4782_v9, %v10724_v40  ;;  %v5190_v50 = vcombine.low %v5125_v2, %v5141_v3 }
 0x951   : > { %v11243_v12 = vrot.slane %v5206_v47, %v10724_v40  ;;  %v4934_v48 = vcombine.low %v4878_v43, %v4894_v29  ;;  %v5221_v27 = vrot.slane %v5207_v19, %v10724_v40  ;;  %v5222_v5 = vcombine.low %v5157_v4, %v5173_v57 }
 0x952   : > { %v4834_v47 = vcombine.low %v4790_v0, %v4822_v49  ;;  %v4935_v26 = vcombine.high %v4878_v43, %v4894_v29  ;;  %v4835_v11 = vcombine.high %v4790_v0, %v4822_v49  ;;  %v4903_v9 = vcombine.high %v4846_v13, %v11220_v62 }
 0x953   : > { %5256 = vrot.lane.b32.xlu0 %v4832_v33, %s9301_s10  ;;  %v5239_v15 = vcombine.high %v11239_v36, %v11243_v12  ;;  %v11257_v10 = vrot.slane %v4934_v48, %v10724_v40  ;;  %v5238_v25 = vcombine.low %v11239_v36, %v11243_v12  ;;  %v5240_v60 = vcombine.low %v5189_v1, %v5221_v27 }
 0x954   : > { %v5230_v19 = vrot.slane %v5222_v5, %v10724_v40  ;;  %v5241_v28 = vcombine.high %v5189_v1, %v5221_v27  ;;  %v5198_v33 = vrot.slane %v5190_v50, %v10724_v40  ;;  %v5223_v48 = vcombine.high %v5157_v4, %v5173_v57 }
 0x955   : > { %5306 = vrot.lane.b32.xlu1 %v5239_v15, %s13477_s9  ;;  %v4966_v54 = vcombine.low %v11262_v45, %v11257_v10  ;;  %v4815_v15 = vcombine.high %v11205_v35, %v11202_v17  ;;  %v4949_v5 = vrot.slane %v4935_v26, %v10724_v40  ;;  %v4967_v43 = vcombine.high %v11262_v45, %v11257_v10 }
 0x956   : > { %v5242_v31 = vcombine.low %v5198_v33, %v5230_v19  ;;  %v4783_v29 = vcombine.high %v11195_v7, %v11226_v34  ;;  %v4917_v62 = vrot.slane %v4903_v9, %v10724_v40  ;;  %v5237_v13 = vrot.slane %v5223_v48, %v10724_v40 }
 0x957   : > { %5264 = vrot.lane.b32.xlu0 %v4833_v55, %s9300_s16  ;;  %v5191_v55 = vcombine.high %v5125_v2, %v5141_v3  ;;  %v5243_v57 = vcombine.high %v5198_v33, %v5230_v19  ;;  %v4829_v17 = vrot.slane %v4815_v15, %v10724_v40  ;;  %v5087_v4 = vcombine.high %v11135_v32, %v11121_v42 }
 0x958   : > { %v4968_v27 = vcombine.low %v4917_v62, %v4949_v5  ;;  %v4797_v49 = vrot.slane %v4783_v29, %v10724_v40  ;;  %v4887_v7 = vcombine.high %v11187_v39, %v11215_v56  ;;  %v5055_v3 = vcombine.high %v11144_v61, %v11131_v52 }
 0x959   : > { %5314 = vrot.lane.b32.xlu1 %v5240_v60, %s9301_s10  ;;  %v5205_v35 = vrot.slane %v5191_v55, %v10724_v40  ;;  %v4871_v1 = vcombine.high %v11165_v6, %v11189_v21  ;;  %v4855_v0 = vcombine.high %v11141_v14, %v11171_v53  ;;  %v5101_v42 = vrot.slane %v5087_v4, %v10724_v40 }
 0x95a   : > { %v4836_v2 = vcombine.low %v4797_v49, %v4829_v17  ;;  %v4839_v32 = vcombine.high %v11118_v41, %v11158_v58  ;;  %v4901_v39 = vrot.slane %v4887_v7, %v10699_v38  ;;  %v5069_v52 = vrot.slane %v5055_v3, %v10724_v40 }
 0x95b   : > { %5272 = vrot.lane.b32.xlu0 %v4834_v47, %s9298_s26  ;;  %v5244_v34 = vcombine.low %v5205_v35, %v5237_v13  ;;  %v5245_v56 = vcombine.high %v5205_v35, %v5237_v13  ;;  %v4885_v61 = vrot.slane %v4871_v1, %v10699_v38  ;;  %v4869_v6 = vrot.slane %v4855_v0, %v10699_v38 }
 0x95c   : > { %v4837_v14 = vcombine.high %v4797_v49, %v4829_v17  ;;  %v4853_v53 = vrot.slane %v4839_v32, %v10699_v38  ;;  %v5108_v60 = vcombine.low %v5069_v52, %v5101_v42  ;;  %v4969_v50 = vcombine.high %v4917_v62, %v4949_v5 }
 0x95d   : > { %5322 = vrot.lane.b32.xlu1 %v5241_v28, %s9300_s16  ;;  %v4950_v21 = vcombine.low %v4885_v61, %v4901_v39  ;;  %v4951_v19 = vcombine.high %v4885_v61, %v4901_v39 }
 0x95e   : > { %v4918_v41 = vcombine.low %v4853_v53, %v4869_v6  ;;  %v4919_v38 = vcombine.high %v4853_v53, %v4869_v6 }
 0x95f   : > { %5280 = vrot.lane.b32.xlu0 %v4835_v11, %s9299_s18  ;;  %v4958_v58 = vrot.slane %v4950_v21, %v10724_v40  ;;  %v4965_v33 = vrot.slane %v4951_v19, %v10724_v40 }
 0x960   : > { %v4926_v47 = vrot.slane %v4918_v41, %v10724_v40  ;;  %v4933_v11 = vrot.slane %v4919_v38, %v10724_v40 }
 0x961   : > { %5330 = vrot.lane.b32.xlu1 %v5242_v31, %s9298_s26  ;;  %v5109_v31 = vcombine.high %v5069_v52, %v5101_v42 }
 0x962   : > { %v4970_v28 = vcombine.low %v4926_v47, %v4958_v58  ;;  %v4971_v26 = vcombine.high %v4926_v47, %v4958_v58  ;;  %v4972_v9 = vcombine.low %v4933_v11, %v4965_v33  ;;  %v4973_v48 = vcombine.high %v4933_v11, %v4965_v33 }
 0x963   : > { %5250 = vrot.lane.b32.xlu0 %v4967_v43, %s13477_s9 }
 0x965   : > { %5338 = vrot.lane.b32.xlu1 %v5243_v57, %s9299_s18 }
 0x967   : > { %5258 = vrot.lane.b32.xlu0 %v4968_v27, %s9301_s10  ;;  %s13569_s10 = smov 113  }
 0x969   : > { %5346 = vrot.lane.b32.xlu1 %v5244_v34, %s9297_s0 }
 0x96b   : > { %5288 = vrot.lane.b32.xlu0 %v4836_v2, %s9297_s0 }
 0x96d   : > { %5354 = vrot.lane.b32.xlu1 %v5245_v56, %s13486_s11 }
 0x96f   : > { %5296 = vrot.lane.b32.xlu0 %v4837_v14, %s13486_s11 }
 0x971   : > { %5344 = vrot.lane.b32.xlu1 %v5108_v60, %s9297_s0 }
 0x973   : > { %6835 = vrot.lane.b32.xlu0 %v10649_v37, %s13486_s11 }
 0x975   : > { %5266 = vrot.lane.b32.xlu1 %v4969_v50, %s9300_s16  ;;  %s13577_s16 = smov 111  }
 0x977   : > { %6831 = vrot.lane.b32.xlu0 %v10563_v63, %s13486_s11 }
 0x979   : > { %5274 = vrot.lane.b32.xlu1 %v4970_v28, %s9298_s26  ;;  %s13583_s26 = sld [smem:[#allocation9_spill]] }
 0x97b   : > { %6793 = vrot.lane.b32.xlu0 %v10573_v44, %s13482_s2 }
 0x97d   : > { %5282 = vrot.lane.b32.xlu1 %v4971_v26, %s9299_s18  ;;  %s13591_s18 = sld [smem:[#allocation8_spill]] }
 0x97f   : > { %6775 = vrot.lane.b32.xlu0 %v10649_v37, %s13484_s20 }
 0x981   : > { %5290 = vrot.lane.b32.xlu1 %v4972_v9, %s9297_s0  ;;  %s13579_s0 = smov 17  }
 0x983   : > { %6771 = vrot.lane.b32.xlu0 %v10563_v63, %s13484_s20 }
 0x985   : > { %5298 = vrot.lane.b32.xlu1 %v4973_v48, %s13486_s11 }
 0x987   : > { %6755 = vrot.lane.b32.xlu0 %v10649_v37, %s13479_s1 }
 0x989   : > { %5352 = vrot.lane.b32.xlu1 %v5109_v31, %s13486_s11 }
 0x98d   : > { %6837 = vrot.lane.b32.xlu1 %v10631_v16, %s13486_s11 }
 0x991   : > { %6833 = vrot.lane.b32.xlu1 %v10573_v44, %s13486_s11 }
 0x995   : > { %6817 = vrot.lane.b32.xlu1 %v10631_v16, %s13569_s10 }
 0x999   : > { %6815 = vrot.lane.b32.xlu1 %v10649_v37, %s13569_s10 }
 0x99d   : > { %6813 = vrot.lane.b32.xlu1 %v10573_v44, %s13569_s10 }
 0x9a1   : > { %6811 = vrot.lane.b32.xlu1 %v10563_v63, %s13569_s10 }
 0x9a5   : > { %6797 = vrot.lane.b32.xlu1 %v10631_v16, %s13482_s2 }
 0x9a9   : > { %6795 = vrot.lane.b32.xlu1 %v10649_v37, %s13482_s2 }
 0x9ad   : > { %6791 = vrot.lane.b32.xlu1 %v10563_v63, %s13482_s2  ;;  %v11358_v40 = vpop.permute.xlu0 %5304 }
 0x9b1   : > { %6777 = vrot.lane.b32.xlu1 %v10631_v16, %s13484_s20  ;;  %v11362_v15 = vpop.permute.xlu0 %5312 }
 0x9b5   : > { %6773 = vrot.lane.b32.xlu1 %v10573_v44, %s13484_s20  ;;  %v11366_v55 = vpop.permute.xlu0 %5320 }
 0x9b9   : > { %6757 = vrot.lane.b32.xlu1 %v10631_v16, %s13479_s1  ;;  %v11370_v5 = vpop.permute.xlu0 %5328 }
 0x9bd   : > { %v11372_v43 = vpop.permute.xlu0 %5336 }
 0x9c1   : > { %v5249_v29 = vpop.permute.xlu0 %5248 }
 0x9c5   : > { %v5257_v62 = vpop.permute.xlu0 %5256 }
 0x9c7   : > { %v5307_v13 = vpop.permute.xlu1 %5306 }
 0x9c8   : > { %v5378_v0 = vsel %vm1018_vm1, %v5238_v25, %v5307_v13  ;;  %v5358_v25 = vsel %vm1018_vm1, %v4830_v46, %v5249_v29  ;;  %v9304_v13 = vmov 683565275  }
 0x9c9   : > { %v5265_v57 = vpop.permute.xlu0 %5264  ;;  %v5361_v52 = vsel %vm5360_vm9, %v5358_v25, %v5257_v62 }
 0x9ca   : > { %v5364_v6 = vsel %vm5363_vm12, %v5361_v52, %v5265_v57 }
 0x9cb   : > { %v5315_v17 = vpop.permute.xlu1 %5314 }
 0x9cc   : > { %v5380_v42 = vsel %vm5360_vm9, %v5378_v0, %v5315_v17  ;;  %v9305_v17 = vmov 2475754826   ;;  %v9308_v0 = vmov 920167782  }
 0x9cd   : > { %v5273_v35 = vpop.permute.xlu0 %5272 }
 0x9ce   : > { %v5367_v14 = vsel %vm13461_vm13, %v5364_v6, %v5273_v35 }
 0x9cf   : > { %v5323_v27 = vpop.permute.xlu1 %5322 }
 0x9d0   : > { %v5382_v39 = vsel %vm5363_vm12, %v5380_v42, %v5323_v27 }
 0x9d1   : > { %v5281_v49 = vpop.permute.xlu0 %5280 }
 0x9d2   : > { %v5370_v41 = vsel %vm5369_vm10, %v5367_v14, %v5281_v49  ;;  %v9306_v49 = vmov 2131351028  }
 0x9d3   : > { %v5331_v4 = vpop.permute.xlu1 %5330 }
 0x9d4   : > { %v5384_v10 = vsel %vm13461_vm13, %v5382_v39, %v5331_v4 }
 0x9d5   : > { %v5251_v7 = vpop.permute.xlu0 %5250 }
 0x9d6   : > { %v5359_v3 = vsel %vm1018_vm1, %v4966_v54, %v5251_v7 }
 0x9d7   : > { %v5339_v34 = vpop.permute.xlu1 %5338 }
 0x9d8   : > { %v5386_v54 = vsel %vm5369_vm10, %v5384_v10, %v5339_v34  ;;  %v9307_v34 = vmov 2102212464  }
 0x9d9   : > { %v5259_v1 = vpop.permute.xlu0 %5258 }
 0x9da   : > { %v5362_v2 = vsel %vm5360_vm9, %v5359_v3, %v5259_v1 }
 0x9db   : > { %v5347_v32 = vpop.permute.xlu1 %5346 }
 0x9dc   : > { %v5388_v36 = vsel %vm5372_vm14, %v5386_v54, %v5347_v32  ;;  %v9309_v32 = vmov 1326507024  }
 0x9dd   : > { %v5289_v45 = vpop.permute.xlu0 %5288 }
 0x9de   : > { %v5373_v51 = vsel %vm5372_vm14, %v5370_v41, %v5289_v45 }
 0x9df   : > { %v5355_v12 = vpop.permute.xlu1 %5354 }
 0x9e0   : > { %v11393_v56 = vsel %vm13460_vm8, %v5388_v36, %v5355_v12 }
 0x9e1   : > { %v5706_v61 = vand.u32 2139095040, %v11393_v56  ;;  %v5297_v60 = vpop.permute.xlu0 %5296  ;;  %v5703_v46 = vand.u32 2147483647, %v11393_v56 }
 0x9e2   : > { %v11405_v58 = vsel %vm13460_vm8, %v5373_v51, %v5297_v60 }
 0x9e3   : > { %v5707_v53 = vshrl.u32 %v5706_v61, 23  ;;  %v11399_v21 = vpop.permute.xlu1 %5344  ;;  %v5394_v28 = vand.u32 2139095040, %v11405_v58  ;;  %v5710_v38 = vand.u32 8388607, %v5703_v46 }
 0x9e5   : > { %v8660_v59 = vadd.s32 4294967169, %v5707_v53  ;;  %v5395_v31 = vshrl.u32 %v5394_v28, 23  ;;  %v5711_v29 = vor.u32 8388608, %v5710_v38 }
 0x9e7   : > { %v5713_v50 = vadd.s32 1, %v8660_v59  ;;  %v5267_v47 = vpop.permute.xlu1 %5266  ;;  %v8648_v36 = vadd.s32 4294967169, %v5395_v31  ;;  %v5751_v14 = vshll.u32 %v5711_v29, 8 }
 0x9e8   : > { %v5365_v19 = vsel %vm5363_vm12, %v5362_v2, %v5267_v47 }
 0x9e9   : > { %vm5714_vm11 = vcmp.gt.s32.totalorder %v5713_v50, 0 }
 0x9ea   : > { %v5715_v33 = vsel %vm5714_vm11, %v5713_v50, 0  ;;  %v5401_v50 = vadd.s32 1, %v8648_v36  ;;  %v5391_v36 = vand.u32 2147483647, %v11405_v58 }
 0x9eb   : > { %v5717_v26 = vand.u32 31, %v5715_v33  ;;  %v5275_v11 = vpop.permute.xlu1 %5274  ;;  %v5716_v62 = vshrl.u32 %v5715_v33, 5 }
 0x9ec   : > { %v5368_v9 = vsel %vm13461_vm13, %v5365_v19, %v5275_v11  ;;  %vm5402_vm8 = vcmp.gt.s32.totalorder %v5401_v50, 0 }
 0x9ed   : > { %v5718_v48 = vsub.s32 32, %v5717_v26  ;;  %v5720_v57 = vshll.u32 %v9304_v13, %v5717_v26  ;;  %v5723_v35 = vshll.u32 %v9305_v17, %v5717_v26  ;;  %v5726_v7 = vshll.u32 %v9306_v49, %v5717_v26 }
 0x9ee   : > { %v5729_v1 = vshll.u32 %v9307_v34, %v5717_v26  ;;  %v5732_v42 = vshll.u32 %v9308_v0, %v5717_v26  ;;  %vm5735_vm11 = vcmp.lt.s32.totalorder %v5716_v62, 1  ;;  %vm5738_vm0 = vcmp.lt.s32.totalorder %v5716_v62, 4 }
 0x9ef   : > { %v5721_v27 = vshrl.u32 %v9305_v17, %v5718_v48  ;;  %v5724_v4 = vshrl.u32 %v9306_v49, %v5718_v48  ;;  %v5727_v3 = vshrl.u32 %v9307_v34, %v5718_v48  ;;  %v5730_v2 = vshrl.u32 %v9308_v0, %v5718_v48 }
 0x9f0   : > { %v5733_v39 = vshrl.u32 %v9309_v32, %v5718_v48  ;;  %v5719_v53 = vshrl.u32 %v9304_v13, %v5718_v48  ;;  %vm5737_vm7 = vcmp.lt.s32.totalorder %v5716_v62, 3  ;;  %vm5736_vm3 = vcmp.lt.s32.totalorder %v5716_v62, 2  ;;  %v5283_v48 = vpop.permute.xlu1 %5282 }
 0x9f1   : > { %v5722_v10 = vor.u32 %v5721_v27, %v5720_v57  ;;  %v5725_v45 = vor.u32 %v5724_v4, %v5723_v35  ;;  %v5728_v54 = vor.u32 %v5727_v3, %v5726_v7  ;;  %v5731_v12 = vor.u32 %v5730_v2, %v5729_v1 }
 0x9f2   : > { %v5734_v25 = vor.u32 %v5733_v39, %v5732_v42  ;;  %v5403_v35 = vsel %vm5402_vm8, %v5401_v50, 0  ;;  %v5371_v2 = vsel %vm5369_vm10, %v5368_v9, %v5283_v48 }
 0x9f3   : > { %v5740_v52 = vsel %vm5738_vm0, %v5728_v54, 2102212464  ;;  %v5743_v61 = vsel %vm5735_vm11, %v5722_v10, %v5725_v45  ;;  %v5747_v6 = vsel %vm5735_vm11, %v5725_v45, %v5728_v54  ;;  %v5744_v60 = vsel %vm5738_vm0, %v5731_v12, 920167782 }
 0x9f4   : > { %v5748_v41 = vsel %vm5738_vm0, %v5734_v25, 1326507024  ;;  %v5745_v59 = vsel %vm5737_vm7, %v5728_v54, %v5744_v60  ;;  %v5739_v47 = vsel %vm5735_vm11, %v5719_v53, %v5722_v10  ;;  %v5741_v19 = vsel %vm5737_vm7, %v5725_v45, %v5740_v52  ;;  %v5291_v3 = vpop.permute.xlu1 %5290 }
 0x9f5   : > { %v5749_v51 = vsel %vm5737_vm7, %v5731_v12, %v5748_v41  ;;  %v5746_v28 = vsel %vm5736_vm3, %v5743_v61, %v5745_v59  ;;  %v5742_v29 = vsel %vm5736_vm3, %v5739_v47, %v5741_v19  ;;  %v5405_v7 = vand.u32 31, %v5403_v35 }
 0x9f6   : > { %v5750_v38 = vsel %vm5736_vm3, %v5747_v6, %v5749_v51  ;;  %v11426_v11 = vmul.u32.u64.low %v5751_v14, %v5746_v28  ;;  %v11427_v31 = vmul.u32.u64.high %v5751_v14, %v5746_v28, %v11426_v11  ;;  %v5758_v57 = vmul.u32 %v5751_v14, %v5742_v29 }
 0x9f7   : > { %v11423_v33 = vmul.u32.u64.low %v5751_v14, %v5750_v38  ;;  %v11424_v26 = vmul.u32.u64.high %v5751_v14, %v5750_v38, %v11423_v33  ;;  %v11436_v39 = vsel %vm5372_vm14, %v5371_v2, %v5291_v3  ;;  %v11438_v10 = vsub.s32 32, %v5405_v7 }
 0x9f8   : > { %v5761_v62 = vadd.s32 1, %v11427_v31  ;;  %v11446_v9 = vshrl.u32 %v5403_v35, 5  ;;  %v5417_v6 = vshll.u32 %v9307_v34, %v5405_v7  ;;  %v5420_v41 = vshll.u32 %v9308_v0, %v5405_v7  ;;  %v5299_v3 = vpop.permute.xlu1 %5298 }
 0x9f9   : > { %vm5760_vm13 = vc.u32 %v11424_v26, %v11426_v11  ;;  %v5418_v12 = vshrl.u32 %v9308_v0, %v11438_v10  ;;  %v5421_v52 = vshrl.u32 %v9309_v32, %v11438_v10  ;;  %v5409_v61 = vshrl.u32 %v9305_v17, %v11438_v10 }
 0x9fa   : > { %v5762_v27 = vsel %vm5760_vm13, %v5761_v62, %v11427_v31  ;;  %v5412_v53 = vshrl.u32 %v9306_v49, %v11438_v10  ;;  %v5415_v60 = vshrl.u32 %v9307_v34, %v11438_v10  ;;  %v5398_v59 = vand.u32 8388607, %v5391_v36 }
 0x9fb   : > { %v5763_v4 = vadd.s32 %v5762_v27, %v5758_v57  ;;  %v5408_v51 = vshll.u32 %v9304_v13, %v5405_v7  ;;  %v5419_v50 = vor.u32 %v5418_v12, %v5417_v6  ;;  %v5411_v19 = vshll.u32 %v9305_v17, %v5405_v7 }
 0x9fc   : > { %v5414_v28 = vshll.u32 %v9306_v49, %v5405_v7  ;;  %v5422_v38 = vor.u32 %v5421_v52, %v5420_v41  ;;  %vm5426_vm0 = vcmp.lt.s32.totalorder %v11446_v9, 4  ;;  %v13570_v62 = vcombine.low %v11108_v8, %v11111_v23  ;;  %v5353_v41 = vpop.permute.xlu1 %5352 }
 0x9fd   : > { %v5764_v1 = vadd.s32 536870912, %v5763_v4  ;;  %v5410_v33 = vor.u32 %v5409_v61, %v5408_v51  ;;  %v5413_v29 = vor.u32 %v5412_v53, %v5411_v19  ;;  %v5432_v35 = vsel %vm5426_vm0, %v5419_v50, 920167782 }
 0x9fe   : > { %v5416_v48 = vor.u32 %v5415_v60, %v5414_v28  ;;  %v5377_v57 = vsel %vm1018_vm1, %v13570_v62, %v11358_v40  ;;  %v5436_v7 = vsel %vm5426_vm0, %v5422_v38, 1326507024  ;;  %vm5423_vm7 = vcmp.lt.s32.totalorder %v11446_v9, 1 }
 0x9ff   : > { %v11433_v42 = vshrl.u32 %v5764_v1, 30  ;;  %v5379_v27 = vsel %vm5360_vm9, %v5377_v57, %v11362_v15  ;;  %v5759_v1 = vadd.s32 %v11426_v11, %v11424_v26  ;;  %vm5425_vm8 = vcmp.lt.s32.totalorder %v11446_v9, 3 }
 0xa00   : > { %v5431_v40 = vsel %vm5423_vm7, %v5410_v33, %v5413_v29  ;;  %v5433_v15 = vsel %vm5425_vm8, %v5416_v48, %v5432_v35  ;;  %v5435_v12 = vsel %vm5423_vm7, %v5413_v29, %v5416_v48  ;;  %v5437_v26 = vsel %vm5425_vm8, %v5419_v50, %v5436_v7 }
 0xa01   : > { %v5766_v45 = vshll.u32 %v11433_v42, 30  ;;  %vm5424_vm9 = vcmp.lt.s32.totalorder %v11446_v9, 2  ;;  %vm13571_vm13 = vcmask 523264   ;;  %v5428_v35 = vsel %vm5426_vm0, %v5416_v48, 2102212464 }
 0xa02   : > { %v5434_v6 = vsel %vm5424_vm9, %v5431_v40, %v5433_v15  ;;  %v5407_v7 = vshrl.u32 %v9304_v13, %v11438_v10 }
 0xa03   : > { %v5767_v54 = vsub.s32 %v5763_v4, %v5766_v45  ;;  %v5399_v4 = vor.u32 8388608, %v5398_v59  ;;  %v5381_v45 = vsel %vm5363_vm12, %v5379_v27, %v11366_v55  ;;  %v5438_v55 = vsel %vm5424_vm9, %v5435_v12, %v5437_v26 }
 0xa04   : > { %v5383_v61 = vsel %vm13571_vm13, %v5381_v45, %v11370_v5  ;;  %vm13572_vm12 = vcmask 916480  }
 0xa05   : > { %v5769_v25 = vsub.s32 0, %v5767_v54  ;;  %v5439_v60 = vshll.u32 %v5399_v4, 8  ;;  %vm13573_vm11 = vmmov %vm13572_vm12 }
 0xa06   : > { %v11509_v62 = vsel %vm13573_vm11, %v11436_v39, %v5299_v3  ;;  %v5427_v3 = vsel %vm5423_vm7, %v5407_v7, %v5410_v33 }
 0xa07   : > { %v8661_v14 = vmin.u32 %v5769_v25, %v5767_v54  ;;  %v11501_v5 = vmul.u32.u64.low %v5439_v60, %v5438_v55  ;;  %v11502_v19 = vmul.u32.u64.high %v5439_v60, %v5438_v55, %v11501_v5  ;;  %v5602_v27 = vand.u32 2139095040, %v11509_v62 }
 0xa09   : > { %v5771_v47 = vclz %v8661_v14  ;;  %v5603_v10 = vshrl.u32 %v5602_v27, 23 }
 0xa0b   : > { %v8662_v31 = vadd.s32 4294967294, %v5771_v47  ;;  %v11497_v50 = vmul.u32.u64.low %v5439_v60, %v5434_v6  ;;  %v11498_v47 = vmul.u32.u64.high %v5439_v60, %v5434_v6, %v11497_v50  ;;  %v8656_v15 = vadd.s32 4294967169, %v5603_v10 }
 0xa0d   : > { %vm8663_vm3 = vcmp.lt.s32.totalorder %v8662_v31, 0  ;;  %vm5448_vm0 = vc.u32 %v11502_v19, %v11497_v50 }
 0xa0e   : > { %v5774_v2 = vsel %vm8663_vm3, 0, %v8662_v31 }
 0xa0f   : > { %v5775_v8 = vsub.s32 32, %v5774_v2  ;;  %v5779_v23 = vsub.s32 4294967266, %v5774_v2  ;;  %v5776_v11 = vshll.u32 %v5767_v54, %v5774_v2  ;;  %v5385_v54 = vsel %vm5369_vm10, %v5383_v61, %v11372_v43 }
 0xa10   : > { %v5387_v51 = vsel %vm5372_vm14, %v5385_v54, %v11399_v21  ;;  %v5789_v21 = vsub.s32 4, %v11433_v42  ;;  %vm5704_vm14 = vcmp.le.f32.partialorder %v5703_v46, 0.7853982  ;;  %vm5705_vm10 = vcmp.lt.s32.totalorder %v11393_v56, 0 }
 0xa11   : > { %v5777_v25 = vshrl.u32 %v5759_v1, %v5775_v8  ;;  %v5780_v52 = vadd.s32 127, %v5779_v23  ;;  %v11505_v28 = vsel %vm13572_vm12, %v5387_v51, %v5353_v41  ;;  %v5429_v1 = vsel %vm5425_vm8, %v5413_v29, %v5428_v35 }
 0xa12   : > { %v5498_v57 = vand.u32 2139095040, %v11505_v28  ;;  %v5790_v48 = vsel %vm5705_vm10, %v5789_v21, %v11433_v42  ;;  %v5449_v23 = vadd.s32 1, %v11498_v47  ;;  %v5430_v46 = vsel %vm5424_vm9, %v5427_v3, %v5429_v1 }
 0xa13   : > { %v5778_v14 = vor.u32 %v5777_v25, %v5776_v11  ;;  %v5781_v53 = vshll.u32 %v5780_v52, 23  ;;  %v5792_v33 = vsel %vm5704_vm14, 0, %v5790_v48  ;;  %v5446_v45 = vmul.u32 %v5439_v60, %v5430_v46 }
 0xa14   : > { %v5499_v2 = vshrl.u32 %v5498_v57, 23  ;;  %v5450_v29 = vsel %vm5448_vm0, %v5449_v23, %v11498_v47  ;;  %v5796_v12 = vadd.s32 3, %v5792_v33  ;;  %v5609_v11 = vadd.s32 1, %v8656_v15 }
 0xa15   : > { %v5782_v59 = vor.u32 4788187, %v5781_v53  ;;  %v5785_v31 = vcvt.s32.f32 %v5778_v14  ;;  %v5451_v26 = vadd.s32 %v5450_v29, %v5446_v45  ;;  %v6209_v52 = vand.u32 3, %v5792_v33 }
 0xa16   : > { %v8652_v40 = vadd.s32 4294967169, %v5499_v2  ;;  %v5797_v6 = vand.u32 3, %v5796_v12  ;;  %vm5610_vm7 = vcmp.gt.s32.totalorder %v5609_v11, 0  ;;  %vm5795_vm8 = vweird.f32 %v11393_v56 }
 0xa17   : > { %v5783_v38 = vand.u32 2147483647, %v5782_v59  ;;  %v5452_v14 = vadd.s32 536870912, %v5451_v26  ;;  %vm6210_vm9 = vcmp.lt.s32.totalorder %v6209_v52, 2  ;;  %v5495_v9 = vand.u32 2147483647, %v11505_v28 }
 0xa18   : > { %v5505_v42 = vadd.s32 1, %v8652_v40  ;;  %vm5798_vm13 = vcmp.lt.s32.totalorder %v5797_v6, 2  ;;  %vm5799_vm12 = vcmp.eq.s32.totalorder %v5797_v6, 0  ;;  %vm6211_vm11 = vcmp.eq.s32.totalorder %v6209_v52, 0 }
 0xa19   : > { %v5786_v43 = vmul.f32 %v5785_v31, %v5783_v38  ;;  %v11535_v54 = vshrl.u32 %v5452_v14, 30  ;;  %v5611_v59 = vsel %vm5610_vm7, %v5609_v11, 0  ;;  %v5502_v46 = vand.u32 8388607, %v5495_v9 }
 0xa1a   : > { %vm5506_vm3 = vcmp.gt.s32.totalorder %v5505_v42, 0 }
 0xa1b   : > { %v5787_v4 = vxor.u32 2147483648, %v5786_v43  ;;  %v5507_v25 = vsel %vm5506_vm3, %v5505_v42, 0  ;;  %v5454_v40 = vshll.u32 %v11535_v54, 30  ;;  %v5613_v42 = vand.u32 31, %v5611_v59 }
 0xa1c   : > { %v5509_v61 = vand.u32 31, %v5507_v25  ;;  %v11537_v47 = vshrl.u32 %v5507_v25, 5  ;;  %v5503_v11 = vor.u32 8388608, %v5502_v46 }
 0xa1d   : > { %v5788_v39 = vsel %vm5705_vm10, %v5787_v4, %v5786_v43  ;;  %vm5802_vm10 = vcmp.eq.s32.totalorder %v5797_v6, 2  ;;  %v11566_v25 = vsub.s32 %v5451_v26, %v5454_v40  ;;  %v11571_v6 = vsub.s32 32, %v5613_v42 }
 0xa1e   : > { %v5791_v8 = vsel %vm5704_vm14, %v11393_v56, %v5788_v39  ;;  %v5510_v53 = vsub.s32 32, %v5509_v61  ;;  %vm6214_vm14 = vcmp.eq.s32.totalorder %v6209_v52, 2  ;;  %v5515_v5 = vshll.u32 %v9305_v17, %v5509_v61 }
 0xa1f   : > { %9231 = vcosq.f32 %v5791_v8  ;;  %v5521_v21 = vshll.u32 %v9307_v34, %v5509_v61  ;;  %v5518_v2 = vshll.u32 %v9306_v49, %v5509_v61  ;;  %v5524_v10 = vshll.u32 %v9308_v0, %v5509_v61 }
 0xa20   : > { %9233 = vsinq.f32 %v5791_v8  ;;  %v5522_v38 = vshrl.u32 %v9308_v0, %v5510_v53  ;;  %v5516_v57 = vshrl.u32 %v9306_v49, %v5510_v53  ;;  %v5519_v4 = vshrl.u32 %v9307_v34, %v5510_v53 }
 0xa21   : > { %v5525_v7 = vshrl.u32 %v9309_v32, %v5510_v53  ;;  %v5513_v1 = vshrl.u32 %v9305_v17, %v5510_v53  ;;  %v5512_v33 = vshll.u32 %v9304_v13, %v5509_v61  ;;  %vm5530_vm0 = vcmp.lt.s32.totalorder %v11537_v47, 4 }
 0xa22   : > { %v5523_v23 = vor.u32 %v5522_v38, %v5521_v21  ;;  %v5517_v29 = vor.u32 %v5516_v57, %v5515_v5  ;;  %v5520_v15 = vor.u32 %v5519_v4, %v5518_v2  ;;  %vm5527_vm3 = vcmp.lt.s32.totalorder %v11537_v47, 1 }
 0xa23   : > { %v5526_v45 = vor.u32 %v5525_v7, %v5524_v10  ;;  %v5514_v12 = vor.u32 %v5513_v1, %v5512_v33  ;;  %vm5529_vm7 = vcmp.lt.s32.totalorder %v11537_v47, 3  ;;  %v5511_v5 = vshrl.u32 %v9304_v13, %v5510_v53 }
 0xa24   : > { %v5536_v56 = vsel %vm5530_vm0, %v5523_v23, 920167782  ;;  %v5539_v52 = vsel %vm5527_vm3, %v5517_v29, %v5520_v15  ;;  %v5599_v4 = vand.u32 2147483647, %v11509_v62  ;;  %v5629_v53 = vshrl.u32 %v9309_v32, %v11571_v6 }
 0xa25   : > { %v5540_v61 = vsel %vm5530_vm0, %v5526_v45, 1326507024  ;;  %v5535_v14 = vsel %vm5527_vm3, %v5514_v12, %v5517_v29  ;;  %v5531_v57 = vsel %vm5527_vm3, %v5511_v5, %v5514_v12  ;;  %v11603_v1 = vshrl.u32 %v5611_v59, 5 }
 0xa26   : > { %v5541_v26 = vsel %vm5529_vm7, %v5523_v23, %v5540_v61  ;;  %v5617_v2 = vshrl.u32 %v9305_v17, %v11571_v6  ;;  %v5625_v23 = vshll.u32 %v9307_v34, %v5613_v42  ;;  %v5620_v10 = vshrl.u32 %v9306_v49, %v11571_v6 }
 0xa27   : > { %v5623_v46 = vshrl.u32 %v9307_v34, %v11571_v6  ;;  %v5628_v32 = vshll.u32 %v9308_v0, %v5613_v42  ;;  %v5616_v40 = vshll.u32 %v9304_v13, %v5613_v42  ;;  %v5606_v34 = vand.u32 8388607, %v5599_v4 }
 0xa29   : > { %v5630_v45 = vor.u32 %v5629_v53, %v5628_v32 }
 0xa2c   : > { %v9232_v55 = vpop.eup %9231 }
 0xa2d   : > { %v9234_v60 = vpop.eup %9233  ;;  %v5803_v41 = vxor.u32 2147483648, %v9232_v55 }
 0xa2e   : > { %v5800_v51 = vxor.u32 2147483648, %v9234_v60 }
 0xa2f   : > { %v5804_v31 = vsel %vm5802_vm10, %v5803_v41, %v9234_v60  ;;  %v6216_v43 = vsel %vm6214_vm14, %v5803_v41, %v9234_v60  ;;  %v5532_v60 = vsel %vm5530_vm0, %v5520_v15, 2102212464  ;;  %vm5632_vm14 = vcmp.lt.s32.totalorder %v11603_v1, 2 }
 0xa30   : > { %v5801_v35 = vsel %vm5799_vm12, %v9232_v55, %v5800_v51  ;;  %v6213_v27 = vsel %vm6211_vm11, %v9232_v55, %v5800_v51  ;;  %v5537_v55 = vsel %vm5529_vm7, %v5520_v15, %v5536_v56  ;;  %v5457_v51 = vsub.s32 0, %v11566_v25 }
 0xa31   : > { %v5805_v39 = vsel %vm5798_vm13, %v5801_v35, %v5804_v31  ;;  %v6217_v3 = vsel %vm6210_vm9, %v6213_v27, %v6216_v43  ;;  %v5543_v31 = vshll.u32 %v5503_v11, 8  ;;  %v5626_v43 = vshrl.u32 %v9308_v0, %v11571_v6 }
 0xa32   : > { %v11553_v48 = vsel %vm5795_vm8, nan, %v5805_v39  ;;  %v11557_v8 = vsel %vm5795_vm8, nan, %v6217_v3  ;;  %vm5528_vm8 = vcmp.lt.s32.totalorder %v11537_v47, 2  ;;  %v5533_v21 = vsel %vm5529_vm7, %v5517_v29, %v5532_v60 }
 0xa33   : > { %13574 = vst [vmem:[#allocation22_spill] sm:$0xff] %v11553_v48  ;;  %v5542_v41 = vsel %vm5528_vm8, %v5539_v52, %v5541_v26  ;;  %v5538_v38 = vsel %vm5528_vm8, %v5535_v14, %v5537_v55  ;;  %v8649_v3 = vmin.u32 %v5457_v51, %v11566_v25  ;;  %v5534_v33 = vsel %vm5528_vm8, %v5531_v57, %v5533_v21 }
 0xa34   : > { %v11592_v35 = vmul.u32.u64.low %v5543_v31, %v5542_v41  ;;  %v11593_v27 = vmul.u32.u64.high %v5543_v31, %v5542_v41, %v11592_v35  ;;  %v11598_v7 = vmul.u32.u64.low %v5543_v31, %v5538_v38  ;;  %v11599_v39 = vmul.u32.u64.high %v5543_v31, %v5538_v38, %v11598_v7 }
 0xa35   : > { %v5627_v59 = vor.u32 %v5626_v43, %v5625_v23  ;;  %v5619_v29 = vshll.u32 %v9305_v17, %v5613_v42  ;;  %v5622_v15 = vshll.u32 %v9306_v49, %v5613_v42  ;;  %v5459_v56 = vclz %v8649_v3 }
 0xa36   : > { %vm5552_vm9 = vc.u32 %v11593_v27, %v11598_v7  ;;  %v5553_v12 = vadd.s32 1, %v11599_v39  ;;  %v5618_v0 = vor.u32 %v5617_v2, %v5616_v40  ;;  %v5550_v47 = vmul.u32 %v5543_v31, %v5534_v33 }
 0xa37   : > { %v5621_v11 = vor.u32 %v5620_v10, %v5619_v29  ;;  %v5624_v52 = vor.u32 %v5623_v46, %v5622_v15  ;;  %vm5634_vm13 = vcmp.lt.s32.totalorder %v11603_v1, 4  ;;  %vm5631_vm12 = vcmp.lt.s32.totalorder %v11603_v1, 1 }
 0xa38   : > { %v5554_v61 = vsel %vm5552_vm9, %v5553_v12, %v11599_v39  ;;  %v5640_v17 = vsel %vm5634_vm13, %v5627_v59, 920167782  ;;  %v5644_v49 = vsel %vm5634_vm13, %v5630_v45, 1326507024  ;;  %vm5633_vm11 = vcmp.lt.s32.totalorder %v11603_v1, 3 }
 0xa39   : > { %v5555_v14 = vadd.s32 %v5554_v61, %v5550_v47  ;;  %v8650_v55 = vadd.s32 4294967294, %v5459_v56  ;;  %v5607_v26 = vor.u32 8388608, %v5606_v34  ;;  %v5639_v60 = vsel %vm5631_vm12, %v5618_v0, %v5621_v11 }
 0xa3a   : > { %v5641_v41 = vsel %vm5633_vm11, %v5624_v52, %v5640_v17  ;;  %v5643_v51 = vsel %vm5631_vm12, %v5621_v11, %v5624_v52  ;;  %v5645_v5 = vsel %vm5633_vm11, %v5627_v59, %v5644_v49  ;;  %v5636_v33 = vsel %vm5634_vm13, %v5624_v52, 2102212464 }
 0xa3b   : > { %v5556_v42 = vadd.s32 536870912, %v5555_v14  ;;  %v5642_v31 = vsel %vm5632_vm14, %v5639_v60, %v5641_v41  ;;  %vm8651_vm10 = vcmp.lt.s32.totalorder %v8650_v55, 0  ;;  %v5646_v57 = vsel %vm5632_vm14, %v5643_v51, %v5645_v5 }
 0xa3c   : > { %v5647_v21 = vshll.u32 %v5607_v26, 8  ;;  %v5462_v3 = vsel %vm8651_vm10, 0, %v8650_v55  ;;  %v5615_v40 = vshrl.u32 %v9304_v13, %v11571_v6  ;;  %v5637_v15 = vsel %vm5633_vm11, %v5621_v11, %v5636_v33 }
 0xa3d   : > { %v11639_v38 = vshrl.u32 %v5556_v42, 30  ;;  %v5467_v32 = vsub.s32 4294967266, %v5462_v3  ;;  %v5463_v13 = vsub.s32 32, %v5462_v3  ;;  %v5551_v6 = vadd.s32 %v11598_v7, %v11593_v27 }
 0xa3e   : > { %v11647_v53 = vmul.u32.u64.low %v5647_v21, %v5642_v31  ;;  %v11648_v39 = vmul.u32.u64.high %v5647_v21, %v5642_v31, %v11647_v53  ;;  %v11651_v2 = vmul.u32.u64.low %v5647_v21, %v5646_v57  ;;  %v11652_v23 = vmul.u32.u64.high %v5647_v21, %v5646_v57, %v11651_v2 }
 0xa3f   : > { %v5558_v43 = vshll.u32 %v11639_v38, 30  ;;  %v5635_v29 = vsel %vm5631_vm12, %v5615_v40, %v5618_v0  ;;  %v5468_v12 = vadd.s32 127, %v5467_v32  ;;  %v5447_v11 = vadd.s32 %v11497_v50, %v11502_v19 }
 0xa40   : > { %v5657_v56 = vadd.s32 1, %v11648_v39  ;;  %vm5656_vm0 = vc.u32 %v11652_v23, %v11647_v53  ;;  %v5638_v34 = vsel %vm5632_vm14, %v5635_v29, %v5637_v15  ;;  %v5464_v51 = vshll.u32 %v11566_v25, %v5462_v3 }
 0xa41   : > { %v5559_v35 = vsub.s32 %v5555_v14, %v5558_v43  ;;  %v5469_v61 = vshll.u32 %v5468_v12, 23  ;;  %v5654_v14 = vmul.u32 %v5647_v21, %v5638_v34  ;;  %v5465_v26 = vshrl.u32 %v5447_v11, %v5463_v13 }
 0xa42   : > { %v5658_v17 = vsel %vm5656_vm0, %v5657_v56, %v11648_v39  ;;  %vm5497_vm7 = vcmp.lt.s32.totalorder %v11505_v28, 0  ;;  %vm5496_vm8 = vcmp.le.f32.partialorder %v5495_v9, 0.7853982  ;;  %vm5393_vm9 = vcmp.lt.s32.totalorder %v11405_v58, 0 }
 0xa43   : > { %v5561_v10 = vsub.s32 0, %v5559_v35  ;;  %v5659_v1 = vadd.s32 %v5658_v17, %v5654_v14  ;;  %v5470_v5 = vor.u32 4788187, %v5469_v61  ;;  %v5466_v7 = vor.u32 %v5465_v26, %v5464_v51 }
 0xa44   : > { %vm11689_vm13 = vcmp.le.f32.partialorder %v5391_v36, 0.7853982  ;;  %v5477_v11 = vsub.s32 4, %v11535_v54  ;;  %vm5587_vm10 = vweird.f32 %v11505_v28 }
 0xa45   : > { %v8653_v46 = vmin.u32 %v5561_v10, %v5559_v35  ;;  %v5660_v31 = vadd.s32 536870912, %v5659_v1  ;;  %v5471_v50 = vand.u32 2147483647, %v5470_v5  ;;  %v5473_v2 = vcvt.s32.f32 %v5466_v7 }
 0xa47   : > { %v5563_v59 = vclz %v8653_v46  ;;  %v11673_v39 = vshrl.u32 %v5660_v31, 30  ;;  %v5581_v46 = vsub.s32 4, %v11639_v38 }
 0xa49   : > { %v8654_v45 = vadd.s32 4294967294, %v5563_v59  ;;  %v5662_v3 = vshll.u32 %v11673_v39, 30  ;;  %v5582_v40 = vsel %vm5497_vm7, %v5581_v46, %v11639_v38 }
 0xa4a   : > { %v5584_v15 = vsel %vm5496_vm8, 0, %v5582_v40 }
 0xa4b   : > { %vm8655_vm3 = vcmp.lt.s32.totalorder %v8654_v45, 0  ;;  %v11681_v33 = vsub.s32 %v5659_v1, %v5662_v3  ;;  %v6003_v12 = vand.u32 3, %v5584_v15 }
 0xa4c   : > { %v5566_v47 = vsel %vm8655_vm3, 0, %v8654_v45 }
 0xa4d   : > { %v5567_v0 = vsub.s32 32, %v5566_v47  ;;  %v5571_v52 = vsub.s32 4294967266, %v5566_v47  ;;  %v5568_v49 = vshll.u32 %v5559_v35, %v5566_v47  ;;  %v5474_v35 = vmul.f32 %v5473_v2, %v5471_v50 }
 0xa4e   : > { %v5665_v29 = vsub.s32 0, %v11681_v33  ;;  %vm6008_vm12 = vcmp.eq.s32.totalorder %v6003_v12, 2  ;;  %vm6005_vm11 = vcmp.eq.s32.totalorder %v6003_v12, 0  ;;  %vm6004_vm14 = vcmp.lt.s32.totalorder %v6003_v12, 2 }
 0xa4f   : > { %v5569_v42 = vshrl.u32 %v5551_v6, %v5567_v0  ;;  %v5572_v55 = vadd.s32 127, %v5571_v52  ;;  %v5475_v32 = vxor.u32 2147483648, %v5474_v35  ;;  %v5588_v6 = vadd.s32 3, %v5584_v15 }
 0xa50   : > { %v8657_v38 = vmin.u32 %v5665_v29, %v11681_v33 }
 0xa51   : > { %v5570_v60 = vor.u32 %v5569_v42, %v5568_v49  ;;  %v5573_v41 = vshll.u32 %v5572_v55, 23  ;;  %v5476_v59 = vsel %vm5393_vm9, %v5475_v32, %v5474_v35  ;;  %v5589_v49 = vand.u32 3, %v5588_v6 }
 0xa52   : > { %v5479_v45 = vsel %vm11689_vm13, %v11405_v58, %v5476_v59  ;;  %v5667_v36 = vclz %v8657_v38  ;;  %v5478_v42 = vsel %vm5393_vm9, %v5477_v11, %v11535_v54 }
 0xa53   : > { %v5574_v27 = vor.u32 4788187, %v5573_v41  ;;  %v5577_v57 = vcvt.s32.f32 %v5570_v60  ;;  %vm5591_vm3 = vcmp.eq.s32.totalorder %v5589_v49, 0  ;;  %v5480_v26 = vsel %vm11689_vm13, 0, %v5478_v42 }
 0xa54   : > { %v8658_v14 = vadd.s32 4294967294, %v5667_v36  ;;  %v5900_v5 = vand.u32 3, %v5480_v26  ;;  %v5484_v32 = vadd.s32 3, %v5480_v26 }
 0xa55   : > { %v5575_v43 = vand.u32 2147483647, %v5574_v27 }
 0xa56   : > { %vm8659_vm0 = vcmp.lt.s32.totalorder %v8658_v14, 0  ;;  %vm5902_vm9 = vcmp.eq.s32.totalorder %v5900_v5, 0  ;;  %vm5905_vm13 = vcmp.eq.s32.totalorder %v5900_v5, 2 }
 0xa57   : > { %v5578_v19 = vmul.f32 %v5577_v57, %v5575_v43  ;;  %v5670_v51 = vsel %vm8659_vm0, 0, %v8658_v14 }
 0xa58   : > { %v5675_v31 = vsub.s32 4294967266, %v5670_v51  ;;  %v5672_v3 = vshll.u32 %v11681_v33, %v5670_v51 }
 0xa59   : > { %v5579_v21 = vxor.u32 2147483648, %v5578_v19 }
 0xa5b   : > { %v5580_v10 = vsel %vm5497_vm7, %v5579_v21, %v5578_v19  ;;  %vm5594_vm7 = vcmp.eq.s32.totalorder %v5589_v49, 2  ;;  %v5676_v19 = vadd.s32 127, %v5675_v31  ;;  %v5671_v21 = vsub.s32 32, %v5670_v51 }
 0xa5c   : > { %v5583_v25 = vsel %vm5496_vm8, %v11505_v28, %v5580_v10  ;;  %vm5590_vm8 = vcmp.lt.s32.totalorder %v5589_v49, 2  ;;  %v5655_v28 = vadd.s32 %v11647_v53, %v11652_v23  ;;  %v5485_v23 = vand.u32 3, %v5484_v32  ;;  %v6224_v32 = vld [vmem:[%s13583_s26 + $0x8] sm:$0xff] }
 0xa5d   : > { %9235 = vcosq.f32 %v5583_v25  ;;  %v5677_v35 = vshll.u32 %v5676_v19, 23  ;;  %8710 = vmatprep.mubr.msk.f32.mxu0 %vm1018_vm1, %v6224_v32  ;;  %v6232_v32 = vld [vmem:[%s9411_s12 + $0x8] sm:$0xff] }
 0xa5e   : > { %9237 = vsinq.f32 %v5583_v25  ;;  %v5673_v25 = vshrl.u32 %v5655_v28, %v5671_v21  ;;  %vm5486_vm0 = vcmp.lt.s32.totalorder %v5485_v23, 2 }
 0xa5f   : > { %9239 = vcosq.f32 %v5479_v45  ;;  %v5678_v46 = vor.u32 4788187, %v5677_v35 }
 0xa60   : > { %9241 = vsinq.f32 %v5479_v45  ;;  %v5674_v40 = vor.u32 %v5673_v25, %v5672_v3 }
 0xa61   : > { %v5679_v53 = vand.u32 2147483647, %v5678_v46 }
 0xa62   : > { %v5681_v59 = vcvt.s32.f32 %v5674_v40 }
 0xa64   : > { %v5682_v9 = vmul.f32 %v5681_v59, %v5679_v53 }
 0xa66   : > { %v5683_v15 = vxor.u32 2147483648, %v5682_v9 }
 0xa6a   : > { %v9236_v56 = vpop.eup %9235 }
 0xa6b   : > { %v9238_v34 = vpop.eup %9237  ;;  %v5595_v47 = vxor.u32 2147483648, %v9236_v56 }
 0xa6c   : > { %v5592_v13 = vxor.u32 2147483648, %v9238_v34  ;;  %v9240_v55 = vpop.eup %9239 }
 0xa6d   : > { %v6010_v0 = vsel %vm6008_vm12, %v5595_v47, %v9238_v34  ;;  %v5596_v60 = vsel %vm5594_vm7, %v5595_v47, %v9238_v34  ;;  %v9242_v41 = vpop.eup %9241  ;;  %v5491_v7 = vxor.u32 2147483648, %v9240_v55  ;;  %vm5901_vm12 = vcmp.lt.s32.totalorder %v5900_v5, 2 }
 0xa6e   : > { %v6007_v52 = vsel %vm6005_vm11, %v9236_v56, %v5592_v13  ;;  %v5593_v1 = vsel %vm5591_vm3, %v9236_v56, %v5592_v13  ;;  %v5488_v27 = vxor.u32 2147483648, %v9242_v41  ;;  %vm5483_vm11 = vweird.f32 %v11405_v58  ;;  %v11781_v58 = vpop.permute.xlu1 %6837 }
 0xa6f   : > { %v6011_v61 = vsel %vm6004_vm14, %v6007_v52, %v6010_v0  ;;  %v5597_v54 = vsel %vm5590_vm8, %v5593_v1, %v5596_v60  ;;  %v5907_v50 = vsel %vm5905_vm13, %v5491_v7, %v9242_v41  ;;  %vm5487_vm14 = vcmp.eq.s32.totalorder %v5485_v23, 0 }
 0xa70   : > { %v11702_v17 = vsel %vm5587_vm10, nan, %v6011_v61  ;;  %v11723_v43 = vsel %vm5587_vm10, nan, %v5597_v54  ;;  %v5904_v57 = vsel %vm5902_vm9, %v9240_v55, %v5488_v27  ;;  %vm5490_vm10 = vcmp.eq.s32.totalorder %v5485_v23, 2 }
 0xa71   : > { %6511 = vrot.lane.b32.xlu1 %v11702_v17, %s13486_s11  ;;  %6491 = vrot.lane.b32.xlu0 %v11702_v17, %s13569_s10  ;;  %13578 = vst [vmem:[#allocation23_spill] sm:$0xff] %v11723_v43  ;;  %v5908_v2 = vsel %vm5901_vm12, %v5904_v57, %v5907_v50  ;;  %v5489_v33 = vsel %vm5487_vm14, %v9240_v55, %v5488_v27  ;;  %vm5601_vm3 = vcmp.lt.s32.totalorder %v11509_v62, 0  ;;  %vm11770_vm7 = vcmp.le.f32.partialorder %v5599_v4, 0.7853982 }
 0xa72   : > { %v11738_v10 = vsel %vm5483_vm11, nan, %v5908_v2  ;;  %v5492_v29 = vsel %vm5490_vm10, %v5491_v7, %v9242_v41  ;;  %v5684_v12 = vsel %vm5601_vm3, %v5683_v15, %v5682_v9  ;;  %v5685_v4 = vsub.s32 4, %v11673_v39  ;;  %v11792_v47 = vpop.permute.xlu1 %6833  ;;  %v11840_v41 = vpop.permute.xlu0 %6835 }
 0xa73   : > { %v5493_v45 = vsel %vm5486_vm0, %v5489_v33, %v5492_v29  ;;  %v5687_v34 = vsel %vm11770_vm7, %v11509_v62, %v5684_v12  ;;  %vm5691_vm12 = vweird.f32 %v11509_v62  ;;  %vm13594_vm0 = vcmask 916480  }
 0xa74   : > { %v11766_v38 = vsel %vm5483_vm11, nan, %v5493_v45  ;;  %9243 = vcosq.f32 %v5687_v34  ;;  %v5686_v13 = vsel %vm5601_vm3, %v5685_v4, %v11673_v39  ;;  %vm13600_vm3 = vmmov %vm13594_vm0 }
 0xa75   : > { %6451 = vrot.lane.b32.xlu1 %v11702_v17, %s13484_s20  ;;  %6471 = vrot.lane.b32.xlu0 %v11702_v17, %s13482_s2  ;;  %13580 = vst [vmem:[#allocation24_spill] sm:$0xff] %v11766_v38  ;;  %9245 = vsinq.f32 %v5687_v34  ;;  %v5688_v0 = vsel %vm11770_vm7, 0, %v5686_v13  ;;  %vm13602_vm7 = vmmov %vm13594_vm0 }
 0xa76   : > { %v11801_v36 = vpop.permute.xlu1 %6817  ;;  %v6106_v11 = vand.u32 3, %v5688_v0  ;;  %v11852_v5 = vpop.permute.xlu0 %6831  ;;  %v5692_v27 = vadd.s32 3, %v5688_v0 }
 0xa78   : > { %vm6108_vm8 = vcmp.eq.s32.totalorder %v6106_v11, 0  ;;  %vm6111_vm9 = vcmp.eq.s32.totalorder %v6106_v11, 2  ;;  %vm6107_vm13 = vcmp.lt.s32.totalorder %v6106_v11, 2  ;;  %v5693_v31 = vand.u32 3, %v5692_v27 }
 0xa79   : > { %6431 = vrot.lane.b32.xlu1 %v11702_v17, %s13479_s1  ;;  %6527 = vrot.lane.b32.xlu0 %v11702_v17, %s13577_s16 }
 0xa7a   : > { %v11813_v14 = vpop.permute.xlu1 %6815  ;;  %v11860_v7 = vpop.permute.xlu0 %6793  ;;  %vm5695_vm11 = vcmp.eq.s32.totalorder %v5693_v31, 0  ;;  %vm5698_vm14 = vcmp.eq.s32.totalorder %v5693_v31, 2  ;;  %vm5694_vm10 = vcmp.lt.s32.totalorder %v5693_v31, 2 }
 0xa7d   : > { %6415 = vrot.lane.b32.xlu1 %v11702_v17, %s13477_s9  ;;  %6335 = vrot.lane.b32.xlu0 %v11723_v43, %s13569_s10 }
 0xa7e   : > { %v11819_v26 = vpop.permute.xlu1 %6813  ;;  %v11872_v2 = vpop.permute.xlu0 %6775 }
 0xa7f   : > { %13584 = vst [vmem:[#allocation25_spill] sm:$0xff] %v11872_v2 }
 0xa81   : > { %6395 = vrot.lane.b32.xlu1 %v11702_v17, %s13579_s0  ;;  %6315 = vrot.lane.b32.xlu0 %v11723_v43, %s13482_s2  ;;  %v9244_v6 = vpop.eup %9243 }
 0xa82   : > { %v9246_v52 = vpop.eup %9245  ;;  %v5699_v61 = vxor.u32 2147483648, %v9244_v6  ;;  %v11834_v60 = vpop.permute.xlu1 %6811 }
 0xa83   : > { %v5696_v39 = vxor.u32 2147483648, %v9246_v52  ;;  %v11884_v25 = vpop.permute.xlu0 %6771 }
 0xa84   : > { %v6113_v42 = vsel %vm6111_vm9, %v5699_v61, %v9246_v52  ;;  %v5700_v19 = vsel %vm5698_vm14, %v5699_v61, %v9246_v52  ;;  %13587 = vst [vmem:[#allocation28_spill] sm:$0xff] %v11884_v25  ;;  %vm13604_vm9 = vmmov %vm13594_vm0 }
 0xa85   : > { %6355 = vrot.lane.b32.xlu1 %v11723_v43, %s13486_s11  ;;  %6509 = vrot.lane.b32.xlu0 %v11738_v10, %s13486_s11  ;;  %v6110_v49 = vsel %vm6108_vm8, %v9244_v6, %v5696_v39  ;;  %v5697_v50 = vsel %vm5695_vm11, %v9244_v6, %v5696_v39  ;;  %v6231_v6 = vld [vmem:[%s9411_s12] sm:$0xff]  ;;  %vm13603_vm8 = vmmov %vm13594_vm0 }
 0xa86   : > { %v6114_v55 = vsel %vm6107_vm13, %v6110_v49, %v6113_v42  ;;  %v11842_v51 = vpop.permute.xlu1 %6797  ;;  %v5701_v28 = vsel %vm5694_vm10, %v5697_v50, %v5700_v19  ;;  %v6220_v42 = vld [vmem:[%s13591_s18 + $0x8] sm:$0xff]  ;;  %vm13605_vm13 = vcmask 924672   ;;  %vm13609_vm10 = vcmask 1039360  }
 0xa87   : > { %v11828_v1 = vsel %vm5691_vm12, nan, %v6114_v55  ;;  %v11882_v35 = vsel %vm5691_vm12, nan, %v5701_v28  ;;  %v11896_v46 = vpop.permute.xlu0 %6755  ;;  %8742 = vmatprep.mubr.msk.f32.mxu1 %vm1018_vm1, %v6220_v42  ;;  %vm13606_vm12 = vmmov %vm13605_vm13 }
 0xa88   : > { %13586 = vst [vmem:[#allocation27_spill] sm:$0xff] %v11882_v35  ;;  %13589 = vst [vmem:[#allocation30_spill] sm:$0xff] %v11896_v46 }
 0xa89   : > { %6295 = vrot.lane.b32.xlu1 %v11723_v43, %s13484_s20  ;;  %6449 = vrot.lane.b32.xlu0 %v11738_v10, %s13484_s20  ;;  %vm13607_vm11 = vmmov %vm13606_vm12 }
 0xa8a   : > { %v11854_v54 = vpop.permute.xlu1 %6795  ;;  %vm13608_vm14 = vmmov %vm13607_vm11 }
 0xa8d   : > { %6275 = vrot.lane.b32.xlu1 %v11723_v43, %s13479_s1  ;;  %6429 = vrot.lane.b32.xlu0 %v11738_v10, %s13479_s1 }
 0xa8e   : > { %v11862_v57 = vpop.permute.xlu1 %6791 }
 0xa91   : > { %6489 = vrot.lane.b32.xlu1 %v11738_v10, %s13569_s10  ;;  %6413 = vrot.lane.b32.xlu0 %v11738_v10, %s13477_s9 }
 0xa92   : > { %v11874_v21 = vpop.permute.xlu1 %6777 }
 0xa93   : > { %13585 = vst [vmem:[#allocation26_spill] sm:$0xff] %v11874_v21 }
 0xa95   : > { %6469 = vrot.lane.b32.xlu1 %v11738_v10, %s13482_s2  ;;  %6393 = vrot.lane.b32.xlu0 %v11738_v10, %s13579_s0 }
 0xa96   : > { %v11886_v3 = vpop.permute.xlu1 %6773 }
 0xa97   : > { %13588 = vst [vmem:[#allocation29_spill] sm:$0xff] %v11886_v3 }
 0xa99   : > { %6525 = vrot.lane.b32.xlu1 %v11738_v10, %s13577_s16  ;;  %6353 = vrot.lane.b32.xlu0 %v11766_v38, %s13486_s11 }
 0xa9a   : > { %v11898_v62 = vpop.permute.xlu1 %6757 }
 0xa9b   : > { %13590 = vst [vmem:[#allocation31_spill] sm:$0xff] %v11898_v62 }
 0xa9d   : > { %6515 = vrot.lane.b32.xlu1 %v11557_v8, %s13486_s11  ;;  %6333 = vrot.lane.b32.xlu0 %v11766_v38, %s13569_s10 }
 0xaa1   : > { %6455 = vrot.lane.b32.xlu1 %v11557_v8, %s13484_s20  ;;  %6313 = vrot.lane.b32.xlu0 %v11766_v38, %s13482_s2 }
 0xaa5   : > { %6435 = vrot.lane.b32.xlu1 %v11557_v8, %s13479_s1  ;;  %6293 = vrot.lane.b32.xlu0 %v11766_v38, %s13484_s20 }
 0xaa9   : > { %6419 = vrot.lane.b32.xlu1 %v11557_v8, %s13477_s9  ;;  %6273 = vrot.lane.b32.xlu0 %v11766_v38, %s13479_s1 }
 0xaad   : > { %6399 = vrot.lane.b32.xlu1 %v11557_v8, %s13579_s0  ;;  %6495 = vrot.lane.b32.xlu0 %v11557_v8, %s13569_s10 }
 0xab1   : > { %6299 = vrot.lane.b32.xlu1 %v11553_v48, %s13484_s20  ;;  %6475 = vrot.lane.b32.xlu0 %v11557_v8, %s13482_s2 }
 0xab5   : > { %6279 = vrot.lane.b32.xlu1 %v11553_v48, %s13479_s1  ;;  %6531 = vrot.lane.b32.xlu0 %v11557_v8, %s13577_s16 }
 0xab9   : > { %6359 = vrot.lane.b32.xlu0 %v11553_v48, %s13486_s11  ;;  %6493 = vrot.lane.b32.xlu1 %v11828_v1, %s13569_s10 }
 0xabd   : > { %6339 = vrot.lane.b32.xlu0 %v11553_v48, %s13569_s10  ;;  %6473 = vrot.lane.b32.xlu1 %v11828_v1, %s13482_s2 }
 0xac1   : > { %6319 = vrot.lane.b32.xlu0 %v11553_v48, %s13482_s2  ;;  %6263 = vrot.lane.b32.xlu1 %v11553_v48, %s13477_s9 }
 0xac5   : > { %6753 = vrot.lane.b32.xlu1 %v10573_v44, %s13479_s1  ;;  %6513 = vrot.lane.b32.xlu0 %v11828_v1, %s13486_s11 }
 0xac9   : > { %6259 = vrot.lane.b32.xlu1 %v11723_v43, %s13477_s9  ;;  %6751 = vrot.lane.b32.xlu0 %v10563_v63, %s13479_s1 }
 0xacd   : > { %6741 = vrot.lane.b32.xlu1 %v10631_v16, %s13477_s9  ;;  %6257 = vrot.lane.b32.xlu0 %v11766_v38, %s13477_s9 }
 0xad1   : > { %6243 = vrot.lane.b32.xlu1 %v11553_v48, %s13579_s0  ;;  %6739 = vrot.lane.b32.xlu0 %v10649_v37, %s13477_s9 }
 0xad5   : > { %6529 = vrot.lane.b32.xlu1 %v11828_v1, %s13577_s16  ;;  %6735 = vrot.lane.b32.xlu0 %v10563_v63, %s13477_s9 }
 0xad9   : > { %6453 = vrot.lane.b32.xlu0 %v11828_v1, %s13484_s20  ;;  %6357 = vrot.lane.b32.xlu1 %v11882_v35, %s13486_s11 }
 0xadd   : > { %6433 = vrot.lane.b32.xlu0 %v11828_v1, %s13479_s1  ;;  %6337 = vrot.lane.b32.xlu1 %v11882_v35, %s13569_s10 }
 0xae1   : > { %6417 = vrot.lane.b32.xlu0 %v11828_v1, %s13477_s9  ;;  %6737 = vrot.lane.b32.xlu1 %v10573_v44, %s13477_s9 }
 0xae3   : > { %v11906_v40 = vpop.permute.xlu1 %6511  ;;  %v11908_v53 = vpop.permute.xlu0 %6491 }
 0xae5   : > { %6397 = vrot.lane.b32.xlu0 %v11828_v1, %s13579_s0  ;;  %6239 = vrot.lane.b32.xlu1 %v11723_v43, %s13579_s0 }
 0xae7   : > { %v11914_v23 = vpop.permute.xlu1 %6451  ;;  %v11916_v59 = vpop.permute.xlu0 %6471 }
 0xae9   : > { %6237 = vrot.lane.b32.xlu0 %v11766_v38, %s13579_s0  ;;  %6721 = vrot.lane.b32.xlu1 %v10631_v16, %s13579_s0 }
 0xaeb   : > { %v11922_v9 = vpop.permute.xlu1 %6431  ;;  %v11924_v33 = vpop.permute.xlu0 %6527 }
 0xaed   : > { %6719 = vrot.lane.b32.xlu0 %v10649_v37, %s13579_s0  ;;  %6715 = vrot.lane.b32.xlu1 %v10563_v63, %s13579_s0 }
 0xaef   : > { %v11930_v29 = vpop.permute.xlu1 %6415  ;;  %v11932_v15 = vpop.permute.xlu0 %6335 }
 0xaf1   : > { %6375 = vrot.lane.b32.xlu0 %v11553_v48, %s13577_s16  ;;  %6853 = vrot.lane.b32.xlu1 %v10631_v16, %s13577_s16 }
 0xaf3   : > { %v11938_v45 = vpop.permute.xlu1 %6395  ;;  %v11940_v12 = vpop.permute.xlu0 %6315 }
 0xaf5   : > { %6717 = vrot.lane.b32.xlu0 %v10573_v44, %s13579_s0  ;;  %6851 = vrot.lane.b32.xlu1 %v10649_v37, %s13577_s16 }
 0xaf7   : > { %v11946_v56 = vpop.permute.xlu1 %6355  ;;  %v6510_v34 = vpop.permute.xlu0 %6509 }
 0xaf9   : > { %6317 = vrot.lane.b32.xlu0 %v11882_v35, %s13482_s2  ;;  %6373 = vrot.lane.b32.xlu1 %v11882_v35, %s13577_s16 }
 0xafb   : > { %v11952_v4 = vpop.permute.xlu1 %6295  ;;  %v11954_v13 = vpop.permute.xlu0 %6449 }
 0xafc   : > { %13592 = vst [vmem:[#allocation32_spill] sm:$0xff] %v11952_v4 }
 0xafd   : > { %6371 = vrot.lane.b32.xlu0 %v11723_v43, %s13577_s16  ;;  %6847 = vrot.lane.b32.xlu1 %v10563_v63, %s13577_s16 }
 0xaff   : > { %v11961_v0 = vpop.permute.xlu1 %6275  ;;  %v11963_v52 = vpop.permute.xlu0 %6429 }
 0xb00   : > { %13593 = vst [vmem:[#allocation33_spill] sm:$0xff] %v11961_v0 }
 0xb01   : > { %6297 = vrot.lane.b32.xlu0 %v11882_v35, %s13484_s20  ;;  %6956 = vperm.xlu1 %9228, %v6231_v6  }
 0xb03   : > { %v6490_v11 = vpop.permute.xlu1 %6489  ;;  %v11967_v39 = vpop.permute.xlu0 %6413 }
 0xb05   : > { %6277 = vrot.lane.b32.xlu0 %v11882_v35, %s13479_s1  ;;  %s13707_s1 = sld [smem:[#allocation12_spill]] }
 0xb07   : > { %v6470_v61 = vpop.permute.xlu1 %6469  ;;  %v11971_v49 = vpop.permute.xlu0 %6393 }
 0xb09   : > { %6261 = vrot.lane.b32.xlu0 %v11882_v35, %s13477_s9  ;;  %s13636_s9 = sld [smem:[#allocation10_spill]] }
 0xb0b   : > { %v11977_v55 = vpop.permute.xlu1 %6525  ;;  %v11979_v27 = vpop.permute.xlu0 %6353 }
 0xb0d   : > { %6241 = vrot.lane.b32.xlu0 %v11882_v35, %s13579_s0 }
 0xb0f   : > { %v6516_v31 = vpop.permute.xlu1 %6515  ;;  %v11983_v50 = vpop.permute.xlu0 %6333 }
 0xb10   : > { %8680 = vmatprep.subr.msk.mxu0 %vm13594_vm0, %v6516_v31  ;;  %vm13610_vm0 = vmmov %vm13609_vm10 }
 0xb11   : > { %6369 = vrot.lane.b32.xlu0 %v11766_v38, %s13577_s16 }
 0xb13   : > { %v6456_v19 = vpop.permute.xlu1 %6455  ;;  %v11988_v28 = vpop.permute.xlu0 %6313 }
 0xb14   : > { %13595 = vst [vmem:[#allocation34_spill] sm:$0xff] %v11988_v28 }
 0xb15   : > { %6849 = vrot.lane.b32.xlu0 %v10573_v44, %s13577_s16 }
 0xb17   : > { %v11993_v6 = vpop.permute.xlu1 %6435  ;;  %v11995_v42 = vpop.permute.xlu0 %6293 }
 0xb18   : > { %13596 = vst [vmem:[#allocation35_spill] sm:$0xff] %v11995_v42 }
 0xb19   : > { %6961 = vperm.xlu0 %9227, %v6232_v32  }
 0xb1b   : > { %v11997_v0 = vpop.permute.xlu1 %6419  ;;  %v11999_v4 = vpop.permute.xlu0 %6273 }
 0xb1c   : > { %13597 = vst [vmem:[#allocation36_spill] sm:$0xff] %v11999_v4 }
 0xb1f   : > { %v12001_v46 = vpop.permute.xlu1 %6399  ;;  %v6496_v62 = vpop.permute.xlu0 %6495 }
 0xb20   : > { %v6504_v28 = vsel %vm13605_vm13, %v6496_v62, 0.0 }
 0xb23   : > { %v12003_v38 = vpop.permute.xlu1 %6299  ;;  %v6476_v43 = vpop.permute.xlu0 %6475 }
 0xb24   : > { %13598 = vst [vmem:[#allocation37_spill] sm:$0xff] %v12003_v38 }
 0xb27   : > { %v12005_v25 = vpop.permute.xlu1 %6279  ;;  %v12007_v3 = vpop.permute.xlu0 %6531 }
 0xb28   : > { %13599 = vst [vmem:[#allocation38_spill] sm:$0xff] %v12005_v25  ;;  %v6517_v25 = vsel %vm13603_vm8, %v6510_v34, %v11906_v40  ;;  %vm13613_vm8 = vcmask 7168  }
 0xb29   : > { %vm13614_vm13 = vmmov %vm13613_vm8 }
 0xb2b   : > { %v6360_v35 = vpop.permute.xlu0 %6359  ;;  %v6494_v63 = vpop.permute.xlu1 %6493 }
 0xb2c   : > { %8712 = vmatprep.subr.msk.mxu1 %vm13600_vm3, %v6360_v35  ;;  %vm13611_vm3 = vmmov %vm13610_vm0 }
 0xb2f   : > { %v6340_v42 = vpop.permute.xlu0 %6339  ;;  %v6474_v32 = vpop.permute.xlu1 %6473 }
 0xb33   : > { %v12010_v48 = vpop.permute.xlu0 %6319  ;;  %v12012_v2 = vpop.permute.xlu1 %6263 }
 0xb34   : > { %13601 = vst [vmem:[#allocation39_spill] sm:$0xff] %v12012_v2  ;;  %v6498_v2 = vsel %vm13606_vm12, %v6494_v63, %v6496_v62  ;;  %v6484_v62 = vsel %vm13609_vm10, %v6476_v43, 0.0  ;;  %vm13615_vm12 = vmmov %vm13604_vm9 }
 0xb35   : > { %vm13618_vm10 = vmmov %vm13613_vm8 }
 0xb37   : > { %v12014_v4 = vpop.permute.xlu1 %6753  ;;  %v6514_v21 = vpop.permute.xlu0 %6513 }
 0xb38   : > { %v6518_v38 = vsel %vm13602_vm7, %v6514_v21, %v6516_v31  ;;  %v6497_v21 = vsel %vm13608_vm14, %v6490_v11, %v11908_v53  ;;  %vm13612_vm7 = vmmov %vm13610_vm0 }
 0xb39   : > { %6552 = vmatpush1.msra.mxu0 %v6518_v38  ;;  %v6503_v38 = vsel %vm13607_vm11, %v11908_v53, 0.0  ;;  %v6477_v53 = vsel %vm13612_vm7, %v6470_v61, %v11916_v59  ;;  %vm13616_vm11 = vmmov %vm13604_vm9 }
 0xb3a   : > { %8681 = vmatprep.subr.msk.mxu0 %vm13604_vm9, %v11906_v40  ;;  %v6483_v40 = vsel %vm13611_vm3, %v11916_v59, 0.0  ;;  %vm13617_vm14 = vmmov %vm13613_vm8  ;;  %vm13620_vm3 = vcmask 121856  }
 0xb3b   : > { %v12021_v44 = vpop.permute.xlu1 %6259  ;;  %6554 = vmatpush1.msra.mxu0 %v6517_v25  ;;  %v12023_v37 = vpop.permute.xlu0 %6751 }
 0xb3c   : > { %8682 = vmatprep.subr.msk.mxu0 %vm9517_vm2, %v6504_v28 }
 0xb3d   : > { %8683 = vmatpush1.msk.msra.mxu0 %vm9522_vm4, %v6498_v2  ;;  %v6478_v2 = vsel %vm13610_vm0, %v6474_v32, %v6476_v43  ;;  %vm13619_vm0 = vcmask 924672  }
 0xb3e   : > { %8684 = vmatprep.subr.msk.mxu0 %vm9517_vm2, %v6503_v38  ;;  %vm13621_vm7 = vmmov %vm13619_vm0 }
 0xb3f   : > { %v12037_v25 = vpop.permute.xlu1 %6741  ;;  %8685 = vmatpush1.msk.msra.mxu0 %vm9522_vm4, %v6497_v21  ;;  %v12041_v63 = vpop.permute.xlu0 %6257 }
 0xb40   : > { %8686 = vmatprep.subr.msk.mxu0 %vm9532_vm6, %v6484_v62 }
 0xb41   : > { %8687 = vmatpush1.msk.msra.mxu0 %vm9527_vm5, %v6478_v2 }
 0xb42   : > { %8688 = vmatprep.subr.msk.mxu0 %vm9532_vm6, %v6483_v40 }
 0xb43   : > { %v12055_v34 = vpop.permute.xlu1 %6243  ;;  %8689 = vmatpush1.msk.msra.mxu0 %vm9527_vm5, %v6477_v53  ;;  %v12059_v43 = vpop.permute.xlu0 %6739 }
 0xb44   : > { %6563 = vmatprep.subr.mxu0 %v11557_v8  ;;  %v6361_v8 = vsel %vm13615_vm12, %v11979_v27, %v11946_v56  ;;  %v6348_v27 = vsel %vm13619_vm0, %v6340_v42, 0.0  ;;  %vm13625_vm12 = vmmov %vm13620_vm3 }
 0xb45   : > { %6564 = vmatpush1.msra.mxu0 %v11828_v1 }
 0xb46   : > { %6565 = vmatprep.subr.mxu0 %v11702_v17  ;;  %v6457_v17 = vsel %vm13617_vm14, %v11954_v13, %v11914_v23  ;;  %vm13627_vm14 = vcmask 1039360  }
 0xb47   : > { %v6530_v11 = vpop.permute.xlu1 %6529  ;;  %6566 = vmatpush1.msra.mxu0 %v11738_v10  ;;  %v12065_v59 = vpop.permute.xlu0 %6735  ;;  %v6463_v10 = vsel %vm13618_vm10, 0.0, %v11954_v13  ;;  %vm13628_vm10 = vcmask 138240  }
 0xb4b   : > { %v6454_v61 = vpop.permute.xlu0 %6453  ;;  %v6358_v31 = vpop.permute.xlu1 %6357 }
 0xb4c   : > { %v6464_v28 = vsel %vm13613_vm8, 0.0, %v6454_v61  ;;  %v6362_v32 = vsel %vm13604_vm9, %v6358_v31, %v6360_v35  ;;  %v6458_v38 = vsel %vm13614_vm13, %v6454_v61, %v6456_v19  ;;  %vm13622_vm8 = vmmov %vm13620_vm3 }
 0xb4d   : > { %8690 = vmatprep.subr.msk.mxu0 %vm9517_vm2, %v6458_v38  ;;  %6635 = vmatpush1.msra.mxu1 %v6362_v32  ;;  %vm13623_vm9 = vmmov %vm13619_vm0 }
 0xb4e   : > { %8691 = vmatpush1.msk.msra.mxu0 %vm9522_vm4, %v6464_v28  ;;  %8713 = vmatprep.subr.msk.mxu1 %vm13616_vm11, %v11946_v56  ;;  %v6347_v56 = vsel %vm13623_vm9, %v11932_v15, 0.0  ;;  %vm13624_vm13 = vmmov %vm13619_vm0 }
 0xb4f   : > { %8692 = vmatprep.subr.msk.mxu0 %vm9517_vm2, %v6457_v17  ;;  %v6434_v1 = vpop.permute.xlu0 %6433  ;;  %6637 = vmatpush1.msra.mxu1 %v6361_v8  ;;  %v6338_v35 = vpop.permute.xlu1 %6337  ;;  %v6341_v13 = vsel %vm13624_vm13, %v11983_v50, %v11932_v15  ;;  %vm13626_vm11 = vmmov %vm13620_vm3  ;;  %v6328_v15 = vsel %vm13627_vm14, %v12010_v48, 0.0  ;;  %v6228_v8 = vld [vmem:[%s13636_s9 + $0x8] sm:$0xff] }
 0xb50   : > { %v6444_v19 = vsel %vm13620_vm3, 0.0, %v6434_v1  ;;  %v6342_v21 = vsel %vm13621_vm7, %v6338_v35, %v6340_v42  ;;  %8693 = vmatpush1.msk.msra.mxu0 %vm9522_vm4, %v6463_v10  ;;  %8714 = vmatprep.subr.msk.mxu1 %vm9517_vm2, %v6348_v27  ;;  %v6438_v23 = vsel %vm13622_vm8, %v6434_v1, %v11993_v6  ;;  %v6437_v6 = vsel %vm13625_vm12, %v11963_v52, %v11922_v9  ;;  %vm13629_vm0 = vmmov %vm13628_vm10 }
 0xb51   : > { %8694 = vmatprep.subr.msk.mxu0 %vm9532_vm6, %v6438_v23  ;;  %8715 = vmatpush1.msk.msra.mxu1 %vm9522_vm4, %v6342_v21  ;;  %v6443_v42 = vsel %vm13626_vm11, 0.0, %v11963_v52  ;;  %v6421_v52 = vsel %vm1018_vm1, %v11967_v39, %v11930_v29  ;;  %vm13630_vm3 = vmmov %vm13629_vm0  ;;  %vm13632_vm8 = vcmask 908288   ;;  %vm13637_vm11 = vcmask 916480   ;;  %v13654_v21 = vld [vmem:[#allocation20_spill] sm:$0xff] }
 0xb52   : > { %8695 = vmatpush1.msk.msra.mxu0 %vm9527_vm5, %v6444_v19  ;;  %8716 = vmatprep.subr.msk.mxu1 %vm9517_vm2, %v6347_v56  ;;  %v6401_v29 = vsel %vm13630_vm3, %v11971_v49, %v11938_v45  ;;  %vm13631_vm7 = vmmov %vm13629_vm0  ;;  %vm13641_vm3 = vcmask 924672   ;;  %v13655_v56 = vld [vmem:[#allocation26_spill] sm:$0xff] }
 0xb53   : > { %8696 = vmatprep.subr.msk.mxu0 %vm9532_vm6, %v6437_v6  ;;  %v6418_v62 = vpop.permute.xlu0 %6417  ;;  %8717 = vmatpush1.msk.msra.mxu1 %vm9522_vm4, %v6341_v13  ;;  %v6407_v40 = vsel %vm13631_vm7, 0.0, %v11971_v49  ;;  %vm13633_vm9 = vmmov %vm13632_vm8  ;;  %v12155_v61 = vpop.permute.xlu1 %6737  ;;  %v6223_v49 = vld [vmem:[%s13583_s26] sm:$0xff]  ;;  %v13656_v13 = vld [vmem:[#allocation25_spill] sm:$0xff] }
 0xb54   : > { %8697 = vmatpush1.msk.msra.mxu0 %vm9527_vm5, %v6443_v42  ;;  %8718 = vmatprep.subr.msk.mxu1 %vm9532_vm6, %v6328_v15  ;;  %v6422_v9 = vsel %vm1018_vm1, %v6418_v62, %v11997_v0  ;;  %v6534_v53 = vsel %vm13633_vm9, %v6530_v11, %v12007_v3  ;;  %vm13634_vm13 = vmmov %vm13632_vm8  ;;  %v6226_v11 = vld [vmem:[%s13583_s26 + $0x18] sm:$0xff]  ;;  %v13661_v15 = vld [vmem:[#allocation27_spill] sm:$0xff] }
 0xb55   : > { %6575 = vmatprep.subr.mxu0 %v6422_v9  ;;  %v6539_v45 = vsel %vm13634_vm13, %v11924_v33, 0.0  ;;  %vm13635_vm12 = vmmov %vm13632_vm8  ;;  %vm13645_vm13 = vcmask 1039360   ;;  %v13658_v42 = vld [vmem:[#allocation22_spill] sm:$0xff]  ;;  %v13662_v9 = vld [vmem:[#allocation29_spill] sm:$0xff] }
 0xb56   : > { %8699 = vmatpush1.msk.msra.mxu0 %vm9726_vm15, %v6418_v62  ;;  %v6533_v31 = vsel %vm13635_vm12, %v11977_v55, %v11924_v33  ;;  %vm13638_vm14 = vmmov %vm13637_vm11  ;;  %v6225_v33 = vld [vmem:[%s13583_s26 + $0x10] sm:$0xff]  ;;  %v12232_v10 = vsel %vm13645_vm13, %v11842_v51, 0.0 }
 0xb57   : > { %6577 = vmatprep.subr.mxu0 %v6421_v52  ;;  %v6398_v50 = vpop.permute.xlu0 %6397  ;;  %v12179_v28 = vsel %vm13638_vm14, %v11840_v41, %v11781_v58  ;;  %v12184_v55 = vpop.permute.xlu1 %6239  ;;  %v12199_v41 = vsel %vm13641_vm3, %v11801_v36, 0.0  ;;  %vm13642_vm7 = vmmov %vm13641_vm3  ;;  %v13663_v52 = vld [vmem:[#allocation28_spill] sm:$0xff] }
 0xb58   : > { %v6408_v2 = vsel %vm13628_vm10, 0.0, %v6398_v50  ;;  %8701 = vmatpush1.msk.msra.mxu0 %vm9726_vm15, %v11967_v39  ;;  %v6402_v0 = vsel %vm13629_vm0, %v6398_v50, %v12001_v46  ;;  %v6540_v46 = vsel %vm13632_vm8, %v12007_v3, 0.0  ;;  %vm13639_vm10 = vmmov %vm13637_vm11  ;;  %v12204_v17 = vsel %vm13642_vm7, %v11813_v14, %v11801_v36 }
 0xb59   : > { %8702 = vmatprep.subr.msk.mxu0 %vm9517_vm2, %v6402_v0  ;;  %vm13640_vm0 = vmmov %vm13639_vm10  ;;  %vm13657_vm7 = vcmask 7168  }
 0xb5a   : > { %8703 = vmatpush1.msk.msra.mxu0 %vm9522_vm4, %v6408_v2  ;;  %v12193_v38 = vsel %vm13640_vm0, %v11852_v5, %v11792_v47  ;;  %vm13643_vm8 = vmmov %vm13641_vm3  ;;  %v12283_v6 = vsel %vm13657_vm7, %v13656_v13, %v13655_v56  ;;  %v13665_v2 = vld [vmem:[#allocation23_spill] sm:$0xff] }
 0xb5b   : > { %8704 = vmatprep.subr.msk.mxu0 %vm9517_vm2, %v6401_v29  ;;  %v12147_v39 = vpop.permute.xlu0 %6237  ;;  %v12214_v5 = vsel %vm13643_vm8, %v11819_v26, 0.0  ;;  %vm13644_vm9 = vmmov %vm13641_vm3 }
 0xb5c   : > { %8705 = vmatpush1.msk.msra.mxu0 %vm9522_vm4, %v6407_v40  ;;  %v12220_v36 = vsel %vm13644_vm9, %v11834_v60, %v11819_v26  ;;  %vm13646_vm12 = vmmov %vm13645_vm13  ;;  %v12239_v26 = vpop.permute.xlu1 %6721  ;;  %v13667_v40 = vld [vmem:[#allocation24_spill] sm:$0xff] }
 0xb5d   : > { %8706 = vmatprep.subr.msk.mxu0 %vm9532_vm6, %v6540_v46  ;;  %v12237_v1 = vsel %vm13646_vm12, %v11854_v54, %v11842_v51  ;;  %vm13660_vm8 = vmmov %vm13657_vm7  ;;  %v13668_v46 = vld [vmem:[#allocation31_spill] sm:$0xff] }
 0xb5e   : > { %8707 = vmatpush2.msk.msra.mxu0 %vm9527_vm5, %v6534_v53  ;;  %v12289_v62 = vsel %vm13660_vm8, 0.0, %v13656_v13  ;;  %vm13664_vm9 = vmmov %vm13657_vm7  ;;  %v13669_v53 = vld [vmem:[#allocation30_spill] sm:$0xff] }
 0xb5f   : > { %8708 = vmatprep.subr.msk.mxu0 %vm9532_vm6, %v6539_v45  ;;  %v12169_v3 = vpop.permute.xlu0 %6719  ;;  %v12298_v50 = vsel %vm13664_vm9, %v13663_v52, %v13662_v9  ;;  %vm13666_vm13 = vmmov %vm13657_vm7  ;;  %v13684_v9 = vld [vmem:[#allocation33_spill] sm:$0xff] }
 0xb60   : > { %8709 = vmatpush2.msk.msra.mxu0 %vm9527_vm5, %v6533_v31  ;;  %v6716_v19 = vpop.permute.xlu1 %6715  ;;  %v12306_v0 = vsel %vm13666_vm13, 0.0, %v13663_v52  ;;  %v13672_v31 = vld [vmem:[#allocation37_spill] sm:$0xff]  ;;  %v13685_v52 = vld [vmem:[#allocation36_spill] sm:$0xff] }
 0xb61   : > { %8744 = vmatprep.subr.msk.mxu0 %vm13637_vm11, %v11781_v58  ;;  %6616 = vmatmul.mubr.f32.vlgmr.msra.gmra.mxu0 %v6223_v49  ;;  %vm13647_vm11 = vmmov %vm13646_vm12  ;;  %vm13670_vm12 = vcmask 121856  }
 0xb62   : > { %6874 = vmatpush1.msra.mxu0 %v12179_v28  ;;  %8711 = vmatprep.mubr.msk.f32.mxu0 %vm1018_vm1, %v6226_v11  ;;  %v12249_v60 = vsel %vm13647_vm11, %v11860_v7, 0.0  ;;  %vm13648_vm14 = vmmov %vm13647_vm11  ;;  %v12315_v45 = vsel %vm13670_vm12, %v13669_v53, %v13668_v46 }
 0xb63   : > { %8745 = vmatprep.subr.msk.mxu0 %vm13639_vm10, %v11792_v47  ;;  %v12188_v32 = vpop.permute.xlu0 %6375  ;;  %v12254_v35 = vsel %vm13648_vm14, %v11862_v57, %v11860_v7  ;;  %vm13649_vm10 = vmmov %vm13647_vm11  ;;  %v13651_v57 = vld [vmem:[#allocation34_spill] sm:$0xff] }
 0xb64   : > { %6876 = vmatpush1.msra.mxu0 %v12193_v38  ;;  %vm13650_vm0 = vmmov %vm13649_vm10 }
 0xb65   : > { %8746 = vmatprep.subr.msk.mxu0 %vm9517_vm2, %v12199_v41  ;;  %6622 = vmatmul.mubr.f32.gmra.mxu0 %v6225_v33  ;;  %v6327_v7 = vsel %vm13650_vm0, %v11940_v12, 0.0  ;;  %vm13652_vm3 = vmmov %vm13650_vm0 }
 0xb66   : > { %8747 = vmatpush1.msk.msra.mxu0 %vm9522_vm4, %v12204_v17  ;;  %8774 = vmatprep.mubr.msk.f32.mxu0 %vm1018_vm1, %v6228_v8  ;;  %v6321_v27 = vsel %vm13652_vm3, %v13651_v57, %v11940_v12  ;;  %v13659_v12 = vld [vmem:[#allocation19_spill] sm:$0xff]  ;;  %vm13671_vm11 = vmmov %vm13657_vm7  ;;  %v6854_v8 = vpop.permute.xlu1 %6853 }
 0xb67   : > { %8748 = vmatprep.subr.msk.mxu0 %vm9517_vm2, %v12214_v5  ;;  %v12225_v14 = vpop.permute.xlu0 %6717  ;;  %vm13673_vm14 = vmmov %vm13657_vm7 }
 0xb68   : > { %8749 = vmatpush1.msk.msra.mxu0 %vm9522_vm4, %v12220_v36  ;;  %vm13678_vm3 = vmmov %vm13657_vm7 }
 0xb69   : > { %8750 = vmatprep.subr.msk.mxu0 %vm9532_vm6, %v12232_v10  ;;  %vm13679_vm7 = vmmov %vm13678_vm3 }
 0xb6a   : > { %8751 = vmatpush1.msk.msra.mxu0 %vm9527_vm5, %v12237_v1 }
 0xb6b   : > { %8752 = vmatprep.subr.msk.mxu0 %vm9532_vm6, %v12249_v60  ;;  %v6318_v51 = vpop.permute.xlu0 %6317 }
 0xb6c   : > { %v6322_v54 = vsel %vm13649_vm10, %v6318_v51, %v12010_v48  ;;  %8753 = vmatpush1.msk.msra.mxu0 %vm9527_vm5, %v12254_v35  ;;  %v13653_v48 = vld [vmem:[#allocation21_spill] sm:$0xff]  ;;  %vm13674_vm10 = vmmov %vm13670_vm12 }
 0xb6d   : > { %8719 = vmatpush1.msk.msra.mxu1 %vm9527_vm5, %v6322_v54  ;;  %6885 = vmatprep.subr.mxu0 %v10631_v16  ;;  %v12325_v33 = vsel %vm13674_vm10, 0.0, %v13669_v53  ;;  %vm13675_vm0 = vmmov %vm13674_vm10  ;;  %v13676_v54 = vld [vmem:[#allocation32_spill] sm:$0xff]  ;;  %v13688_v53 = vld [vmem:[#allocation39_spill] sm:$0xff] }
 0xb6e   : > { %8720 = vmatprep.subr.msk.mxu1 %vm9532_vm6, %v6327_v7  ;;  %6886 = vmatpush1.msra.mxu0 %v13653_v48  ;;  %v12340_v51 = vsel %vm13675_vm0, %v12023_v37, %v12014_v4  ;;  %v13677_v7 = vld [vmem:[#allocation35_spill] sm:$0xff]  ;;  %vm13680_vm8 = vmmov %vm13675_vm0 }
 0xb6f   : > { %6887 = vmatprep.subr.mxu0 %v13654_v21  ;;  %v12276_v23 = vpop.permute.xlu0 %6371  ;;  %8721 = vmatpush1.msk.msra.mxu1 %vm9527_vm5, %v6321_v27  ;;  %v6301_v57 = vsel %vm13678_vm3, %v13677_v7, %v13676_v54  ;;  %v6307_v27 = vsel %vm13679_vm7, 0.0, %v13677_v7  ;;  %v12349_v56 = vsel %vm13680_vm8, 0.0, %v12023_v37  ;;  %vm13681_vm9 = vmmov %vm13675_vm0 }
 0xb70   : > { %6646 = vmatprep.subr.mxu1 %v13658_v42  ;;  %6888 = vmatpush1.msra.mxu0 %v13659_v12  ;;  %v13682_v42 = vld [vmem:[#allocation38_spill] sm:$0xff]  ;;  %vm13683_vm13 = vmmov %vm13675_vm0 }
 0xb71   : > { %6647 = vmatpush1.msra.mxu1 %v13661_v15  ;;  %8754 = vmatprep.subr.msk.mxu0 %vm9517_vm2, %v12283_v6  ;;  %v12367_v15 = vsel %vm1018_vm1, %v12059_v43, %v12037_v25  ;;  %vm13686_vm12 = vmmov %vm13675_vm0  ;;  %v12383_v25 = vsel %vm1018_vm1, %v12065_v59, %v12155_v61 }
 0xb72   : > { %6648 = vmatprep.subr.mxu1 %v13665_v2  ;;  %8755 = vmatpush1.msk.msra.mxu0 %vm9522_vm4, %v12289_v62  ;;  %v6281_v2 = vsel %vm13686_vm12, %v13685_v52, %v13684_v9 }
 0xb73   : > { %8756 = vmatprep.subr.msk.mxu0 %vm9517_vm2, %v12298_v50  ;;  %v6298_v29 = vpop.permute.xlu0 %6297  ;;  %6649 = vmatpush1.msra.mxu1 %v13667_v40  ;;  %v6852_v40 = vpop.permute.xlu1 %6851 }
 0xb74   : > { %v6308_v49 = vsel %vm13671_vm11, 0.0, %v6298_v29  ;;  %8757 = vmatpush1.msk.msra.mxu0 %vm9522_vm4, %v12306_v0  ;;  %v6302_v11 = vsel %vm13673_vm14, %v6298_v29, %v13672_v31  ;;  %vm13687_vm11 = vmmov %vm13675_vm0  ;;  %vm13689_vm14 = vcmask 138240  }
 0xb75   : > { %8722 = vmatprep.subr.msk.mxu1 %vm9517_vm2, %v6302_v11  ;;  %8758 = vmatprep.subr.msk.mxu0 %vm9532_vm6, %v12315_v45  ;;  %v6287_v29 = vsel %vm13687_vm11, 0.0, %v13685_v52  ;;  %vm13690_vm10 = vmmov %vm13689_vm14  ;;  %v6227_v52 = vld [vmem:[%s13636_s9] sm:$0xff] }
 0xb76   : > { %8723 = vmatpush1.msk.msra.mxu1 %vm9522_vm4, %v6308_v49  ;;  %8759 = vmatpush1.msk.msra.mxu0 %vm9527_vm5, %v12325_v33  ;;  %v12400_v49 = vsel %vm13689_vm14, %v12169_v3, %v12239_v26  ;;  %v12404_v31 = vsel %vm13690_vm10, 0.0, %v12169_v3  ;;  %vm13691_vm0 = vmmov %vm13690_vm10  ;;  %v6265_v3 = vsel %vm1018_vm1, %v12041_v63, %v12021_v44 }
 0xb77   : > { %8760 = vmatprep.subr.msk.mxu0 %vm9532_vm6, %v12340_v51  ;;  %v6278_v13 = vpop.permute.xlu0 %6277  ;;  %8724 = vmatprep.subr.msk.mxu1 %vm9517_vm2, %v6301_v57  ;;  %v12411_v11 = vsel %vm13691_vm0, %v6716_v19, %v12225_v14  ;;  %vm13692_vm3 = vmmov %vm13691_vm0  ;;  %v6374_v57 = vpop.permute.xlu1 %6373 }
 0xb78   : > { %v6288_v4 = vsel %vm13681_vm9, 0.0, %v6278_v13  ;;  %8725 = vmatpush1.msk.msra.mxu1 %vm9522_vm4, %v6307_v27  ;;  %8761 = vmatpush1.msk.msra.mxu0 %vm9527_vm5, %v12349_v56  ;;  %v6282_v37 = vsel %vm13683_vm13, %v6278_v13, %v13682_v42  ;;  %v12422_v26 = vsel %vm13692_vm3, 0.0, %v6716_v19  ;;  %vm13693_vm7 = vmmov %vm13691_vm0  ;;  %vm13695_vm9 = vcmask 908288  }
 0xb79   : > { %8726 = vmatprep.subr.msk.mxu1 %vm9532_vm6, %v6282_v37  ;;  %6897 = vmatprep.subr.mxu0 %v12367_v15  ;;  %vm13694_vm8 = vmmov %vm13691_vm0  ;;  %v12437_v19 = vsel %vm13695_vm9, %v6854_v8, 0.0 }
 0xb7a   : > { %8727 = vmatpush1.msk.msra.mxu1 %vm9527_vm5, %v6288_v4  ;;  %8763 = vmatpush1.msk.msra.mxu0 %vm9726_vm15, %v12059_v43  ;;  %vm13696_vm13 = vmmov %vm13695_vm9 }
 0xb7b   : > { %v6262_v46 = vpop.permute.xlu0 %6261  ;;  %8728 = vmatprep.subr.msk.mxu1 %vm9532_vm6, %v6281_v2  ;;  %6899 = vmatprep.subr.mxu0 %v12383_v25  ;;  %v12440_v7 = vsel %vm13696_vm13, %v6852_v40, %v6854_v8  ;;  %vm13697_vm12 = vmmov %vm13691_vm0  ;;  %v6848_v4 = vpop.permute.xlu1 %6847  ;;  %v6222_v2 = vld [vmem:[%s13591_s18 + $0x18] sm:$0xff]  ;;  %v6229_v40 = vld [vmem:[%s13636_s9 + $0x10] sm:$0xff] }
 0xb7c   : > { %8729 = vmatpush1.msk.msra.mxu1 %vm9527_vm5, %v6287_v29  ;;  %8765 = vmatpush1.msk.msra.mxu0 %vm9726_vm15, %v12065_v59  ;;  %v6266_v61 = vsel %vm1018_vm1, %v6262_v46, %v13688_v53  ;;  %vm13698_vm11 = vmmov %vm13691_vm0  ;;  %v6221_v29 = vld [vmem:[%s13591_s18 + $0x10] sm:$0xff]  ;;  %v6975_v53 = vld [vmem:[%s13707_s1 + $0x18] sm:$0xff] }
 0xb7d   : > { %6658 = vmatprep.subr.mxu1 %v6266_v61  ;;  %8766 = vmatprep.subr.msk.mxu0 %vm9517_vm2, %v12400_v49  ;;  %vm13699_vm14 = vmmov %vm13695_vm9  ;;  %v6974_v61 = vld [vmem:[%s13707_s1 + $0x10] sm:$0xff] }
 0xb7e   : > { %8731 = vmatpush1.msk.msra.mxu1 %vm9726_vm15, %v6262_v46  ;;  %8767 = vmatpush1.msk.msra.mxu0 %vm9522_vm4, %v12404_v31  ;;  %v6384_v27 = vsel %vm13699_vm14, %v12188_v32, 0.0  ;;  %vm13700_vm10 = vmmov %vm13695_vm9  ;;  %v6972_v46 = vld [vmem:[%s13707_s1] sm:$0xff] }
 0xb7f   : > { %v6242_v54 = vpop.permute.xlu0 %6241  ;;  %6660 = vmatprep.subr.mxu1 %v6265_v3  ;;  %8768 = vmatprep.subr.msk.mxu0 %vm9517_vm2, %v12411_v11  ;;  %v6378_v13 = vsel %vm13700_vm10, %v6374_v57, %v12188_v32  ;;  %vm13701_vm0 = vmmov %vm13695_vm9  ;;  %vm13705_vm9 = vcmask 916480  }
 0xb80   : > { %v6252_v14 = vsel %vm13693_vm7, 0.0, %v6242_v54  ;;  %8733 = vmatpush1.msk.msra.mxu1 %vm9726_vm15, %v12041_v63  ;;  %8769 = vmatpush1.msk.msra.mxu0 %vm9522_vm4, %v12422_v26  ;;  %v6246_v44 = vsel %vm13694_vm8, %v6242_v54, %v12055_v34  ;;  %v6245_v63 = vsel %vm13697_vm12, %v12147_v39, %v12184_v55  ;;  %v6251_v34 = vsel %vm13698_vm11, 0.0, %v12147_v39  ;;  %v6219_v55 = vld [vmem:[%s13591_s18] sm:$0xff]  ;;  %vm13702_vm3 = vmmov %vm13701_vm0 }
 0xb81   : > { %8734 = vmatprep.subr.msk.mxu1 %vm9517_vm2, %v6246_v44  ;;  %8770 = vmatprep.subr.msk.mxu0 %vm9532_vm6, %v12437_v19  ;;  %v6383_v39 = vsel %vm13701_vm0, %v12276_v23, 0.0  ;;  %vm13703_vm7 = vmmov %vm13701_vm0 }
 0xb82   : > { %8735 = vmatpush1.msk.msra.mxu1 %vm9522_vm4, %v6252_v14  ;;  %8771 = vmatpush2.msk.msra.mxu0 %vm9527_vm5, %v12440_v7  ;;  %vm13704_vm8 = vmmov %vm13701_vm0  ;;  %vm13718_vm0 = vcmask 924672  }
 0xb83   : > { %v6370_v8 = vpop.permute.xlu0 %6369  ;;  %8736 = vmatprep.subr.msk.mxu1 %vm9517_vm2, %v6245_v63  ;;  %vm13706_vm13 = vmmov %vm13705_vm9 }
 0xb84   : > { %8737 = vmatpush1.msk.msra.mxu1 %vm9522_vm4, %v6251_v34  ;;  %v6377_v42 = vsel %vm13702_vm3, %v6370_v8, %v12276_v23  ;;  %v6230_v23 = vld [vmem:[%s13636_s9 + $0x18] sm:$0xff]  ;;  %vm13714_vm12 = vmmov %vm13705_vm9 }
 0xb85   : > { %8738 = vmatprep.subr.msk.mxu1 %vm9532_vm6, %v6384_v27  ;;  %vm13715_vm11 = vmmov %vm13705_vm9 }
 0xb86   : > { %8739 = vmatpush2.msk.msra.mxu1 %vm9527_vm5, %v6378_v13  ;;  %vm13716_vm14 = vmmov %vm13705_vm9 }
 0xb87   : > { %v6850_v37 = vpop.permute.xlu0 %6849  ;;  %8740 = vmatprep.subr.msk.mxu1 %vm9532_vm6, %v6383_v39  ;;  %vm13717_vm10 = vmmov %vm13705_vm9 }
 0xb88   : > { %v6855_v32 = vsel %vm13703_vm7, %v6848_v4, %v6850_v37  ;;  %8741 = vmatpush2.msk.msra.mxu1 %vm9527_vm5, %v6377_v42  ;;  %v6861_v9 = vsel %vm13704_vm8, %v6850_v37, 0.0  ;;  %vm13719_vm3 = vmmov %vm13718_vm0 }
 0xb89   : > { %6699 = vmatmul.mubr.f32.vlgmr.msra.gmra.mxu1 %v6219_v55  ;;  %8772 = vmatprep.subr.msk.mxu0 %vm9532_vm6, %v6861_v9  ;;  %vm13720_vm7 = vmmov %vm13718_vm0 }
 0xb8a   : > { %8776 = vmatprep.subr.msk.mxu1 %vm13705_vm9, %v11781_v58  ;;  %8773 = vmatpush2.msk.msra.mxu0 %vm9527_vm5, %v6855_v32  ;;  %vm13721_vm8 = vmmov %vm13718_vm0  ;;  %vm13722_vm9 = vcmask 1039360  }
 0xb8b   : > { %7141 = vmatpush1.msra.mxu1 %v12179_v28  ;;  %6938 = vmatmul.mubr.f32.vlgmr.msra.gmra.mxu0 %v6227_v52 }
 0xb8c   : > { %8777 = vmatprep.subr.msk.mxu1 %vm13706_vm13, %v11792_v47  ;;  %8743 = vmatprep.mubr.msk.f32.mxu1 %vm1018_vm1, %v6222_v2  ;;  %vm13723_vm13 = vmmov %vm13722_vm9 }
 0xb8d   : > { %7143 = vmatpush1.msra.mxu1 %v12193_v38  ;;  %8775 = vmatprep.mubr.msk.f32.mxu0 %vm1018_vm1, %v6230_v23 }
 0xb8e   : > { %6705 = vmatmul.mubr.f32.gmra.mxu1 %v6221_v29  ;;  %8778 = vmatprep.subr.msk.mxu1 %vm9517_vm2, %v12199_v41 }
 0xb8f   : > { %8779 = vmatpush1.msk.msra.mxu1 %vm9522_vm4, %v12204_v17  ;;  %6944 = vmatmul.mubr.f32.gmra.mxu0 %v6229_v40 }
 0xb90   : > { %8780 = vmatprep.subr.msk.mxu1 %vm9517_vm2, %v12214_v5  ;;  %v6957_v5 = vpop.permute.xlu1 %6956 }
 0xb91   : > { %8781 = vmatpush1.msk.msra.mxu1 %vm9522_vm4, %v12220_v36 }
 0xb92   : > { %8782 = vmatprep.subr.msk.mxu1 %vm9532_vm6, %v12232_v10 }
 0xb93   : > { %8783 = vmatpush1.msk.msra.mxu1 %vm9527_vm5, %v12237_v1 }
 0xb94   : > { %8784 = vmatprep.subr.msk.mxu1 %vm9532_vm6, %v12249_v60 }
 0xb95   : > { %8785 = vmatpush1.msk.msra.mxu1 %vm9527_vm5, %v12254_v35 }
 0xb96   : > { %7152 = vmatprep.subr.mxu1 %v10631_v16 }
 0xb97   : > { %7153 = vmatpush1.msra.mxu1 %v13653_v48 }
 0xb98   : > { %7154 = vmatprep.subr.mxu1 %v13654_v21 }
 0xb99   : > { %7155 = vmatpush1.msra.mxu1 %v13659_v12 }
 0xb9a   : > { %8786 = vmatprep.subr.msk.mxu1 %vm9517_vm2, %v12283_v6 }
 0xb9b   : > { %8787 = vmatpush1.msk.msra.mxu1 %vm9522_vm4, %v12289_v62 }
 0xb9c   : > { %8788 = vmatprep.subr.msk.mxu1 %vm9517_vm2, %v12298_v50  ;;  %v6962_v50 = vpop.permute.xlu0 %6961 }
 0xb9d   : > { %8789 = vmatpush1.msk.msra.mxu1 %vm9522_vm4, %v12306_v0 }
 0xb9e   : > { %8790 = vmatprep.subr.msk.mxu1 %vm9532_vm6, %v12315_v45 }
 0xb9f   : > { %8791 = vmatpush1.msk.msra.mxu1 %vm9527_vm5, %v12325_v33 }
 0xba0   : > { %8792 = vmatprep.subr.msk.mxu1 %vm9532_vm6, %v12340_v51 }
 0xba1   : > { %8793 = vmatpush1.msk.msra.mxu1 %vm9527_vm5, %v12349_v56 }
 0xba2   : > { %7164 = vmatprep.subr.mxu1 %v12367_v15  ;;  %v6973_v15 = vld [vmem:[%s13707_s1 + $0x8] sm:$0xff]  ;;  %s13742_s1 = smov 112  }
 0xba3   : > { %8795 = vmatpush1.msk.msra.mxu1 %vm9726_vm15, %v12059_v43  ;;  %8806 = vmatprep.mubr.msk.f32.mxu1 %vm1018_vm1, %v6973_v15 }
 0xba4   : > { %7166 = vmatprep.subr.mxu1 %v12383_v25  ;;  %v6969_v25 = vld [vmem:[%s13709_s5 + $0x8] sm:$0xff] }
 0xba5   : > { %8797 = vmatpush1.msk.msra.mxu1 %vm9726_vm15, %v12065_v59  ;;  %8838 = vmatprep.mubr.msk.f32.mxu0 %vm1018_vm1, %v6969_v25 }
 0xba6   : > { %8798 = vmatprep.subr.msk.mxu1 %vm9517_vm2, %v12400_v49  ;;  %v6976_v49 = vld [vmem:[%s13713_s6] sm:$0xff] }
 0xba7   : > { %8799 = vmatpush1.msk.msra.mxu1 %vm9522_vm4, %v12404_v31  ;;  %v6977_v31 = vld [vmem:[%s13713_s6 + $0x8] sm:$0xff]  ;;  %s13744_s6 = sld [smem:[#allocation15_spill]] }
 0xba8   : > { %8800 = vmatprep.subr.msk.mxu1 %vm9517_vm2, %v12411_v11 }
 0xba9   : > { %8801 = vmatpush1.msk.msra.mxu1 %vm9522_vm4, %v12422_v26 }
 0xbaa   : > { %8802 = vmatprep.subr.msk.mxu1 %vm9532_vm6, %v12437_v19 }
 0xbab   : > { %8803 = vmatpush2.msk.msra.mxu1 %vm9527_vm5, %v12440_v7 }
 0xbac   : > { %8804 = vmatprep.subr.msk.mxu1 %vm9532_vm6, %v6861_v9 }
 0xbad   : > { %8805 = vmatpush2.msk.msra.mxu1 %vm9527_vm5, %v6855_v32 }
 0xbae   : > { %7205 = vmatmul.mubr.f32.vlgmr.msra.gmra.mxu1 %v6972_v46 }
 0xbaf   : > { %8807 = vmatprep.mubr.msk.f32.mxu1 %vm1018_vm1, %v6975_v53 }
 0xbb2   : > { %7211 = vmatmul.mubr.f32.gmra.mxu1 %v6974_v61 }
 0xc21   : > { %v6617_v16 = vpop.f32.mrf.mxu0 }
 0xc23   : > { %v6619_v58 = vpop.f32.mrf.mxu0 }
 0xc25   : > { %v6623_v47 = vpop.f32.mrf.mxu0 }
 0xc27   : > { %v6625_v43 = vpop.f32.mrf.mxu0 }
 0xc49   : > { %v6700_v59 = vpop.f32.mrf.mxu1 }
 0xc4a   : > { %v6701_v28 = vadd.f32 %v6700_v59, %v6617_v16 }
 0xc4b   : > { %v6702_v38 = vpop.f32.mrf.mxu1  ;;  %v6939_v41 = vpop.f32.mrf.mxu0 }
 0xc4c   : > { %v6950_v17 = vadd.f32 %v6939_v41, %v6701_v28  ;;  %v6703_v36 = vadd.f32 %v6702_v38, %v6619_v58 }
 0xc4d   : > { %v6941_v1 = vpop.f32.mrf.mxu0 }
 0xc4e   : > { %v12579_v10 = vadd.f32 %v6957_v5, %v6950_v17  ;;  %v6951_v60 = vadd.f32 %v6941_v1, %v6703_v36  ;;  %v6706_v35 = vpop.f32.mrf.mxu1 }
 0xc4f   : > { %v6707_v48 = vadd.f32 %v6706_v35, %v6623_v47  ;;  %v6945_v6 = vpop.f32.mrf.mxu0 }
 0xc50   : > { %7078 = vrot.lane.b32.xlu1 %v12579_v10, %s13569_s10  ;;  %7098 = vrot.lane.b32.xlu0 %v12579_v10, %s13486_s11  ;;  %v12589_v21 = vadd.f32 %v6957_v5, %v6951_v60  ;;  %v6708_v62 = vpop.f32.mrf.mxu1 }
 0xc51   : > { %v6952_v12 = vadd.f32 %v6945_v6, %v6707_v48  ;;  %v6709_v0 = vadd.f32 %v6708_v62, %v6625_v43  ;;  %v6947_v33 = vpop.f32.mrf.mxu0 }
 0xc53   : > { %v12599_v45 = vadd.f32 %v6962_v50, %v6952_v12  ;;  %v6953_v51 = vadd.f32 %v6947_v33, %v6709_v0 }
 0xc54   : > { %7058 = vrot.lane.b32.xlu1 %v12579_v10, %s13482_s2  ;;  %7038 = vrot.lane.b32.xlu0 %v12579_v10, %s13484_s20 }
 0xc55   : > { %v12609_v56 = vadd.f32 %v6962_v50, %v6953_v51 }
 0xc58   : > { %7100 = vrot.lane.b32.xlu1 %v12589_v21, %s13486_s11  ;;  %7080 = vrot.lane.b32.xlu0 %v12589_v21, %s13569_s10 }
 0xc5c   : > { %7040 = vrot.lane.b32.xlu1 %v12589_v21, %s13484_s20  ;;  %7060 = vrot.lane.b32.xlu0 %v12589_v21, %s13482_s2 }
 0xc60   : > { %7082 = vrot.lane.b32.xlu1 %v12599_v45, %s13569_s10  ;;  %7102 = vrot.lane.b32.xlu0 %v12599_v45, %s13486_s11 }
 0xc64   : > { %7062 = vrot.lane.b32.xlu1 %v12599_v45, %s13482_s2  ;;  %7042 = vrot.lane.b32.xlu0 %v12599_v45, %s13484_s20  ;;  %s13710_s2 = smov 16   ;;  %s13711_s20 = smov 127  }
 0xc68   : > { %7104 = vrot.lane.b32.xlu1 %v12609_v56, %s13486_s11  ;;  %7022 = vrot.lane.b32.xlu0 %v12599_v45, %s13708_s3  ;;  %s13712_s11 = smov 1  }
 0xc6c   : > { %7020 = vrot.lane.b32.xlu1 %v12589_v21, %s13708_s3  ;;  %7084 = vrot.lane.b32.xlu0 %v12609_v56, %s13569_s10 }
 0xc70   : > { %7004 = vrot.lane.b32.xlu1 %v12589_v21, %s13710_s2  ;;  %7064 = vrot.lane.b32.xlu0 %v12609_v56, %s13711_s20 }
 0xc74   : > { %6984 = vrot.lane.b32.xlu1 %v12589_v21, %s13579_s0  ;;  %7018 = vrot.lane.b32.xlu0 %v12579_v10, %s13708_s3 }
 0xc78   : > { %7044 = vrot.lane.b32.xlu1 %v12609_v56, %s13712_s11  ;;  %7006 = vrot.lane.b32.xlu0 %v12599_v45, %s13710_s2 }
 0xc7c   : > { %7024 = vrot.lane.b32.xlu1 %v12609_v56, %s13708_s3  ;;  %7002 = vrot.lane.b32.xlu0 %v12579_v10, %s13710_s2 }
 0xc80   : > { %7008 = vrot.lane.b32.xlu1 %v12609_v56, %s13710_s2  ;;  %6986 = vrot.lane.b32.xlu0 %v12599_v45, %s13579_s0 }
 0xc84   : > { %6988 = vrot.lane.b32.xlu1 %v12609_v56, %s13579_s0  ;;  %6982 = vrot.lane.b32.xlu0 %v12579_v10, %s13579_s0 }
 0xc88   : > { %7118 = vrot.lane.b32.xlu1 %v12599_v45, %s13577_s16  ;;  %7120 = vrot.lane.b32.xlu0 %v12609_v56, %s13577_s16 }
 0xc8c   : > { %7114 = vrot.lane.b32.xlu1 %v12579_v10, %s13577_s16  ;;  %7116 = vrot.lane.b32.xlu0 %v12589_v21, %s13577_s16 }
 0xc90   : > { %7302 = vperm.xlu1 %9228, %v6976_v49   ;;  %7307 = vperm.xlu0 %9227, %v6977_v31  }
 0xcc2   : > { %v7079_v11 = vpop.permute.xlu1 %7078  ;;  %v7099_v3 = vpop.permute.xlu0 %7098 }
 0xcc6   : > { %v7059_v26 = vpop.permute.xlu1 %7058  ;;  %v7039_v54 = vpop.permute.xlu0 %7038 }
 0xcca   : > { %v7101_v14 = vpop.permute.xlu1 %7100  ;;  %v7081_v44 = vpop.permute.xlu0 %7080 }
 0xccb   : > { %v7106_v55 = vsel %vm13717_vm10, %v7099_v3, %v7101_v14  ;;  %v7092_v9 = vsel %vm13720_vm7, %v7081_v44, 0.0  ;;  %v7086_v52 = vsel %vm13721_vm8, %v7079_v11, %v7081_v44  ;;  %vm13730_vm7 = vcmask 121856   ;;  %v6968_v3 = vld [vmem:[%s13709_s5] sm:$0xff] }
 0xccc   : > { %vm13731_vm8 = vmmov %vm13730_vm7 }
 0xcce   : > { %v7041_v19 = vpop.permute.xlu1 %7040  ;;  %v7061_v7 = vpop.permute.xlu0 %7060 }
 0xcd2   : > { %v7083_v57 = vpop.permute.xlu1 %7082  ;;  %v7103_v63 = vpop.permute.xlu0 %7102 }
 0xcd6   : > { %v7063_v34 = vpop.permute.xlu1 %7062  ;;  %v7043_v8 = vpop.permute.xlu0 %7042 }
 0xcda   : > { %v7105_v27 = vpop.permute.xlu1 %7104  ;;  %v7023_v13 = vpop.permute.xlu0 %7022 }
 0xcdb   : > { %8808 = vmatprep.subr.msk.mxu0 %vm13714_vm12, %v7105_v27  ;;  %v7107_v39 = vsel %vm13715_vm11, %v7103_v63, %v7105_v27  ;;  %vm13724_vm12 = vmmov %vm13722_vm9 }
 0xcdc   : > { %7224 = vmatpush1.msra.mxu0 %v7107_v39  ;;  %v7072_v16 = vsel %vm13724_vm12, %v7061_v7, 0.0  ;;  %vm13725_vm11 = vmmov %vm13722_vm9  ;;  %vm13734_vm12 = vcmask 138240  }
 0xcdd   : > { %8809 = vmatprep.subr.msk.mxu0 %vm13716_vm14, %v7101_v14  ;;  %v7066_v58 = vsel %vm13725_vm11, %v7059_v26, %v7061_v7  ;;  %vm13726_vm14 = vcmask 7168   ;;  %vm13735_vm11 = vmmov %vm13734_vm12  ;;  %v6971_v26 = vld [vmem:[%s13709_s5 + $0x18] sm:$0xff]  ;;  %v7206_v14 = vpop.f32.mrf.mxu1 }
 0xcde   : > { %v7021_v4 = vpop.permute.xlu1 %7020  ;;  %7226 = vmatpush1.msra.mxu0 %v7106_v55  ;;  %v7085_v42 = vpop.permute.xlu0 %7084  ;;  %vm13727_vm10 = vmmov %vm13726_vm14 }
 0xcdf   : > { %v7087_v37 = vsel %vm13718_vm0, %v7083_v57, %v7085_v42  ;;  %v7093_v32 = vsel %vm13719_vm3, %v7085_v42, 0.0  ;;  %v7053_v41 = vsel %vm13727_vm10, 0.0, %v7043_v8  ;;  %vm13728_vm0 = vmmov %vm13727_vm10 }
 0xce0   : > { %8810 = vmatprep.subr.msk.mxu0 %vm9517_vm2, %v7093_v32  ;;  %v7046_v17 = vsel %vm13728_vm0, %v7039_v54, %v7041_v19  ;;  %vm13729_vm3 = vmmov %vm13728_vm0  ;;  %vm13738_vm0 = vcmask 908288  }
 0xce1   : > { %8811 = vmatpush1.msk.msra.mxu0 %vm9522_vm4, %v7087_v37  ;;  %v7052_v5 = vsel %vm13729_vm3, 0.0, %v7039_v54  ;;  %vm13737_vm10 = vmmov %vm13735_vm11  ;;  %v6970_v54 = vld [vmem:[%s13709_s5 + $0x10] sm:$0xff]  ;;  %s13743_s5 = sld [smem:[#allocation14_spill]] }
 0xce2   : > { %v7005_v2 = vpop.permute.xlu1 %7004  ;;  %8812 = vmatprep.subr.msk.mxu0 %vm9517_vm2, %v7092_v9  ;;  %v7065_v23 = vpop.permute.xlu0 %7064  ;;  %vm13739_vm3 = vmmov %vm13738_vm0 }
 0xce3   : > { %v7067_v29 = vsel %vm13722_vm9, %v7063_v34, %v7065_v23  ;;  %8813 = vmatpush1.msk.msra.mxu0 %vm9522_vm4, %v7086_v52  ;;  %v7073_v40 = vsel %vm13723_vm13, %v7065_v23, 0.0  ;;  %vm13732_vm9 = vmmov %vm13730_vm7  ;;  %v7208_v34 = vpop.f32.mrf.mxu1  ;;  %v7318_v23 = vld [vmem:[%s13744_s6] sm:$0xff] }
 0xce4   : > { %8814 = vmatprep.subr.msk.mxu0 %vm9532_vm6, %v7073_v40  ;;  %vm13733_vm13 = vmmov %vm13730_vm7 }
 0xce5   : > { %8815 = vmatpush1.msk.msra.mxu0 %vm9527_vm5, %v7067_v29  ;;  %v7319_v29 = vld [vmem:[%s13744_s6 + $0x8] sm:$0xff]  ;;  %s13774_s6 = sld [smem:[#allocation17_spill]] }
 0xce6   : > { %v6985_v47 = vpop.permute.xlu1 %6984  ;;  %8816 = vmatprep.subr.msk.mxu0 %vm9532_vm6, %v7072_v16  ;;  %v7019_v43 = vpop.permute.xlu0 %7018 }
 0xce7   : > { %8817 = vmatpush1.msk.msra.mxu0 %vm9527_vm5, %v7066_v58  ;;  %v7026_v35 = vsel %vm13732_vm9, %v7019_v43, %v7021_v4  ;;  %v7032_v48 = vsel %vm13733_vm13, 0.0, %v7019_v43  ;;  %vm13745_vm9 = vcmask 916480  }
 0xce8   : > { %7235 = vmatprep.subr.mxu0 %v12609_v56  ;;  %vm13746_vm13 = vmmov %vm13745_vm9 }
 0xce9   : > { %7236 = vmatpush1.msra.mxu0 %v12599_v45 }
 0xcea   : > { %v7045_v59 = vpop.permute.xlu1 %7044  ;;  %7237 = vmatprep.subr.mxu0 %v12589_v21  ;;  %v7007_v28 = vpop.permute.xlu0 %7006 }
 0xceb   : > { %v7047_v38 = vsel %vm13726_vm14, %v7043_v8, %v7045_v59  ;;  %7238 = vmatpush1.msra.mxu0 %v12579_v10  ;;  %v7033_v10 = vsel %vm13731_vm8, 0.0, %v7023_v13  ;;  %vm13736_vm14 = vmmov %vm13735_vm11 }
 0xcec   : > { %8818 = vmatprep.subr.msk.mxu0 %vm9517_vm2, %v7047_v38  ;;  %vm13741_vm8 = vmmov %vm13738_vm0 }
 0xced   : > { %8819 = vmatpush1.msk.msra.mxu0 %vm9522_vm4, %v7053_v41 }
 0xcee   : > { %v7025_v36 = vpop.permute.xlu1 %7024  ;;  %8820 = vmatprep.subr.msk.mxu0 %vm9517_vm2, %v7046_v17  ;;  %v7003_v1 = vpop.permute.xlu0 %7002 }
 0xcef   : > { %v7027_v60 = vsel %vm13730_vm7, %v7023_v13, %v7025_v36  ;;  %8821 = vmatpush1.msk.msra.mxu0 %vm9522_vm4, %v7052_v5  ;;  %v7010_v62 = vsel %vm1018_vm1, %v7003_v1, %v7005_v2  ;;  %vm13740_vm7 = vmmov %vm13738_vm0  ;;  %v7212_v13 = vpop.f32.mrf.mxu1  ;;  %v7315_v2 = vld [vmem:[%s13743_s5 + $0x8] sm:$0xff] }
 0xcf0   : > { %8822 = vmatprep.subr.msk.mxu0 %vm9532_vm6, %v7027_v60  ;;  %8870 = vmatprep.mubr.msk.f32.mxu1 %vm1018_vm1, %v7315_v2 }
 0xcf1   : > { %8823 = vmatpush1.msk.msra.mxu0 %vm9527_vm5, %v7033_v10  ;;  %v7214_v37 = vpop.f32.mrf.mxu1 }
 0xcf2   : > { %v7009_v21 = vpop.permute.xlu1 %7008  ;;  %8824 = vmatprep.subr.msk.mxu0 %vm9532_vm6, %v7026_v35  ;;  %v6987_v6 = vpop.permute.xlu0 %6986 }
 0xcf3   : > { %8825 = vmatpush1.msk.msra.mxu0 %vm9527_vm5, %v7032_v48  ;;  %v7011_v12 = vsel %vm1018_vm1, %v7007_v28, %v7009_v21  ;;  %v6997_v33 = vsel %vm13735_vm11, 0.0, %v6987_v6  ;;  %vm13748_vm11 = vmmov %vm13745_vm9 }
 0xcf4   : > { %7247 = vmatprep.subr.mxu0 %v7011_v12 }
 0xcf5   : > { %8827 = vmatpush1.msk.msra.mxu0 %vm9726_vm15, %v7007_v28 }
 0xcf6   : > { %v6989_v50 = vpop.permute.xlu1 %6988  ;;  %7249 = vmatprep.subr.mxu0 %v7010_v62  ;;  %v6983_v0 = vpop.permute.xlu0 %6982 }
 0xcf7   : > { %v6991_v45 = vsel %vm13734_vm12, %v6987_v6, %v6989_v50  ;;  %8829 = vmatpush1.msk.msra.mxu0 %vm9726_vm15, %v7003_v1  ;;  %v6990_v51 = vsel %vm13736_vm14, %v6983_v0, %v6985_v47  ;;  %v6996_v56 = vsel %vm13737_vm10, 0.0, %v6983_v0  ;;  %vm13747_vm12 = vmmov %vm13745_vm9  ;;  %vm13749_vm14 = vcmask 924672  }
 0xcf8   : > { %8830 = vmatprep.subr.msk.mxu0 %vm9517_vm2, %v6991_v45  ;;  %vm13750_vm10 = vmmov %vm13749_vm14 }
 0xcf9   : > { %8831 = vmatpush1.msk.msra.mxu0 %vm9522_vm4, %v6997_v33 }
 0xcfa   : > { %v7119_v15 = vpop.permute.xlu1 %7118  ;;  %8832 = vmatprep.subr.msk.mxu0 %vm9517_vm2, %v6990_v51  ;;  %v7121_v25 = vpop.permute.xlu0 %7120 }
 0xcfb   : > { %v7123_v46 = vsel %vm13738_vm0, %v7119_v15, %v7121_v25  ;;  %8833 = vmatpush1.msk.msra.mxu0 %vm9522_vm4, %v6996_v56  ;;  %v7129_v53 = vsel %vm13739_vm3, %v7121_v25, 0.0  ;;  %vm13751_vm0 = vmmov %vm13750_vm10 }
 0xcfc   : > { %8834 = vmatprep.subr.msk.mxu0 %vm9532_vm6, %v7129_v53  ;;  %vm13752_vm3 = vmmov %vm13751_vm0 }
 0xcfd   : > { %8835 = vmatpush2.msk.msra.mxu0 %vm9527_vm5, %v7123_v46 }
 0xcfe   : > { %v7115_v61 = vpop.permute.xlu1 %7114  ;;  %v7117_v49 = vpop.permute.xlu0 %7116 }
 0xcff   : > { %v7122_v31 = vsel %vm13740_vm7, %v7115_v61, %v7117_v49  ;;  %v7128_v11 = vsel %vm13741_vm8, %v7117_v49, 0.0  ;;  %vm13753_vm7 = vcmask 1039360  }
 0xd00   : > { %8836 = vmatprep.subr.msk.mxu0 %vm9532_vm6, %v7128_v11  ;;  %vm13754_vm8 = vmmov %vm13753_vm7 }
 0xd01   : > { %8837 = vmatpush2.msk.msra.mxu0 %vm9527_vm5, %v7122_v31 }
 0xd02   : > { %7288 = vmatmul.mubr.f32.vlgmr.msra.gmra.mxu0 %v6968_v3 }
 0xd03   : > { %8839 = vmatprep.mubr.msk.f32.mxu0 %vm1018_vm1, %v6971_v26 }
 0xd06   : > { %7294 = vmatmul.mubr.f32.gmra.mxu0 %v6970_v54 }
 0xd0b   : > { %v7303_v7 = vpop.permute.xlu1 %7302  ;;  %v7308_v4 = vpop.permute.xlu0 %7307 }
 0xdc2   : > { %v7289_v44 = vpop.f32.mrf.mxu0 }
 0xdc3   : > { %v7290_v19 = vadd.f32 %v7289_v44, %v7206_v14 }
 0xdc4   : > { %v7291_v63 = vpop.f32.mrf.mxu0 }
 0xdc5   : > { %v12751_v57 = vadd.f32 %v7303_v7, %v7290_v19  ;;  %v7292_v8 = vadd.f32 %v7291_v63, %v7208_v34 }
 0xdc6   : > { %v7295_v39 = vpop.f32.mrf.mxu0 }
 0xdc7   : > { %7420 = vrot.lane.b32.xlu1 %v12751_v57, %s13569_s10  ;;  %7440 = vrot.lane.b32.xlu0 %v12751_v57, %s13742_s1  ;;  %v12761_v27 = vadd.f32 %v7303_v7, %v7292_v8  ;;  %v7296_v55 = vadd.f32 %v7295_v39, %v7212_v13 }
 0xdc8   : > { %v7297_v32 = vpop.f32.mrf.mxu0 }
 0xdc9   : > { %v12771_v42 = vadd.f32 %v7308_v4, %v7296_v55  ;;  %v7298_v9 = vadd.f32 %v7297_v32, %v7214_v37 }
 0xdcb   : > { %7400 = vrot.lane.b32.xlu1 %v12751_v57, %s13711_s20  ;;  %7380 = vrot.lane.b32.xlu0 %v12751_v57, %s13712_s11  ;;  %v12781_v52 = vadd.f32 %v7308_v4, %v7298_v9 }
 0xdcf   : > { %7442 = vrot.lane.b32.xlu1 %v12761_v27, %s13742_s1  ;;  %7422 = vrot.lane.b32.xlu0 %v12761_v27, %s13569_s10 }
 0xdd3   : > { %7382 = vrot.lane.b32.xlu1 %v12761_v27, %s13712_s11  ;;  %7402 = vrot.lane.b32.xlu0 %v12761_v27, %s13711_s20 }
 0xdd7   : > { %7424 = vrot.lane.b32.xlu1 %v12771_v42, %s13569_s10  ;;  %7444 = vrot.lane.b32.xlu0 %v12771_v42, %s13742_s1 }
 0xddb   : > { %7404 = vrot.lane.b32.xlu1 %v12771_v42, %s13711_s20  ;;  %7384 = vrot.lane.b32.xlu0 %v12771_v42, %s13712_s11 }
 0xddf   : > { %7446 = vrot.lane.b32.xlu1 %v12781_v52, %s13742_s1  ;;  %7364 = vrot.lane.b32.xlu0 %v12771_v42, %s13708_s3 }
 0xde3   : > { %7362 = vrot.lane.b32.xlu1 %v12761_v27, %s13708_s3  ;;  %7426 = vrot.lane.b32.xlu0 %v12781_v52, %s13569_s10 }
 0xde7   : > { %7346 = vrot.lane.b32.xlu1 %v12761_v27, %s13710_s2  ;;  %7406 = vrot.lane.b32.xlu0 %v12781_v52, %s13711_s20 }
 0xdeb   : > { %7326 = vrot.lane.b32.xlu1 %v12761_v27, %s13579_s0  ;;  %7360 = vrot.lane.b32.xlu0 %v12751_v57, %s13708_s3 }
 0xdef   : > { %7386 = vrot.lane.b32.xlu1 %v12781_v52, %s13712_s11  ;;  %7348 = vrot.lane.b32.xlu0 %v12771_v42, %s13710_s2 }
 0xdf3   : > { %7366 = vrot.lane.b32.xlu1 %v12781_v52, %s13708_s3  ;;  %7344 = vrot.lane.b32.xlu0 %v12751_v57, %s13710_s2 }
 0xdf7   : > { %7350 = vrot.lane.b32.xlu1 %v12781_v52, %s13710_s2  ;;  %7328 = vrot.lane.b32.xlu0 %v12771_v42, %s13579_s0 }
 0xdfb   : > { %7330 = vrot.lane.b32.xlu1 %v12781_v52, %s13579_s0  ;;  %7324 = vrot.lane.b32.xlu0 %v12751_v57, %s13579_s0 }
 0xdff   : > { %7460 = vrot.lane.b32.xlu1 %v12771_v42, %s13577_s16  ;;  %7462 = vrot.lane.b32.xlu0 %v12781_v52, %s13577_s16 }
 0xe03   : > { %7456 = vrot.lane.b32.xlu1 %v12751_v57, %s13577_s16  ;;  %7458 = vrot.lane.b32.xlu0 %v12761_v27, %s13577_s16 }
 0xe07   : > { %7478 = vperm.xlu1 %9228, %v7318_v23   ;;  %7483 = vperm.xlu0 %9227, %v7319_v29  }
 0xe39   : > { %v7421_v40 = vpop.permute.xlu1 %7420  ;;  %v7441_v16 = vpop.permute.xlu0 %7440 }
 0xe3d   : > { %v7401_v58 = vpop.permute.xlu1 %7400  ;;  %v7381_v47 = vpop.permute.xlu0 %7380 }
 0xe41   : > { %v7443_v43 = vpop.permute.xlu1 %7442  ;;  %v7423_v59 = vpop.permute.xlu0 %7422 }
 0xe42   : > { %v7448_v35 = vsel %vm13748_vm11, %v7441_v16, %v7443_v43  ;;  %v7434_v62 = vsel %vm13751_vm0, %v7423_v59, 0.0  ;;  %v7428_v50 = vsel %vm13752_vm3, %v7421_v40, %v7423_v59  ;;  %vm13761_vm0 = vcmask 121856   ;;  %v7314_v59 = vld [vmem:[%s13743_s5] sm:$0xff] }
 0xe43   : > { %vm13762_vm3 = vmmov %vm13761_vm0 }
 0xe45   : > { %v7383_v28 = vpop.permute.xlu1 %7382  ;;  %v7403_v38 = vpop.permute.xlu0 %7402 }
 0xe49   : > { %v7425_v41 = vpop.permute.xlu1 %7424  ;;  %v7445_v17 = vpop.permute.xlu0 %7444 }
 0xe4d   : > { %v7405_v5 = vpop.permute.xlu1 %7404  ;;  %v7385_v36 = vpop.permute.xlu0 %7384 }
 0xe51   : > { %v7447_v1 = vpop.permute.xlu1 %7446  ;;  %v7365_v60 = vpop.permute.xlu0 %7364 }
 0xe52   : > { %8840 = vmatprep.subr.msk.mxu1 %vm13745_vm9, %v7447_v1  ;;  %v7449_v10 = vsel %vm13746_vm13, %v7445_v17, %v7447_v1  ;;  %vm13755_vm9 = vmmov %vm13753_vm7  ;;  %v7375_v44 = vsel %vm13762_vm3, 0.0, %v7365_v60 }
 0xe53   : > { %7493 = vmatpush1.msra.mxu1 %v7449_v10  ;;  %v7414_v56 = vsel %vm13755_vm9, %v7403_v38, 0.0  ;;  %vm13756_vm13 = vmmov %vm13753_vm7  ;;  %vm13765_vm9 = vcmask 138240  }
 0xe54   : > { %8841 = vmatprep.subr.msk.mxu1 %vm13747_vm12, %v7443_v43  ;;  %v7408_v15 = vsel %vm13756_vm13, %v7401_v58, %v7403_v38  ;;  %vm13757_vm12 = vcmask 7168   ;;  %vm13766_vm13 = vmmov %vm13765_vm9  ;;  %v7316_v38 = vld [vmem:[%s13743_s5 + $0x10] sm:$0xff] }
 0xe55   : > { %v7363_v48 = vpop.permute.xlu1 %7362  ;;  %7495 = vmatpush1.msra.mxu1 %v7448_v35  ;;  %v7427_v21 = vpop.permute.xlu0 %7426  ;;  %vm13758_vm11 = vmmov %vm13757_vm12 }
 0xe56   : > { %v7429_v6 = vsel %vm13749_vm14, %v7425_v41, %v7427_v21  ;;  %v7435_v12 = vsel %vm13750_vm10, %v7427_v21, 0.0  ;;  %v7395_v31 = vsel %vm13758_vm11, 0.0, %v7385_v36  ;;  %vm13759_vm14 = vmmov %vm13758_vm11 }
 0xe57   : > { %8842 = vmatprep.subr.msk.mxu1 %vm9517_vm2, %v7435_v12  ;;  %v7388_v11 = vsel %vm13759_vm14, %v7381_v47, %v7383_v28  ;;  %vm13760_vm10 = vmmov %vm13758_vm11  ;;  %vm13769_vm14 = vcmask 908288   ;;  %v7317_v28 = vld [vmem:[%s13743_s5 + $0x18] sm:$0xff]  ;;  %s13773_s5 = sld [smem:[#allocation16_spill]] }
 0xe58   : > { %8843 = vmatpush1.msk.msra.mxu1 %vm9522_vm4, %v7429_v6  ;;  %v7394_v3 = vsel %vm13760_vm10, 0.0, %v7381_v47  ;;  %vm13768_vm11 = vmmov %vm13765_vm9 }
 0xe59   : > { %v7347_v0 = vpop.permute.xlu1 %7346  ;;  %8844 = vmatprep.subr.msk.mxu1 %vm9517_vm2, %v7434_v62  ;;  %v7407_v45 = vpop.permute.xlu0 %7406  ;;  %vm13770_vm10 = vmmov %vm13769_vm14 }
 0xe5a   : > { %v7409_v33 = vsel %vm13753_vm7, %v7405_v5, %v7407_v45  ;;  %8845 = vmatpush1.msk.msra.mxu1 %vm9522_vm4, %v7428_v50  ;;  %v7415_v51 = vsel %vm13754_vm8, %v7407_v45, 0.0  ;;  %vm13763_vm7 = vmmov %vm13761_vm0  ;;  %v7577_v45 = vld [vmem:[%s13774_s6] sm:$0xff] }
 0xe5b   : > { %8846 = vmatprep.subr.msk.mxu1 %vm9532_vm6, %v7415_v51  ;;  %vm13764_vm8 = vmmov %vm13761_vm0 }
 0xe5c   : > { %8847 = vmatpush1.msk.msra.mxu1 %vm9527_vm5, %v7409_v33  ;;  %v7578_v33 = vld [vmem:[%s13774_s6 + $0x8] sm:$0xff] }
 0xe5d   : > { %v7327_v25 = vpop.permute.xlu1 %7326  ;;  %8848 = vmatprep.subr.msk.mxu1 %vm9532_vm6, %v7414_v56  ;;  %v7361_v46 = vpop.permute.xlu0 %7360 }
 0xe5e   : > { %8849 = vmatpush1.msk.msra.mxu1 %vm9527_vm5, %v7408_v15  ;;  %v7368_v19 = vsel %vm13763_vm7, %v7361_v46, %v7363_v48  ;;  %v7374_v7 = vsel %vm13764_vm8, 0.0, %v7361_v46  ;;  %vm13775_vm7 = vcmask 916480  }
 0xe5f   : > { %7504 = vmatprep.subr.mxu1 %v12781_v52  ;;  %vm13776_vm8 = vmmov %vm13775_vm7 }
 0xe60   : > { %7505 = vmatpush1.msra.mxu1 %v12771_v42 }
 0xe61   : > { %v7387_v53 = vpop.permute.xlu1 %7386  ;;  %7506 = vmatprep.subr.mxu1 %v12761_v27  ;;  %v7349_v61 = vpop.permute.xlu0 %7348 }
 0xe62   : > { %v7389_v49 = vsel %vm13757_vm12, %v7385_v36, %v7387_v53  ;;  %7507 = vmatpush1.msra.mxu1 %v12751_v57  ;;  %vm13767_vm12 = vmmov %vm13765_vm9 }
 0xe63   : > { %8850 = vmatprep.subr.msk.mxu1 %vm9517_vm2, %v7389_v49 }
 0xe64   : > { %8851 = vmatpush1.msk.msra.mxu1 %vm9522_vm4, %v7395_v31 }
 0xe65   : > { %v7367_v26 = vpop.permute.xlu1 %7366  ;;  %8852 = vmatprep.subr.msk.mxu1 %vm9517_vm2, %v7388_v11  ;;  %v7345_v54 = vpop.permute.xlu0 %7344 }
 0xe66   : > { %v7369_v14 = vsel %vm13761_vm0, %v7365_v60, %v7367_v26  ;;  %8853 = vmatpush1.msk.msra.mxu1 %vm9522_vm4, %v7394_v3  ;;  %v7352_v13 = vsel %vm1018_vm1, %v7345_v54, %v7347_v0  ;;  %vm13771_vm0 = vmmov %vm13770_vm10  ;;  %v7574_v0 = vld [vmem:[%s13773_s5 + $0x8] sm:$0xff] }
 0xe67   : > { %8854 = vmatprep.subr.msk.mxu1 %vm9532_vm6, %v7369_v14  ;;  %vm13772_vm3 = vmmov %vm13771_vm0  ;;  %8902 = vmatprep.mubr.msk.f32.mxu0 %vm1018_vm1, %v7574_v0 }
 0xe68   : > { %8855 = vmatpush1.msk.msra.mxu1 %vm9527_vm5, %v7375_v44 }
 0xe69   : > { %v7351_v63 = vpop.permute.xlu1 %7350  ;;  %8856 = vmatprep.subr.msk.mxu1 %vm9532_vm6, %v7368_v19  ;;  %v7329_v34 = vpop.permute.xlu0 %7328 }
 0xe6a   : > { %8857 = vmatpush1.msk.msra.mxu1 %vm9527_vm5, %v7374_v7  ;;  %v7353_v8 = vsel %vm1018_vm1, %v7349_v61, %v7351_v63  ;;  %v7339_v37 = vsel %vm13766_vm13, 0.0, %v7329_v34  ;;  %vm13778_vm13 = vmmov %vm13775_vm7 }
 0xe6b   : > { %7516 = vmatprep.subr.mxu1 %v7353_v8 }
 0xe6c   : > { %8859 = vmatpush1.msk.msra.mxu1 %vm9726_vm15, %v7349_v61 }
 0xe6d   : > { %v7331_v39 = vpop.permute.xlu1 %7330  ;;  %7518 = vmatprep.subr.mxu1 %v7352_v13  ;;  %v7325_v55 = vpop.permute.xlu0 %7324 }
 0xe6e   : > { %v7333_v4 = vsel %vm13765_vm9, %v7329_v34, %v7331_v39  ;;  %8861 = vmatpush1.msk.msra.mxu1 %vm9726_vm15, %v7345_v54  ;;  %v7332_v32 = vsel %vm13767_vm12, %v7325_v55, %v7327_v25  ;;  %v7338_v9 = vsel %vm13768_vm11, 0.0, %v7325_v55  ;;  %vm13777_vm9 = vmmov %vm13775_vm7  ;;  %vm13779_vm12 = vcmask 924672  }
 0xe6f   : > { %8862 = vmatprep.subr.msk.mxu1 %vm9517_vm2, %v7333_v4  ;;  %vm13780_vm11 = vmmov %vm13779_vm12 }
 0xe70   : > { %8863 = vmatpush1.msk.msra.mxu1 %vm9522_vm4, %v7339_v37 }
 0xe71   : > { %v7461_v2 = vpop.permute.xlu1 %7460  ;;  %8864 = vmatprep.subr.msk.mxu1 %vm9517_vm2, %v7332_v32  ;;  %v7463_v23 = vpop.permute.xlu0 %7462 }
 0xe72   : > { %v7465_v29 = vsel %vm13769_vm14, %v7461_v2, %v7463_v23  ;;  %8865 = vmatpush1.msk.msra.mxu1 %vm9522_vm4, %v7338_v9  ;;  %v7471_v40 = vsel %vm13770_vm10, %v7463_v23, 0.0  ;;  %vm13781_vm14 = vmmov %vm13780_vm11 }
 0xe73   : > { %8866 = vmatprep.subr.msk.mxu1 %vm9532_vm6, %v7471_v40  ;;  %vm13782_vm10 = vmmov %vm13780_vm11 }
 0xe74   : > { %8867 = vmatpush2.msk.msra.mxu1 %vm9527_vm5, %v7465_v29 }
 0xe75   : > { %v7457_v16 = vpop.permute.xlu1 %7456  ;;  %v7459_v58 = vpop.permute.xlu0 %7458 }
 0xe76   : > { %v7464_v47 = vsel %vm13771_vm0, %v7457_v16, %v7459_v58  ;;  %v7470_v43 = vsel %vm13772_vm3, %v7459_v58, 0.0  ;;  %vm13783_vm0 = vcmask 1039360  }
 0xe77   : > { %8868 = vmatprep.subr.msk.mxu1 %vm9532_vm6, %v7470_v43  ;;  %vm13784_vm3 = vmmov %vm13783_vm0 }
 0xe78   : > { %8869 = vmatpush2.msk.msra.mxu1 %vm9527_vm5, %v7464_v47 }
 0xe79   : > { %7557 = vmatmul.mubr.f32.vlgmr.msra.gmra.mxu1 %v7314_v59 }
 0xe7a   : > { %8871 = vmatprep.mubr.msk.f32.mxu1 %vm1018_vm1, %v7317_v28 }
 0xe7d   : > { %7563 = vmatmul.mubr.f32.gmra.mxu1 %v7316_v38 }
 0xe82   : > { %v7479_v41 = vpop.permute.xlu1 %7478  ;;  %v7484_v48 = vpop.permute.xlu0 %7483 }
 0xf39   : > { %v7558_v17 = vpop.f32.mrf.mxu1 }
 0xf3a   : > { %v7559_v5 = vadd.f32 %v7558_v17, %v7479_v41 }
 0xf3b   : > { %v7560_v1 = vpop.f32.mrf.mxu1 }
 0xf3c   : > { %v12917_v36 = vmax.f32 %v7559_v5, 0.0  ;;  %v7561_v60 = vadd.f32 %v7560_v1, %v7479_v41 }
 0xf3d   : > { %v7564_v35 = vpop.f32.mrf.mxu1 }
 0xf3e   : > { %7679 = vrot.lane.b32.xlu1 %v12917_v36, %s13569_s10  ;;  %7699 = vrot.lane.b32.xlu0 %v12917_v36, %s13742_s1  ;;  %v12927_v10 = vmax.f32 %v7561_v60, 0.0  ;;  %v7565_v21 = vadd.f32 %v7564_v35, %v7484_v48 }
 0xf3f   : > { %v7566_v12 = vpop.f32.mrf.mxu1 }
 0xf40   : > { %v12937_v6 = vmax.f32 %v7565_v21, 0.0  ;;  %v7567_v62 = vadd.f32 %v7566_v12, %v7484_v48 }
 0xf42   : > { %7659 = vrot.lane.b32.xlu1 %v12917_v36, %s13711_s20  ;;  %7639 = vrot.lane.b32.xlu0 %v12917_v36, %s13712_s11  ;;  %v12947_v50 = vmax.f32 %v7567_v62, 0.0 }
 0xf46   : > { %7701 = vrot.lane.b32.xlu1 %v12927_v10, %s13742_s1  ;;  %7681 = vrot.lane.b32.xlu0 %v12927_v10, %s13569_s10 }
 0xf4a   : > { %7641 = vrot.lane.b32.xlu1 %v12927_v10, %s13712_s11  ;;  %7661 = vrot.lane.b32.xlu0 %v12927_v10, %s13711_s20 }
 0xf4e   : > { %7683 = vrot.lane.b32.xlu1 %v12937_v6, %s13569_s10  ;;  %7703 = vrot.lane.b32.xlu0 %v12937_v6, %s13742_s1 }
 0xf52   : > { %7663 = vrot.lane.b32.xlu1 %v12937_v6, %s13711_s20  ;;  %7643 = vrot.lane.b32.xlu0 %v12937_v6, %s13712_s11 }
 0xf56   : > { %7705 = vrot.lane.b32.xlu1 %v12947_v50, %s13742_s1  ;;  %7623 = vrot.lane.b32.xlu0 %v12937_v6, %s13708_s3 }
 0xf5a   : > { %7621 = vrot.lane.b32.xlu1 %v12927_v10, %s13708_s3  ;;  %7685 = vrot.lane.b32.xlu0 %v12947_v50, %s13569_s10 }
 0xf5e   : > { %7605 = vrot.lane.b32.xlu1 %v12927_v10, %s13710_s2  ;;  %7665 = vrot.lane.b32.xlu0 %v12947_v50, %s13711_s20 }
 0xf62   : > { %7585 = vrot.lane.b32.xlu1 %v12927_v10, %s13579_s0  ;;  %7619 = vrot.lane.b32.xlu0 %v12917_v36, %s13708_s3 }
 0xf66   : > { %7645 = vrot.lane.b32.xlu1 %v12947_v50, %s13712_s11  ;;  %7607 = vrot.lane.b32.xlu0 %v12937_v6, %s13710_s2 }
 0xf6a   : > { %7625 = vrot.lane.b32.xlu1 %v12947_v50, %s13708_s3  ;;  %7603 = vrot.lane.b32.xlu0 %v12917_v36, %s13710_s2 }
 0xf6e   : > { %7609 = vrot.lane.b32.xlu1 %v12947_v50, %s13710_s2  ;;  %7587 = vrot.lane.b32.xlu0 %v12937_v6, %s13579_s0 }
 0xf72   : > { %7589 = vrot.lane.b32.xlu1 %v12947_v50, %s13579_s0  ;;  %7583 = vrot.lane.b32.xlu0 %v12917_v36, %s13579_s0 }
 0xf76   : > { %7719 = vrot.lane.b32.xlu1 %v12937_v6, %s13577_s16  ;;  %7721 = vrot.lane.b32.xlu0 %v12947_v50, %s13577_s16 }
 0xf7a   : > { %7715 = vrot.lane.b32.xlu1 %v12917_v36, %s13577_s16  ;;  %7717 = vrot.lane.b32.xlu0 %v12927_v10, %s13577_s16 }
 0xf7e   : > { %7737 = vperm.xlu1 %9228, %v7577_v45   ;;  %7742 = vperm.xlu0 %9227, %v7578_v33  }
 0xfb0   : > { %v7680_v51 = vpop.permute.xlu1 %7679  ;;  %v7700_v56 = vpop.permute.xlu0 %7699 }
 0xfb4   : > { %v7660_v15 = vpop.permute.xlu1 %7659  ;;  %v7640_v25 = vpop.permute.xlu0 %7639 }
 0xfb8   : > { %v7702_v46 = vpop.permute.xlu1 %7701  ;;  %v7682_v53 = vpop.permute.xlu0 %7681 }
 0xfb9   : > { %v7707_v19 = vsel %vm13777_vm9, %v7700_v56, %v7702_v46  ;;  %v7693_v13 = vsel %vm13781_vm14, %v7682_v53, 0.0  ;;  %v7687_v39 = vsel %vm13782_vm10, %v7680_v51, %v7682_v53  ;;  %vm13787_vm9 = vcmask 7168   ;;  %v7573_v53 = vld [vmem:[%s13773_s5] sm:$0xff] }
 0xfba   : > { %vm13791_vm14 = vcmask 121856  }
 0xfbb   : > { %vm13792_vm10 = vmmov %vm13791_vm14 }
 0xfbc   : > { %v7642_v61 = vpop.permute.xlu1 %7641  ;;  %v7662_v49 = vpop.permute.xlu0 %7661 }
 0xfc0   : > { %v7684_v31 = vpop.permute.xlu1 %7683  ;;  %v7704_v11 = vpop.permute.xlu0 %7703 }
 0xfc4   : > { %v7664_v3 = vpop.permute.xlu1 %7663  ;;  %v7644_v26 = vpop.permute.xlu0 %7643 }
 0xfc8   : > { %v7706_v54 = vpop.permute.xlu1 %7705  ;;  %v7624_v14 = vpop.permute.xlu0 %7623 }
 0xfc9   : > { %v7708_v44 = vsel %vm13775_vm7, %v7704_v11, %v7706_v54  ;;  %8872 = vmatprep.subr.msk.mxu0 %vm13776_vm8, %v7706_v54  ;;  %vm13785_vm7 = vmmov %vm13783_vm0  ;;  %v7634_v17 = vsel %vm13792_vm10, 0.0, %v7624_v14 }
 0xfca   : > { %7752 = vmatpush1.msra.mxu0 %v7708_v44  ;;  %v7673_v9 = vsel %vm13785_vm7, %v7662_v49, 0.0  ;;  %vm13786_vm8 = vmmov %vm13783_vm0  ;;  %vm13795_vm7 = vcmask 138240  }
 0xfcb   : > { %8873 = vmatprep.subr.msk.mxu0 %vm13778_vm13, %v7702_v46  ;;  %v7667_v2 = vsel %vm13786_vm8, %v7660_v15, %v7662_v49  ;;  %vm13788_vm13 = vmmov %vm13787_vm9  ;;  %v7575_v49 = vld [vmem:[%s13773_s5 + $0x10] sm:$0xff] }
 0xfcc   : > { %v7622_v7 = vpop.permute.xlu1 %7621  ;;  %7754 = vmatpush1.msra.mxu0 %v7707_v19  ;;  %v7686_v63 = vpop.permute.xlu0 %7685  ;;  %v7654_v47 = vsel %vm13788_vm13, 0.0, %v7644_v26  ;;  %vm13796_vm8 = vmmov %vm13795_vm7 }
 0xfcd   : > { %v7688_v34 = vsel %vm13779_vm12, %v7684_v31, %v7686_v63  ;;  %v7694_v8 = vsel %vm13780_vm11, %v7686_v63, 0.0  ;;  %vm13789_vm12 = vmmov %vm13787_vm9 }
 0xfce   : > { %8874 = vmatprep.subr.msk.mxu0 %vm9517_vm2, %v7694_v8  ;;  %v7647_v43 = vsel %vm13789_vm12, %v7640_v25, %v7642_v61  ;;  %vm13790_vm11 = vmmov %vm13787_vm9  ;;  %vm13799_vm12 = vcmask 908288   ;;  %v7576_v61 = vld [vmem:[%s13773_s5 + $0x18] sm:$0xff]  ;;  %s13803_s5 = sld [smem:[#allocation18_spill]] }
 0xfcf   : > { %8875 = vmatpush1.msk.msra.mxu0 %vm9522_vm4, %v7688_v34  ;;  %v7653_v59 = vsel %vm13790_vm11, 0.0, %v7640_v25  ;;  %vm13798_vm13 = vmmov %vm13795_vm7 }
 0xfd0   : > { %v7606_v55 = vpop.permute.xlu1 %7605  ;;  %8876 = vmatprep.subr.msk.mxu0 %vm9517_vm2, %v7693_v13  ;;  %v7666_v4 = vpop.permute.xlu0 %7665  ;;  %vm13800_vm11 = vmmov %vm13799_vm12  ;;  %v7837_v13 = vld [vmem:[%s9456_s28 + $0x8] sm:$0xff] }
 0xfd1   : > { %v7668_v37 = vsel %vm13783_vm0, %v7664_v3, %v7666_v4  ;;  %v7674_v32 = vsel %vm13784_vm3, %v7666_v4, 0.0  ;;  %8877 = vmatpush1.msk.msra.mxu0 %vm9522_vm4, %v7687_v39  ;;  %vm13793_vm0 = vmmov %vm13792_vm10 }
 0xfd2   : > { %8878 = vmatprep.subr.msk.mxu0 %vm9532_vm6, %v7674_v32  ;;  %vm13794_vm3 = vmmov %vm13793_vm0 }
 0xfd3   : > { %8879 = vmatpush1.msk.msra.mxu0 %vm9527_vm5, %v7668_v37  ;;  %vm13802_vm10 = vmmov %vm13800_vm11 }
 0xfd4   : > { %v7586_v23 = vpop.permute.xlu1 %7585  ;;  %8880 = vmatprep.subr.msk.mxu0 %vm9532_vm6, %v7673_v9  ;;  %v7620_v29 = vpop.permute.xlu0 %7619 }
 0xfd5   : > { %8881 = vmatpush1.msk.msra.mxu0 %vm9527_vm5, %v7667_v2  ;;  %v7627_v5 = vsel %vm13793_vm0, %v7620_v29, %v7622_v7  ;;  %vm13804_vm0 = vcmask 916480  }
 0xfd6   : > { %7763 = vmatprep.subr.mxu0 %v12947_v50 }
 0xfd7   : > { %7764 = vmatpush1.msra.mxu0 %v12937_v6 }
 0xfd8   : > { %v7646_v40 = vpop.permute.xlu1 %7645  ;;  %7765 = vmatprep.subr.mxu0 %v12927_v10  ;;  %v7608_v16 = vpop.permute.xlu0 %7607 }
 0xfd9   : > { %v7648_v58 = vsel %vm13787_vm9, %v7644_v26, %v7646_v40  ;;  %7766 = vmatpush1.msra.mxu0 %v12917_v36  ;;  %v7633_v36 = vsel %vm13794_vm3, 0.0, %v7620_v29  ;;  %vm13797_vm9 = vmmov %vm13795_vm7 }
 0xfda   : > { %8882 = vmatprep.subr.msk.mxu0 %vm9517_vm2, %v7648_v58  ;;  %vm13805_vm3 = vmmov %vm13804_vm0 }
 0xfdb   : > { %8883 = vmatpush1.msk.msra.mxu0 %vm9522_vm4, %v7654_v47 }
 0xfdc   : > { %v7626_v28 = vpop.permute.xlu1 %7625  ;;  %8884 = vmatprep.subr.msk.mxu0 %vm9517_vm2, %v7647_v43  ;;  %v7604_v38 = vpop.permute.xlu0 %7603 }
 0xfdd   : > { %v7628_v41 = vsel %vm13791_vm14, %v7624_v14, %v7626_v28  ;;  %8885 = vmatpush1.msk.msra.mxu0 %vm9522_vm4, %v7653_v59  ;;  %v7611_v35 = vsel %vm1018_vm1, %v7604_v38, %v7606_v55  ;;  %vm13801_vm14 = vmmov %vm13800_vm11 }
 0xfde   : > { %8886 = vmatprep.subr.msk.mxu0 %vm9532_vm6, %v7628_v41 }
 0xfdf   : > { %8887 = vmatpush1.msk.msra.mxu0 %vm9527_vm5, %v7634_v17 }
 0xfe0   : > { %v7610_v1 = vpop.permute.xlu1 %7609  ;;  %8888 = vmatprep.subr.msk.mxu0 %vm9532_vm6, %v7627_v5  ;;  %v7588_v60 = vpop.permute.xlu0 %7587 }
 0xfe1   : > { %8889 = vmatpush1.msk.msra.mxu0 %vm9527_vm5, %v7633_v36  ;;  %v7612_v10 = vsel %vm1018_vm1, %v7608_v16, %v7610_v1  ;;  %v7598_v12 = vsel %vm13796_vm8, 0.0, %v7588_v60  ;;  %vm13807_vm8 = vmmov %vm13804_vm0 }
 0xfe2   : > { %7775 = vmatprep.subr.mxu0 %v7612_v10 }
 0xfe3   : > { %8891 = vmatpush1.msk.msra.mxu0 %vm9726_vm15, %v7608_v16 }
 0xfe4   : > { %v7590_v48 = vpop.permute.xlu1 %7589  ;;  %7777 = vmatprep.subr.mxu0 %v7611_v35  ;;  %v7584_v21 = vpop.permute.xlu0 %7583 }
 0xfe5   : > { %v7592_v6 = vsel %vm13795_vm7, %v7588_v60, %v7590_v48  ;;  %8893 = vmatpush1.msk.msra.mxu0 %vm9726_vm15, %v7604_v38  ;;  %v7591_v62 = vsel %vm13797_vm9, %v7584_v21, %v7586_v23  ;;  %v7597_v50 = vsel %vm13798_vm13, 0.0, %v7584_v21  ;;  %vm13806_vm7 = vmmov %vm13804_vm0  ;;  %vm13808_vm9 = vcmask 924672  }
 0xfe6   : > { %8894 = vmatprep.subr.msk.mxu0 %vm9517_vm2, %v7592_v6  ;;  %vm13809_vm13 = vmmov %vm13808_vm9 }
 0xfe7   : > { %8895 = vmatpush1.msk.msra.mxu0 %vm9522_vm4, %v7598_v12 }
 0xfe8   : > { %v7720_v0 = vpop.permute.xlu1 %7719  ;;  %8896 = vmatprep.subr.msk.mxu0 %vm9517_vm2, %v7591_v62  ;;  %v7722_v45 = vpop.permute.xlu0 %7721 }
 0xfe9   : > { %v7724_v33 = vsel %vm13799_vm12, %v7720_v0, %v7722_v45  ;;  %v7730_v51 = vsel %vm13800_vm11, %v7722_v45, 0.0  ;;  %8897 = vmatpush1.msk.msra.mxu0 %vm9522_vm4, %v7597_v50  ;;  %vm13810_vm12 = vmmov %vm13808_vm9 }
 0xfea   : > { %8898 = vmatprep.subr.msk.mxu0 %vm9532_vm6, %v7730_v51  ;;  %vm13811_vm11 = vmmov %vm13808_vm9 }
 0xfeb   : > { %8899 = vmatpush2.msk.msra.mxu0 %vm9527_vm5, %v7724_v33 }
 0xfec   : > { %v7716_v56 = vpop.permute.xlu1 %7715  ;;  %v7718_v15 = vpop.permute.xlu0 %7717 }
 0xfed   : > { %v7723_v25 = vsel %vm13801_vm14, %v7716_v56, %v7718_v15  ;;  %v7729_v46 = vsel %vm13802_vm10, %v7718_v15, 0.0  ;;  %vm13812_vm14 = vcmask 1039360  }
 0xfee   : > { %8900 = vmatprep.subr.msk.mxu0 %vm9532_vm6, %v7729_v46  ;;  %vm13813_vm10 = vmmov %vm13812_vm14 }
 0xfef   : > { %8901 = vmatpush2.msk.msra.mxu0 %vm9527_vm5, %v7723_v25 }
 0xff0   : > { %7816 = vmatmul.mubr.f32.vlgmr.msra.gmra.mxu0 %v7573_v53 }
 0xff1   : > { %8903 = vmatprep.mubr.msk.f32.mxu0 %vm1018_vm1, %v7576_v61 }
 0xff4   : > { %7822 = vmatmul.mubr.f32.gmra.mxu0 %v7575_v49 }
 0xff9   : > { %v7738_v31 = vpop.permute.xlu1 %7737 }
0x10b0   : > { %v7817_v11 = vpop.f32.mrf.mxu0 }
0x10b1   : > { %v7818_v3 = vadd.f32 %v7817_v11, %v7738_v31 }
0x10b2   : > { %v7819_v54 = vpop.f32.mrf.mxu0 }
0x10b3   : > { %v13084_v26 = vadd.f32 %v7818_v3, %v12751_v57  ;;  %v7820_v14 = vadd.f32 %v7819_v54, %v7738_v31  ;;  %v7743_v57 = vpop.permute.xlu0 %7742 }
0x10b4   : > { %v7823_v19 = vpop.f32.mrf.mxu0 }
0x10b5   : > { %7938 = vrot.lane.b32.xlu1 %v13084_v26, %s13569_s10  ;;  %7958 = vrot.lane.b32.xlu0 %v13084_v26, %s13742_s1  ;;  %v13095_v44 = vadd.f32 %v7820_v14, %v12761_v27  ;;  %v7824_v7 = vadd.f32 %v7823_v19, %v7743_v57 }
0x10b6   : > { %v7825_v27 = vpop.f32.mrf.mxu0 }
0x10b7   : > { %v13106_v63 = vadd.f32 %v7824_v7, %v12771_v42  ;;  %v7826_v34 = vadd.f32 %v7825_v27, %v7743_v57  ;;  %v7833_v42 = vld [vmem:[%s13803_s5 + $0x8] sm:$0xff] }
0x10b8   : > { %8934 = vmatprep.mubr.msk.f32.mxu1 %vm1018_vm1, %v7833_v42 }
0x10b9   : > { %7918 = vrot.lane.b32.xlu1 %v13084_v26, %s13711_s20  ;;  %7898 = vrot.lane.b32.xlu0 %v13084_v26, %s13712_s11  ;;  %v13117_v8 = vadd.f32 %v7826_v34, %v12781_v52  ;;  %v7836_v52 = vld [vmem:[%s9456_s28] sm:$0xff] }
0x10bd   : > { %7960 = vrot.lane.b32.xlu1 %v13095_v44, %s13742_s1  ;;  %7940 = vrot.lane.b32.xlu0 %v13095_v44, %s13569_s10 }
0x10c1   : > { %7900 = vrot.lane.b32.xlu1 %v13095_v44, %s13712_s11  ;;  %7920 = vrot.lane.b32.xlu0 %v13095_v44, %s13711_s20 }
0x10c5   : > { %7942 = vrot.lane.b32.xlu1 %v13106_v63, %s13569_s10  ;;  %7962 = vrot.lane.b32.xlu0 %v13106_v63, %s13742_s1 }
0x10c9   : > { %7922 = vrot.lane.b32.xlu1 %v13106_v63, %s13711_s20  ;;  %7902 = vrot.lane.b32.xlu0 %v13106_v63, %s13712_s11 }
0x10cd   : > { %7964 = vrot.lane.b32.xlu1 %v13117_v8, %s13742_s1  ;;  %7882 = vrot.lane.b32.xlu0 %v13106_v63, %s13708_s3 }
0x10d1   : > { %7880 = vrot.lane.b32.xlu1 %v13095_v44, %s13708_s3  ;;  %7944 = vrot.lane.b32.xlu0 %v13117_v8, %s13569_s10 }
0x10d5   : > { %7864 = vrot.lane.b32.xlu1 %v13095_v44, %s13710_s2  ;;  %7924 = vrot.lane.b32.xlu0 %v13117_v8, %s13711_s20 }
0x10d9   : > { %7844 = vrot.lane.b32.xlu1 %v13095_v44, %s13579_s0  ;;  %7878 = vrot.lane.b32.xlu0 %v13084_v26, %s13708_s3 }
0x10dd   : > { %7904 = vrot.lane.b32.xlu1 %v13117_v8, %s13712_s11  ;;  %7866 = vrot.lane.b32.xlu0 %v13106_v63, %s13710_s2 }
0x10e1   : > { %7884 = vrot.lane.b32.xlu1 %v13117_v8, %s13708_s3  ;;  %7862 = vrot.lane.b32.xlu0 %v13084_v26, %s13710_s2 }
0x10e5   : > { %7868 = vrot.lane.b32.xlu1 %v13117_v8, %s13710_s2  ;;  %7846 = vrot.lane.b32.xlu0 %v13106_v63, %s13579_s0 }
0x10e9   : > { %7848 = vrot.lane.b32.xlu1 %v13117_v8, %s13579_s0  ;;  %7842 = vrot.lane.b32.xlu0 %v13084_v26, %s13579_s0 }
0x10ed   : > { %7978 = vrot.lane.b32.xlu1 %v13106_v63, %s13577_s16  ;;  %7980 = vrot.lane.b32.xlu0 %v13117_v8, %s13577_s16 }
0x10f1   : > { %7974 = vrot.lane.b32.xlu1 %v13084_v26, %s13577_s16  ;;  %7976 = vrot.lane.b32.xlu0 %v13095_v44, %s13577_s16 }
0x10f5   : > { %7996 = vperm.xlu1 %9228, %v7836_v52   ;;  %8001 = vperm.xlu0 %9227, %v7837_v13  }
0x1127   : > { %v7939_v39 = vpop.permute.xlu1 %7938  ;;  %v7959_v55 = vpop.permute.xlu0 %7958 }
0x112b   : > { %v7919_v4 = vpop.permute.xlu1 %7918  ;;  %v7899_v37 = vpop.permute.xlu0 %7898 }
0x112f   : > { %v7961_v32 = vpop.permute.xlu1 %7960  ;;  %v7941_v9 = vpop.permute.xlu0 %7940 }
0x1130   : > { %v7966_v28 = vsel %vm13806_vm7, %v7959_v55, %v7961_v32  ;;  %v7952_v36 = vsel %vm13810_vm12, %v7941_v9, 0.0  ;;  %v7946_v1 = vsel %vm13811_vm11, %v7939_v39, %v7941_v9  ;;  %vm13816_vm7 = vcmask 7168   ;;  %v7832_v9 = vld [vmem:[%s13803_s5] sm:$0xff] }
0x1131   : > { %vm13820_vm12 = vcmask 121856  }
0x1132   : > { %vm13821_vm11 = vmmov %vm13820_vm12 }
0x1133   : > { %v7901_v2 = vpop.permute.xlu1 %7900  ;;  %v7921_v23 = vpop.permute.xlu0 %7920 }
0x1137   : > { %v7943_v29 = vpop.permute.xlu1 %7942  ;;  %v7963_v40 = vpop.permute.xlu0 %7962 }
0x113b   : > { %v7923_v16 = vpop.permute.xlu1 %7922  ;;  %v7903_v58 = vpop.permute.xlu0 %7902 }
0x113f   : > { %v7965_v47 = vpop.permute.xlu1 %7964  ;;  %v7883_v43 = vpop.permute.xlu0 %7882 }
0x1140   : > { %v7967_v59 = vsel %vm13804_vm0, %v7963_v40, %v7965_v47  ;;  %8904 = vmatprep.subr.msk.mxu1 %vm13805_vm3, %v7965_v47  ;;  %vm13814_vm0 = vmmov %vm13813_vm10  ;;  %v7893_v53 = vsel %vm13821_vm11, 0.0, %v7883_v43 }
0x1141   : > { %8011 = vmatpush1.msra.mxu1 %v7967_v59  ;;  %v7932_v21 = vsel %vm13814_vm0, %v7921_v23, 0.0  ;;  %vm13815_vm3 = vmmov %vm13814_vm0  ;;  %vm13824_vm0 = vcmask 138240  }
0x1142   : > { %8905 = vmatprep.subr.msk.mxu1 %vm13807_vm8, %v7961_v32  ;;  %v7926_v6 = vsel %vm13815_vm3, %v7919_v4, %v7921_v23  ;;  %vm13817_vm8 = vmmov %vm13816_vm7  ;;  %v7834_v23 = vld [vmem:[%s13803_s5 + $0x10] sm:$0xff] }
0x1143   : > { %v7881_v38 = vpop.permute.xlu1 %7880  ;;  %8013 = vmatpush1.msra.mxu1 %v7966_v28  ;;  %v7945_v41 = vpop.permute.xlu0 %7944  ;;  %v7913_v33 = vsel %vm13817_vm8, 0.0, %v7903_v58  ;;  %vm13825_vm3 = vmmov %vm13824_vm0 }
0x1144   : > { %v7947_v17 = vsel %vm13808_vm9, %v7943_v29, %v7945_v41  ;;  %v7953_v5 = vsel %vm13809_vm13, %v7945_v41, 0.0  ;;  %vm13818_vm9 = vmmov %vm13816_vm7 }
0x1145   : > { %8906 = vmatprep.subr.msk.mxu1 %vm9517_vm2, %v7953_v5  ;;  %v7906_v51 = vsel %vm13818_vm9, %v7899_v37, %v7901_v2  ;;  %vm13819_vm13 = vmmov %vm13816_vm7  ;;  %vm13828_vm9 = vcmask 908288   ;;  %v7835_v2 = vld [vmem:[%s13803_s5 + $0x18] sm:$0xff] }
0x1146   : > { %8907 = vmatpush1.msk.msra.mxu1 %vm9522_vm4, %v7947_v17  ;;  %v7912_v56 = vsel %vm13819_vm13, 0.0, %v7899_v37  ;;  %vm13827_vm8 = vmmov %vm13824_vm0 }
0x1147   : > { %v7865_v60 = vpop.permute.xlu1 %7864  ;;  %8908 = vmatprep.subr.msk.mxu1 %vm9517_vm2, %v7952_v36  ;;  %v7925_v10 = vpop.permute.xlu0 %7924  ;;  %vm13829_vm13 = vmmov %vm13828_vm9 }
0x1148   : > { %v7927_v35 = vsel %vm13812_vm14, %v7923_v16, %v7925_v10  ;;  %v7933_v48 = vsel %vm13813_vm10, %v7925_v10, 0.0  ;;  %8909 = vmatpush1.msk.msra.mxu1 %vm9522_vm4, %v7946_v1  ;;  %vm13822_vm14 = vmmov %vm13821_vm11  ;;  %v8096_v10 = vld [vmem:[%s9466_s4 + $0x8] sm:$0xff] }
0x1149   : > { %8910 = vmatprep.subr.msk.mxu1 %vm9532_vm6, %v7933_v48  ;;  %vm13823_vm10 = vmmov %vm13821_vm11 }
0x114a   : > { %8911 = vmatpush1.msk.msra.mxu1 %vm9527_vm5, %v7927_v35  ;;  %vm13831_vm11 = vmmov %vm13828_vm9  ;;  %v8095_v35 = vld [vmem:[%s9466_s4] sm:$0xff] }
0x114b   : > { %v7845_v12 = vpop.permute.xlu1 %7844  ;;  %8912 = vmatprep.subr.msk.mxu1 %vm9532_vm6, %v7932_v21  ;;  %v7879_v62 = vpop.permute.xlu0 %7878 }
0x114c   : > { %8913 = vmatpush1.msk.msra.mxu1 %vm9527_vm5, %v7926_v6  ;;  %v7886_v61 = vsel %vm13822_vm14, %v7879_v62, %v7881_v38  ;;  %v7892_v49 = vsel %vm13823_vm10, 0.0, %v7879_v62  ;;  %vm13832_vm14 = vcmask 916480  }
0x114d   : > { %8022 = vmatprep.subr.mxu1 %v13117_v8  ;;  %vm13833_vm10 = vmmov %vm13832_vm14 }
0x114e   : > { %8023 = vmatpush1.msra.mxu1 %v13106_v63 }
0x114f   : > { %v7905_v50 = vpop.permute.xlu1 %7904  ;;  %8024 = vmatprep.subr.mxu1 %v13095_v44  ;;  %v7867_v0 = vpop.permute.xlu0 %7866 }
0x1150   : > { %v7907_v45 = vsel %vm13816_vm7, %v7903_v58, %v7905_v50  ;;  %8025 = vmatpush1.msra.mxu1 %v13084_v26  ;;  %vm13826_vm7 = vmmov %vm13824_vm0 }
0x1151   : > { %8914 = vmatprep.subr.msk.mxu1 %vm9517_vm2, %v7907_v45 }
0x1152   : > { %8915 = vmatpush1.msk.msra.mxu1 %vm9522_vm4, %v7913_v33 }
0x1153   : > { %v7885_v15 = vpop.permute.xlu1 %7884  ;;  %8916 = vmatprep.subr.msk.mxu1 %vm9517_vm2, %v7906_v51  ;;  %v7863_v25 = vpop.permute.xlu0 %7862 }
0x1154   : > { %v7887_v46 = vsel %vm13820_vm12, %v7883_v43, %v7885_v15  ;;  %8917 = vmatpush1.msk.msra.mxu1 %vm9522_vm4, %v7912_v56  ;;  %v7870_v54 = vsel %vm1018_vm1, %v7863_v25, %v7865_v60  ;;  %vm13830_vm12 = vmmov %vm13828_vm9  ;;  %v8092_v60 = vld [vmem:[%s9461_s7 + $0x8] sm:$0xff] }
0x1155   : > { %8918 = vmatprep.subr.msk.mxu1 %vm9532_vm6, %v7887_v46  ;;  %8966 = vmatprep.mubr.msk.f32.mxu0 %vm1018_vm1, %v8092_v60 }
0x1156   : > { %8919 = vmatpush1.msk.msra.mxu1 %vm9527_vm5, %v7893_v53 }
0x1157   : > { %v7869_v31 = vpop.permute.xlu1 %7868  ;;  %8920 = vmatprep.subr.msk.mxu1 %vm9532_vm6, %v7886_v61  ;;  %v7847_v11 = vpop.permute.xlu0 %7846 }
0x1158   : > { %8921 = vmatpush1.msk.msra.mxu1 %vm9527_vm5, %v7892_v49  ;;  %v7871_v3 = vsel %vm1018_vm1, %v7867_v0, %v7869_v31  ;;  %v7857_v7 = vsel %vm13825_vm3, 0.0, %v7847_v11 }
0x1159   : > { %8034 = vmatprep.subr.mxu1 %v7871_v3 }
0x115a   : > { %8923 = vmatpush1.msk.msra.mxu1 %vm9726_vm15, %v7867_v0 }
0x115b   : > { %v7849_v14 = vpop.permute.xlu1 %7848  ;;  %8036 = vmatprep.subr.mxu1 %v7870_v54  ;;  %v7843_v19 = vpop.permute.xlu0 %7842 }
0x115c   : > { %v7851_v57 = vsel %vm13824_vm0, %v7847_v11, %v7849_v14  ;;  %8925 = vmatpush1.msk.msra.mxu1 %vm9726_vm15, %v7863_v25  ;;  %v7850_v27 = vsel %vm13826_vm7, %v7843_v19, %v7845_v12  ;;  %v7856_v34 = vsel %vm13827_vm8, 0.0, %v7843_v19  ;;  %vm13834_vm0 = vmmov %vm13833_vm10  ;;  %vm13836_vm7 = vcmask 924672  }
0x115d   : > { %8926 = vmatprep.subr.msk.mxu1 %vm9517_vm2, %v7851_v57  ;;  %vm13835_vm3 = vmmov %vm13834_vm0 }
0x115e   : > { %8927 = vmatpush1.msk.msra.mxu1 %vm9522_vm4, %v7857_v7  ;;  %vm13837_vm8 = vmmov %vm13836_vm7 }
0x115f   : > { %v7979_v42 = vpop.permute.xlu1 %7978  ;;  %8928 = vmatprep.subr.msk.mxu1 %vm9517_vm2, %v7850_v27  ;;  %v7981_v52 = vpop.permute.xlu0 %7980 }
0x1160   : > { %v7983_v13 = vsel %vm13828_vm9, %v7979_v42, %v7981_v52  ;;  %v7989_v39 = vsel %vm13829_vm13, %v7981_v52, 0.0  ;;  %8929 = vmatpush1.msk.msra.mxu1 %vm9522_vm4, %v7856_v34  ;;  %vm13838_vm9 = vmmov %vm13836_vm7 }
0x1161   : > { %8930 = vmatprep.subr.msk.mxu1 %vm9532_vm6, %v7989_v39  ;;  %vm13839_vm13 = vmmov %vm13836_vm7 }
0x1162   : > { %8931 = vmatpush2.msk.msra.mxu1 %vm9527_vm5, %v7983_v13 }
0x1163   : > { %v7975_v55 = vpop.permute.xlu1 %7974  ;;  %v7977_v4 = vpop.permute.xlu0 %7976 }
0x1164   : > { %v7982_v37 = vsel %vm13830_vm12, %v7975_v55, %v7977_v4  ;;  %v7988_v32 = vsel %vm13831_vm11, %v7977_v4, 0.0  ;;  %vm13840_vm12 = vcmask 1039360  }
0x1165   : > { %8932 = vmatprep.subr.msk.mxu1 %vm9532_vm6, %v7988_v32  ;;  %vm13841_vm11 = vmmov %vm13840_vm12 }
0x1166   : > { %8933 = vmatpush2.msk.msra.mxu1 %vm9527_vm5, %v7982_v37 }
0x1167   : > { %8075 = vmatmul.mubr.f32.vlgmr.msra.gmra.mxu1 %v7832_v9 }
0x1168   : > { %8935 = vmatprep.mubr.msk.f32.mxu1 %vm1018_vm1, %v7835_v2 }
0x116b   : > { %8081 = vmatmul.mubr.f32.gmra.mxu1 %v7834_v23 }
0x1170   : > { %v7997_v29 = vpop.permute.xlu1 %7996  ;;  %v8002_v38 = vpop.permute.xlu0 %8001 }
0x1227   : > { %v8076_v40 = vpop.f32.mrf.mxu1 }
0x1228   : > { %v8077_v16 = vadd.f32 %v8076_v40, %v7997_v29 }
0x1229   : > { %v8078_v47 = vpop.f32.mrf.mxu1 }
0x122a   : > { %v13253_v58 = vmax.f32 %v8077_v16, 0.0  ;;  %v8079_v43 = vadd.f32 %v8078_v47, %v7997_v29 }
0x122b   : > { %v8082_v28 = vpop.f32.mrf.mxu1 }
0x122c   : > { %8197 = vrot.lane.b32.xlu1 %v13253_v58, %s13569_s10  ;;  %8217 = vrot.lane.b32.xlu0 %v13253_v58, %s13742_s1  ;;  %v13263_v59 = vmax.f32 %v8079_v43, 0.0  ;;  %v8083_v41 = vadd.f32 %v8082_v28, %v8002_v38 }
0x122d   : > { %v8084_v5 = vpop.f32.mrf.mxu1 }
0x122e   : > { %v13273_v17 = vmax.f32 %v8083_v41, 0.0  ;;  %v8085_v36 = vadd.f32 %v8084_v5, %v8002_v38 }
0x1230   : > { %8177 = vrot.lane.b32.xlu1 %v13253_v58, %s13711_s20  ;;  %8157 = vrot.lane.b32.xlu0 %v13253_v58, %s13712_s11  ;;  %v13283_v1 = vmax.f32 %v8085_v36, 0.0 }
0x1234   : > { %8219 = vrot.lane.b32.xlu1 %v13263_v59, %s13742_s1  ;;  %8199 = vrot.lane.b32.xlu0 %v13263_v59, %s13569_s10 }
0x1238   : > { %8159 = vrot.lane.b32.xlu1 %v13263_v59, %s13712_s11  ;;  %8179 = vrot.lane.b32.xlu0 %v13263_v59, %s13711_s20 }
0x123c   : > { %8201 = vrot.lane.b32.xlu1 %v13273_v17, %s13569_s10  ;;  %8221 = vrot.lane.b32.xlu0 %v13273_v17, %s13742_s1 }
0x1240   : > { %8181 = vrot.lane.b32.xlu1 %v13273_v17, %s13711_s20  ;;  %8161 = vrot.lane.b32.xlu0 %v13273_v17, %s13712_s11 }
0x1244   : > { %8223 = vrot.lane.b32.xlu1 %v13283_v1, %s13742_s1  ;;  %8141 = vrot.lane.b32.xlu0 %v13273_v17, %s13708_s3 }
0x1248   : > { %8139 = vrot.lane.b32.xlu1 %v13263_v59, %s13708_s3  ;;  %8203 = vrot.lane.b32.xlu0 %v13283_v1, %s13569_s10 }
0x124c   : > { %8123 = vrot.lane.b32.xlu1 %v13263_v59, %s13710_s2  ;;  %8183 = vrot.lane.b32.xlu0 %v13283_v1, %s13711_s20 }
0x1250   : > { %8103 = vrot.lane.b32.xlu1 %v13263_v59, %s13579_s0  ;;  %8137 = vrot.lane.b32.xlu0 %v13253_v58, %s13708_s3 }
0x1254   : > { %8163 = vrot.lane.b32.xlu1 %v13283_v1, %s13712_s11  ;;  %8125 = vrot.lane.b32.xlu0 %v13273_v17, %s13710_s2 }
0x1258   : > { %8143 = vrot.lane.b32.xlu1 %v13283_v1, %s13708_s3  ;;  %8121 = vrot.lane.b32.xlu0 %v13253_v58, %s13710_s2  ;;  %s8971_s3 = sshll.u32 %s13861_s23, 5 }
0x1259   : > { %s960_s20 = scalar_lea.vmem %s9471_s22, %s8971_s3 }
0x125c   : > { %8127 = vrot.lane.b32.xlu1 %v13283_v1, %s13710_s2  ;;  %8105 = vrot.lane.b32.xlu0 %v13273_v17, %s13579_s0 }
0x1260   : > { %8107 = vrot.lane.b32.xlu1 %v13283_v1, %s13579_s0  ;;  %8101 = vrot.lane.b32.xlu0 %v13253_v58, %s13579_s0 }
0x1264   : > { %8237 = vrot.lane.b32.xlu1 %v13273_v17, %s13577_s16  ;;  %8239 = vrot.lane.b32.xlu0 %v13283_v1, %s13577_s16 }
0x1268   : > { %8233 = vrot.lane.b32.xlu1 %v13253_v58, %s13577_s16  ;;  %8235 = vrot.lane.b32.xlu0 %v13263_v59, %s13577_s16 }
0x126c   : > { %8260 = vperm.xlu1 %9228, %v8096_v10   ;;  %8255 = vperm.xlu0 %9227, %v8095_v35  }
0x129e   : > { %v8198_v48 = vpop.permute.xlu1 %8197  ;;  %v8218_v21 = vpop.permute.xlu0 %8217 }
0x12a2   : > { %v8178_v6 = vpop.permute.xlu1 %8177  ;;  %v8158_v12 = vpop.permute.xlu0 %8157 }
0x12a6   : > { %v8220_v62 = vpop.permute.xlu1 %8219  ;;  %v8200_v50 = vpop.permute.xlu0 %8199 }
0x12a7   : > { %v8225_v61 = vsel %vm13834_vm0, %v8218_v21, %v8220_v62  ;;  %v8211_v54 = vsel %vm13838_vm9, %v8200_v50, 0.0  ;;  %v8205_v14 = vsel %vm13839_vm13, %v8198_v48, %v8200_v50  ;;  %vm13844_vm0 = vcmask 7168  }
0x12a8   : > { %vm13848_vm9 = vcmask 121856  }
0x12a9   : > { %vm13849_vm13 = vmmov %vm13848_vm9 }
0x12aa   : > { %v8160_v0 = vpop.permute.xlu1 %8159  ;;  %v8180_v45 = vpop.permute.xlu0 %8179 }
0x12ae   : > { %v8202_v33 = vpop.permute.xlu1 %8201  ;;  %v8222_v51 = vpop.permute.xlu0 %8221 }
0x12b2   : > { %v8182_v56 = vpop.permute.xlu1 %8181  ;;  %v8162_v15 = vpop.permute.xlu0 %8161 }
0x12b6   : > { %v8224_v25 = vpop.permute.xlu1 %8223  ;;  %v8142_v46 = vpop.permute.xlu0 %8141 }
0x12b7   : > { %v8226_v53 = vsel %vm13832_vm14, %v8222_v51, %v8224_v25  ;;  %8936 = vmatprep.subr.msk.mxu0 %vm13833_vm10, %v8224_v25  ;;  %vm13842_vm14 = vmmov %vm13841_vm11  ;;  %v8152_v40 = vsel %vm13849_vm13, 0.0, %v8142_v46 }
0x12b8   : > { %8270 = vmatpush1.msra.mxu0 %v8226_v53  ;;  %v8191_v34 = vsel %vm13842_vm14, %v8180_v45, 0.0  ;;  %vm13843_vm10 = vmmov %vm13841_vm11  ;;  %vm13852_vm14 = vcmask 138240  }
0x12b9   : > { %8937 = vmatprep.subr.msk.mxu0 %vm13835_vm3, %v8220_v62  ;;  %v8185_v42 = vsel %vm13843_vm10, %v8178_v6, %v8180_v45  ;;  %vm13845_vm3 = vmmov %vm13844_vm0  ;;  %v8093_v62 = vld [vmem:[%s9461_s7 + $0x10] sm:$0xff] }
0x12ba   : > { %v8140_v49 = vpop.permute.xlu1 %8139  ;;  %8272 = vmatpush1.msra.mxu0 %v8225_v61  ;;  %v8204_v31 = vpop.permute.xlu0 %8203  ;;  %v8172_v37 = vsel %vm13845_vm3, 0.0, %v8162_v15  ;;  %vm13853_vm10 = vmmov %vm13852_vm14 }
0x12bb   : > { %v8206_v11 = vsel %vm13836_vm7, %v8202_v33, %v8204_v31  ;;  %v8212_v3 = vsel %vm13837_vm8, %v8204_v31, 0.0  ;;  %vm13846_vm7 = vmmov %vm13844_vm0 }
0x12bc   : > { %8938 = vmatprep.subr.msk.mxu0 %vm9517_vm2, %v8212_v3  ;;  %v8165_v32 = vsel %vm13846_vm7, %v8158_v12, %v8160_v0  ;;  %vm13847_vm8 = vmmov %vm13844_vm0 }
0x12bd   : > { %8939 = vmatpush1.msk.msra.mxu0 %vm9522_vm4, %v8206_v11  ;;  %v8171_v9 = vsel %vm13847_vm8, 0.0, %v8158_v12  ;;  %v8091_v12 = vld [vmem:[%s9461_s7] sm:$0xff] }
0x12be   : > { %v8124_v19 = vpop.permute.xlu1 %8123  ;;  %8940 = vmatprep.subr.msk.mxu0 %vm9517_vm2, %v8211_v54  ;;  %v8184_v57 = vpop.permute.xlu0 %8183 }
0x12bf   : > { %v8186_v7 = vsel %vm13840_vm12, %v8182_v56, %v8184_v57  ;;  %v8192_v27 = vsel %vm13841_vm11, %v8184_v57, 0.0  ;;  %8941 = vmatpush1.msk.msra.mxu0 %vm9522_vm4, %v8205_v14  ;;  %vm13850_vm12 = vmmov %vm13848_vm9 }
0x12c0   : > { %8942 = vmatprep.subr.msk.mxu0 %vm9532_vm6, %v8192_v27  ;;  %vm13851_vm11 = vmmov %vm13848_vm9 }
0x12c1   : > { %8943 = vmatpush1.msk.msra.mxu0 %vm9527_vm5, %v8186_v7 }
0x12c2   : > { %v8104_v52 = vpop.permute.xlu1 %8103  ;;  %8944 = vmatprep.subr.msk.mxu0 %vm9532_vm6, %v8191_v34  ;;  %v8138_v13 = vpop.permute.xlu0 %8137 }
0x12c3   : > { %8945 = vmatpush1.msk.msra.mxu0 %vm9527_vm5, %v8185_v42  ;;  %v8145_v16 = vsel %vm13850_vm12, %v8138_v13, %v8140_v49 }
0x12c4   : > { %8281 = vmatprep.subr.mxu0 %v13283_v1 }
0x12c5   : > { %8282 = vmatpush1.msra.mxu0 %v13273_v17 }
0x12c6   : > { %v8164_v39 = vpop.permute.xlu1 %8163  ;;  %8283 = vmatprep.subr.mxu0 %v13263_v59  ;;  %v8126_v55 = vpop.permute.xlu0 %8125 }
0x12c7   : > { %v8166_v4 = vsel %vm13844_vm0, %v8162_v15, %v8164_v39  ;;  %8284 = vmatpush1.msra.mxu0 %v13253_v58  ;;  %v8151_v58 = vsel %vm13851_vm11, 0.0, %v8138_v13  ;;  %vm13854_vm0 = vmmov %vm13853_vm10 }
0x12c8   : > { %8946 = vmatprep.subr.msk.mxu0 %vm9517_vm2, %v8166_v4  ;;  %vm13855_vm3 = vmmov %vm13854_vm0 }
0x12c9   : > { %8947 = vmatpush1.msk.msra.mxu0 %vm9522_vm4, %v8172_v37 }
0x12ca   : > { %v8144_v2 = vpop.permute.xlu1 %8143  ;;  %8948 = vmatprep.subr.msk.mxu0 %vm9517_vm2, %v8165_v32  ;;  %v8122_v23 = vpop.permute.xlu0 %8121 }
0x12cb   : > { %v8146_v29 = vsel %vm13848_vm9, %v8142_v46, %v8144_v2  ;;  %8949 = vmatpush1.msk.msra.mxu0 %vm9522_vm4, %v8171_v9  ;;  %v8129_v28 = vsel %vm1018_vm1, %v8122_v23, %v8124_v19 }
0x12cc   : > { %8950 = vmatprep.subr.msk.mxu0 %vm9532_vm6, %v8146_v29 }
0x12cd   : > { %8951 = vmatpush1.msk.msra.mxu0 %vm9527_vm5, %v8152_v40 }
0x12ce   : > { %v8128_v47 = vpop.permute.xlu1 %8127  ;;  %8952 = vmatprep.subr.msk.mxu0 %vm9532_vm6, %v8145_v16  ;;  %v8106_v43 = vpop.permute.xlu0 %8105 }
0x12cf   : > { %8953 = vmatpush1.msk.msra.mxu0 %vm9527_vm5, %v8151_v58  ;;  %v8130_v59 = vsel %vm1018_vm1, %v8126_v55, %v8128_v47  ;;  %v8116_v5 = vsel %vm13853_vm10, 0.0, %v8106_v43 }
0x12d0   : > { %8293 = vmatprep.subr.mxu0 %v8130_v59 }
0x12d1   : > { %8955 = vmatpush1.msk.msra.mxu0 %vm9726_vm15, %v8126_v55 }
0x12d2   : > { %v8108_v38 = vpop.permute.xlu1 %8107  ;;  %8295 = vmatprep.subr.mxu0 %v8129_v28  ;;  %v8102_v41 = vpop.permute.xlu0 %8101 }
0x12d3   : > { %v8110_v17 = vsel %vm13852_vm14, %v8106_v43, %v8108_v38  ;;  %8957 = vmatpush1.msk.msra.mxu0 %vm9726_vm15, %v8122_v23  ;;  %v8109_v36 = vsel %vm13854_vm0, %v8102_v41, %v8104_v52  ;;  %v8115_v1 = vsel %vm13855_vm3, 0.0, %v8102_v41  ;;  %vm13856_vm15 = vcmask 908288  }
0x12d4   : > { %8958 = vmatprep.subr.msk.mxu0 %vm9517_vm2, %v8110_v17  ;;  %vm13857_vm7 = vmmov %vm13856_vm15 }
0x12d5   : > { %8959 = vmatpush1.msk.msra.mxu0 %vm9522_vm4, %v8116_v5 }
0x12d6   : > { %v8238_v60 = vpop.permute.xlu1 %8237  ;;  %8960 = vmatprep.subr.msk.mxu0 %vm9517_vm2, %v8109_v36  ;;  %v8240_v30 = vpop.permute.xlu0 %8239  ;;  %vm13858_vm2 = vmmov %vm13857_vm7 }
0x12d7   : > { %v8242_v10 = vsel %vm13856_vm15, %v8238_v60, %v8240_v30  ;;  %v8248_v35 = vsel %vm13857_vm7, %v8240_v30, 0.0  ;;  %8961 = vmatpush1.msk.msra.mxu0 %vm9522_vm4, %v8115_v1  ;;  %vm13859_vm8 = vmmov %vm13858_vm2 }
0x12d8   : > { %8962 = vmatprep.subr.msk.mxu0 %vm9532_vm6, %v8248_v35 }
0x12d9   : > { %8963 = vmatpush2.msk.msra.mxu0 %vm9527_vm5, %v8242_v10 }
0x12da   : > { %v8234_v48 = vpop.permute.xlu1 %8233  ;;  %v8236_v18 = vpop.permute.xlu0 %8235 }
0x12db   : > { %v8241_v21 = vsel %vm13858_vm2, %v8234_v48, %v8236_v18  ;;  %v8247_v6 = vsel %vm13859_vm8, %v8236_v18, 0.0 }
0x12dc   : > { %8964 = vmatprep.subr.msk.mxu0 %vm9532_vm6, %v8247_v6 }
0x12dd   : > { %8965 = vmatpush2.msk.msra.mxu0 %vm9527_vm5, %v8241_v21 }
0x12de   : > { %8334 = vmatmul.mubr.f32.vlgmr.msra.gmra.mxu0 %v8091_v12 }
0x12df   : > { %8967 = vmatprep.mubr.msk.f32.mxu0 %vm1018_vm1, %v8094_v20 }
0x12e2   : > { %8340 = vmatmul.mubr.f32.gmra.mxu0 %v8093_v62 }
0x12e7   : > { %v8256_v50 = vpop.permute.xlu0 %8255  ;;  %v8261_v24 = vpop.permute.xlu1 %8260 }
0x139e   : > { %v8335_v0 = vpop.f32.mrf.mxu0 }
0x139f   : > { %v8336_v45 = vadd.f32 %v8335_v0, %v8256_v50 }
0x13a0   : > { %v8337_v33 = vpop.f32.mrf.mxu0 }
0x13a1   : > { %v8346_v51 = vadd.f32 %v8336_v45, %v13084_v26  ;;  %v8338_v56 = vadd.f32 %v8337_v33, %v8256_v50 }
0x13a2   : > { %v8341_v15 = vpop.f32.mrf.mxu0 }
0x13a3   : > { %8350 = vst [vmem:[%s960_s20] sm:$0xff] %v8346_v51  ;;  %v8347_v22 = vadd.f32 %v8338_v56, %v13095_v44  ;;  %v8342_v25 = vadd.f32 %v8341_v15, %v8261_v24 }
0x13a4   : > { %v8343_v46 = vpop.f32.mrf.mxu0 }
0x13a5   : > { %8351 = vst [vmem:[%s960_s20 + $0x8] sm:$0xff] %v8347_v22  ;;  %v8348_v53 = vadd.f32 %v8342_v25, %v13106_v63  ;;  %v8344_v61 = vadd.f32 %v8343_v46, %v8261_v24 }
0x13a7   : > { %8352 = vst [vmem:[%s960_s20 + $0x10] sm:$0xff] %v8348_v53  ;;  %v8349_v49 = vadd.f32 %v8344_v61, %v13117_v8 }
0x13a9   : > { %8353 = vst [vmem:[%s960_s20 + $0x18] sm:$0xff] %v8349_v49 }
0x13aa PF: > { %s75_s27 = sadd.s32 1, %s9253_s27  }
0x13ab   : > { %p72_p4 = scmp.ge.s32.totalorder %s75_s27, 4  }
0x13ad   :  { %74 = sbr.rel (!%p72_p4) target bundleno = 51 (0x33), region = 205 }

</bundles_post_ra>
